<compile_context>
chip_gen: v6e
topology: v6e:2x2x1
jax: 0.10.0
libtpu: 0.0.40
codegen_flags: <defaults>
</compile_context>

<pallas_src>
import functools

import jax
import jax.numpy as jnp
from jax.experimental import pallas as pl
from jax.experimental.pallas import tpu as pltpu


def _round_up(v, m):
    return ((v + m - 1) // m) * m


def _srnet_fused_kernel(xcol_ref, w1_ref, b1_ref, w2_ref, b2_ref, w3t_ref,
                        b3_ref, o_ref, h2_scr, *, H, W, halo):
    """Fused conv1(9x9)+ReLU -> conv2(1x1)+ReLU -> conv3(5x5)+ReLU+clamp.

    xcol_ref : (1, H1*W1, 243)  im2col'd padded input for conv1 (H1,W1 = H,W+halo, 8-aligned)
    w1_ref   : (243, 64)   w2_ref : (64, 32)   w3t_ref : (3, 800)  (transposed)
    b1_ref   : (1, 64)     b2_ref : (1, 32)    b3_ref  : (3, 1)
    o_ref    : (1, 3, H*W)  channels-major, lane-dense output (already NCHW order)
    h2_scr   : (H1, W1, 32) VMEM scratch holding the (ring-zeroed) conv2 output
    """
    f32 = jnp.float32
    H1, W1, C2 = h2_scr.shape
    k3 = 2 * halo + 1

    # ---- conv1 (9x9, pad 4): single im2col matmul on the MXU, K = 243 ------
    h1 = jnp.dot(xcol_ref[0], w1_ref[...], preferred_element_type=f32)
    h1 = jnp.maximum(h1 + b1_ref[...], 0.0)                      # (H1*W1, 64) f32

    # ---- conv2 (1x1): plain matmul, K = 64 ---------------------------------
    h2 = jnp.dot(h1.astype(w2_ref.dtype), w2_ref[...],
                 preferred_element_type=f32)
    h2 = jnp.maximum(h2 + b2_ref[...], 0.0)                      # (H1*W1, 32) f32

    # ---- emulate PyTorch's zero padding of h2 for conv3 --------------------
    # Positions outside the original HxW image (the halo ring we compute so the
    # layers stay fused) must be exactly zero, like Conv2d(padding=2) would see.
    h2_3d = h2.reshape(H1, W1, C2)
    ry = jax.lax.broadcasted_iota(jnp.int32, (H1, W1, C2), 0)
    rx = jax.lax.broadcasted_iota(jnp.int32, (H1, W1, C2), 1)
    inside = (ry >= halo) & (ry < halo + H) & (rx >= halo) & (rx < halo + W)
    h2_scr[...] = jnp.where(inside, h2_3d, 0.0).astype(h2_scr.dtype)

    # ---- conv3 (5x5, pad 2): build the (H*W, 800) patch once in VMEM and do
    #      one K = 800 matmul (instead of 25 K=32 dots) -----------------------
    taps = []
    for i in range(k3):
        row = jnp.concatenate(
            [h2_scr[i:i + H, j:j + W, :] for j in range(k3)], axis=-1)
        taps.append(row)                                          # (H, W, k3*C2)
    patch = jnp.concatenate(taps, axis=-1)                        # (H, W, k3*k3*C2)
    patch = patch.reshape(H * W, k3 * k3 * C2)

    # w3 is passed transposed (3, 800); contract both operands over their last
    # dim (the q @ k.T MXU pattern) so the result is channels-major (3, H*W)
    # and the store is lane-dense -- no in-kernel transpose required.
    out_t = jax.lax.dot_general(
        w3t_ref[...], patch, dimension_numbers=(((1,), (1,)), ((), ())),
        preferred_element_type=f32)                               # (3, H*W)
    out_t = jnp.maximum(out_t + b3_ref[...], 0.0)                 # ReLU
    out_t = jnp.clip(out_t, 1e-12, 1.0 - 1e-12)                   # clamp
    o_ref[0] = out_t.astype(o_ref.dtype)


def _im2col_nhwc(xp, kh, kw, out_h, out_w):
    """xp: (N, Hp, Wp, C) -> (N, out_h*out_w, kh*kw*C).

    Patch-channel ordering is (i, j, c) with c fastest, matching a weight
    flattened from (kh, kw, Cin, Cout).  (Plain XLA glue; the conv math itself
    runs inside the Pallas kernel as full-K MXU matmuls.)
    """
    n, _, _, c = xp.shape
    cols = [xp[:, i:i + out_h, j:j + out_w, :]
            for i in range(kh) for j in range(kw)]
    return jnp.concatenate(cols, axis=-1).reshape(n, out_h * out_w, kh * kw * c)


@functools.partial(jax.jit, static_argnames=("matmul_dtype",))
def srnet_forward(x_nchw, params, matmul_dtype=jnp.bfloat16):
    (w1, b1), (w2, b2), (w3, b3) = params
    N, _, H, W = x_nchw.shape

    K1_TAP, K3_TAP = 9, 5
    pad1 = K1_TAP // 2                       # 4
    halo = K3_TAP // 2                       # 2
    # Working grid = original image + conv3 halo, rounded up to the sublane
    # tile (8) so the in-kernel reshapes stay tile-aligned.
    H1 = _round_up(H + 2 * halo, 8)
    W1 = _round_up(W + 2 * halo, 8)
    Hp, Wp = H1 + 2 * pad1, W1 + 2 * pad1    # padded-input extent

    C1, C2, C3 = w1.shape[1], w2.shape[1], w3.shape[1]
    KC1, KC3 = w1.shape[0], w3.shape[0]      # 243, 800

    # NCHW -> NHWC, pad once for the combined receptive field (image starts at
    # offset pad1+halo = 6), then im2col the 3-channel input for conv1.
    x = jnp.transpose(x_nchw, (0, 2, 3, 1)).astype(jnp.float32)
    off = pad1 + halo
    xp = jnp.pad(x, ((0, 0), (off, Hp - H - off), (off, Wp - W - off), (0, 0)))
    xcol = _im2col_nhwc(xp, K1_TAP, K1_TAP, H1, W1).astype(matmul_dtype)

    # bf16 matmul operands, f32 biases.  w3 is handed to the kernel transposed.
    w1m = w1.astype(matmul_dtype)
    w2m = w2.astype(matmul_dtype)
    w3tm = w3.T.astype(matmul_dtype)                    # (3, 800)
    b1r = b1.reshape(1, C1).astype(jnp.float32)
    b2r = b2.reshape(1, C2).astype(jnp.float32)
    b3r = b3.reshape(C3, 1).astype(jnp.float32)

    # Explicit VMEM budget: double-buffered I/O + weights + scratch + values.
    isz = jnp.dtype(matmul_dtype).itemsize
    block_in = H1 * W1 * KC1 * isz
    block_out = C3 * H * W * 4
    weights = (KC1 * C1 + C1 * C2 + KC3 * C3) * isz + (C1 + C2 + C3) * 4
    scratch = H1 * W1 * C2 * isz
    values = H1 * W1 * (C1 + 2 * C2) * 4 + H * W * KC3 * isz + H1 * W1 * C2 * 8
    vmem_limit = int(min(32 * 2 ** 20,
                         max(16 * 2 ** 20,
                             2 * (block_in + block_out + weights)
                             + scratch + 2 * values)))

    kernel = functools.partial(_srnet_fused_kernel, H=H, W=W, halo=halo)

    out_flat = pl.pallas_call(
        kernel,
        out_shape=jax.ShapeDtypeStruct((N, C3, H * W), jnp.float32),
        grid_spec=pltpu.PrefetchScalarGridSpec(
            num_scalar_prefetch=0,
            grid=(N,),
            in_specs=[
                pl.BlockSpec((1, H1 * W1, KC1), lambda n: (n, 0, 0)),
                pl.BlockSpec((KC1, C1), lambda n: (0, 0)),
                pl.BlockSpec((1, C1), lambda n: (0, 0)),
                pl.BlockSpec((C1, C2), lambda n: (0, 0)),
                pl.BlockSpec((1, C2), lambda n: (0, 0)),
                pl.BlockSpec((C3, KC3), lambda n: (0, 0)),
                pl.BlockSpec((C3, 1), lambda n: (0, 0)),
            ],
            out_specs=pl.BlockSpec((1, C3, H * W), lambda n: (n, 0, 0)),
            scratch_shapes=[pltpu.VMEM((H1, W1, C2), matmul_dtype)],
        ),
        compiler_params=pltpu.CompilerParams(
            dimension_semantics=("parallel",),
            vmem_limit_bytes=vmem_limit),
    )(xcol, w1m, b1r, w2m, b2r, w3tm, b3r)

    # (N, 3, H*W) is already channel-major (NCHW); just split the spatial dim.
    return out_flat.reshape(N, C3, H, W)


def init_srnet_params(key):
    """Synthetic SRNET parameters.

    Weights are stored as flat (kh*kw*Cin, Cout) matrices with tap order
    (i, j, c), c fastest.  To import real PyTorch weights (Cout, Cin, kh, kw),
    permute to (kh, kw, Cin, Cout) first and then reshape the same way.
    """
    ks = jax.random.split(key, 6)

    def conv_init(kw_key, kb_key, kh, kw, cin, cout):
        fan_in = cin * kh * kw
        bound = 1.0 / (fan_in ** 0.5)
        w = jax.random.uniform(kw_key, (kh, kw, cin, cout),
                               minval=-bound, maxval=bound, dtype=jnp.float32)
        b = jax.random.uniform(kb_key, (cout,),
                               minval=-bound, maxval=bound, dtype=jnp.float32)
        return w.reshape(kh * kw * cin, cout), b

    w1, b1 = conv_init(ks[0], ks[1], 9, 9, 3, 64)
    w2, b2 = conv_init(ks[2], ks[3], 1, 1, 64, 32)
    w3, b3 = conv_init(ks[4], ks[5], 5, 5, 32, 3)
    return (w1, b1), (w2, b2), (w3, b3)


def srnet_reference(x_nchw, params):
    """Pure-JAX reference (lax.conv) used only to validate the kernel."""
    def conv_relu(x, w_flat, b, k, pad):
        cin, cout = x.shape[1], b.shape[0]
        w = w_flat.reshape(k, k, cin, cout)          # HWIO, same order as kernel
        y = jax.lax.conv_general_dilated(
            x, w, window_strides=(1, 1), padding=[(pad, pad), (pad, pad)],
            dimension_numbers=("NCHW", "HWIO", "NCHW"),
            precision=jax.lax.Precision.HIGHEST)
        return jax.nn.relu(y + b.reshape(1, cout, 1, 1))

    (w1, b1), (w2, b2), (w3, b3) = params
    h = conv_relu(x_nchw, w1, b1, 9, 4)
    h = conv_relu(h, w2, b2, 1, 0)
    h = conv_relu(h, w3, b3, 5, 2)
    return jnp.clip(h, 1e-12, 1.0 - 1e-12)


if __name__ == "__main__":
    key = jax.random.PRNGKey(0)
    k_in, k_par = jax.random.split(key)

    # Small SRNET-consistent shapes: batch=2, 3 channels, 16x16 spatial.
    x = jax.random.uniform(k_in, (2, 3, 16, 16), dtype=jnp.float32)
    params = init_srnet_params(k_par)

    # Performance configuration: bf16 MXU matmuls, f32 accumulation.
    out = srnet_forward(x, params)
    out = jax.block_until_ready(out)
    assert out.shape == (2, 3, 16, 16), out.shape
    assert bool(jnp.all(out >= 1e-12)) and bool(jnp.all(out <= 1.0))

    # Structural correctness check: same kernel with f32 matmuls vs lax.conv.
    out_f32 = jax.block_until_ready(
        srnet_forward(x, params, matmul_dtype=jnp.float32))
    ref = srnet_reference(x, params)
    max_err = float(jnp.max(jnp.abs(out_f32 - ref)))
    assert max_err < 1e-2, f"mismatch vs reference: {max_err}"

    print("KERNEL_OK")
</pallas_src>

<mosaic_0001>
module attributes {stable_mosaic.version = 11 : i64} {
  func.func @_srnet_fused_kernel(%arg0: i32, %arg1: memref<1x576x243xbf16, #tpu.memory_space<vmem>>, %arg2: memref<243x64xbf16, #tpu.memory_space<vmem>>, %arg3: memref<1x64xf32, #tpu.memory_space<vmem>>, %arg4: memref<64x32xbf16, #tpu.memory_space<vmem>>, %arg5: memref<1x32xf32, #tpu.memory_space<vmem>>, %arg6: memref<3x800xbf16, #tpu.memory_space<vmem>>, %arg7: memref<3x1xf32, #tpu.memory_space<vmem>>, %arg8: memref<1x3x256xf32, #tpu.memory_space<vmem>>, %arg9: memref<24x24x32xbf16, #tpu.memory_space<vmem>>) attributes {dimension_semantics = [#tpu.dimension_semantics<parallel>], iteration_bounds = array<i64: 2>, scalar_prefetch = 0 : i64, scratch_operands = 1 : i64, tpu.core_type = #tpu.core_type<tc>, window_params = [{transform_indices = @transform_0, window_bounds = array<i64: 1, 576, 243>}, {pipeline_mode = #tpu.pipeline_mode<synchronous>, transform_indices = @transform_1, window_bounds = array<i64: 243, 64>}, {pipeline_mode = #tpu.pipeline_mode<synchronous>, transform_indices = @transform_2, window_bounds = array<i64: 1, 64>}, {pipeline_mode = #tpu.pipeline_mode<synchronous>, transform_indices = @transform_3, window_bounds = array<i64: 64, 32>}, {pipeline_mode = #tpu.pipeline_mode<synchronous>, transform_indices = @transform_4, window_bounds = array<i64: 1, 32>}, {pipeline_mode = #tpu.pipeline_mode<synchronous>, transform_indices = @transform_5, window_bounds = array<i64: 3, 800>}, {pipeline_mode = #tpu.pipeline_mode<synchronous>, transform_indices = @transform_6, window_bounds = array<i64: 3, 1>}, {transform_indices = @transform_7, window_bounds = array<i64: 1, 3, 256>}]} {
    %c0 = arith.constant 0 : index
    %c0_0 = arith.constant 0 : index
    %c0_1 = arith.constant 0 : index
    %0 = vector.load %arg1[%c0, %c0_0, %c0_1] : memref<1x576x243xbf16, #tpu.memory_space<vmem>>, vector<1x576x243xbf16>
    %1 = vector.shape_cast %0 : vector<1x576x243xbf16> to vector<576x243xbf16>
    %c0_2 = arith.constant 0 : index
    %c0_3 = arith.constant 0 : index
    %2 = vector.load %arg2[%c0_2, %c0_3] : memref<243x64xbf16, #tpu.memory_space<vmem>>, vector<243x64xbf16>
    %cst = arith.constant dense<0.000000e+00> : vector<576x64xf32>
    %3 = tpu.matmul %1, %2, %cst {dimension_numbers = #tpu.dot_dimension_numbers<[1], [0], [0], [1], [0, 0, 1, 1], [], []>} : vector<576x243xbf16>, vector<243x64xbf16>, vector<576x64xf32> -> vector<576x64xf32>
    %c0_4 = arith.constant 0 : index
    %c0_5 = arith.constant 0 : index
    %4 = vector.load %arg3[%c0_4, %c0_5] : memref<1x64xf32, #tpu.memory_space<vmem>>, vector<1x64xf32>
    %5 = vector.broadcast %4 : vector<1x64xf32> to vector<576x64xf32>
    %6 = arith.addf %3, %5 : vector<576x64xf32>
    %cst_6 = arith.constant 0.000000e+00 : f32
    %7 = vector.broadcast %cst_6 : f32 to vector<576x64xf32>
    %8 = arith.maximumf %6, %7 : vector<576x64xf32>
    %9 = arith.truncf %8 : vector<576x64xf32> to vector<576x64xbf16>
    %c0_7 = arith.constant 0 : index
    %c0_8 = arith.constant 0 : index
    %10 = vector.load %arg4[%c0_7, %c0_8] : memref<64x32xbf16, #tpu.memory_space<vmem>>, vector<64x32xbf16>
    %cst_9 = arith.constant dense<0.000000e+00> : vector<576x32xf32>
    %11 = tpu.matmul %9, %10, %cst_9 {dimension_numbers = #tpu.dot_dimension_numbers<[1], [0], [0], [1], [0, 0, 1, 1], [], []>} : vector<576x64xbf16>, vector<64x32xbf16>, vector<576x32xf32> -> vector<576x32xf32>
    %c0_10 = arith.constant 0 : index
    %c0_11 = arith.constant 0 : index
    %12 = vector.load %arg5[%c0_10, %c0_11] : memref<1x32xf32, #tpu.memory_space<vmem>>, vector<1x32xf32>
    %13 = vector.broadcast %12 : vector<1x32xf32> to vector<576x32xf32>
    %14 = arith.addf %11, %13 : vector<576x32xf32>
    %cst_12 = arith.constant 0.000000e+00 : f32
    %15 = vector.broadcast %cst_12 : f32 to vector<576x32xf32>
    %16 = arith.maximumf %14, %15 : vector<576x32xf32>
    %17 = vector.shape_cast %16 : vector<576x32xf32> to vector<24x24x32xf32>
    %18 = tpu.iota {dimensions = array<i32: 0>} : vector<24x24x32xi32>
    %19 = tpu.iota {dimensions = array<i32: 1>} : vector<24x24x32xi32>
    %c2_i32 = arith.constant 2 : i32
    %20 = vector.broadcast %c2_i32 : i32 to vector<24x24x32xi32>
    %21 = arith.cmpi sge, %18, %20 : vector<24x24x32xi32>
    %c18_i32 = arith.constant 18 : i32
    %22 = vector.broadcast %c18_i32 : i32 to vector<24x24x32xi32>
    %23 = arith.cmpi slt, %18, %22 : vector<24x24x32xi32>
    %24 = arith.andi %21, %23 : vector<24x24x32xi1>
    %c2_i32_13 = arith.constant 2 : i32
    %25 = vector.broadcast %c2_i32_13 : i32 to vector<24x24x32xi32>
    %26 = arith.cmpi sge, %19, %25 : vector<24x24x32xi32>
    %27 = arith.andi %24, %26 : vector<24x24x32xi1>
    %c18_i32_14 = arith.constant 18 : i32
    %28 = vector.broadcast %c18_i32_14 : i32 to vector<24x24x32xi32>
    %29 = arith.cmpi slt, %19, %28 : vector<24x24x32xi32>
    %30 = arith.andi %27, %29 : vector<24x24x32xi1>
    %cst_15 = arith.constant 0.000000e+00 : f32
    %31 = vector.broadcast %cst_15 : f32 to vector<24x24x32xf32>
    %32 = arith.select %30, %17, %31 : vector<24x24x32xi1>, vector<24x24x32xf32>
    %33 = arith.truncf %32 : vector<24x24x32xf32> to vector<24x24x32xbf16>
    %c0_16 = arith.constant 0 : index
    %c0_17 = arith.constant 0 : index
    %c0_18 = arith.constant 0 : index
    %34 = vector.load %arg9[%c0_16, %c0_17, %c0_18] : memref<24x24x32xbf16, #tpu.memory_space<vmem>>, vector<24x24x32xbf16>
    tpu.vector_store %arg9[%c0_16, %c0_17, %c0_18], %33 {strides = array<i32>} : memref<24x24x32xbf16, #tpu.memory_space<vmem>>, vector<24x24x32xbf16>,
    %c0_19 = arith.constant 0 : index
    %c0_20 = arith.constant 0 : index
    %c0_21 = arith.constant 0 : index
    %35 = vector.load %arg9[%c0_19, %c0_20, %c0_21] : memref<24x24x32xbf16, #tpu.memory_space<vmem>>, vector<16x16x32xbf16>
    %c0_22 = arith.constant 0 : index
    %c1 = arith.constant 1 : index
    %c0_23 = arith.constant 0 : index
    %36 = vector.load %arg9[%c0_22, %c1, %c0_23] : memref<24x24x32xbf16, #tpu.memory_space<vmem>>, vector<16x16x32xbf16>
    %c0_24 = arith.constant 0 : index
    %c2 = arith.constant 2 : index
    %c0_25 = arith.constant 0 : index
    %37 = vector.load %arg9[%c0_24, %c2, %c0_25] : memref<24x24x32xbf16, #tpu.memory_space<vmem>>, vector<16x16x32xbf16>
    %c0_26 = arith.constant 0 : index
    %c3 = arith.constant 3 : index
    %c0_27 = arith.constant 0 : index
    %38 = vector.load %arg9[%c0_26, %c3, %c0_27] : memref<24x24x32xbf16, #tpu.memory_space<vmem>>, vector<16x16x32xbf16>
    %c0_28 = arith.constant 0 : index
    %c4 = arith.constant 4 : index
    %c0_29 = arith.constant 0 : index
    %39 = vector.load %arg9[%c0_28, %c4, %c0_29] : memref<24x24x32xbf16, #tpu.memory_space<vmem>>, vector<16x16x32xbf16>
    %40 = tpu.concatenate %35, %36, %37, %38, %39 in 2 : vector<16x16x32xbf16>, vector<16x16x32xbf16>, vector<16x16x32xbf16>, vector<16x16x32xbf16>, vector<16x16x32xbf16> -> vector<16x16x160xbf16>
    %c1_30 = arith.constant 1 : index
    %c0_31 = arith.constant 0 : index
    %c0_32 = arith.constant 0 : index
    %41 = vector.load %arg9[%c1_30, %c0_31, %c0_32] : memref<24x24x32xbf16, #tpu.memory_space<vmem>>, vector<16x16x32xbf16>
    %c1_33 = arith.constant 1 : index
    %c1_34 = arith.constant 1 : index
    %c0_35 = arith.constant 0 : index
    %42 = vector.load %arg9[%c1_33, %c1_34, %c0_35] : memref<24x24x32xbf16, #tpu.memory_space<vmem>>, vector<16x16x32xbf16>
    %c1_36 = arith.constant 1 : index
    %c2_37 = arith.constant 2 : index
    %c0_38 = arith.constant 0 : index
    %43 = vector.load %arg9[%c1_36, %c2_37, %c0_38] : memref<24x24x32xbf16, #tpu.memory_space<vmem>>, vector<16x16x32xbf16>
    %c1_39 = arith.constant 1 : index
    %c3_40 = arith.constant 3 : index
    %c0_41 = arith.constant 0 : index
    %44 = vector.load %arg9[%c1_39, %c3_40, %c0_41] : memref<24x24x32xbf16, #tpu.memory_space<vmem>>, vector<16x16x32xbf16>
    %c1_42 = arith.constant 1 : index
    %c4_43 = arith.constant 4 : index
    %c0_44 = arith.constant 0 : index
    %45 = vector.load %arg9[%c1_42, %c4_43, %c0_44] : memref<24x24x32xbf16, #tpu.memory_space<vmem>>, vector<16x16x32xbf16>
    %46 = tpu.concatenate %41, %42, %43, %44, %45 in 2 : vector<16x16x32xbf16>, vector<16x16x32xbf16>, vector<16x16x32xbf16>, vector<16x16x32xbf16>, vector<16x16x32xbf16> -> vector<16x16x160xbf16>
    %c2_45 = arith.constant 2 : index
    %c0_46 = arith.constant 0 : index
    %c0_47 = arith.constant 0 : index
    %47 = vector.load %arg9[%c2_45, %c0_46, %c0_47] : memref<24x24x32xbf16, #tpu.memory_space<vmem>>, vector<16x16x32xbf16>
    %c2_48 = arith.constant 2 : index
    %c1_49 = arith.constant 1 : index
    %c0_50 = arith.constant 0 : index
    %48 = vector.load %arg9[%c2_48, %c1_49, %c0_50] : memref<24x24x32xbf16, #tpu.memory_space<vmem>>, vector<16x16x32xbf16>
    %c2_51 = arith.constant 2 : index
    %c2_52 = arith.constant 2 : index
    %c0_53 = arith.constant 0 : index
    %49 = vector.load %arg9[%c2_51, %c2_52, %c0_53] : memref<24x24x32xbf16, #tpu.memory_space<vmem>>, vector<16x16x32xbf16>
    %c2_54 = arith.constant 2 : index
    %c3_55 = arith.constant 3 : index
    %c0_56 = arith.constant 0 : index
    %50 = vector.load %arg9[%c2_54, %c3_55, %c0_56] : memref<24x24x32xbf16, #tpu.memory_space<vmem>>, vector<16x16x32xbf16>
    %c2_57 = arith.constant 2 : index
    %c4_58 = arith.constant 4 : index
    %c0_59 = arith.constant 0 : index
    %51 = vector.load %arg9[%c2_57, %c4_58, %c0_59] : memref<24x24x32xbf16, #tpu.memory_space<vmem>>, vector<16x16x32xbf16>
    %52 = tpu.concatenate %47, %48, %49, %50, %51 in 2 : vector<16x16x32xbf16>, vector<16x16x32xbf16>, vector<16x16x32xbf16>, vector<16x16x32xbf16>, vector<16x16x32xbf16> -> vector<16x16x160xbf16>
    %c3_60 = arith.constant 3 : index
    %c0_61 = arith.constant 0 : index
    %c0_62 = arith.constant 0 : index
    %53 = vector.load %arg9[%c3_60, %c0_61, %c0_62] : memref<24x24x32xbf16, #tpu.memory_space<vmem>>, vector<16x16x32xbf16>
    %c3_63 = arith.constant 3 : index
    %c1_64 = arith.constant 1 : index
    %c0_65 = arith.constant 0 : index
    %54 = vector.load %arg9[%c3_63, %c1_64, %c0_65] : memref<24x24x32xbf16, #tpu.memory_space<vmem>>, vector<16x16x32xbf16>
    %c3_66 = arith.constant 3 : index
    %c2_67 = arith.constant 2 : index
    %c0_68 = arith.constant 0 : index
    %55 = vector.load %arg9[%c3_66, %c2_67, %c0_68] : memref<24x24x32xbf16, #tpu.memory_space<vmem>>, vector<16x16x32xbf16>
    %c3_69 = arith.constant 3 : index
    %c3_70 = arith.constant 3 : index
    %c0_71 = arith.constant 0 : index
    %56 = vector.load %arg9[%c3_69, %c3_70, %c0_71] : memref<24x24x32xbf16, #tpu.memory_space<vmem>>, vector<16x16x32xbf16>
    %c3_72 = arith.constant 3 : index
    %c4_73 = arith.constant 4 : index
    %c0_74 = arith.constant 0 : index
    %57 = vector.load %arg9[%c3_72, %c4_73, %c0_74] : memref<24x24x32xbf16, #tpu.memory_space<vmem>>, vector<16x16x32xbf16>
    %58 = tpu.concatenate %53, %54, %55, %56, %57 in 2 : vector<16x16x32xbf16>, vector<16x16x32xbf16>, vector<16x16x32xbf16>, vector<16x16x32xbf16>, vector<16x16x32xbf16> -> vector<16x16x160xbf16>
    %c4_75 = arith.constant 4 : index
    %c0_76 = arith.constant 0 : index
    %c0_77 = arith.constant 0 : index
    %59 = vector.load %arg9[%c4_75, %c0_76, %c0_77] : memref<24x24x32xbf16, #tpu.memory_space<vmem>>, vector<16x16x32xbf16>
    %c4_78 = arith.constant 4 : index
    %c1_79 = arith.constant 1 : index
    %c0_80 = arith.constant 0 : index
    %60 = vector.load %arg9[%c4_78, %c1_79, %c0_80] : memref<24x24x32xbf16, #tpu.memory_space<vmem>>, vector<16x16x32xbf16>
    %c4_81 = arith.constant 4 : index
    %c2_82 = arith.constant 2 : index
    %c0_83 = arith.constant 0 : index
    %61 = vector.load %arg9[%c4_81, %c2_82, %c0_83] : memref<24x24x32xbf16, #tpu.memory_space<vmem>>, vector<16x16x32xbf16>
    %c4_84 = arith.constant 4 : index
    %c3_85 = arith.constant 3 : index
    %c0_86 = arith.constant 0 : index
    %62 = vector.load %arg9[%c4_84, %c3_85, %c0_86] : memref<24x24x32xbf16, #tpu.memory_space<vmem>>, vector<16x16x32xbf16>
    %c4_87 = arith.constant 4 : index
    %c4_88 = arith.constant 4 : index
    %c0_89 = arith.constant 0 : index
    %63 = vector.load %arg9[%c4_87, %c4_88, %c0_89] : memref<24x24x32xbf16, #tpu.memory_space<vmem>>, vector<16x16x32xbf16>
    %64 = tpu.concatenate %59, %60, %61, %62, %63 in 2 : vector<16x16x32xbf16>, vector<16x16x32xbf16>, vector<16x16x32xbf16>, vector<16x16x32xbf16>, vector<16x16x32xbf16> -> vector<16x16x160xbf16>
    %65 = tpu.concatenate %40, %46, %52, %58, %64 in 2 : vector<16x16x160xbf16>, vector<16x16x160xbf16>, vector<16x16x160xbf16>, vector<16x16x160xbf16>, vector<16x16x160xbf16> -> vector<16x16x800xbf16>
    %66 = vector.shape_cast %65 : vector<16x16x800xbf16> to vector<256x800xbf16>
    %c0_90 = arith.constant 0 : index
    %c0_91 = arith.constant 0 : index
    %67 = vector.load %arg6[%c0_90, %c0_91] : memref<3x800xbf16, #tpu.memory_space<vmem>>, vector<3x800xbf16>
    %cst_92 = arith.constant dense<0.000000e+00> : vector<3x256xf32>
    %68 = tpu.matmul %67, %66, %cst_92 {dimension_numbers = #tpu.dot_dimension_numbers<[1], [1], [0], [0], [0, 0, 1, 0], [], []>} : vector<3x800xbf16>, vector<256x800xbf16>, vector<3x256xf32> -> vector<3x256xf32>
    %c0_93 = arith.constant 0 : index
    %c0_94 = arith.constant 0 : index
    %69 = vector.load %arg7[%c0_93, %c0_94] : memref<3x1xf32, #tpu.memory_space<vmem>>, vector<3x1xf32>
    %70 = vector.broadcast %69 : vector<3x1xf32> to vector<3x256xf32>
    %71 = arith.addf %68, %70 : vector<3x256xf32>
    %cst_95 = arith.constant 0.000000e+00 : f32
    %72 = vector.broadcast %cst_95 : f32 to vector<3x256xf32>
    %73 = arith.maximumf %71, %72 : vector<3x256xf32>
    %cst_96 = arith.constant 9.99999996E-13 : f32
    %cst_97 = arith.constant 1.000000e+00 : f32
    %74 = vector.broadcast %cst_96 : f32 to vector<3x256xf32>
    %75 = arith.maximumf %74, %73 : vector<3x256xf32>
    %76 = vector.broadcast %cst_97 : f32 to vector<3x256xf32>
    %77 = arith.minimumf %76, %75 : vector<3x256xf32>
    %c0_98 = arith.constant 0 : index
    %c0_99 = arith.constant 0 : index
    %c0_100 = arith.constant 0 : index
    %78 = vector.load %arg8[%c0_98, %c0_99, %c0_100] : memref<1x3x256xf32, #tpu.memory_space<vmem>>, vector<1x3x256xf32>
    %79 = vector.shape_cast %78 : vector<1x3x256xf32> to vector<3x256xf32>
    %80 = vector.shape_cast %77 : vector<3x256xf32> to vector<1x3x256xf32>
    tpu.vector_store %arg8[%c0_98, %c0_99, %c0_100], %80 {strides = array<i32>} : memref<1x3x256xf32, #tpu.memory_space<vmem>>, vector<1x3x256xf32>,
    return
  }
  func.func @transform_0(%arg0: i32) -> (i32, i32, i32) {
    %c0_i32 = arith.constant 0 : i32
    %c0_i32_0 = arith.constant 0 : i32
    %c0_i32_1 = arith.constant 0 : i32
    return %arg0, %c0_i32, %c0_i32_0 : i32, i32, i32
  }
  func.func @transform_1(%arg0: i32) -> (i32, i32) {
    %c0_i32 = arith.constant 0 : i32
    %c0_i32_0 = arith.constant 0 : i32
    %c0_i32_1 = arith.constant 0 : i32
    return %c0_i32, %c0_i32_0 : i32, i32
  }
  func.func @transform_2(%arg0: i32) -> (i32, i32) {
    %c0_i32 = arith.constant 0 : i32
    %c0_i32_0 = arith.constant 0 : i32
    %c0_i32_1 = arith.constant 0 : i32
    return %c0_i32, %c0_i32_0 : i32, i32
  }
  func.func @transform_3(%arg0: i32) -> (i32, i32) {
    %c0_i32 = arith.constant 0 : i32
    %c0_i32_0 = arith.constant 0 : i32
    %c0_i32_1 = arith.constant 0 : i32
    return %c0_i32, %c0_i32_0 : i32, i32
  }
  func.func @transform_4(%arg0: i32) -> (i32, i32) {
    %c0_i32 = arith.constant 0 : i32
    %c0_i32_0 = arith.constant 0 : i32
    %c0_i32_1 = arith.constant 0 : i32
    return %c0_i32, %c0_i32_0 : i32, i32
  }
  func.func @transform_5(%arg0: i32) -> (i32, i32) {
    %c0_i32 = arith.constant 0 : i32
    %c0_i32_0 = arith.constant 0 : i32
    %c0_i32_1 = arith.constant 0 : i32
    return %c0_i32, %c0_i32_0 : i32, i32
  }
  func.func @transform_6(%arg0: i32) -> (i32, i32) {
    %c0_i32 = arith.constant 0 : i32
    %c0_i32_0 = arith.constant 0 : i32
    %c0_i32_1 = arith.constant 0 : i32
    return %c0_i32, %c0_i32_0 : i32, i32
  }
  func.func @transform_7(%arg0: i32) -> (i32, i32, i32) {
    %c0_i32 = arith.constant 0 : i32
    %c0_i32_0 = arith.constant 0 : i32
    %c0_i32_1 = arith.constant 0 : i32
    return %arg0, %c0_i32, %c0_i32_0 : i32, i32, i32
  }
}

</mosaic_0001>

<bundles_post_ra>
// kernel: srnet_forward.1
= control target key start
LH: loop header
LB: loop body
LE: loop exit
PB: predicated region body
PF: predicated region fallthrough
CT: control target
= control target key end

     0   :  { %s10364_s24 = smov 0   ;;  %s14122_s0 = inlined_call_operand.vmem [shape: bf16[2,576,243], index: 0, kind: input, shape index: {}]   ;;  %s14123_s1 = inlined_call_operand.vmem [shape: bf16[243,64], index: 1, kind: input, shape index: {}]   ;;  %s14124_s2 = inlined_call_operand.vmem [shape: f32[1,64], index: 2, kind: input, shape index: {}]   ;;  %s14125_s3 = inlined_call_operand.vmem [shape: bf16[64,32], index: 3, kind: input, shape index: {}]   ;;  %s14126_s4 = inlined_call_operand.vmem [shape: f32[1,32], index: 4, kind: input, shape index: {}]   ;;  %s14127_s5 = inlined_call_operand.vmem [shape: bf16[3,800], index: 5, kind: input, shape index: {}]   ;;  %s14128_s6 = inlined_call_operand.vmem [shape: f32[3,1], index: 6, kind: input, shape index: {}]   ;;  %s14129_s7 = inlined_call_operand.vmem [shape: f32[2,3,256], index: 7, kind: output, shape index: {}]  }
   0x1 LB: > { %s8843_s25 = sadd.s32 4294967295, %s10315_s24   ;;  %p8847_p0 = scmp.ge.s32.totalorder %s10315_s24, 1  ;;  %s10315_s24 = sphi %s10364_s24, %s17_s24  }
   0x2   : > { %p237_p1 = scmp.lt.s32.totalorder %s10315_s24, 3 }
   0x4   : > { %p238_p2 = pnand %p8847_p0, %p237_p1 }
   0x6   : > { %241 = sbr.rel (%p238_p2) target bundleno = 1549 (0x60d), region = 48 }
   0xb   : > { %v9704_v0 = vld [vmem:[%s14123_s1 + $0x38] sm:$0xff]   ;;  %v10317_v1 = vmov 0   ;;  %v9705_v2 = vld [vmem:[%s14123_s1 + $0x30] sm:$0xff]   ;;  %v9706_v3 = vld [vmem:[%s14123_s1 + $0x28] sm:$0xff]   ;;  %p269_p3 = scmp.lt.s32.totalorder %s8843_s25, 1  ;;  %vm807_vm0 = vcmask 941056  }
   0xc   : > { %923 = vmatprep.subr.bf16.mxu0 %v10317_v1  ;;  %9703 = vset.pattern.permute.xlu0 %v10317_v1  ;;  %v9707_v4 = vld [vmem:[%s14123_s1 + $0x20] sm:$0xff]   ;;  %v9708_v5 = vld [vmem:[%s14123_s1 + $0x18] sm:$0xff]   ;;  %v9709_v7 = vld [vmem:[%s14123_s1 + $0x10] sm:$0xff]   ;;  %vm916_vm1 = vcmask 1040384   ;;  %vm917_vm2 = vcmask 1041408   ;;  %v10318_v9 = vmov 65535  }
   0xd   : > { %924 = vmatpush1.bf16.msra.mxu0 %v9704_v0  ;;  %s14624_s25 = smov (!%p269_p3, %s8843_s25), 1  ;;  %v9710_v8 = vld [vmem:[%s14123_s1 + $0x8] sm:$0xff]   ;;  %v918_v10 = vsel %vm916_vm1, 4294967295, %v10318_v9  ;;  %v9711_v11 = vld [vmem:[%s14123_s1] sm:$0xff]   ;;  %v9713_v15 = vld [vmem:[%s14123_s1 + $0x70] sm:$0xff]   ;;  %vm2299_vm3 = vcmask 257024  }
   0xe   : > { %925 = vmatprep.subr.bf16.mxu0 %v10317_v1  ;;  %s9687_s11 = smul.u32 576, %s14624_s25  ;;  %v9712_v12 = vld [vmem:[%s14123_s1 + $0x78] ss:$0 sps:$4 sm:$0x33]   ;;  %v919_v13 = vsel %vm917_vm2, %v918_v10, 0  ;;  %v9714_v16 = vld [vmem:[%s14123_s1 + $0x68] sm:$0xff]  }
   0xf   : > { %v921_v14 = vand.u32 %v9712_v12, %v919_v13  ;;  %v9715_v17 = vld [vmem:[%s14123_s1 + $0x60] sm:$0xff]   ;;  %v9716_v18 = vld [vmem:[%s14123_s1 + $0x58] sm:$0xff]   ;;  %v9717_v19 = vld [vmem:[%s14123_s1 + $0x50] sm:$0xff]   ;;  %vm2596_vm4 = vsmask.f32 7424  ;;  %vm2869_vm5 = vcmask 1046528  }
  0x10   : > { %s10393_s16 = scalar_lea.vmem %s14122_s0, %s9687_s11  ;;  %v9718_v20 = vld [vmem:[%s14123_s1 + $0x48] sm:$0xff]   ;;  %v9719_v21 = vld [vmem:[%s14123_s1 + $0x40] sm:$0xff]   ;;  %v9768_v40 = vld [vmem:[%s14125_s3 + $0x18] sm:$0xff]   ;;  %vm2998_vm6 = vsmask.f32 6400  ;;  %s10320_s29 = smov 64  }
  0x11   : > { %926 = vmatpush1.bf16.msra.mxu0 %v9705_v2  ;;  %v9722_v6 = vld [vmem:[%s10393_s16 + $0x4] ss:$8 sps:$4 sm:$0xff]   ;;  %v9720_v22 = vld [vmem:[%s10393_s16] ss:$8 sps:$4 sm:$0xff]   ;;  %v9723_v23 = vld [vmem:[%s10393_s16 + $0x14] ss:$8 sps:$4 sm:$0xff]   ;;  %9599 = vmatprep.subr.bf16.mxu1 %v9768_v40 }
  0x12   : > { %927 = vmatprep.subr.bf16.mxu0 %v10317_v1  ;;  %8940 = vmatprep.mubr.msk.bf16.mxu0 %vm807_vm0, %v9722_v6  ;;  %v9725_v24 = vld [vmem:[%s10393_s16 + $0x10] ss:$8 sps:$4 sm:$0xff]   ;;  %v9726_v25 = vld [vmem:[%s10393_s16 + $0x24] ss:$8 sps:$4 sm:$0xff]   ;;  %v9728_v26 = vld [vmem:[%s10393_s16 + $0x20] ss:$8 sps:$4 sm:$0xff]  }
  0x13   : > { %v9729_v27 = vld [vmem:[%s10393_s16 + $0x34] ss:$8 sps:$4 sm:$0xff]   ;;  %v9731_v28 = vld [vmem:[%s10393_s16 + $0x30] ss:$8 sps:$4 sm:$0xff]   ;;  %v9732_v29 = vld [vmem:[%s10393_s16 + $0x44] ss:$8 sps:$4 sm:$0xff]   ;;  %9600 = vmatpush3.bf16.msra.mxu1 %v9768_v40 }
  0x14   : > { %v9734_v30 = vld [vmem:[%s10393_s16 + $0x40] ss:$8 sps:$4 sm:$0xff]   ;;  %v9735_v31 = vld [vmem:[%s10393_s16 + $0x54] ss:$8 sps:$4 sm:$0xff]   ;;  %v9737_v32 = vld [vmem:[%s10393_s16 + $0x50] ss:$8 sps:$4 sm:$0xff]  }
  0x15   : > { %928 = vmatpush1.bf16.msra.mxu0 %v9706_v3  ;;  %v9738_v33 = vld [vmem:[%s10393_s16 + $0x64] ss:$8 sps:$4 sm:$0xff]   ;;  %v9740_v34 = vld [vmem:[%s10393_s16 + $0x60] ss:$8 sps:$4 sm:$0xff]   ;;  %v9741_v35 = vld [vmem:[%s10393_s16 + $0x74] ss:$8 sps:$4 sm:$0xff]  }
  0x16   : > { %929 = vmatprep.subr.bf16.mxu0 %v10317_v1  ;;  %v9743_v36 = vld [vmem:[%s10393_s16 + $0x70] ss:$8 sps:$4 sm:$0xff]   ;;  %v9744_v37 = vld [vmem:[%s10393_s16 + $0x84] ss:$8 sps:$4 sm:$0xff]   ;;  %v9746_v38 = vld [vmem:[%s10393_s16 + $0x80] ss:$8 sps:$4 sm:$0xff]  }
  0x17   : > { %v9747_v39 = vld [vmem:[%s10393_s16 + $0x94] ss:$8 sps:$4 sm:$0xff]   ;;  %v9749_v41 = vld [vmem:[%s10393_s16 + $0x90] ss:$8 sps:$4 sm:$0xff]   ;;  %v9750_v42 = vld [vmem:[%s10393_s16 + $0xa4] ss:$8 sps:$4 sm:$0xff]  }
  0x18   : > { %v9772_v43 = vld [vmem:[%s14125_s3 + $0x10] sm:$0xff]   ;;  %v9773_v44 = vld [vmem:[%s14125_s3 + $0x8] sm:$0xff]   ;;  %v9777_v47 = vld [vmem:[%s14125_s3] sm:$0xff]   ;;  %s10321_s30 = smov 32   ;;  %s10322_s10 = smov 96   ;;  %vm1391_vm7 = vcmask 523264  }
  0x19   : > { %930 = vmatpush1.bf16.msra.mxu0 %v9707_v4  ;;  %9601 = vmatprep.subr.bf16.mxu1 %v9772_v43  ;;  %v9752_v45 = vld [vmem:[%s10393_s16 + $0xa0] ss:$8 sps:$4 sm:$0xff]   ;;  %v9753_v46 = vld [vmem:[%s10393_s16 + $0xb4] ss:$8 sps:$4 sm:$0xff]   ;;  %v9755_v48 = vld [vmem:[%s10393_s16 + $0xb0] ss:$8 sps:$4 sm:$0xff]  }
  0x1a   : > { %931 = vmatprep.subr.bf16.mxu0 %v10317_v1  ;;  %9602 = vmatpush3.bf16.msra.mxu1 %v9772_v43  ;;  %v9756_v49 = vld [vmem:[%s10393_s16 + $0xc4] ss:$8 sps:$4 sm:$0xff]   ;;  %v9758_v50 = vld [vmem:[%s10393_s16 + $0xc0] ss:$8 sps:$4 sm:$0xff]   ;;  %v9759_v51 = vld [vmem:[%s10393_s16 + $0xd4] ss:$8 sps:$4 sm:$0xff]  }
  0x1b   : > { %9603 = vmatprep.subr.bf16.mxu1 %v9773_v44  ;;  %v9761_v52 = vld [vmem:[%s10393_s16 + $0xd0] ss:$8 sps:$4 sm:$0xff]   ;;  %v9762_v53 = vld [vmem:[%s10393_s16 + $0xe4] ss:$8 sps:$4 sm:$0xff]   ;;  %v9764_v54 = vld [vmem:[%s10393_s16 + $0xe0] ss:$8 sps:$4 sm:$0xff]  }
  0x1c   : > { %v9765_v55 = vld [vmem:[%s10393_s16 + $0xf4] ss:$8 sps:$4 sm:$0xff]   ;;  %v9767_v56 = vld [vmem:[%s10393_s16 + $0xf0] ss:$8 sps:$4 sm:$0xff]   ;;  %v9769_v57 = vld [vmem:[%s10393_s16 + $0x104] ss:$8 sps:$4 sm:$0xff]  }
  0x1d   : > { %932 = vmatpush1.bf16.msra.mxu0 %v9708_v5  ;;  %v9771_v58 = vld [vmem:[%s10393_s16 + $0x100] ss:$8 sps:$4 sm:$0xff]   ;;  %v9774_v59 = vld [vmem:[%s10393_s16 + $0x114] ss:$8 sps:$4 sm:$0xff]   ;;  %v9776_v60 = vld [vmem:[%s10393_s16 + $0x110] ss:$8 sps:$4 sm:$0xff]  }
  0x1e   : > { %933 = vmatprep.subr.bf16.mxu0 %v10317_v1  ;;  %9604 = vmatpush3.bf16.msra.mxu1 %v9773_v44  ;;  %v9778_v61 = vld [vmem:[%s10393_s16 + $0x124] ss:$8 sps:$4 sm:$0xff]   ;;  %v9780_v62 = vld [vmem:[%s10393_s16 + $0x120] ss:$8 sps:$4 sm:$0xff]   ;;  %v9781_v63 = vld [vmem:[%s10393_s16 + $0x134] ss:$8 sps:$4 sm:$0xff]  }
  0x1f   : > { %9605 = vmatprep.subr.bf16.mxu1 %v9777_v47  ;;  %v9783_v0 = vld [vmem:[%s10393_s16 + $0x130] ss:$8 sps:$4 sm:$0xff]   ;;  %v9786_v2 = vld [vmem:[%s10393_s16 + $0x140] ss:$8 sps:$4 sm:$0xff]   ;;  %v9787_v3 = vld [vmem:[%s10393_s16 + $0x154] ss:$8 sps:$4 sm:$0xff]  }
  0x20   : > { %v9789_v4 = vld [vmem:[%s10393_s16 + $0x150] ss:$8 sps:$4 sm:$0xff]   ;;  %v10319_v5 = vmov 0.0|0.0   ;;  %v9792_v9 = vld [vmem:[%s10393_s16 + $0x160] ss:$8 sps:$4 sm:$0xff]   ;;  %vm3400_vm8 = vcmask 261120  }
  0x21   : > { %934 = vmatpush1.bf16.msra.mxu0 %v9709_v7  ;;  %v9017_v6 = vcombine.low %v10319_v5, %v10319_v5  ;;  %v9018_v7 = vcombine.high %v10319_v5, %v10319_v5  ;;  %v9793_v10 = vld [vmem:[%s10393_s16 + $0x174] ss:$8 sps:$4 sm:$0xff]   ;;  %vm3465_vm9 = vcmask 785408   ;;  %vm3351_vm12 = vcmask 1045504  }
  0x22   : > { %935 = vmatprep.subr.bf16.mxu0 %v10317_v1  ;;  %9606 = vmatpush3.bf16.msra.mxu1 %v9777_v47 }
  0x23   : > { %2300 = vst.msk [vmem:[#allocation2] sm:$0xf] %vm2299_vm3, %v9017_v6  ;;  %2301 = vst.msk [vmem:[#allocation2 + $0x4] sm:$0xf] %vm2299_vm3, %v9018_v7 }
  0x24   : > { %2302 = vst.msk [vmem:[#allocation2 + $0x8] sm:$0xf] %vm2299_vm3, %v9017_v6  ;;  %2303 = vst.msk [vmem:[#allocation2 + $0xc] sm:$0xf] %vm2299_vm3, %v9017_v6 }
  0x25   : > { %936 = vmatpush1.bf16.msra.mxu0 %v9710_v8  ;;  %v9790_v8 = vld [vmem:[%s10393_s16 + $0x164] ss:$8 sps:$4 sm:$0xff]   ;;  %2304 = vst.msk [vmem:[#allocation2 + $0x10] sm:$0xf] %vm2299_vm3, %v9018_v7  ;;  %2305 = vst.msk [vmem:[#allocation2 + $0x14] sm:$0xf] %vm2299_vm3, %v9017_v6 }
  0x26   : > { %937 = vmatprep.subr.bf16.mxu0 %v10317_v1  ;;  %2354 = vst.msk [vmem:[#allocation2 + $0xd8] sm:$0xf] %vm2299_vm3, %v9017_v6  ;;  %2355 = vst.msk [vmem:[#allocation2 + $0xdc] sm:$0xf] %vm2299_vm3, %v9018_v7 }
  0x27   : > { %2356 = vst.msk [vmem:[#allocation2 + $0xe0] sm:$0xf] %vm2299_vm3, %v9017_v6  ;;  %2357 = vst.msk [vmem:[#allocation2 + $0xe4] sm:$0xf] %vm2299_vm3, %v9017_v6 }
  0x28   : > { %2358 = vst.msk [vmem:[#allocation2 + $0xe8] sm:$0xf] %vm2299_vm3, %v9018_v7  ;;  %2359 = vst.msk [vmem:[#allocation2 + $0xec] sm:$0xf] %vm2299_vm3, %v9017_v6  ;;  %v9799_v7 = vld [vmem:[%s10393_s16 + $0x194] ss:$8 sps:$4 sm:$0xff]  }
  0x29   : > { %938 = vmatpush1.bf16.msra.mxu0 %v9711_v11 }
  0x2a   : > { %939 = vmatprep.subr.bf16.mxu0 %v10317_v1  ;;  %v2372_v11 = vld [vmem:[#allocation2] sm:$0xf]  ;;  %v2373_v12 = vld [vmem:[#allocation2 + $0x4] sm:$0xf] }
  0x2b   : > { %v10522_v13 = vcombine.low %v2372_v11, %v2373_v12  ;;  %v2421_v40 = vld [vmem:[#allocation2 + $0xc] sm:$0xe] }
  0x2d   : > { %940 = vmatpush2.bf16.msra.mxu0 %v921_v14  ;;  %14223 = vst [vmem:[#allocation3_spill] sm:$0xff] %v10522_v13  ;;  %v9805_v14 = vld [vmem:[#allocation2 + $0x8] ss:$0 sps:$4 sm:$0x11]  }
  0x2e   : > { %941 = vmatprep.subr.bf16.mxu0 %v10317_v1 }
  0x31   : > { %942 = vmatpush2.bf16.msra.mxu0 %v9713_v15  ;;  %v2374_v15 = vld [vmem:[#allocation2 + $0xc] sm:$0xf] }
  0x32   : > { %943 = vmatprep.subr.bf16.mxu0 %v10317_v1 }
  0x35   : > { %944 = vmatpush2.bf16.msra.mxu0 %v9714_v16  ;;  %v2375_v16 = vld [vmem:[#allocation2 + $0x10] sm:$0xf] }
  0x36   : > { %945 = vmatprep.subr.bf16.mxu0 %v10317_v1 }
  0x39   : > { %946 = vmatpush2.bf16.msra.mxu0 %v9715_v17  ;;  %v2420_v17 = vld [vmem:[#allocation2] sm:$0xe] }
  0x3a   : > { %947 = vmatprep.subr.bf16.mxu0 %v10317_v1 }
  0x3d   : > { %948 = vmatpush2.bf16.msra.mxu0 %v9716_v18  ;;  %v2598_v18 = vshrl.u32 %v10522_v13, 16 }
  0x3e   : > { %949 = vmatprep.subr.bf16.mxu0 %v10317_v1 }
  0x41   : > { %950 = vmatpush2.bf16.msra.mxu0 %v9717_v19  ;;  %v2600_v19 = vshll.u32 %v10522_v13, 16 }
  0x42   : > { %951 = vmatprep.subr.bf16.mxu0 %v10317_v1 }
  0x45   : > { %952 = vmatpush2.bf16.msra.mxu0 %v9718_v20  ;;  %v2605_v20 = vshll.u32 %v9805_v14, 16 }
  0x46   : > { %953 = vmatprep.subr.bf16.mxu0 %v10317_v1  ;;  %v9784_v1 = vld [vmem:[%s10393_s16 + $0x144] ss:$8 sps:$4 sm:$0xff]  }
  0x49   : > { %954 = vmatpush2.bf16.msra.mxu0 %v9719_v21  ;;  %v10526_v21 = vcombine.low %v2374_v15, %v2375_v16 }
  0x4b   : > { %14224 = vst [vmem:[#allocation4_spill] sm:$0xff] %v10526_v21 }
  0x4c   : > { %956 = vmatmul.mubr.bf16.vlgmr.msra.gmra.mxu0 %v9720_v22  ;;  %v9807_v22 = vld [vmem:[#allocation2 + $0x14] ss:$0 sps:$4 sm:$0x11]  }
  0x4d   : > { %8941 = vmatprep.mubr.msk.bf16.mxu0 %vm807_vm0, %v9723_v23  ;;  %v10529_v23 = vcombine.low %v2420_v17, %v2373_v12 }
  0x4f   : > { %v3003_v6 = vshll.u32 %v10529_v23, 16 }
  0x54   : > { %964 = vmatmul.mubr.bf16.gmra.mxu0 %v9725_v24  ;;  %v2871_v24 = vrot.slane %v9805_v14, 1  ;;  %v3005_v14 = vrot.slane %v3003_v6, 2 }
  0x55   : > { %8942 = vmatprep.mubr.msk.bf16.mxu0 %vm807_vm0, %v9726_v25  ;;  %v3515_v25 = vld [vmem:[#allocation2 + $0xc] sm:$0xf] }
  0x5c   : > { %972 = vmatmul.mubr.bf16.gmra.mxu0 %v9728_v26  ;;  %v3516_v26 = vld [vmem:[#allocation2 + $0x10] sm:$0xf] }
  0x5d   : > { %8943 = vmatprep.mubr.msk.bf16.mxu0 %vm807_vm0, %v9729_v27  ;;  %v9795_v27 = vld [vmem:[%s10393_s16 + $0x170] ss:$8 sps:$4 sm:$0xff]  }
  0x64   : > { %980 = vmatmul.mubr.bf16.gmra.mxu0 %v9731_v28  ;;  %v2602_v28 = vrot.slane %v2600_v19, 1 }
  0x65   : > { %8944 = vmatprep.mubr.msk.bf16.mxu0 %vm807_vm0, %v9732_v29  ;;  %v2607_v29 = vrot.slane %v2605_v20, 1 }
  0x6c   : > { %988 = vmatmul.mubr.bf16.gmra.mxu0 %v9734_v30  ;;  %v2610_v30 = vshrl.u32 %v10526_v21, 16 }
  0x6d   : > { %8945 = vmatprep.mubr.msk.bf16.mxu0 %vm807_vm0, %v9735_v31  ;;  %v2612_v31 = vshll.u32 %v10526_v21, 16 }
  0x74   : > { %996 = vmatmul.mubr.bf16.gmra.mxu0 %v9737_v32  ;;  %v9796_v32 = vld [vmem:[%s10393_s16 + $0x184] ss:$8 sps:$4 sm:$0xff]  }
  0x75   : > { %8946 = vmatprep.mubr.msk.bf16.mxu0 %vm807_vm0, %v9738_v33  ;;  %v2617_v33 = vshll.u32 %v9807_v22, 16 }
  0x77   : > { %v2619_v43 = vrot.slane %v2617_v33, 1 }
  0x7c   : > { %1004 = vmatmul.mubr.bf16.gmra.mxu0 %v9740_v34  ;;  %v2870_v34 = vrot.slane %v10529_v23, 1 }
  0x7d   : > { %8947 = vmatprep.mubr.msk.bf16.mxu0 %vm807_vm0, %v9741_v35  ;;  %v10536_v35 = vcombine.low %v3515_v25, %v3516_v26 }
  0x7e   : > { %v2872_v44 = vsel %vm2869_vm5, %v2870_v34, %v2871_v24 }
  0x7f   : > { %2918 = vrot.lane.b32.xlu1 %v2872_v44, %s10320_s29  ;;  %v9802_v44 = vld [vmem:[%s10393_s16 + $0x1a4] ss:$8 sps:$4 sm:$0xff]  }
  0x84   : > { %1012 = vmatmul.mubr.bf16.gmra.mxu0 %v9743_v36  ;;  %v9811_v36 = vld [vmem:[#allocation2 + $0x14] ss:$0 sps:$4 sm:$0x11]  }
  0x85   : > { %8948 = vmatprep.mubr.msk.bf16.mxu0 %vm807_vm0, %v9744_v37  ;;  %v2874_v37 = vrot.slane %v9807_v22, 1 }
  0x8c   : > { %1020 = vmatmul.mubr.bf16.gmra.mxu0 %v9746_v38  ;;  %v2603_v38 = vor.u32 %v2602_v28, %v2598_v18  ;;  %v10560_v28 = vld [vmem:[%s14124_s2] ss:$0 sm:$0xff] }
  0x8d   : > { %8949 = vmatprep.mubr.msk.bf16.mxu0 %vm807_vm0, %v9747_v39  ;;  %v2614_v39 = vrot.slane %v2612_v31, 1 }
  0x8e   : > { %v2608_v47 = vsel %vm2596_vm4, %v2603_v38, %v2607_v29 }
  0x8f   : > { %2789 = vrot.lane.b32.xlu0 %v2608_v47, %s10321_s30 }
  0x94   : > { %1028 = vmatmul.mubr.bf16.gmra.mxu0 %v9749_v41  ;;  %v3563_v41 = vld [vmem:[#allocation2 + $0xc] sm:$0xe] }
  0x95   : > { %8950 = vmatprep.mubr.msk.bf16.mxu0 %vm807_vm0, %v9750_v42  ;;  %v3000_v42 = vshrl.u32 %v10529_v23, 16 }
  0x9c   : > { %1036 = vmatmul.mubr.bf16.gmra.mxu0 %v9752_v45  ;;  %v3740_v45 = vshrl.u32 %v10536_v35, 16 }
  0x9d   : > { %8951 = vmatprep.mubr.msk.bf16.mxu0 %vm807_vm0, %v9753_v46  ;;  %v3742_v46 = vshll.u32 %v10536_v35, 16 }
  0xa4   : > { %1044 = vmatmul.mubr.bf16.gmra.mxu0 %v9755_v48  ;;  %v2615_v48 = vor.u32 %v2614_v39, %v2610_v30 }
  0xa5   : > { %8952 = vmatprep.mubr.msk.bf16.mxu0 %vm807_vm0, %v9756_v49  ;;  %v3747_v49 = vshll.u32 %v9811_v36, 16 }
  0xac   : > { %1052 = vmatmul.mubr.bf16.gmra.mxu0 %v9758_v50  ;;  %v9122_v50 = vcombine.low %v2421_v40, %v2375_v16 }
  0xad   : > { %8953 = vmatprep.mubr.msk.bf16.mxu0 %vm807_vm0, %v9759_v51  ;;  %v9815_v51 = vld [vmem:[#allocation2 + $0x14] ss:$0 sps:$4 sm:$0x33]  }
  0xae   : > { %v3017_v19 = vshrl.u32 %v9122_v50, 16  ;;  %v3020_v20 = vshll.u32 %v9122_v50, 16 }
  0xb0   : > { %v3019_v25 = vrot.slane %v3017_v19, 1 }
  0xb4   : > { %1060 = vmatmul.mubr.bf16.gmra.mxu0 %v9761_v52  ;;  %v3744_v52 = vrot.slane %v3742_v46, 1 }
  0xb5   : > { %8954 = vmatprep.mubr.msk.bf16.mxu0 %vm807_vm0, %v9762_v53  ;;  %v9201_v53 = vcombine.low %v3563_v41, %v3516_v26  ;;  %v3022_v26 = vrot.slane %v3020_v20, 2  ;;  %v9801_v41 = vld [vmem:[%s10393_s16 + $0x190] ss:$8 sps:$4 sm:$0xff]  }
  0xb7   : > { %v4011_v5 = vrot.slane %v9201_v53, 1  ;;  %v3023_v34 = vor.u32 %v3022_v26, %v3019_v25 }
  0xbc   : > { %1068 = vmatmul.mubr.bf16.gmra.mxu0 %v9764_v54  ;;  %v4012_v54 = vrot.slane %v9811_v36, 1 }
  0xbd   : > { %8955 = vmatprep.mubr.msk.bf16.mxu0 %vm807_vm0, %v9765_v55  ;;  %v9816_v55 = vld [vmem:[#allocation2 + $0x8] ss:$0 sps:$4 sm:$0x33]  }
  0xbe   : > { %v4013_v12 = vsel %vm2869_vm5, %v4011_v5, %v4012_v54  ;;  %v3008_v15 = vshrl.u32 %v9816_v55, 16  ;;  %v3011_v16 = vshll.u32 %v9816_v55, 16 }
  0xc0   : > { %v3010_v22 = vrot.slane %v3008_v15, 1  ;;  %v3013_v23 = vrot.slane %v3011_v16, 2 }
  0xc4   : > { %1076 = vmatmul.mubr.bf16.gmra.mxu0 %v9767_v56  ;;  %v3002_v56 = vrot.slane %v3000_v42, 1 }
  0xc5   : > { %8956 = vmatprep.mubr.msk.bf16.mxu0 %vm807_vm0, %v9769_v57  ;;  %v2620_v57 = vsel %vm2596_vm4, %v2615_v48, %v2619_v43 }
  0xc6   : > { %2791 = vrot.lane.b32.xlu0 %v2620_v57, %s10321_s30  ;;  %v3006_v31 = vor.u32 %v3005_v14, %v3002_v56 }
  0xcc   : > { %1084 = vmatmul.mubr.bf16.gmra.mxu0 %v9771_v58  ;;  %v3749_v58 = vrot.slane %v3747_v49, 1 }
  0xcd   : > { %8957 = vmatprep.mubr.msk.bf16.mxu0 %vm807_vm0, %v9774_v59  ;;  %v2873_v59 = vrot.slane %v9122_v50, 1 }
  0xd4   : > { %1092 = vmatmul.mubr.bf16.gmra.mxu0 %v9776_v60  ;;  %v4148_v60 = vshrl.u32 %v9815_v51, 16 }
  0xd5   : > { %8958 = vmatprep.mubr.msk.bf16.mxu0 %vm807_vm0, %v9778_v61  ;;  %v3745_v61 = vor.u32 %v3744_v52, %v3740_v45  ;;  %v333_v52 = vld [vmem:[%s10393_s16 + $0x1a8] sm:$0xff] }
  0xdc   : > { %1100 = vmatmul.mubr.bf16.gmra.mxu0 %v9780_v62  ;;  %v4140_v62 = vshrl.u32 %v9201_v53, 16 }
  0xdd   : > { %8959 = vmatprep.mubr.msk.bf16.mxu0 %vm807_vm0, %v9781_v63  ;;  %v4143_v63 = vshll.u32 %v9201_v53, 16 }
  0xe4   : > { %1108 = vmatmul.mubr.bf16.gmra.mxu0 %v9783_v0  ;;  %v4151_v0 = vshll.u32 %v9815_v51, 16  ;;  %v332_v51 = vld [vmem:[%s10393_s16 + $0x1a0] sm:$0xff] }
  0xe5   : > { %8960 = vmatprep.mubr.msk.bf16.mxu0 %vm807_vm0, %v9784_v1  ;;  %v9817_v1 = vld [vmem:[#allocation2 + $0x14] ss:$0 sps:$4 sm:$0x33]   ;;  %v8904_v56 = vcombine.low %v332_v51, %v333_v52 }
  0xe6   : > { %v4153_v11 = vrot.slane %v4151_v0, 2  ;;  %v3025_v24 = vshrl.u32 %v9817_v1, 16 }
  0xe8   : > { %v3027_v33 = vrot.slane %v3025_v24, 1 }
  0xec   : > { %1116 = vmatmul.mubr.bf16.gmra.mxu0 %v9786_v2  ;;  %v9798_v2 = vld [vmem:[%s10393_s16 + $0x180] ss:$8 sps:$4 sm:$0xff]  }
  0xed   : > { %8961 = vmatprep.mubr.msk.bf16.mxu0 %vm807_vm0, %v9787_v3  ;;  %v2875_v3 = vsel %vm2869_vm5, %v2873_v59, %v2874_v37 }
  0xee   : > { %2920 = vrot.lane.b32.xlu1 %v2875_v3, %s10320_s29  ;;  %v9812_v3 = vld [vmem:[%s10393_s16 + $0x1b0] ss:$8 sps:$4 sm:$0xff]  }
  0xf2   : > { %4059 = vrot.lane.b32.xlu1 %v4013_v12, %s10320_s29 }
  0xf4   : > { %1124 = vmatmul.mubr.bf16.gmra.mxu0 %v9789_v4  ;;  %v4150_v4 = vrot.slane %v4148_v60, 1 }
  0xf5   : > { %8962 = vmatprep.mubr.msk.bf16.mxu0 %vm807_vm0, %v9790_v8  ;;  %v3750_v8 = vsel %vm2596_vm4, %v3745_v61, %v3749_v58  ;;  %v9808_v58 = vld [vmem:[%s10393_s16 + $0x1b4] ss:$8 sps:$4 sm:$0xff]  }
  0xf6   : > { %v4154_v18 = vor.u32 %v4153_v11, %v4150_v4  ;;  %3931 = vrot.lane.b32.xlu0 %v3750_v8, %s10321_s30 }
  0xfc   : > { %1132 = vmatmul.mubr.bf16.gmra.mxu0 %v9792_v9  ;;  %v4142_v9 = vrot.slane %v4140_v62, 1 }
  0xfd   : > { %8963 = vmatprep.mubr.msk.bf16.mxu0 %vm807_vm0, %v9793_v10  ;;  %v4145_v10 = vrot.slane %v4143_v63, 2 }
  0xff   : > { %v4146_v17 = vor.u32 %v4145_v10, %v4142_v9 }
 0x101   : > { %v4155_v30 = vsel %vm2998_vm6, %v4146_v17, %v4154_v18 }
 0x102   : > { %4411 = vrot.lane.b32.xlu0 %v4155_v30, %s10322_s10 }
 0x104   : > { %1140 = vmatmul.mubr.bf16.gmra.mxu0 %v9795_v27  ;;  %v3028_v27 = vshll.u32 %v9817_v1, 16 }
 0x105   : > { %8964 = vmatprep.mubr.msk.bf16.mxu0 %vm807_vm0, %v9796_v32  ;;  %v3014_v32 = vor.u32 %v3013_v23, %v3010_v22 }
 0x106   : > { %v3030_v36 = vrot.slane %v3028_v27, 2 }
 0x107   : > { %v3015_v42 = vsel %vm2998_vm6, %v3006_v31, %v3014_v32 }
 0x108   : > { %v3031_v39 = vor.u32 %v3030_v36, %v3027_v33  ;;  %3271 = vrot.lane.b32.xlu0 %v3015_v42, %s10322_s10 }
 0x10a   : > { %v3032_v45 = vsel %vm2998_vm6, %v3023_v34, %v3031_v39 }
 0x10b   : > { %3273 = vrot.lane.b32.xlu1 %v3032_v45, %s10322_s10 }
 0x10c   : > { %v957_v29 = vpop.f32.mrf.mxu0  ;;  %1148 = vmatmul.mubr.bf16.gmra.mxu0 %v9798_v2 }
 0x10d   : > { %8965 = vmatprep.mubr.msk.bf16.mxu0 %vm807_vm0, %v9799_v7  ;;  %v958_v38 = vadd.f32 %v10560_v28, %v957_v29 }
 0x10e   : > { %v959_v37 = vpop.f32.mrf.mxu0 }
 0x10f   : > { %v1244_v47 = vmax.f32 %v958_v38, 0.0 }
 0x110   : > { %v960_v40 = vpop.f32.mrf.mxu0 }
 0x111   : > { %v961_v43 = vadd.f32 %v10560_v28, %v960_v40 }
 0x112   : > { %v962_v46 = vpop.f32.mrf.mxu0 }
 0x113   : > { %v1245_v48 = vmax.f32 %v961_v43, 0.0 }
 0x114   : > { %v965_v49 = vpop.f32.mrf.mxu0  ;;  %1156 = vmatmul.mubr.bf16.gmra.mxu0 %v9801_v41 }
 0x115   : > { %v1316_v50 = vpack.c.bf16 %v1245_v48, %v1244_v47  ;;  %8966 = vmatprep.mubr.msk.bf16.mxu0 %vm807_vm0, %v9802_v44  ;;  %v966_v54 = vadd.f32 %v10560_v28, %v965_v49 }
 0x116   : > { %v967_v53 = vpop.f32.mrf.mxu0 }
 0x117   : > { %9607 = vmatprep.mubr.msk.bf16.mxu1 %vm1391_vm7, %v1316_v50  ;;  %v1246_v60 = vmax.f32 %v966_v54, 0.0 }
 0x118   : > { %v968_v55 = vpop.f32.mrf.mxu0 }
 0x119   : > { %v969_v57 = vadd.f32 %v10560_v28, %v968_v55 }
 0x11a   : > { %v970_v59 = vpop.f32.mrf.mxu0 }
 0x11b   : > { %v1247_v61 = vmax.f32 %v969_v57, 0.0 }
 0x11c   : > { %v973_v62 = vpop.f32.mrf.mxu0  ;;  %1164 = vmatmul.mubr.bf16.gmra.mxu0 %v8904_v56 }
 0x11d   : > { %v1317_v63 = vpack.c.bf16 %v1247_v61, %v1246_v60  ;;  %8967 = vmatprep.mubr.msk.bf16.mxu0 %vm807_vm0, %v9808_v58  ;;  %v974_v1 = vadd.f32 %v10560_v28, %v973_v62 }
 0x11e   : > { %v975_v0 = vpop.f32.mrf.mxu0 }
 0x11f   : > { %9608 = vmatmul.mubr.msk.bf16.vlgmr.msra.gmra.mxu1 %vm1391_vm7, %v1317_v63  ;;  %v1248_v6 = vmax.f32 %v974_v1, 0.0 }
 0x120   : > { %v976_v2 = vpop.f32.mrf.mxu0 }
 0x121   : > { %v977_v4 = vadd.f32 %v10560_v28, %v976_v2 }
 0x122   : > { %v978_v5 = vpop.f32.mrf.mxu0 }
 0x123   : > { %v1249_v7 = vmax.f32 %v977_v4, 0.0 }
 0x124   : > { %v981_v8 = vpop.f32.mrf.mxu0  ;;  %1172 = vmatmul.mubr.bf16.gmra.mxu0 %v9812_v3 }
 0x125   : > { %v1318_v9 = vpack.c.bf16 %v1249_v7, %v1248_v6  ;;  %v982_v11 = vadd.f32 %v10560_v28, %v981_v8 }
 0x126   : > { %v983_v10 = vpop.f32.mrf.mxu0 }
 0x127   : > { %9611 = vmatprep.mubr.msk.bf16.mxu1 %vm1391_vm7, %v1318_v9  ;;  %v1250_v16 = vmax.f32 %v982_v11, 0.0 }
 0x128   : > { %v984_v12 = vpop.f32.mrf.mxu0 }
 0x129   : > { %v985_v14 = vadd.f32 %v10560_v28, %v984_v12 }
 0x12a   : > { %v986_v15 = vpop.f32.mrf.mxu0 }
 0x12b   : > { %v1251_v17 = vmax.f32 %v985_v14, 0.0 }
 0x12c   : > { %v989_v18 = vpop.f32.mrf.mxu0 }
 0x12d   : > { %v1319_v19 = vpack.c.bf16 %v1251_v17, %v1250_v16  ;;  %v990_v22 = vadd.f32 %v10560_v28, %v989_v18 }
 0x12e   : > { %v991_v20 = vpop.f32.mrf.mxu0 }
 0x12f   : > { %9612 = vmatmul.mubr.msk.bf16.gmra.mxu1 %vm1391_vm7, %v1319_v19  ;;  %v1252_v26 = vmax.f32 %v990_v22, 0.0 }
 0x130   : > { %v992_v23 = vpop.f32.mrf.mxu0 }
 0x131   : > { %v993_v24 = vadd.f32 %v10560_v28, %v992_v23 }
 0x132   : > { %v994_v25 = vpop.f32.mrf.mxu0 }
 0x133   : > { %v1253_v27 = vmax.f32 %v993_v24, 0.0 }
 0x134   : > { %v997_v29 = vpop.f32.mrf.mxu0 }
 0x135   : > { %v1320_v30 = vpack.c.bf16 %v1253_v27, %v1252_v26  ;;  %v998_v32 = vadd.f32 %v10560_v28, %v997_v29 }
 0x136   : > { %v999_v31 = vpop.f32.mrf.mxu0 }
 0x137   : > { %9615 = vmatprep.mubr.msk.bf16.mxu1 %vm1391_vm7, %v1320_v30  ;;  %v1254_v37 = vmax.f32 %v998_v32, 0.0 }
 0x138   : > { %v1000_v33 = vpop.f32.mrf.mxu0 }
 0x139   : > { %v1001_v34 = vadd.f32 %v10560_v28, %v1000_v33 }
 0x13a   : > { %v1002_v36 = vpop.f32.mrf.mxu0 }
 0x13b   : > { %v1255_v38 = vmax.f32 %v1001_v34, 0.0 }
 0x13c   : > { %v1005_v39 = vpop.f32.mrf.mxu0 }
 0x13d   : > { %v1321_v40 = vpack.c.bf16 %v1255_v38, %v1254_v37  ;;  %v1006_v41 = vadd.f32 %v10560_v28, %v1005_v39 }
 0x13e   : > { %v1007_v42 = vpop.f32.mrf.mxu0 }
 0x13f   : > { %9616 = vmatmul.mubr.msk.bf16.gmra.mxu1 %vm1391_vm7, %v1321_v40  ;;  %v1256_v44 = vmax.f32 %v1006_v41, 0.0 }
 0x140   : > { %v1008_v43 = vpop.f32.mrf.mxu0 }
 0x141   : > { %v1009_v45 = vadd.f32 %v10560_v28, %v1008_v43 }
 0x142   : > { %v1010_v46 = vpop.f32.mrf.mxu0 }
 0x143   : > { %v1257_v47 = vmax.f32 %v1009_v45, 0.0 }
 0x144   : > { %v1013_v48 = vpop.f32.mrf.mxu0 }
 0x145   : > { %v1322_v49 = vpack.c.bf16 %v1257_v47, %v1256_v44  ;;  %v1014_v50 = vadd.f32 %v10560_v28, %v1013_v48 }
 0x146   : > { %v1015_v51 = vpop.f32.mrf.mxu0 }
 0x147   : > { %9619 = vmatprep.mubr.msk.bf16.mxu1 %vm1391_vm7, %v1322_v49  ;;  %v1258_v53 = vmax.f32 %v1014_v50, 0.0 }
 0x148   : > { %v1016_v52 = vpop.f32.mrf.mxu0 }
 0x149   : > { %v1017_v54 = vadd.f32 %v10560_v28, %v1016_v52  ;;  %v10618_v52 = vpop.permute.xlu0 %2789 }
 0x14a   : > { %v1018_v55 = vpop.f32.mrf.mxu0  ;;  %14225 = vst [vmem:[#allocation5_spill] sm:$0xff] %v10618_v52 }
 0x14b   : > { %v1259_v56 = vmax.f32 %v1017_v54, 0.0 }
 0x14c   : > { %v1021_v57 = vpop.f32.mrf.mxu0 }
 0x14d   : > { %v1323_v58 = vpack.c.bf16 %v1259_v56, %v1258_v53  ;;  %v1022_v59 = vadd.f32 %v10560_v28, %v1021_v57  ;;  %v5787_v56 = vld [vmem:[#allocation2 + $0xd8] sm:$0xf]  ;;  %v5788_v57 = vld [vmem:[#allocation2 + $0xdc] sm:$0xf] }
 0x14e   : > { %v1023_v60 = vpop.f32.mrf.mxu0 }
 0x14f   : > { %9620 = vmatmul.mubr.msk.bf16.gmra.mxu1 %vm1391_vm7, %v1323_v58  ;;  %v1260_v62 = vmax.f32 %v1022_v59, 0.0  ;;  %v10622_v58 = vcombine.low %v5787_v56, %v5788_v57 }
 0x150   : > { %v1024_v61 = vpop.f32.mrf.mxu0 }
 0x151   : > { %v1025_v63 = vadd.f32 %v10560_v28, %v1024_v61  ;;  %14226 = vst [vmem:[#allocation6_spill] sm:$0xff] %v10622_v58  ;;  %v10624_v61 = vpop.permute.xlu1 %2918 }
 0x152   : > { %v1026_v0 = vpop.f32.mrf.mxu0  ;;  %14227 = vst [vmem:[#allocation7_spill] sm:$0xff] %v10624_v61 }
 0x153   : > { %v1261_v1 = vmax.f32 %v1025_v63, 0.0  ;;  %v9819_v63 = vld [vmem:[#allocation2 + $0xe0] ss:$0 sps:$4 sm:$0x11]   ;;  %v6164_v0 = vshll.u32 %v10622_v58, 16 }
 0x154   : > { %v1029_v2 = vpop.f32.mrf.mxu0 }
 0x155   : > { %v1324_v3 = vpack.c.bf16 %v1261_v1, %v1260_v62  ;;  %v1030_v4 = vadd.f32 %v10560_v28, %v1029_v2  ;;  %v5820_v1 = vld [vmem:[#allocation2 + $0xd8] sm:$0xe] }
 0x156   : > { %v1031_v5 = vpop.f32.mrf.mxu0 }
 0x157   : > { %9623 = vmatprep.mubr.msk.bf16.mxu1 %vm1391_vm7, %v1324_v3  ;;  %v1262_v7 = vmax.f32 %v1030_v4, 0.0  ;;  %v10628_v3 = vpop.permute.xlu0 %2791  ;;  %v9376_v4 = vcombine.low %v5820_v1, %v5788_v57  ;;  %v9821_v5 = vld [vmem:[#allocation2 + $0xe0] ss:$0 sps:$4 sm:$0x33]  }
 0x158   : > { %v1032_v6 = vpop.f32.mrf.mxu0  ;;  %14228 = vst [vmem:[#allocation8_spill] sm:$0xff] %v10628_v3 }
 0x159   : > { %v1033_v8 = vadd.f32 %v10560_v28, %v1032_v6 }
 0x15a   : > { %v1034_v9 = vpop.f32.mrf.mxu0 }
 0x15b   : > { %v1263_v10 = vmax.f32 %v1033_v8, 0.0  ;;  %v6166_v8 = vrot.slane %v6164_v0, 1 }
 0x15c   : > { %v1037_v11 = vpop.f32.mrf.mxu0 }
 0x15d   : > { %v1325_v12 = vpack.c.bf16 %v1263_v10, %v1262_v7  ;;  %v1038_v14 = vadd.f32 %v10560_v28, %v1037_v11  ;;  %v6162_v7 = vshrl.u32 %v10622_v58, 16  ;;  %v6169_v10 = vshll.u32 %v9819_v63, 16 }
 0x15e   : > { %v1039_v15 = vpop.f32.mrf.mxu0  ;;  %v6637_v11 = vshrl.u32 %v9376_v4, 16 }
 0x15f   : > { %9624 = vmatmul.mubr.msk.bf16.gmra.mxu1 %vm1391_vm7, %v1325_v12  ;;  %v1264_v17 = vmax.f32 %v1038_v14, 0.0  ;;  %v6640_v12 = vshll.u32 %v9376_v4, 16  ;;  %v6645_v14 = vshrl.u32 %v9821_v5, 16 }
 0x160   : > { %v1040_v16 = vpop.f32.mrf.mxu0 }
 0x161   : > { %v1041_v18 = vadd.f32 %v10560_v28, %v1040_v16 }
 0x162   : > { %v1042_v19 = vpop.f32.mrf.mxu0 }
 0x163   : > { %v1265_v20 = vmax.f32 %v1041_v18, 0.0  ;;  %v10632_v18 = vpop.permute.xlu1 %2920  ;;  %v6167_v19 = vor.u32 %v6166_v8, %v6162_v7 }
 0x164   : > { %v1045_v22 = vpop.f32.mrf.mxu0  ;;  %14229 = vst [vmem:[#allocation9_spill] sm:$0xff] %v10632_v18 }
 0x165   : > { %v1326_v23 = vpack.c.bf16 %v1265_v20, %v1264_v17  ;;  %v1046_v24 = vadd.f32 %v10560_v28, %v1045_v22  ;;  %v6171_v20 = vrot.slane %v6169_v10, 1  ;;  %v6639_v22 = vrot.slane %v6637_v11, 1 }
 0x166   : > { %v1047_v25 = vpop.f32.mrf.mxu0 }
 0x167   : > { %9627 = vmatprep.mubr.msk.bf16.mxu1 %vm1391_vm7, %v1326_v23  ;;  %v1266_v27 = vmax.f32 %v1046_v24, 0.0  ;;  %v6642_v23 = vrot.slane %v6640_v12, 2  ;;  %v6647_v24 = vrot.slane %v6645_v14, 1  ;;  %v6648_v25 = vshll.u32 %v9821_v5, 16 }
 0x168   : > { %v1048_v26 = vpop.f32.mrf.mxu0 }
 0x169   : > { %v1049_v29 = vadd.f32 %v10560_v28, %v1048_v26 }
 0x16a   : > { %v1050_v30 = vpop.f32.mrf.mxu0 }
 0x16b   : > { %v1267_v31 = vmax.f32 %v1049_v29, 0.0  ;;  %v6172_v29 = vsel %vm2596_vm4, %v6167_v19, %v6171_v20 }
 0x16c   : > { %v1053_v32 = vpop.f32.mrf.mxu0  ;;  %6203 = vrot.lane.b32.xlu0 %v6172_v29, %s10321_s30 }
 0x16d   : > { %v1327_v33 = vpack.c.bf16 %v1267_v31, %v1266_v27  ;;  %v1054_v34 = vadd.f32 %v10560_v28, %v1053_v32  ;;  %v3932_v27 = vpop.permute.xlu0 %3931  ;;  %v6643_v32 = vor.u32 %v6642_v23, %v6639_v22 }
 0x16e   : > { %v1055_v36 = vpop.f32.mrf.mxu0 }
 0x16f   : > { %9628 = vmatmul.mubr.msk.bf16.gmra.mxu1 %vm1391_vm7, %v1327_v33  ;;  %v1268_v38 = vmax.f32 %v1054_v34, 0.0  ;;  %v6650_v33 = vrot.slane %v6648_v25, 2  ;;  %v4540_v36 = vsel %vm3400_vm8, %v10536_v35, %v3932_v27 }
 0x170   : > { %v1056_v37 = vpop.f32.mrf.mxu0 }
 0x171   : > { %v1057_v39 = vadd.f32 %v10560_v28, %v1056_v37  ;;  %v6298_v37 = vrot.slane %v9376_v4, 1 }
 0x172   : > { %v1058_v40 = vpop.f32.mrf.mxu0 }
 0x173   : > { %v1269_v41 = vmax.f32 %v1057_v39, 0.0  ;;  %v6651_v40 = vor.u32 %v6650_v33, %v6647_v24 }
 0x174   : > { %v1061_v42 = vpop.f32.mrf.mxu0 }
 0x175   : > { %v1328_v43 = vpack.c.bf16 %v1269_v41, %v1268_v38  ;;  %v1062_v44 = vadd.f32 %v10560_v28, %v1061_v42  ;;  %v6299_v38 = vrot.slane %v9819_v63, 1  ;;  %v4060_v42 = vpop.permute.xlu1 %4059 }
 0x176   : > { %v1063_v45 = vpop.f32.mrf.mxu0 }
 0x177   : > { %9631 = vmatprep.mubr.msk.bf16.mxu1 %vm1391_vm7, %v1328_v43  ;;  %v1270_v47 = vmax.f32 %v1062_v44, 0.0  ;;  %v6300_v43 = vsel %vm2869_vm5, %v6298_v37, %v6299_v38 }
 0x178   : > { %v1064_v46 = vpop.f32.mrf.mxu0  ;;  %6331 = vrot.lane.b32.xlu0 %v6300_v43, %s10320_s29 }
 0x179   : > { %v1065_v48 = vadd.f32 %v10560_v28, %v1064_v46  ;;  %v4572_v46 = vsel %vm1391_vm7, %v4540_v36, %v4060_v42 }
 0x17a   : > { %v1066_v49 = vpop.f32.mrf.mxu0 }
 0x17b   : > { %v1271_v50 = vmax.f32 %v1065_v48, 0.0  ;;  %v4412_v49 = vpop.permute.xlu0 %4411 }
 0x17c   : > { %v1069_v51 = vpop.f32.mrf.mxu0  ;;  %v4604_v35 = vsel %vm3465_vm9, %v4572_v46, %v4412_v49 }
 0x17d   : > { %v1329_v53 = vpack.c.bf16 %v1271_v50, %v1270_v47  ;;  %v1070_v54 = vadd.f32 %v10560_v28, %v1069_v51  ;;  %v6652_v47 = vsel %vm2998_vm6, %v6643_v32, %v6651_v40 }
 0x17e   : > { %v1071_v55 = vpop.f32.mrf.mxu0  ;;  %6683 = vrot.lane.b32.xlu1 %v6652_v47, %s10322_s10 }
 0x17f   : > { %9632 = vmatmul.mubr.msk.bf16.gmra.mxu1 %vm1391_vm7, %v1329_v53  ;;  %v1272_v59 = vmax.f32 %v1070_v54, 0.0 }
 0x180   : > { %v1072_v60 = vpop.f32.mrf.mxu0 }
 0x181   : > { %v1073_v62 = vadd.f32 %v10560_v28, %v1072_v60 }
 0x182   : > { %v1074_v2 = vpop.f32.mrf.mxu0  ;;  %8030 = vrot.lane.b32.xlu1 %v4604_v35, %s10321_s30 }
 0x183   : > { %v1273_v6 = vmax.f32 %v1073_v62, 0.0 }
 0x184   : > { %v1077_v9 = vpop.f32.mrf.mxu0 }
 0x185   : > { %v1330_v15 = vpack.c.bf16 %v1273_v6, %v1272_v59  ;;  %v1078_v16 = vadd.f32 %v10560_v28, %v1077_v9 }
 0x186   : > { %v1079_v17 = vpop.f32.mrf.mxu0 }
 0x187   : > { %9635 = vmatprep.mubr.msk.bf16.mxu1 %vm1391_vm7, %v1330_v15  ;;  %v1274_v30 = vmax.f32 %v1078_v16, 0.0 }
 0x188   : > { %v1080_v26 = vpop.f32.mrf.mxu0 }
 0x189   : > { %v1081_v31 = vadd.f32 %v10560_v28, %v1080_v26 }
 0x18a   : > { %v1082_v34 = vpop.f32.mrf.mxu0 }
 0x18b   : > { %v1275_v39 = vmax.f32 %v1081_v31, 0.0 }
 0x18c   : > { %v1085_v41 = vpop.f32.mrf.mxu0 }
 0x18d   : > { %v1331_v44 = vpack.c.bf16 %v1275_v39, %v1274_v30  ;;  %v1086_v45 = vadd.f32 %v10560_v28, %v1085_v41 }
 0x18e   : > { %v1087_v48 = vpop.f32.mrf.mxu0 }
 0x18f   : > { %9636 = vmatmul.mubr.msk.bf16.gmra.mxu1 %vm1391_vm7, %v1331_v44  ;;  %v1276_v51 = vmax.f32 %v1086_v45, 0.0 }
 0x190   : > { %v1088_v50 = vpop.f32.mrf.mxu0 }
 0x191   : > { %v1089_v53 = vadd.f32 %v10560_v28, %v1088_v50 }
 0x192   : > { %v1090_v54 = vpop.f32.mrf.mxu0 }
 0x193   : > { %v1277_v55 = vmax.f32 %v1089_v53, 0.0 }
 0x194   : > { %v1093_v56 = vpop.f32.mrf.mxu0 }
 0x195   : > { %v1332_v57 = vpack.c.bf16 %v1277_v55, %v1276_v51  ;;  %v1094_v59 = vadd.f32 %v10560_v28, %v1093_v56 }
 0x196   : > { %v1095_v60 = vpop.f32.mrf.mxu0 }
 0x197   : > { %9639 = vmatprep.mubr.msk.bf16.mxu1 %vm1391_vm7, %v1332_v57  ;;  %v1278_v63 = vmax.f32 %v1094_v59, 0.0 }
 0x198   : > { %v1096_v62 = vpop.f32.mrf.mxu0 }
 0x199   : > { %v1097_v0 = vadd.f32 %v10560_v28, %v1096_v62 }
 0x19a   : > { %v1098_v1 = vpop.f32.mrf.mxu0 }
 0x19b   : > { %v1279_v2 = vmax.f32 %v1097_v0, 0.0 }
 0x19c   : > { %v1101_v4 = vpop.f32.mrf.mxu0 }
 0x19d   : > { %v1333_v5 = vpack.c.bf16 %v1279_v2, %v1278_v63  ;;  %v1102_v6 = vadd.f32 %v10560_v28, %v1101_v4 }
 0x19e   : > { %v1103_v7 = vpop.f32.mrf.mxu0 }
 0x19f   : > { %9640 = vmatmul.mubr.msk.bf16.gmra.mxu1 %vm1391_vm7, %v1333_v5  ;;  %v1280_v9 = vmax.f32 %v1102_v6, 0.0 }
 0x1a0   : > { %v1104_v8 = vpop.f32.mrf.mxu0 }
 0x1a1   : > { %v1105_v10 = vadd.f32 %v10560_v28, %v1104_v8 }
 0x1a2   : > { %v1106_v11 = vpop.f32.mrf.mxu0 }
 0x1a3   : > { %v1281_v12 = vmax.f32 %v1105_v10, 0.0 }
 0x1a4   : > { %v1109_v14 = vpop.f32.mrf.mxu0 }
 0x1a5   : > { %v1334_v15 = vpack.c.bf16 %v1281_v12, %v1280_v9  ;;  %v1110_v16 = vadd.f32 %v10560_v28, %v1109_v14 }
 0x1a6   : > { %v1111_v17 = vpop.f32.mrf.mxu0 }
 0x1a7   : > { %9643 = vmatprep.mubr.msk.bf16.mxu1 %vm1391_vm7, %v1334_v15  ;;  %v1282_v20 = vmax.f32 %v1110_v16, 0.0 }
 0x1a8   : > { %v1112_v19 = vpop.f32.mrf.mxu0 }
 0x1a9   : > { %v1113_v22 = vadd.f32 %v10560_v28, %v1112_v19 }
 0x1aa   : > { %v1114_v23 = vpop.f32.mrf.mxu0 }
 0x1ab   : > { %v1283_v24 = vmax.f32 %v1113_v22, 0.0 }
 0x1ac   : > { %v1117_v25 = vpop.f32.mrf.mxu0 }
 0x1ad   : > { %v1335_v26 = vpack.c.bf16 %v1283_v24, %v1282_v20  ;;  %v1118_v27 = vadd.f32 %v10560_v28, %v1117_v25 }
 0x1ae   : > { %v1119_v29 = vpop.f32.mrf.mxu0 }
 0x1af   : > { %9644 = vmatmul.mubr.msk.bf16.gmra.mxu1 %vm1391_vm7, %v1335_v26  ;;  %v1284_v31 = vmax.f32 %v1118_v27, 0.0 }
 0x1b0   : > { %v1120_v30 = vpop.f32.mrf.mxu0 }
 0x1b1   : > { %v1121_v32 = vadd.f32 %v10560_v28, %v1120_v30 }
 0x1b2   : > { %v1122_v33 = vpop.f32.mrf.mxu0 }
 0x1b3   : > { %v1285_v34 = vmax.f32 %v1121_v32, 0.0 }
 0x1b4   : > { %v1125_v36 = vpop.f32.mrf.mxu0 }
 0x1b5   : > { %v1336_v37 = vpack.c.bf16 %v1285_v34, %v1284_v31  ;;  %v1126_v38 = vadd.f32 %v10560_v28, %v1125_v36 }
 0x1b6   : > { %v1127_v39 = vpop.f32.mrf.mxu0 }
 0x1b7   : > { %9647 = vmatprep.mubr.msk.bf16.mxu1 %vm1391_vm7, %v1336_v37  ;;  %v1286_v41 = vmax.f32 %v1126_v38, 0.0 }
 0x1b8   : > { %v1128_v40 = vpop.f32.mrf.mxu0 }
 0x1b9   : > { %v1129_v42 = vadd.f32 %v10560_v28, %v1128_v40 }
 0x1ba   : > { %v1130_v43 = vpop.f32.mrf.mxu0 }
 0x1bb   : > { %v1287_v44 = vmax.f32 %v1129_v42, 0.0  ;;  %v1893_v43 = vlaneseq }
 0x1bc   : > { %v1133_v45 = vpop.f32.mrf.mxu0 }
 0x1bd   : > { %v1337_v46 = vpack.c.bf16 %v1287_v44, %v1286_v41  ;;  %v1134_v47 = vadd.f32 %v10560_v28, %v1133_v45 }
 0x1be   : > { %v1135_v48 = vpop.f32.mrf.mxu0 }
 0x1bf   : > { %9648 = vmatmul.mubr.msk.bf16.gmra.mxu1 %vm1391_vm7, %v1337_v46  ;;  %v1288_v35 = vmax.f32 %v1134_v47, 0.0  ;;  %v10686_v48 = vld [vmem:[%s14126_s4] ss:$0 sm:$0xff] }
 0x1c0   : > { %v1136_v49 = vpop.f32.mrf.mxu0 }
 0x1c1   : > { %v1137_v50 = vadd.f32 %v10560_v28, %v1136_v49  ;;  %v10688_v49 = vshrl.u32 %v1893_v43, 7 }
 0x1c2   : > { %v1138_v51 = vpop.f32.mrf.mxu0 }
 0x1c3   : > { %v1289_v53 = vmax.f32 %v1137_v50, 0.0  ;;  %14230 = vst [vmem:[#allocation10_spill] sm:$0xff] %v10688_v49  ;;  %vm1897_vm10 = vcmp.ge.s32.totalorder %v10688_v49, 2 }
 0x1c4   : > { %v1141_v54 = vpop.f32.mrf.mxu0 }
 0x1c5   : > { %v1338_v55 = vpack.c.bf16 %v1289_v53, %v1288_v35  ;;  %v1142_v56 = vadd.f32 %v10560_v28, %v1141_v54 }
 0x1c6   : > { %v1143_v57 = vpop.f32.mrf.mxu0 }
 0x1c7   : > { %9651 = vmatprep.mubr.msk.bf16.mxu1 %vm1391_vm7, %v1338_v55  ;;  %v1290_v60 = vmax.f32 %v1142_v56, 0.0 }
 0x1c8   : > { %v1144_v59 = vpop.f32.mrf.mxu0 }
 0x1c9   : > { %v1145_v62 = vadd.f32 %v10560_v28, %v1144_v59 }
 0x1ca   : > { %v1146_v63 = vpop.f32.mrf.mxu0 }
 0x1cb   : > { %v1291_v0 = vmax.f32 %v1145_v62, 0.0 }
 0x1cc   : > { %v1149_v1 = vpop.f32.mrf.mxu0 }
 0x1cd   : > { %v1339_v2 = vpack.c.bf16 %v1291_v0, %v1290_v60  ;;  %v1150_v4 = vadd.f32 %v10560_v28, %v1149_v1  ;;  %v10699_v0 = vadd.s32 16, %v10688_v49 }
 0x1ce   : > { %v1151_v5 = vpop.f32.mrf.mxu0 }
 0x1cf   : > { %9652 = vmatmul.mubr.msk.bf16.gmra.mxu1 %vm1391_vm7, %v1339_v2  ;;  %v1292_v7 = vmax.f32 %v1150_v4, 0.0  ;;  %vm1908_vm11 = vcmp.lt.s32.totalorder %v10699_v0, 18 }
 0x1d0   : > { %v1152_v6 = vpop.f32.mrf.mxu0 }
 0x1d1   : > { %v1153_v8 = vadd.f32 %v10560_v28, %v1152_v6 }
 0x1d2   : > { %v1154_v9 = vpop.f32.mrf.mxu0 }
 0x1d3   : > { %v1293_v10 = vmax.f32 %v1153_v8, 0.0 }
 0x1d4   : > { %v1157_v11 = vpop.f32.mrf.mxu0 }
 0x1d5   : > { %v1340_v12 = vpack.c.bf16 %v1293_v10, %v1292_v7  ;;  %v1158_v14 = vadd.f32 %v10560_v28, %v1157_v11 }
 0x1d6   : > { %v1159_v15 = vpop.f32.mrf.mxu0 }
 0x1d7   : > { %9655 = vmatprep.mubr.msk.bf16.mxu1 %vm1391_vm7, %v1340_v12  ;;  %v1294_v17 = vmax.f32 %v1158_v14, 0.0 }
 0x1d8   : > { %v1160_v16 = vpop.f32.mrf.mxu0 }
 0x1d9   : > { %v1161_v19 = vadd.f32 %v10560_v28, %v1160_v16 }
 0x1da   : > { %v1162_v20 = vpop.f32.mrf.mxu0 }
 0x1db   : > { %v1295_v22 = vmax.f32 %v1161_v19, 0.0 }
 0x1dc   : > { %v1165_v23 = vpop.f32.mrf.mxu0 }
 0x1dd   : > { %v1341_v24 = vpack.c.bf16 %v1295_v22, %v1294_v17  ;;  %v1166_v25 = vadd.f32 %v10560_v28, %v1165_v23 }
 0x1de   : > { %v1167_v26 = vpop.f32.mrf.mxu0 }
 0x1df   : > { %v9609_v27 = vpop.f32.mrf.mxu1  ;;  %9656 = vmatmul.mubr.msk.bf16.gmra.mxu1 %vm1391_vm7, %v1341_v24  ;;  %v1296_v31 = vmax.f32 %v1166_v25, 0.0 }
 0x1e0   : > { %v1168_v29 = vpop.f32.mrf.mxu0 }
 0x1e1   : > { %v1534_v30 = vpop.f32.mrf.mxu1  ;;  %v1169_v32 = vadd.f32 %v10560_v28, %v1168_v29 }
 0x1e2   : > { %v1170_v33 = vpop.f32.mrf.mxu0 }
 0x1e3   : > { %v9610_v34 = vpop.f32.mrf.mxu1  ;;  %v1297_v36 = vmax.f32 %v1169_v32, 0.0 }
 0x1e4   : > { %v1173_v37 = vpop.f32.mrf.mxu0 }
 0x1e5   : > { %v1537_v38 = vpop.f32.mrf.mxu1  ;;  %v1342_v39 = vpack.c.bf16 %v1297_v36, %v1296_v31  ;;  %v1174_v40 = vadd.f32 %v10560_v28, %v1173_v37 }
 0x1e6   : > { %v1175_v41 = vpop.f32.mrf.mxu0 }
 0x1e7   : > { %9659 = vmatprep.mubr.msk.bf16.mxu1 %vm1391_vm7, %v1342_v39  ;;  %v1298_v44 = vmax.f32 %v1174_v40, 0.0 }
 0x1e8   : > { %v1176_v42 = vpop.f32.mrf.mxu0 }
 0x1e9   : > { %v1177_v45 = vadd.f32 %v10560_v28, %v1176_v42 }
 0x1ea   : > { %v1178_v46 = vpop.f32.mrf.mxu0 }
 0x1eb   : > { %v1299_v47 = vmax.f32 %v1177_v45, 0.0 }
 0x1ed   : > { %v1343_v35 = vpack.c.bf16 %v1299_v47, %v1298_v44 }
 0x1ef   : > { %v9613_v50 = vpop.f32.mrf.mxu1  ;;  %9660 = vmatmul.mubr.msk.bf16.gmra.mxu1 %vm1391_vm7, %v1343_v35 }
 0x1f0   : > { %v1559_v51 = vadd.f32 %v9613_v50, %v10686_v48 }
 0x1f1   : > { %v1550_v53 = vpop.f32.mrf.mxu1 }
 0x1f2   : > { %v1827_v54 = vmax.f32 %v1559_v51, 0.0 }
 0x1f3   : > { %v9614_v28 = vpop.f32.mrf.mxu1 }
 0x1f4   : > { %v1921_v55 = vsel %vm1897_vm10, %v1827_v54, 0.0  ;;  %v1562_v56 = vadd.f32 %v9614_v28, %v10686_v48 }
 0x1f5   : > { %v9493_v57 = vpack.c.bf16 %v1921_v55, %v1921_v55  ;;  %v1553_v59 = vpop.f32.mrf.mxu1 }
 0x1f6   : > { %v1828_v60 = vmax.f32 %v1562_v56, 0.0 }
 0x1f7   : > { %2306 = vst.msk [vmem:[#allocation2 + $0x18] sm:$0xf] %vm2299_vm3, %v9493_v57 }
 0x1f8   : > { %v9494_v62 = vpack.c.bf16 %v1828_v60, %v1828_v60 }
 0x1fa   : > { %2307 = vst.msk [vmem:[#allocation2 + $0x1c] sm:$0xf] %vm2299_vm3, %v9494_v62 }
 0x1fe   : > { %v3517_v10 = vld [vmem:[#allocation2 + $0x18] sm:$0xf] }
 0x1ff   : > { %v9617_v63 = vpop.f32.mrf.mxu1  ;;  %v3564_v16 = vld [vmem:[#allocation2 + $0x18] sm:$0xe] }
 0x200   : > { %v1575_v1 = vadd.f32 %v9617_v63, %v10686_v48  ;;  %v4636_v17 = vld [vmem:[#allocation2 + $0x18] sm:$0xf] }
 0x201   : > { %v1566_v2 = vpop.f32.mrf.mxu1  ;;  %v3518_v4 = vld [vmem:[#allocation2 + $0x1c] sm:$0xf]  ;;  %v2376_v23 = vld [vmem:[#allocation2 + $0x18] sm:$0xf] }
 0x202   : > { %v1831_v5 = vmax.f32 %v1575_v1, 0.0  ;;  %v1567_v6 = vadd.f32 %v10686_v48, %v1566_v2  ;;  %v4637_v7 = vld [vmem:[#allocation2 + $0x1c] sm:$0xf]  ;;  %v10705_v15 = vcombine.low %v3517_v10, %v3518_v4  ;;  %v10707_v20 = vcombine.low %v3564_v16, %v3518_v4  ;;  %v2422_v27 = vld [vmem:[#allocation2 + $0x18] sm:$0xe] }
 0x203   : > { %v9618_v8 = vpop.f32.mrf.mxu1  ;;  %v2377_v9 = vld [vmem:[#allocation2 + $0x1c] sm:$0xf]  ;;  %v10709_v22 = vcombine.low %v4636_v17, %v4637_v7  ;;  %v4684_v32 = vld [vmem:[#allocation2 + $0x18] sm:$0xe] }
 0x204   : > { %v9497_v11 = vpack.c.bf16 %v1831_v5, %v1831_v5  ;;  %v1829_v12 = vmax.f32 %v1567_v6, 0.0  ;;  %v1578_v14 = vadd.f32 %v9618_v8, %v10686_v48  ;;  %v10715_v29 = vcombine.low %v2376_v23, %v2377_v9 }
 0x205   : > { %v1569_v19 = vpop.f32.mrf.mxu1  ;;  %14231 = vst [vmem:[#allocation11_spill] sm:$0xff] %v10709_v22  ;;  %v9123_v31 = vcombine.low %v2422_v27, %v2377_v9  ;;  %v3754_v36 = vshll.u32 %v10705_v15, 16  ;;  %v10720_v37 = vcombine.low %v4684_v32, %v4637_v7  ;;  %v4863_v39 = vshll.u32 %v10709_v22, 16 }
 0x206   : > { %2310 = vst.msk [vmem:[#allocation2 + $0x28] sm:$0xf] %vm2299_vm3, %v9497_v11  ;;  %v1923_v24 = vsel %vm1908_vm11, %v1829_v12, 0.0  ;;  %v1832_v25 = vmax.f32 %v1578_v14, 0.0  ;;  %v1570_v26 = vadd.f32 %v10686_v48, %v1569_v19  ;;  %14232 = vst [vmem:[#allocation12_spill] sm:$0xff] %v10715_v29  ;;  %v4157_v40 = vshrl.u32 %v10707_v20, 16 }
 0x207   : > { %v9495_v30 = vpack.c.bf16 %v1923_v24, %v1923_v24  ;;  %v4160_v41 = vshll.u32 %v10707_v20, 16  ;;  %v2624_v43 = vshll.u32 %v10715_v29, 16  ;;  %v3034_v45 = vshrl.u32 %v9123_v31, 16 }
 0x208   : > { %v1926_v33 = vsel %vm1908_vm11, %v1832_v25, 0.0  ;;  %v1830_v34 = vmax.f32 %v1570_v26, 0.0  ;;  %v3037_v46 = vshll.u32 %v9123_v31, 16  ;;  %v2876_v47 = vrot.slane %v9123_v31, 1 }
 0x209   : > { %2308 = vst.msk [vmem:[#allocation2 + $0x20] sm:$0xf] %vm2299_vm3, %v9495_v30  ;;  %v9498_v38 = vpack.c.bf16 %v1926_v33, %v1926_v33  ;;  %v3756_v35 = vrot.slane %v3754_v36, 1  ;;  %v5261_v50 = vshrl.u32 %v10720_v37, 16  ;;  %v4865_v51 = vrot.slane %v4863_v39, 1 }
 0x20a   : > { %v1924_v42 = vsel %vm1897_vm10, %v1830_v34, 0.0  ;;  %v10732_v53 = vrot.slane %v4157_v40, 1  ;;  %v10734_v54 = vrot.slane %v4160_v41, 2  ;;  %v5264_v28 = vshll.u32 %v10720_v37, 16 }
 0x20b   : > { %2311 = vst.msk [vmem:[#allocation2 + $0x2c] sm:$0xf] %vm2299_vm3, %v9498_v38  ;;  %v9496_v44 = vpack.c.bf16 %v1924_v42, %v1924_v42  ;;  %v3752_v55 = vshrl.u32 %v10705_v15, 16  ;;  %v4014_v56 = vrot.slane %v10707_v20, 1  ;;  %v4861_v57 = vshrl.u32 %v10709_v22, 16 }
 0x20c   : > { %v2626_v59 = vrot.slane %v2624_v43, 1  ;;  %v5132_v62 = vrot.slane %v10720_v37, 1  ;;  %v2622_v63 = vshrl.u32 %v10715_v29, 16  ;;  %v10742_v1 = vrot.slane %v3034_v45, 1 }
 0x20d   : > { %2309 = vst.msk [vmem:[#allocation2 + $0x24] sm:$0xf] %vm2299_vm3, %v9496_v44  ;;  %v10744_v2 = vrot.slane %v3037_v46, 2  ;;  %v10747_v6 = vrot.slane %v5261_v50, 1  ;;  %v3757_v8 = vor.u32 %v3756_v35, %v3752_v55  ;;  %v4866_v10 = vor.u32 %v4865_v51, %v4861_v57 }
 0x20e   : > { %v4163_v11 = vor.u32 %v10734_v54, %v10732_v53  ;;  %v10751_v12 = vrot.slane %v5264_v28, 2  ;;  %v10754_v19 = vor.u32 %v2626_v59, %v2622_v63 }
 0x20f   : > { %v9621_v60 = vpop.f32.mrf.mxu1  ;;  %v3040_v27 = vor.u32 %v10744_v2, %v10742_v1 }
 0x210   : > { %v9822_v4 = vld [vmem:[#allocation2 + $0x20] ss:$0 sps:$4 sm:$0x11]   ;;  %v1591_v5 = vadd.f32 %v9621_v60, %v10686_v48  ;;  %v5267_v40 = vor.u32 %v10751_v12, %v10747_v6  ;;  %v10774_v60 = vld [vmem:[#allocation2 + $0x28] sm:$0xf] }
 0x211   : > { %v9825_v7 = vld [vmem:[#allocation2 + $0x20] ss:$0 sps:$4 sm:$0x11]   ;;  %v1582_v9 = vpop.f32.mrf.mxu1  ;;  %v2877_v14 = vrot.slane %v9822_v4, 1  ;;  %v2629_v26 = vshll.u32 %v9822_v4, 16 }
 0x212   : > { %v1835_v16 = vmax.f32 %v1591_v5, 0.0  ;;  %v1583_v17 = vadd.f32 %v10686_v48, %v1582_v9  ;;  %v3759_v20 = vshll.u32 %v9825_v7, 16  ;;  %v4015_v23 = vrot.slane %v9825_v7, 1  ;;  %v9827_v25 = vld [vmem:[#allocation2 + $0x20] ss:$0 sps:$4 sm:$0x11]  }
 0x213   : > { %v9622_v24 = vpop.f32.mrf.mxu1  ;;  %v2878_v30 = vsel %vm2869_vm5, %v2876_v47, %v2877_v14  ;;  %v9828_v34 = vld [vmem:[#allocation2 + $0x20] ss:$0 sps:$4 sm:$0x33]   ;;  %v4868_v38 = vshll.u32 %v9827_v25, 16  ;;  %v5133_v44 = vrot.slane %v9827_v25, 1 }
 0x214   : > { %v1929_v31 = vsel %vm1908_vm11, %v1835_v16, 0.0  ;;  %v1833_v32 = vmax.f32 %v1583_v17, 0.0  ;;  %v1594_v33 = vadd.f32 %v9622_v24, %v10686_v48  ;;  %2922 = vrot.lane.b32.xlu1 %v2878_v30, %s10320_s29  ;;  %v3761_v37 = vrot.slane %v3759_v20, 1  ;;  %v9829_v45 = vld [vmem:[#allocation2 + $0x20] ss:$0 sps:$4 sm:$0x33]  }
 0x215   : > { %v9501_v36 = vpack.c.bf16 %v1929_v31, %v1929_v31  ;;  %v1585_v39 = vpop.f32.mrf.mxu1  ;;  %v4870_v35 = vrot.slane %v4868_v38, 1  ;;  %v4165_v50 = vshrl.u32 %v9828_v34, 16  ;;  %v2423_v51 = vld [vmem:[#allocation2 + $0x24] sm:$0xe]  ;;  %v4016_v28 = vsel %vm2869_vm5, %v4014_v56, %v4015_v23  ;;  %v10778_v4 = vld [vmem:[#allocation2 + $0x28] sm:$0xf] }
 0x216   : > { %v1927_v41 = vsel %vm1897_vm10, %v1833_v32, 0.0  ;;  %v1836_v42 = vmax.f32 %v1594_v33, 0.0  ;;  %v1586_v43 = vadd.f32 %v10686_v48, %v1585_v39  ;;  %v3762_v46 = vsel %vm2596_vm4, %v3757_v8, %v3761_v37  ;;  %v10776_v63 = vld [vmem:[#allocation2 + $0x2c] ss:$0 sps:$4 sm:$0x11]  }
 0x217   : > { %2314 = vst.msk [vmem:[#allocation2 + $0x38] sm:$0xf] %vm2299_vm3, %v9501_v36  ;;  %v9499_v47 = vpack.c.bf16 %v1927_v41, %v1927_v41  ;;  %3933 = vrot.lane.b32.xlu0 %v3762_v46, %s10321_s30  ;;  %v4168_v59 = vshll.u32 %v9828_v34, 16  ;;  %v5134_v7 = vsel %vm2869_vm5, %v5132_v62, %v5133_v44  ;;  %v4167_v8 = vrot.slane %v4165_v50, 1  ;;  %v4685_v9 = vld [vmem:[#allocation2 + $0x24] sm:$0xe] }
 0x218   : > { %v1930_v55 = vsel %vm1897_vm10, %v1836_v42, 0.0  ;;  %v1834_v57 = vmax.f32 %v1586_v43, 0.0  ;;  %4061 = vrot.lane.b32.xlu1 %v4016_v28, %s10320_s29  ;;  %v2631_v56 = vrot.slane %v2629_v26, 1  ;;  %v3042_v17 = vshrl.u32 %v9829_v45, 16  ;;  %v3520_v24 = vld [vmem:[#allocation2 + $0x28] sm:$0xf] }
 0x219   : > { %2312 = vst.msk [vmem:[#allocation2 + $0x30] sm:$0xf] %vm2299_vm3, %v9499_v47  ;;  %v9502_v5 = vpack.c.bf16 %v1930_v55, %v1930_v55  ;;  %v4170_v16 = vrot.slane %v4168_v59, 2  ;;  %v3045_v20 = vshll.u32 %v9829_v45, 16  ;;  %v4871_v25 = vsel %vm2596_vm4, %v4866_v10, %v4870_v35  ;;  %v3565_v26 = vld [vmem:[#allocation2 + $0x24] sm:$0xe] }
 0x21a   : > { %v9500_v14 = vpack.c.bf16 %v1834_v57, %v1834_v57  ;;  %v10783_v23 = vld [vmem:[#allocation2 + $0x2c] ss:$0 sps:$4 sm:$0x11]   ;;  %v10788_v30 = vcombine.low %v2423_v51, %v10774_v60  ;;  %v2880_v31 = vrot.slane %v10776_v63, 1  ;;  %v10792_v62 = vcombine.low %v4685_v9, %v10778_v4  ;;  %v10794_v33 = vld [vmem:[#allocation2 + $0x28] sm:$0xf] }
 0x21b   : > { %2315 = vst.msk [vmem:[#allocation2 + $0x3c] sm:$0xf] %vm2299_vm3, %v9502_v5  ;;  %v9834_v32 = vld [vmem:[#allocation2 + $0x2c] ss:$0 sps:$4 sm:$0x11]   ;;  %5052 = vrot.lane.b32.xlu0 %v4871_v25, %s10321_s30  ;;  %v4171_v34 = vor.u32 %v4170_v16, %v4167_v8  ;;  %v3044_v36 = vrot.slane %v3042_v17, 1  ;;  %v10802_v41 = vcombine.low %v3565_v26, %v3520_v24  ;;  %v2632_v44 = vsel %vm2596_vm4, %v10754_v19, %v2631_v56 }
 0x21c   : > { %2313 = vst.msk [vmem:[#allocation2 + $0x34] sm:$0xf] %vm2299_vm3, %v9500_v14  ;;  %v3047_v37 = vrot.slane %v3045_v20, 2  ;;  %v5136_v10 = vrot.slane %v10783_v23, 1  ;;  %5180 = vrot.lane.b32.xlu1 %v5134_v7, %s10320_s29  ;;  %v2879_v38 = vrot.slane %v10788_v30, 1  ;;  %v5135_v39 = vrot.slane %v10792_v62, 1 }
 0x21d   : > { %v4018_v42 = vrot.slane %v9834_v32, 1  ;;  %v5805_v43 = vld [vmem:[#allocation2 + $0x24] sm:$0xe]  ;;  %v10806_v46 = vld [vmem:[#allocation2 + $0x2c] ss:$0 sps:$4 sm:$0x11]   ;;  %v4172_v51 = vsel %vm2998_vm6, %v4163_v11, %v4171_v34 }
 0x21e   : > { %v3048_v45 = vor.u32 %v3047_v37, %v3044_v36  ;;  %v10809_v47 = vcombine.low %v5805_v43, %v10794_v33  ;;  %v3771_v35 = vshll.u32 %v9834_v32, 16  ;;  %v2881_v28 = vsel %vm2869_vm5, %v2879_v38, %v2880_v31  ;;  %v9838_v19 = vld [vmem:[#allocation2 + $0x20] ss:$0 sps:$4 sm:$0x33]   ;;  %v3519_v59 = vld [vmem:[#allocation2 + $0x24] sm:$0xf] }
 0x21f   : > { %v9625_v50 = vpop.f32.mrf.mxu1  ;;  %v5137_v55 = vsel %vm2869_vm5, %v5135_v39, %v5136_v10  ;;  %v4017_v57 = vrot.slane %v10802_v41, 1  ;;  %4413 = vrot.lane.b32.xlu0 %v4172_v51, %s10322_s10  ;;  %v6254_v54 = vrot.slane %v10806_v46, 1  ;;  %v5269_v56 = vshrl.u32 %v9838_v19, 16  ;;  %v2378_v16 = vld [vmem:[#allocation2 + $0x24] sm:$0xf] }
 0x220   : > { %v1607_v5 = vadd.f32 %v9625_v50, %v10686_v48  ;;  %v3049_v7 = vsel %vm2998_vm6, %v3040_v27, %v3048_v45  ;;  %v6253_v53 = vrot.slane %v10809_v47, 1  ;;  %2793 = vrot.lane.b32.xlu1 %v2632_v44, %s10321_s30  ;;  %v5272_v9 = vshll.u32 %v9838_v19, 16  ;;  %v9841_v44 = vld [vmem:[#allocation2 + $0x2c] ss:$0 sps:$4 sm:$0x33]  }
 0x221   : > { %v1598_v11 = vpop.f32.mrf.mxu1  ;;  %v4019_v8 = vsel %vm2869_vm5, %v4017_v57, %v4018_v42  ;;  %v10828_v14 = vcombine.low %v3519_v59, %v3520_v24  ;;  %v3773_v2 = vrot.slane %v3771_v35, 1  ;;  %v5271_v25 = vrot.slane %v5269_v56, 1 }
 0x222   : > { %v1839_v17 = vmax.f32 %v1607_v5, 0.0  ;;  %v1599_v20 = vadd.f32 %v10686_v48, %v1598_v11  ;;  %v6255_v1 = vsel %vm2869_vm5, %v6253_v53, %v6254_v54  ;;  %v5274_v31 = vrot.slane %v5272_v9, 2  ;;  %v9842_v53 = vld [vmem:[#allocation2 + $0x2c] ss:$0 sps:$4 sm:$0x33]  }
 0x223   : > { %v9626_v27 = vpop.f32.mrf.mxu1  ;;  %v3764_v26 = vshrl.u32 %v10828_v14, 16  ;;  %v3766_v32 = vshll.u32 %v10828_v14, 16  ;;  %3275 = vrot.lane.b32.xlu0 %v3049_v7, %s10322_s10  ;;  %v10839_v37 = vcombine.low %v2378_v16, %v10774_v60  ;;  %v2641_v43 = vshll.u32 %v10776_v63, 16  ;;  %v9843_v11 = vld [vmem:[#allocation2 + $0x2c] ss:$0 sps:$4 sm:$0x33]  }
 0x224   : > { %v1933_v34 = vsel %vm1897_vm10, %v1839_v17, 0.0  ;;  %v1837_v36 = vmax.f32 %v1599_v20, 0.0  ;;  %v1610_v24 = vadd.f32 %v9626_v27, %v10686_v48  ;;  %2924 = vrot.lane.b32.xlu1 %v2881_v28, %s10320_s29  ;;  %v5275_v39 = vor.u32 %v5274_v31, %v5271_v25 }
 0x225   : > { %14233 = vst [vmem:[#allocation13_spill] sm:$0xff] %v10839_v37  ;;  %v9505_v10 = vpack.c.bf16 %v1933_v34, %v1933_v34  ;;  %v1601_v38 = vpop.f32.mrf.mxu1  ;;  %v3768_v42 = vrot.slane %v3766_v32, 1  ;;  %v2634_v51 = vshrl.u32 %v10839_v37, 16  ;;  %v2636_v28 = vshll.u32 %v10839_v37, 16 }
 0x226   : > { %v9503_v45 = vpack.c.bf16 %v1837_v36, %v1837_v36  ;;  %v1840_v35 = vmax.f32 %v1610_v24, 0.0  ;;  %v1602_v50 = vadd.f32 %v10686_v48, %v1601_v38  ;;  %v5276_v60 = vsel %vm2998_vm6, %v5267_v40, %v5275_v39  ;;  %v4638_v39 = vld [vmem:[#allocation2 + $0x24] sm:$0xf] }
 0x227   : > { %2318 = vst.msk [vmem:[#allocation2 + $0x48] sm:$0xf] %vm2299_vm3, %v9505_v10  ;;  %v3769_v57 = vor.u32 %v3768_v42, %v3764_v26  ;;  %v2643_v19 = vrot.slane %v2641_v43, 1  ;;  %5182 = vrot.lane.b32.xlu0 %v5137_v55, %s10320_s29  ;;  %v4174_v5 = vshrl.u32 %v10802_v41, 16  ;;  %v4177_v7 = vshll.u32 %v10802_v41, 16 }
 0x228   : > { %2316 = vst.msk [vmem:[#allocation2 + $0x40] sm:$0xf] %vm2299_vm3, %v9503_v45  ;;  %v9506_v63 = vpack.c.bf16 %v1840_v35, %v1840_v35  ;;  %v1838_v59 = vmax.f32 %v1602_v50, 0.0  ;;  %4063 = vrot.lane.b32.xlu1 %v4019_v8, %s10320_s29  ;;  %v2638_v12 = vrot.slane %v2636_v28, 1  ;;  %v4182_v40 = vshrl.u32 %v9841_v44, 16 }
 0x229   : > { %v3774_v6 = vsel %vm2596_vm4, %v3769_v57, %v3773_v2  ;;  %v4185_v54 = vshll.u32 %v9841_v44, 16  ;;  %v4176_v9 = vrot.slane %v4174_v5, 1  ;;  %v4179_v55 = vrot.slane %v4177_v7, 2  ;;  %v5757_v35 = vld [vmem:[#allocation2 + $0x24] sm:$0xf] }
 0x22a   : > { %2319 = vst.msk [vmem:[#allocation2 + $0x4c] sm:$0xf] %vm2299_vm3, %v9506_v63  ;;  %v1932_v56 = vsel %vm1908_vm11, %v1838_v59, 0.0  ;;  %v3051_v16 = vshrl.u32 %v10788_v30, 16  ;;  %v2639_v41 = vor.u32 %v2638_v12, %v2634_v51  ;;  %v4184_v20 = vrot.slane %v4182_v40, 1 }
 0x22b   : > { %v9504_v17 = vpack.c.bf16 %v1932_v56, %v1932_v56  ;;  %v4187_v27 = vrot.slane %v4185_v54, 2  ;;  %6301 = vrot.lane.b32.xlu0 %v6255_v1, %s10320_s29  ;;  %v4180_v8 = vor.u32 %v4179_v55, %v4176_v9  ;;  %v3054_v25 = vshll.u32 %v10788_v30, 16  ;;  %v9844_v12 = vld [vmem:[#allocation2 + $0x2c] ss:$0 sps:$4 sm:$0x33]  }
 0x22c   : > { %v3053_v2 = vrot.slane %v3051_v16, 1  ;;  %v3059_v31 = vshrl.u32 %v9842_v53, 16  ;;  %5532 = vrot.lane.b32.xlu1 %v5276_v60, %s10322_s10  ;;  %v2644_v26 = vsel %vm2596_vm4, %v2639_v41, %v2643_v19  ;;  %v3062_v34 = vshll.u32 %v9842_v53, 16  ;;  %v2380_v16 = vld [vmem:[#allocation2 + $0x30] sm:$0xf] }
 0x22d   : > { %2317 = vst.msk [vmem:[#allocation2 + $0x44] sm:$0xf] %vm2299_vm3, %v9504_v17  ;;  %v4188_v32 = vor.u32 %v4187_v27, %v4184_v20  ;;  %v5278_v36 = vshrl.u32 %v10792_v62, 16  ;;  %v3056_v24 = vrot.slane %v3054_v25, 2  ;;  %v5281_v38 = vshll.u32 %v10792_v62, 16 }
 0x22e   : > { %v3061_v10 = vrot.slane %v3059_v31, 1  ;;  %v5286_v1 = vshrl.u32 %v9843_v11, 16  ;;  %v3064_v30 = vrot.slane %v3062_v34, 2  ;;  %v5289_v45 = vshll.u32 %v9843_v11, 16  ;;  %v4720_v21 = vld [vmem:[#allocation2 + $0x48] sm:$0xc] }
 0x22f   : > { %v4189_v42 = vsel %vm2998_vm6, %v4180_v8, %v4188_v32  ;;  %v9629_v43 = vpop.f32.mrf.mxu1  ;;  %v5280_v44 = vrot.slane %v5278_v36, 1  ;;  %3935 = vrot.lane.b32.xlu0 %v3774_v6, %s10321_s30  ;;  %v3057_v50 = vor.u32 %v3056_v24, %v3053_v2  ;;  %v5283_v60 = vrot.slane %v5281_v38, 2  ;;  %v10885_v17 = vld [vmem:[#allocation2 + $0x38] ss:$0 sps:$4 sm:$0x11]  }
 0x230   : > { %v1623_v51 = vadd.f32 %v9629_v43, %v10686_v48  ;;  %v5288_v57 = vrot.slane %v5286_v1, 1  ;;  %2795 = vrot.lane.b32.xlu1 %v2644_v26, %s10321_s30  ;;  %v3065_v28 = vor.u32 %v3064_v30, %v3061_v10  ;;  %v5291_v62 = vrot.slane %v5289_v45, 2  ;;  %v9847_v8 = vld [vmem:[#allocation2 + $0x38] ss:$0 sps:$4 sm:$0x11]  }
 0x231   : > { %v1614_v19 = vpop.f32.mrf.mxu1  ;;  %v10873_v63 = vcombine.low %v4638_v39, %v10778_v4  ;;  %v4880_v59 = vshll.u32 %v10783_v23, 16  ;;  %v5284_v7 = vor.u32 %v5283_v60, %v5280_v44  ;;  %v10878_v6 = vcombine.low %v5757_v35, %v10794_v33  ;;  %v2381_v32 = vld [vmem:[#allocation2 + $0x34] sm:$0xf]  ;;  %v3566_v38 = vld [vmem:[#allocation2 + $0x30] sm:$0xe] }
 0x232   : > { %v1843_v5 = vmax.f32 %v1623_v51, 0.0  ;;  %v1615_v53 = vadd.f32 %v10686_v48, %v1614_v19  ;;  %v3066_v40 = vsel %vm2998_vm6, %v3057_v50, %v3065_v28  ;;  %v5292_v54 = vor.u32 %v5291_v62, %v5288_v57  ;;  %v3522_v30 = vld [vmem:[#allocation2 + $0x34] sm:$0xf]  ;;  %v3521_v35 = vld [vmem:[#allocation2 + $0x30] sm:$0xf] }
 0x233   : > { %14234 = vst [vmem:[#allocation14_spill] sm:$0xff] %v10873_v63  ;;  %14235 = vst [vmem:[#allocation15_spill] sm:$0xff] %v10878_v6  ;;  %v4873_v11 = vshrl.u32 %v10873_v63, 16  ;;  %v4875_v56 = vshll.u32 %v10873_v63, 16  ;;  %4415 = vrot.lane.b32.xlu0 %v4189_v42, %s10322_s10  ;;  %v4882_v23 = vrot.slane %v4880_v59, 1  ;;  %v5982_v55 = vshrl.u32 %v10878_v6, 16 }
 0x234   : > { %v9509_v4 = vpack.c.bf16 %v1843_v5, %v1843_v5  ;;  %v1841_v9 = vmax.f32 %v1615_v53, 0.0  ;;  %3277 = vrot.lane.b32.xlu1 %v3066_v40, %s10322_s10  ;;  %v5293_v33 = vsel %vm2998_vm6, %v5284_v7, %v5292_v54  ;;  %v5984_v20 = vshll.u32 %v10878_v6, 16  ;;  %v2424_v28 = vld [vmem:[#allocation2 + $0x30] sm:$0xe] }
 0x235   : > { %v4877_v41 = vrot.slane %v4875_v56, 1  ;;  %v5989_v27 = vshll.u32 %v10806_v46, 16  ;;  %v6382_v25 = vshrl.u32 %v10809_v47, 16  ;;  %v6385_v31 = vshll.u32 %v10809_v47, 16 }
 0x236   : > { %2322 = vst.msk [vmem:[#allocation2 + $0x58] sm:$0xf] %vm2299_vm3, %v9509_v4  ;;  %v1935_v2 = vsel %vm1908_vm11, %v1841_v9, 0.0  ;;  %v6390_v26 = vshrl.u32 %v9844_v12, 16  ;;  %v5986_v24 = vrot.slane %v5984_v20, 1  ;;  %v6393_v42 = vshll.u32 %v9844_v12, 16 }
 0x237   : > { %v9507_v34 = vpack.c.bf16 %v1935_v2, %v1935_v2  ;;  %v4878_v36 = vor.u32 %v4877_v41, %v4873_v11  ;;  %v5991_v10 = vrot.slane %v5989_v27, 1  ;;  %5534 = vrot.lane.b32.xlu0 %v5293_v33, %s10322_s10  ;;  %v6384_v46 = vrot.slane %v6382_v25, 1  ;;  %v9851_v54 = vld [vmem:[#allocation2 + $0x38] ss:$0 sps:$4 sm:$0x33]  }
 0x238   : > { %v6387_v1 = vrot.slane %v6385_v31, 2  ;;  %v6392_v39 = vrot.slane %v6390_v26, 1  ;;  %v5987_v44 = vor.u32 %v5986_v24, %v5982_v55  ;;  %v10899_v47 = vcombine.low %v2380_v16, %v2381_v32  ;;  %v4686_v20 = vld [vmem:[#allocation2 + $0x30] sm:$0xe] }
 0x239   : > { %2320 = vst.msk [vmem:[#allocation2 + $0x50] sm:$0xf] %vm2299_vm3, %v9507_v34  ;;  %v4883_v43 = vsel %vm2596_vm4, %v4878_v36, %v4882_v23  ;;  %v2653_v45 = vshll.u32 %v10885_v17, 16  ;;  %v6395_v51 = vrot.slane %v6393_v42, 2  ;;  %v9204_v60 = vcombine.low %v3566_v38, %v3522_v30  ;;  %v4641_v36 = vld [vmem:[#allocation2 + $0x34] sm:$0xf] }
 0x23a   : > { %14236 = vst [vmem:[#allocation16_spill] sm:$0xff] %v10899_v47  ;;  %5054 = vrot.lane.b32.xlu1 %v4883_v43, %s10321_s30  ;;  %v6388_v50 = vor.u32 %v6387_v1, %v6384_v46  ;;  %v4021_v57 = vrot.slane %v9847_v8, 1  ;;  %v5992_v62 = vsel %vm2596_vm4, %v5987_v44, %v5991_v10  ;;  %v2646_v19 = vshrl.u32 %v10899_v47, 16  ;;  %v9852_v23 = vld [vmem:[#allocation2 + $0x38] ss:$0 sps:$4 sm:$0x11]  }
 0x23b   : > { %v2648_v59 = vshll.u32 %v10899_v47, 16  ;;  %v2655_v5 = vrot.slane %v2653_v45, 1  ;;  %6173 = vrot.lane.b32.xlu0 %v5992_v62, %s10321_s30  ;;  %v6396_v7 = vor.u32 %v6395_v51, %v6392_v39  ;;  %v4020_v53 = vrot.slane %v9204_v60, 1  ;;  %v9854_v31 = vld [vmem:[#allocation2 + $0x38] ss:$0 sps:$4 sm:$0x33]  }
 0x23c   : > { %v10907_v12 = vcombine.low %v3521_v35, %v3522_v30  ;;  %v3783_v40 = vshll.u32 %v9847_v8, 16  ;;  %v9125_v56 = vcombine.low %v2424_v28, %v2381_v32  ;;  %v2883_v4 = vrot.slane %v10885_v17, 1  ;;  %v10918_v43 = vld [vmem:[#allocation2 + $0x38] ss:$0 sps:$4 sm:$0x11]  }
 0x23d   : > { %v2650_v11 = vrot.slane %v2648_v59, 1  ;;  %v4191_v9 = vshrl.u32 %v9204_v60, 16  ;;  %v6397_v55 = vsel %vm2998_vm6, %v6388_v50, %v6396_v7  ;;  %v4022_v16 = vsel %vm2869_vm5, %v4020_v53, %v4021_v57  ;;  %v5806_v51 = vld [vmem:[#allocation2 + $0x30] sm:$0xe] }
 0x23e   : > { %v3776_v33 = vshrl.u32 %v10907_v12, 16  ;;  %v3778_v41 = vshll.u32 %v10907_v12, 16  ;;  %6653 = vrot.lane.b32.xlu1 %v6397_v55, %s10322_s10  ;;  %v3785_v8 = vrot.slane %v3783_v40, 1  ;;  %v2882_v2 = vrot.slane %v9125_v56, 1  ;;  %v5760_v40 = vld [vmem:[#allocation2 + $0x34] sm:$0xf] }
 0x23f   : > { %v2651_v27 = vor.u32 %v2650_v11, %v2646_v19  ;;  %v4193_v25 = vrot.slane %v4191_v9, 1  ;;  %v4194_v17 = vshll.u32 %v9204_v60, 16  ;;  %v4199_v32 = vshrl.u32 %v9851_v54, 16  ;;  %v4640_v19 = vld [vmem:[#allocation2 + $0x30] sm:$0xf] }
 0x240   : > { %v3780_v26 = vrot.slane %v3778_v41, 1  ;;  %v4202_v34 = vshll.u32 %v9851_v54, 16  ;;  %v2884_v10 = vsel %vm2869_vm5, %v2882_v2, %v2883_v4  ;;  %v9283_v38 = vcombine.low %v4686_v20, %v4641_v36  ;;  %v9630_v54 = vpop.f32.mrf.mxu1  ;;  %v9858_v20 = vld [vmem:[#allocation2 + $0x38] ss:$0 sps:$4 sm:$0x33]  }
 0x241   : > { %v2656_v24 = vsel %vm2596_vm4, %v2651_v27, %v2655_v5  ;;  %v5139_v46 = vrot.slane %v9852_v23, 1  ;;  %v4196_v39 = vrot.slane %v4194_v17, 2  ;;  %v4201_v42 = vrot.slane %v4199_v32, 1  ;;  %v9882_v61 = vld [vmem:[#allocation2 + $0x50] ss:$0 sps:$4 sm:$0x11]  }
 0x242   : > { %2797 = vrot.lane.b32.xlu0 %v2656_v24, %s10321_s30  ;;  %v3781_v1 = vor.u32 %v3780_v26, %v3776_v33  ;;  %v4204_v30 = vrot.slane %v4202_v34, 2  ;;  %4065 = vrot.lane.b32.xlu1 %v4022_v16, %s10320_s29  ;;  %v5138_v44 = vrot.slane %v9283_v38, 1  ;;  %v3068_v45 = vshrl.u32 %v9125_v56, 16  ;;  %v1617_v34 = vpop.f32.mrf.mxu1 }
 0x243   : > { %v3071_v35 = vshll.u32 %v9125_v56, 16  ;;  %v3076_v50 = vshrl.u32 %v9854_v31, 16  ;;  %v4197_v57 = vor.u32 %v4196_v39, %v4193_v25  ;;  %v3079_v62 = vshll.u32 %v9854_v31, 16 }
 0x244   : > { %v3786_v60 = vsel %vm2596_vm4, %v3781_v1, %v3785_v8  ;;  %v4205_v28 = vor.u32 %v4204_v30, %v4201_v42  ;;  %v5140_v59 = vsel %vm2869_vm5, %v5138_v44, %v5139_v46  ;;  %v3070_v5 = vrot.slane %v3068_v45, 1  ;;  %v9859_v46 = vld [vmem:[#allocation2 + $0x38] ss:$0 sps:$4 sm:$0x33]  }
 0x245   : > { %v3073_v7 = vrot.slane %v3071_v35, 2  ;;  %v3078_v53 = vrot.slane %v3076_v50, 1  ;;  %v3081_v56 = vrot.slane %v3079_v62, 2  ;;  %v9362_v4 = vcombine.low %v5806_v51, %v5760_v40  ;;  %v5759_v50 = vld [vmem:[#allocation2 + $0x30] sm:$0xf] }
 0x246   : > { %3937 = vrot.lane.b32.xlu0 %v3786_v60, %s10321_s30  ;;  %v4206_v11 = vsel %vm2998_vm6, %v4197_v57, %v4205_v28  ;;  %v6257_v9 = vrot.slane %v10918_v43, 1  ;;  %2926 = vrot.lane.b32.xlu1 %v2884_v10, %s10320_s29  ;;  %v10927_v16 = vcombine.low %v4640_v19, %v4641_v36  ;;  %v4892_v33 = vshll.u32 %v9852_v23, 16  ;;  %v4687_v62 = vld [vmem:[#allocation2 + $0x3c] sm:$0xe] }
 0x247   : > { %v3074_v55 = vor.u32 %v3073_v7, %v3070_v5  ;;  %v1626_v41 = vadd.f32 %v9630_v54, %v10686_v48  ;;  %v3082_v27 = vor.u32 %v3081_v56, %v3078_v53  ;;  %v6256_v8 = vrot.slane %v9362_v4, 1  ;;  %v10939_v19 = vld [vmem:[#allocation2 + $0x44] ss:$0 sps:$4 sm:$0x11]  }
 0x248   : > { %14237 = vst [vmem:[#allocation17_spill] sm:$0xff] %v10927_v16  ;;  %v5295_v2 = vshrl.u32 %v9283_v38, 16  ;;  %v5298_v25 = vshll.u32 %v9283_v38, 16  ;;  %v4885_v31 = vshrl.u32 %v10927_v16, 16  ;;  %v4887_v26 = vshll.u32 %v10927_v16, 16 }
 0x249   : > { %v4894_v17 = vrot.slane %v4892_v33, 1  ;;  %v1844_v32 = vmax.f32 %v1626_v41, 0.0  ;;  %v3083_v36 = vsel %vm2998_vm6, %v3074_v55, %v3082_v27  ;;  %v6258_v23 = vsel %vm2869_vm5, %v6256_v8, %v6257_v9  ;;  %v10948_v55 = vld [vmem:[#allocation2 + $0x40] sm:$0xf] }
 0x24a   : > { %4417 = vrot.lane.b32.xlu0 %v4206_v11, %s10322_s10  ;;  %v5297_v24 = vrot.slane %v5295_v2, 1  ;;  %v5300_v10 = vrot.slane %v5298_v25, 2  ;;  %5184 = vrot.lane.b32.xlu1 %v5140_v59, %s10320_s29  ;;  %v4889_v1 = vrot.slane %v4887_v26, 1  ;;  %v5303_v39 = vshrl.u32 %v9858_v20, 16  ;;  %v5807_v11 = vld [vmem:[#allocation2 + $0x3c] sm:$0xe]  ;;  %v10955_v2 = vpop.f32.mrf.mxu1 }
 0x24b   : > { %v1938_v38 = vsel %vm1908_vm11, %v1844_v32, 0.0  ;;  %v5306_v42 = vshll.u32 %v9858_v20, 16  ;;  %v1618_v45 = vadd.f32 %v10686_v48, %v1617_v34  ;;  %v6399_v35 = vshrl.u32 %v9362_v4, 16  ;;  %v10941_v59 = vld [vmem:[#allocation2 + $0x44] ss:$0 sps:$4 sm:$0x11]  }
 0x24c   : > { %v9510_v30 = vpack.c.bf16 %v1938_v38, %v1938_v38  ;;  %v5301_v44 = vor.u32 %v5300_v10, %v5297_v24  ;;  %v4890_v51 = vor.u32 %v4889_v1, %v4885_v31  ;;  %v5305_v60 = vrot.slane %v5303_v39, 1  ;;  %v3567_v48 = vld [vmem:[#allocation2 + $0x3c] sm:$0xe]  ;;  %v10950_v33 = vld [vmem:[#allocation2 + $0x44] ss:$0 sps:$4 sm:$0x11]  }
 0x24d   : > { %v5308_v57 = vrot.slane %v5306_v42, 2  ;;  %v6402_v28 = vshll.u32 %v9362_v4, 16  ;;  %v1842_v5 = vmax.f32 %v1618_v45, 0.0  ;;  %v6401_v7 = vrot.slane %v6399_v35, 1  ;;  %v3524_v32 = vld [vmem:[#allocation2 + $0x40] sm:$0xf] }
 0x24e   : > { %3279 = vrot.lane.b32.xlu0 %v3083_v36, %s10322_s10  ;;  %2323 = vst.msk [vmem:[#allocation2 + $0x5c] sm:$0xf] %vm2299_vm3, %v9510_v30  ;;  %v6407_v53 = vshrl.u32 %v9859_v46, 16  ;;  %v6410_v54 = vshll.u32 %v9859_v46, 16  ;;  %6303 = vrot.lane.b32.xlu1 %v6258_v23, %s10320_s29  ;;  %v10946_v4 = vcombine.low %v5759_v50, %v5760_v40  ;;  %v6001_v8 = vshll.u32 %v10918_v43, 16 }
 0x24f   : > { %v5309_v56 = vor.u32 %v5308_v57, %v5305_v60  ;;  %v6404_v9 = vrot.slane %v6402_v28, 2  ;;  %v1936_v41 = vsel %vm1897_vm10, %v1842_v5, 0.0  ;;  %v4895_v25 = vsel %vm2596_vm4, %v4890_v51, %v4894_v17  ;;  %v5762_v34 = vld [vmem:[#allocation2 + $0x40] sm:$0xf]  ;;  %v2425_v36 = vld [vmem:[#allocation2 + $0x3c] sm:$0xe]  ;;  %v10975_v60 = vpop.f32.mrf.mxu1 }
 0x250   : > { %14238 = vst [vmem:[#allocation18_spill] sm:$0xff] %v10946_v4  ;;  %v6409_v20 = vrot.slane %v6407_v53, 1  ;;  %v6412_v27 = vrot.slane %v6410_v54, 2  ;;  %v9508_v26 = vpack.c.bf16 %v1936_v41, %v1936_v41  ;;  %v5994_v24 = vshrl.u32 %v10946_v4, 16  ;;  %v2383_v42 = vld [vmem:[#allocation2 + $0x40] sm:$0xf] }
 0x251   : > { %v5310_v31 = vsel %vm2998_vm6, %v5301_v44, %v5309_v56  ;;  %v6405_v40 = vor.u32 %v6404_v9, %v6401_v7  ;;  %v5996_v10 = vshll.u32 %v10946_v4, 16  ;;  %v10963_v43 = vcombine.low %v4687_v62, %v10948_v55  ;;  %v9866_v46 = vld [vmem:[#allocation2 + $0x44] ss:$0 sps:$4 sm:$0x11]   ;;  %v3523_v30 = vld [vmem:[#allocation2 + $0x3c] sm:$0xf] }
 0x252   : > { %5056 = vrot.lane.b32.xlu0 %v4895_v25, %s10321_s30  ;;  %v6413_v23 = vor.u32 %v6412_v27, %v6409_v20  ;;  %5536 = vrot.lane.b32.xlu1 %v5310_v31, %s10322_s10  ;;  %2321 = vst.msk [vmem:[#allocation2 + $0x54] sm:$0xf] %vm2299_vm3, %v9508_v26  ;;  %v5142_v17 = vrot.slane %v10939_v19, 1  ;;  %v10968_v1 = vcombine.low %v3567_v48, %v3524_v32  ;;  %v4024_v38 = vrot.slane %v10941_v59, 1  ;;  %v2382_v51 = vld [vmem:[#allocation2 + $0x3c] sm:$0xf] }
 0x253   : > { %v10971_v39 = vcombine.low %v5807_v11, %v5762_v34  ;;  %v5998_v44 = vrot.slane %v5996_v10, 1  ;;  %v6003_v45 = vrot.slane %v6001_v8, 1  ;;  %v5141_v35 = vrot.slane %v10963_v43, 1  ;;  %v5761_v11 = vld [vmem:[#allocation2 + $0x3c] sm:$0xf] }
 0x254   : > { %v6260_v50 = vrot.slane %v10950_v33, 1  ;;  %v6414_v57 = vsel %vm2998_vm6, %v6405_v40, %v6413_v23  ;;  %v4023_v28 = vrot.slane %v10968_v1, 1  ;;  %v10980_v5 = vcombine.low %v2425_v36, %v2383_v42  ;;  %v4642_v27 = vld [vmem:[#allocation2 + $0x3c] sm:$0xf]  ;;  %v10995_v40 = vpop.f32.mrf.mxu1 }
 0x255   : > { %v6259_v62 = vrot.slane %v10971_v39, 1  ;;  %v5999_v7 = vor.u32 %v5998_v44, %v5994_v24  ;;  %v2886_v53 = vrot.slane %v9866_v46, 1  ;;  %v10983_v54 = vcombine.low %v3523_v30, %v3524_v32  ;;  %v11242_v47 = vld [vmem:[#allocation2 + $0x5c] ss:$0 sps:$4 sm:$0x33]  }
 0x256   : > { %6655 = vrot.lane.b32.xlu0 %v6414_v57, %s10322_s10  ;;  %v3795_v48 = vshll.u32 %v10941_v59, 16  ;;  %v5143_v56 = vsel %vm2869_vm5, %v5141_v35, %v5142_v17  ;;  %v4025_v9 = vsel %vm2869_vm5, %v4023_v28, %v4024_v38  ;;  %v2885_v41 = vrot.slane %v10980_v5, 1  ;;  %v11012_v57 = vpop.f32.mrf.mxu1 }
 0x257   : > { %14239 = vst [vmem:[#allocation19_spill] sm:$0xff] %v10983_v54  ;;  %v10989_v20 = vcombine.low %v2382_v51, %v2383_v42  ;;  %v6004_v8 = vsel %vm2596_vm4, %v5999_v7, %v6003_v45  ;;  %v6261_v25 = vsel %vm2869_vm5, %v6259_v62, %v6260_v50  ;;  %v3788_v31 = vshrl.u32 %v10983_v54, 16  ;;  %v9872_v45 = vld [vmem:[#allocation2 + $0x44] ss:$0 sps:$4 sm:$0x33]  }
 0x258   : > { %v3790_v26 = vshll.u32 %v10983_v54, 16  ;;  %6175 = vrot.lane.b32.xlu1 %v6004_v8, %s10321_s30  ;;  %v3797_v59 = vrot.slane %v3795_v48, 1  ;;  %v2665_v23 = vshll.u32 %v9866_v46, 16  ;;  %v11001_v10 = vcombine.low %v5761_v11, %v5762_v34 }
 0x259   : > { %14240 = vst [vmem:[#allocation20_spill] sm:$0xff] %v10989_v20  ;;  %v2658_v32 = vshrl.u32 %v10989_v20, 16  ;;  %v2660_v36 = vshll.u32 %v10989_v20, 16  ;;  %v6013_v17 = vshll.u32 %v10950_v33, 16  ;;  %v11005_v38 = vcombine.low %v4642_v27, %v10948_v55  ;;  %v4721_v37 = vld [vmem:[#allocation2 + $0x54] sm:$0xc] }
 0x25a   : > { %5186 = vrot.lane.b32.xlu0 %v5143_v56, %s10320_s29  ;;  %v3792_v24 = vrot.slane %v3790_v26, 1  ;;  %14241 = vst [vmem:[#allocation21_spill] sm:$0xff] %v11001_v10  ;;  %v2887_v42 = vsel %vm2869_vm5, %v2885_v41, %v2886_v53  ;;  %v4904_v44 = vshll.u32 %v10939_v19, 16  ;;  %v4208_v35 = vshrl.u32 %v10968_v1, 16 }
 0x25b   : > { %14242 = vst [vmem:[#allocation22_spill] sm:$0xff] %v11005_v38  ;;  %v2662_v30 = vrot.slane %v2660_v36, 1  ;;  %v2667_v46 = vrot.slane %v2665_v23, 1  ;;  %v6006_v51 = vshrl.u32 %v11001_v10, 16  ;;  %v6008_v34 = vshll.u32 %v11001_v10, 16  ;;  %v11022_v23 = vpop.f32.mrf.mxu1 }
 0x25c   : > { %v3793_v50 = vor.u32 %v3792_v24, %v3788_v31  ;;  %4067 = vrot.lane.b32.xlu1 %v4025_v9, %s10320_s29  ;;  %v6015_v33 = vrot.slane %v6013_v17, 1  ;;  %v4897_v28 = vshrl.u32 %v11005_v38, 16  ;;  %v4899_v62 = vshll.u32 %v11005_v38, 16  ;;  %v9873_v19 = vld [vmem:[#allocation2 + $0x44] ss:$0 sps:$4 sm:$0x33]  }
 0x25d   : > { %v2663_v55 = vor.u32 %v2662_v30, %v2658_v32  ;;  %v6010_v53 = vrot.slane %v6008_v34, 1  ;;  %v4906_v48 = vrot.slane %v4904_v44, 1  ;;  %v4211_v11 = vshll.u32 %v10968_v1, 16  ;;  %v9874_v36 = vld [vmem:[#allocation2 + $0x44] ss:$0 sps:$4 sm:$0x33]  }
 0x25e   : > { %6305 = vrot.lane.b32.xlu0 %v6261_v25, %s10320_s29  ;;  %v3798_v7 = vsel %vm2596_vm4, %v3793_v50, %v3797_v59  ;;  %v4901_v56 = vrot.slane %v4899_v62, 1  ;;  %v4210_v41 = vrot.slane %v4208_v35, 1  ;;  %v4216_v27 = vshrl.u32 %v9872_v45, 16  ;;  %v9875_v1 = vld [vmem:[#allocation2 + $0x44] ss:$0 sps:$4 sm:$0x33]  }
 0x25f   : > { %v4219_v8 = vshll.u32 %v9872_v45, 16  ;;  %v6011_v9 = vor.u32 %v6010_v53, %v6006_v51  ;;  %v4213_v31 = vrot.slane %v4211_v11, 2  ;;  %v3085_v26 = vshrl.u32 %v10980_v5, 16  ;;  %v3525_v11 = vld [vmem:[#allocation2 + $0x48] sm:$0xf] }
 0x260   : > { %v3088_v32 = vshll.u32 %v10980_v5, 16  ;;  %2928 = vrot.lane.b32.xlu1 %v2887_v42, %s10320_s29  ;;  %v4902_v25 = vor.u32 %v4901_v56, %v4897_v28  ;;  %v4218_v59 = vrot.slane %v4216_v27, 1  ;;  %v3093_v17 = vshrl.u32 %v9873_v19, 16  ;;  %v3526_v56 = vld [vmem:[#allocation2 + $0x4c] sm:$0xf] }
 0x261   : > { %v4221_v24 = vrot.slane %v4219_v8, 2  ;;  %v2668_v30 = vsel %vm2596_vm4, %v2663_v55, %v2667_v46  ;;  %v6016_v44 = vsel %vm2596_vm4, %v6011_v9, %v6015_v33  ;;  %v3087_v45 = vrot.slane %v3085_v26, 1  ;;  %v11031_v27 = vld [vmem:[#allocation2 + $0x50] ss:$0 sps:$4 sm:$0x33]   ;;  %v11033_v46 = vpop.f32.mrf.mxu1 }
 0x262   : > { %3939 = vrot.lane.b32.xlu0 %v3798_v7, %s10321_s30  ;;  %v3090_v35 = vrot.slane %v3088_v32, 2  ;;  %v4907_v5 = vsel %vm2596_vm4, %v4902_v25, %v4906_v48  ;;  %v4214_v50 = vor.u32 %v4213_v31, %v4210_v41  ;;  %v3095_v51 = vrot.slane %v3093_v17, 1  ;;  %v3600_v7 = vld [vmem:[#allocation2 + $0x48] sm:$0xc] }
 0x263   : > { %v3096_v34 = vshll.u32 %v9873_v19, 16  ;;  %v4222_v62 = vor.u32 %v4221_v24, %v4218_v59  ;;  %v5312_v42 = vshrl.u32 %v10963_v43, 16  ;;  %v5315_v28 = vshll.u32 %v10963_v43, 16  ;;  %v3568_v41 = vld [vmem:[#allocation2 + $0x48] sm:$0xe]  ;;  %v11042_v18 = vpop.f32.mrf.mxu1 }
 0x264   : > { %v5320_v53 = vshrl.u32 %v9874_v36, 16  ;;  %2799 = vrot.lane.b32.xlu1 %v2668_v30, %s10321_s30  ;;  %v3091_v55 = vor.u32 %v3090_v35, %v3087_v45  ;;  %v5323_v48 = vshll.u32 %v9874_v36, 16  ;;  %v6416_v19 = vshrl.u32 %v10971_v39, 16  ;;  %v11037_v8 = vld [vmem:[#allocation2 + $0x50] ss:$0 sps:$4 sm:$0x11]  }
 0x265   : > { %v3098_v33 = vrot.slane %v3096_v34, 2  ;;  %v5314_v43 = vrot.slane %v5312_v42, 1  ;;  %v5317_v9 = vrot.slane %v5315_v28, 2  ;;  %v6419_v26 = vshll.u32 %v10971_v39, 16  ;;  %v2384_v32 = vld [vmem:[#allocation2 + $0x48] sm:$0xf] }
 0x266   : > { %6177 = vrot.lane.b32.xlu0 %v6016_v44, %s10321_s30  ;;  %v5322_v31 = vrot.slane %v5320_v53, 1  ;;  %v5325_v59 = vrot.slane %v5323_v48, 2  ;;  %v6418_v24 = vrot.slane %v6416_v19, 1  ;;  %v6424_v17 = vshrl.u32 %v9875_v1, 16  ;;  %v2385_v30 = vld [vmem:[#allocation2 + $0x4c] sm:$0xf] }
 0x267   : > { %v3099_v25 = vor.u32 %v3098_v33, %v3095_v51  ;;  %v4223_v36 = vsel %vm2998_vm6, %v4214_v50, %v4222_v62  ;;  %v5318_v45 = vor.u32 %v5317_v9, %v5314_v43  ;;  %v6421_v35 = vrot.slane %v6419_v26, 2  ;;  %v2426_v51 = vld [vmem:[#allocation2 + $0x48] sm:$0xe]  ;;  %v11055_v43 = vld [vmem:[#allocation2 + $0x4c] sm:$0xf] }
 0x268   : > { %v6427_v34 = vshll.u32 %v9875_v1, 16  ;;  %5058 = vrot.lane.b32.xlu1 %v4907_v5, %s10321_s30  ;;  %v5326_v44 = vor.u32 %v5325_v59, %v5322_v31  ;;  %v6426_v42 = vrot.slane %v6424_v17, 1  ;;  %v11045_v28 = vcombine.low %v3525_v11, %v3526_v56  ;;  %v9884_v11 = vld [vmem:[#allocation2 + $0x50] ss:$0 sps:$4 sm:$0x11]  }
 0x269   : > { %v9238_v39 = vcombine.low %v3600_v7, %v3526_v56  ;;  %v6422_v53 = vor.u32 %v6421_v35, %v6418_v24  ;;  %v4507_v50 = vrot.slane %v11031_v27, 2  ;;  %v11049_v62 = vcombine.low %v3568_v41, %v3526_v56  ;;  %v4688_v59 = vld [vmem:[#allocation2 + $0x48] sm:$0xe]  ;;  %v11060_v24 = vpop.f32.mrf.mxu1 }
 0x26a   : > { %14243 = vst [vmem:[#allocation23_spill] sm:$0xff] %v11045_v28  ;;  %4419 = vrot.lane.b32.xlu0 %v4223_v36, %s10322_s10  ;;  %v6429_v33 = vrot.slane %v6427_v34, 2  ;;  %v3100_v1 = vsel %vm2998_vm6, %v3091_v55, %v3099_v25  ;;  %v4027_v19 = vrot.slane %v11037_v8, 1  ;;  %v11053_v5 = vcombine.low %v2384_v32, %v2385_v30  ;;  %v4644_v25 = vld [vmem:[#allocation2 + $0x48] sm:$0xf] }
 0x26b   : > { %v4506_v48 = vrot.slane %v9238_v39, 2  ;;  %v4026_v9 = vrot.slane %v11049_v62, 1  ;;  %v2677_v31 = vshll.u32 %v9882_v61, 16  ;;  %v11058_v26 = vcombine.low %v2426_v51, %v2385_v30  ;;  %v11070_v35 = vpop.f32.mrf.mxu1  ;;  %v5808_v39 = vld [vmem:[#allocation2 + $0x48] sm:$0xe] }
 0x26c   : > { %14244 = vst [vmem:[#allocation24_spill] sm:$0xff] %v11053_v5  ;;  %v6430_v7 = vor.u32 %v6429_v33, %v6426_v42  ;;  %3281 = vrot.lane.b32.xlu1 %v3100_v1, %s10322_s10  ;;  %v5327_v56 = vsel %vm2998_vm6, %v5318_v45, %v5326_v44  ;;  %v2670_v55 = vshrl.u32 %v11053_v5, 16  ;;  %v2672_v41 = vshll.u32 %v11053_v5, 16 }
 0x26d   : > { %v2889_v32 = vrot.slane %v9882_v61, 1  ;;  %v4508_v30 = vsel %vm3351_vm12, %v4506_v48, %v4507_v50  ;;  %v2888_v36 = vrot.slane %v11058_v26, 1  ;;  %v3800_v42 = vshrl.u32 %v11045_v28, 16  ;;  %v11082_v50 = vld [vmem:[#allocation2 + $0x50] ss:$0 sps:$4 sm:$0x11]  }
 0x26e   : > { %5538 = vrot.lane.b32.xlu0 %v5327_v56, %s10322_s10  ;;  %v6431_v17 = vsel %vm2998_vm6, %v6422_v53, %v6430_v7  ;;  %v2674_v34 = vrot.slane %v2672_v41, 1  ;;  %v3802_v45 = vshll.u32 %v11045_v28, 16  ;;  %v3807_v44 = vshll.u32 %v11037_v8, 16  ;;  %v11098_v41 = vpop.f32.mrf.mxu1 }
 0x26f   : > { %v4028_v61 = vsel %vm2869_vm5, %v4026_v9, %v4027_v19  ;;  %v2679_v51 = vrot.slane %v2677_v31, 1  ;;  %v11077_v33 = vcombine.low %v4688_v59, %v11055_v43  ;;  %v11080_v53 = vcombine.low %v4644_v25, %v11055_v43  ;;  %v11092_v31 = vld [vmem:[%s14126_s4] ss:$0 sm:$0xff] }
 0x270   : > { %6657 = vrot.lane.b32.xlu1 %v6431_v17, %s10322_s10  ;;  %v2675_v1 = vor.u32 %v2674_v34, %v2670_v55  ;;  %v2890_v48 = vsel %vm2869_vm5, %v2888_v36, %v2889_v32  ;;  %v3804_v7 = vrot.slane %v3802_v45, 1  ;;  %v4916_v56 = vshll.u32 %v9884_v11, 16  ;;  %v11096_v55 = vld [vmem:[#allocation2 + $0x4c] sm:$0xf]  ;;  %v11105_v13 = vpop.f32.mrf.mxu1 }
 0x271   : > { %14245 = vst [vmem:[#allocation25_spill] sm:$0xff] %v11080_v53  ;;  %v5145_v8 = vrot.slane %v9884_v11, 1  ;;  %v4909_v19 = vshrl.u32 %v11080_v53, 16  ;;  %v4911_v9 = vshll.u32 %v11080_v53, 16  ;;  %v1639_v59 = vadd.f32 %v11092_v31, %v10955_v2 }
 0x272   : > { %8052 = vrot.lane.b32.xlu0 %v4508_v30, %s10321_s30  ;;  %v3805_v32 = vor.u32 %v3804_v7, %v3800_v42  ;;  %v3809_v25 = vrot.slane %v3807_v44, 1  ;;  %v5144_v11 = vrot.slane %v11077_v33, 1  ;;  %v11102_v17 = vcombine.low %v5808_v39, %v11096_v55 }
 0x273   : > { %v4913_v30 = vrot.slane %v4911_v9, 1  ;;  %v4918_v36 = vrot.slane %v4916_v56, 1  ;;  %v1847_v34 = vmax.f32 %v1639_v59, 0.0  ;;  %v6263_v45 = vrot.slane %v11082_v50, 1 }
 0x274   : > { %4069 = vrot.lane.b32.xlu1 %v4028_v61, %s10320_s29  ;;  %v2680_v2 = vsel %vm2596_vm4, %v2675_v1, %v2679_v51  ;;  %v6262_v52 = vrot.slane %v11102_v17, 1  ;;  %v1631_v42 = vadd.f32 %v11092_v31, %v10975_v60  ;;  %v4225_v44 = vshrl.u32 %v11049_v62, 16 }
 0x275   : > { %v4914_v39 = vor.u32 %v4913_v30, %v4909_v19  ;;  %v1941_v7 = vsel %vm1908_vm11, %v1847_v34, 0.0  ;;  %v4228_v56 = vshll.u32 %v11049_v62, 16  ;;  %v4233_v9 = vshrl.u32 %v11031_v27, 16  ;;  %v9890_v19 = vld [vmem:[#allocation2 + $0x50] ss:$0 sps:$4 sm:$0x33]   ;;  %v11121_v30 = vpop.f32.mrf.mxu1  ;;  %v11123_v34 = vpop.permute.xlu1 %3273 }
 0x276   : > { %2801 = vrot.lane.b32.xlu0 %v2680_v2, %s10321_s30  ;;  %v5146_v61 = vsel %vm2869_vm5, %v5144_v11, %v5145_v8  ;;  %v9513_v51 = vpack.c.bf16 %v1941_v7, %v1941_v7  ;;  %v1845_v1 = vmax.f32 %v1631_v42, 0.0  ;;  %v4227_v59 = vrot.slane %v4225_v44, 1  ;;  %14246 = vst [vmem:[#allocation26_spill] sm:$0xff] %v11123_v34  ;;  %v5763_v44 = vld [vmem:[#allocation2 + $0x48] sm:$0xf] }
 0x277   : > { %v3810_v60 = vsel %vm2596_vm4, %v3805_v32, %v3809_v25  ;;  %v4230_v3 = vrot.slane %v4228_v56, 2  ;;  %v4235_v5 = vrot.slane %v4233_v9, 1  ;;  %v4236_v2 = vshll.u32 %v11031_v27, 16  ;;  %v11133_v27 = vld [vmem:[#allocation2 + $0x50] ss:$0 sps:$4 sm:$0x33]   ;;  %v11143_v56 = vpop.permute.xlu0 %3271 }
 0x278   : > { %2930 = vrot.lane.b32.xlu1 %v2890_v48, %s10320_s29  ;;  %v4919_v62 = vsel %vm2596_vm4, %v4914_v39, %v4918_v36  ;;  %2326 = vst.msk [vmem:[#allocation2 + $0x68] sm:$0xf] %vm2299_vm3, %v9513_v51  ;;  %v6264_v8 = vsel %vm2869_vm5, %v6262_v52, %v6263_v45  ;;  %v1939_v32 = vsel %vm1897_vm10, %v1845_v1, 0.0  ;;  %v1642_v25 = vadd.f32 %v11092_v31, %v10995_v40  ;;  %v11139_v39 = vpop.f32.mrf.mxu1 }
 0x279   : > { %v9511_v11 = vpack.c.bf16 %v1939_v32, %v1939_v32  ;;  %v4238_v42 = vrot.slane %v4236_v2, 2  ;;  %v9317_v48 = vcombine.low %v4720_v21, %v11055_v43  ;;  %v1634_v36 = vadd.f32 %v11092_v31, %v11012_v57  ;;  %14247 = vst [vmem:[#allocation27_spill] sm:$0xff] %v11143_v56  ;;  %v11146_v43 = vld [vmem:[#allocation2 + $0x5c] ss:$0 sps:$4 sm:$0x11]   ;;  %v11149_v57 = vpop.permute.xlu1 %6683 }
 0x27a   : > { %3941 = vrot.lane.b32.xlu0 %v3810_v60, %s10321_s30  ;;  %v4231_v52 = vor.u32 %v4230_v3, %v4227_v59  ;;  %v1848_v45 = vmax.f32 %v1642_v25, 0.0  ;;  %v3102_v7 = vshrl.u32 %v11058_v26, 16  ;;  %v3105_v40 = vshll.u32 %v11058_v26, 16  ;;  %14248 = vst [vmem:[#allocation28_spill] sm:$0xff] %v11149_v57  ;;  %v4689_v2 = vld [vmem:[#allocation2 + $0x54] sm:$0xe] }
 0x27b   : > { %2324 = vst.msk [vmem:[#allocation2 + $0x60] sm:$0xf] %vm2299_vm3, %v9511_v11  ;;  %v4239_v9 = vor.u32 %v4238_v42, %v4235_v5  ;;  %v1846_v51 = vmax.f32 %v1634_v36, 0.0  ;;  %v3110_v1 = vshrl.u32 %v9890_v19, 16  ;;  %v3113_v21 = vshll.u32 %v9890_v19, 16  ;;  %v11155_v11 = vpop.f32.mrf.mxu1  ;;  %v11165_v56 = vpop.permute.xlu0 %6203 }
 0x27c   : > { %5188 = vrot.lane.b32.xlu1 %v5146_v61, %s10320_s29  ;;  %v1942_v3 = vsel %vm1897_vm10, %v1848_v45, 0.0  ;;  %v5625_v59 = vrot.slane %v11133_v27, 2  ;;  %v3104_v26 = vrot.slane %v3102_v7, 1  ;;  %v3107_v60 = vrot.slane %v3105_v40, 2  ;;  %v11163_v7 = vld [vmem:[#allocation2 + $0x58] sm:$0xf] }
 0x27d   : > { %v9514_v5 = vpack.c.bf16 %v1942_v3, %v1942_v3  ;;  %v5624_v32 = vrot.slane %v9317_v48, 2  ;;  %v9512_v25 = vpack.c.bf16 %v1846_v51, %v1846_v51  ;;  %v3112_v19 = vrot.slane %v3110_v1, 1  ;;  %v3569_v40 = vld [vmem:[#allocation2 + $0x54] sm:$0xe]  ;;  %14250 = vst [vmem:[#allocation30_spill] sm:$0xff] %v11165_v56 }
 0x27e   : > { %5060 = vrot.lane.b32.xlu0 %v4919_v62, %s10321_s30  ;;  %v4240_v61 = vsel %vm2998_vm6, %v4231_v52, %v4239_v9  ;;  %v3115_v42 = vrot.slane %v3113_v21, 2  ;;  %v1655_v36 = vadd.f32 %v11092_v31, %v11022_v23  ;;  %v11161_v45 = vcombine.low %v5763_v44, %v11096_v55  ;;  %v11175_v55 = vld [vmem:[#allocation2 + $0x58] sm:$0xf]  ;;  %v11177_v44 = vld [vmem:[#allocation2 + $0x5c] ss:$0 sps:$4 sm:$0x11]  }
 0x27f   : > { %2327 = vst.msk [vmem:[#allocation2 + $0x6c] sm:$0xf] %vm2299_vm3, %v9514_v5  ;;  %2325 = vst.msk [vmem:[#allocation2 + $0x64] sm:$0xf] %vm2299_vm3, %v9512_v25  ;;  %v3108_v62 = vor.u32 %v3107_v60, %v3104_v26  ;;  %v6025_v48 = vshll.u32 %v11082_v50, 16  ;;  %v1647_v52 = vadd.f32 %v11092_v31, %v11033_v46  ;;  %v11173_v23 = vcombine.low %v4689_v2, %v11163_v7  ;;  %v11191_v5 = vpop.permute.xlu1 %8030 }
 0x280   : > { %14249 = vst [vmem:[#allocation29_spill] sm:$0xff] %v11161_v45  ;;  %6307 = vrot.lane.b32.xlu1 %v6264_v8, %s10320_s29  ;;  %v3116_v9 = vor.u32 %v3115_v42, %v3112_v19  ;;  %v1851_v51 = vmax.f32 %v1655_v36, 0.0  ;;  %v6018_v1 = vshrl.u32 %v11161_v45, 16  ;;  %v6020_v21 = vshll.u32 %v11161_v45, 16  ;;  %v5809_v3 = vld [vmem:[#allocation2 + $0x54] sm:$0xe]  ;;  %v11189_v8 = vpop.f32.mrf.mxu1 }
 0x281   : > { %v5626_v46 = vsel %vm3351_vm12, %v5624_v32, %v5625_v59  ;;  %v1849_v50 = vmax.f32 %v1647_v52, 0.0  ;;  %v5148_v26 = vrot.slane %v11146_v43, 1  ;;  %v1658_v60 = vadd.f32 %v11092_v31, %v11042_v18  ;;  %v11187_v2 = vld [vmem:[#allocation2 + $0x5c] ss:$0 sps:$4 sm:$0x11]   ;;  %14251 = vst [vmem:[#allocation31_spill] sm:$0xff] %v11191_v5 }
 0x282   : > { %4421 = vrot.lane.b32.xlu0 %v4240_v61, %s10322_s10  ;;  %v1945_v25 = vsel %vm1897_vm10, %v1851_v51, 0.0  ;;  %v6022_v19 = vrot.slane %v6020_v21, 1  ;;  %v5147_v61 = vrot.slane %v11173_v23, 1  ;;  %v11197_v59 = vcombine.low %v3569_v40, %v11175_v55  ;;  %v11199_v32 = vld [vmem:[#allocation2 + $0x58] sm:$0xf]  ;;  %v11207_v40 = vpop.permute.xlu0 %6331 }
 0x283   : > { %v2427_v42 = vld [vmem:[#allocation2 + $0x54] sm:$0xe]  ;;  %v9517_v36 = vpack.c.bf16 %v1945_v25, %v1945_v25  ;;  %v6027_v18 = vrot.slane %v6025_v48, 1  ;;  %v9515_v52 = vpack.c.bf16 %v1849_v50, %v1849_v50  ;;  %v1852_v34 = vmax.f32 %v1658_v60, 0.0  ;;  %v11205_v21 = vld [vmem:[#allocation2 + $0x58] sm:$0xf] }
 0x284   : > { %v9899_v57 = vld [vmem:[#allocation2 + $0x50] ss:$0 sps:$4 sm:$0x33]   ;;  %8145 = vrot.lane.b32.xlu1 %v5626_v46, %s10320_s29  ;;  %v3117_v5 = vsel %vm2998_vm6, %v3108_v62, %v3116_v9  ;;  %v6023_v10 = vor.u32 %v6022_v19, %v6018_v1  ;;  %v1650_v51 = vadd.f32 %v11092_v31, %v11060_v24  ;;  %14252 = vst [vmem:[#allocation32_spill] sm:$0xff] %v11207_v40  ;;  %v4029_v50 = vrot.slane %v11197_v59, 1  ;;  %v11219_v24 = vpop.f32.mrf.mxu1 }
 0x285   : > { %2330 = vst.msk [vmem:[#allocation2 + $0x78] sm:$0xf] %vm2299_vm3, %v9517_v36  ;;  %2328 = vst.msk [vmem:[#allocation2 + $0x70] sm:$0xf] %vm2299_vm3, %v9515_v52  ;;  %v9518_v48 = vpack.c.bf16 %v1852_v34, %v1852_v34  ;;  %v4030_v46 = vrot.slane %v11177_v44, 1  ;;  %v11215_v62 = vcombine.low %v5809_v3, %v11199_v32  ;;  %v5149_v1 = vsel %vm2869_vm5, %v5147_v61, %v5148_v26 }
 0x286   : > { %3283 = vrot.lane.b32.xlu0 %v3117_v5, %s10322_s10  ;;  %v11217_v9 = vld [vmem:[#allocation2 + $0x5c] ss:$0 sps:$4 sm:$0x11]   ;;  %v11222_v60 = vpop.permute.xlu1 %2922  ;;  %v1850_v5 = vmax.f32 %v1650_v51, 0.0  ;;  %v6266_v25 = vrot.slane %v11187_v2, 1  ;;  %v11226_v34 = vcombine.low %v2427_v42, %v11205_v21  ;;  %v6028_v19 = vsel %vm2596_vm4, %v6023_v10, %v6027_v18 }
 0x287   : > { %14253 = vst [vmem:[#allocation33_spill] sm:$0xff] %v11222_v60  ;;  %2331 = vst.msk [vmem:[#allocation2 + $0x7c] sm:$0xf] %vm2299_vm3, %v9518_v48  ;;  %v6265_v3 = vrot.slane %v11215_v62, 1  ;;  %v6433_v36 = vshrl.u32 %v11102_v17, 16  ;;  %v6436_v52 = vshll.u32 %v11102_v17, 16  ;;  %v4031_v18 = vsel %vm2869_vm5, %v4029_v50, %v4030_v46 }
 0x288   : > { %6179 = vrot.lane.b32.xlu1 %v6028_v19, %s10321_s30  ;;  %v1944_v26 = vsel %vm1908_vm11, %v1850_v5, 0.0  ;;  %v6441_v61 = vshrl.u32 %v9899_v57, 16  ;;  %v6444_v51 = vshll.u32 %v9899_v57, 16  ;;  %v5329_v42 = vshrl.u32 %v11077_v33, 16  ;;  %v3601_v17 = vld [vmem:[#allocation2 + $0x54] sm:$0xc]  ;;  %v11244_v19 = vpop.f32.mrf.mxu1 }
 0x289   : > { %v11238_v10 = vpop.permute.xlu0 %3933  ;;  %v9516_v48 = vpack.c.bf16 %v1944_v26, %v1944_v26  ;;  %v2892_v4 = vrot.slane %v11217_v9, 1  ;;  %v6435_v20 = vrot.slane %v6433_v36, 1  ;;  %v2891_v57 = vrot.slane %v11226_v34, 1  ;;  %v11365_v58 = vld [vmem:[#allocation2 + $0x68] ss:$0 sps:$4 sm:$0x11]  }
 0x28a   : > { %5190 = vrot.lane.b32.xlu0 %v5149_v1, %s10320_s29  ;;  %v11246_v5 = vpop.permute.xlu1 %4061  ;;  %v6438_v63 = vrot.slane %v6436_v52, 2  ;;  %v6443_v60 = vrot.slane %v6441_v61, 1  ;;  %v6446_v1 = vrot.slane %v6444_v51, 2  ;;  %v6267_v50 = vsel %vm2869_vm5, %v6265_v3, %v6266_v25  ;;  %v11256_v61 = vld [vmem:[#allocation2 + $0x5c] ss:$0 sps:$4 sm:$0x33]  }
 0x28b   : > { %2329 = vst.msk [vmem:[#allocation2 + $0x74] sm:$0xf] %vm2299_vm3, %v9516_v48  ;;  %v5331_v46 = vrot.slane %v5329_v42, 1  ;;  %v5332_v26 = vshll.u32 %v11077_v33, 16  ;;  %v5337_v36 = vshrl.u32 %v11133_v27, 16  ;;  %v5340_v29 = vshll.u32 %v11133_v27, 16  ;;  %v11261_v42 = vpop.f32.mrf.mxu1 }
 0x28c   : > { %4071 = vrot.lane.b32.xlu1 %v4031_v18, %s10320_s29  ;;  %v6439_v40 = vor.u32 %v6438_v63, %v6435_v20  ;;  %v6447_v6 = vor.u32 %v6446_v1, %v6443_v60  ;;  %v9239_v52 = vcombine.low %v3601_v17, %v11175_v55  ;;  %v3527_v33 = vld [vmem:[#allocation2 + $0x54] sm:$0xf]  ;;  %v9318_v63 = vcombine.low %v4721_v37, %v11163_v7 }
 0x28d   : > { %v11259_v51 = vpop.permute.xlu0 %5052  ;;  %v5334_v25 = vrot.slane %v5332_v26, 2  ;;  %v5339_v3 = vrot.slane %v5337_v36, 1  ;;  %v5342_v18 = vrot.slane %v5340_v29, 2  ;;  %v2386_v20 = vld [vmem:[#allocation2 + $0x54] sm:$0xf]  ;;  %v2893_v27 = vsel %vm2869_vm5, %v2891_v57, %v2892_v4 }
 0x28e   : > { %6309 = vrot.lane.b32.xlu0 %v6267_v50, %s10320_s29  ;;  %14254 = vst [vmem:[#allocation34_spill] sm:$0xff] %v11259_v51  ;;  %v11263_v48 = vpop.permute.xlu1 %5180  ;;  %v4509_v17 = vrot.slane %v9239_v52, 2  ;;  %v4510_v1 = vrot.slane %v11242_v47, 2  ;;  %v6448_v50 = vsel %vm2998_vm6, %v6439_v40, %v6447_v6  ;;  %v11271_v36 = vcombine.low %v3527_v33, %v11175_v55  ;;  %v9903_v33 = vld [vmem:[#allocation2 + $0x5c] ss:$0 sps:$4 sm:$0x33]  }
 0x28f   : > { %14255 = vst [vmem:[#allocation35_spill] sm:$0xff] %v11263_v48  ;;  %v5335_v60 = vor.u32 %v5334_v25, %v5331_v46  ;;  %v5343_v26 = vor.u32 %v5342_v18, %v5339_v3  ;;  %v3819_v48 = vshll.u32 %v11177_v44, 16  ;;  %v11278_v37 = vcombine.low %v2386_v20, %v11205_v21  ;;  %v11282_v46 = vpop.f32.mrf.mxu1 }
 0x290   : > { %2932 = vrot.lane.b32.xlu1 %v2893_v27, %s10320_s29  ;;  %14256 = vst [vmem:[#allocation36_spill] sm:$0xff] %v11271_v36  ;;  %v2689_v4 = vshll.u32 %v11217_v9, 16  ;;  %v4242_v57 = vshrl.u32 %v11197_v59, 16  ;;  %v5627_v40 = vrot.slane %v9318_v63, 2  ;;  %v5628_v55 = vrot.slane %v11256_v61, 2 }
 0x291   : > { %v11275_v29 = vpop.permute.xlu0 %4413  ;;  %14257 = vst [vmem:[#allocation37_spill] sm:$0xff] %v11278_v37  ;;  %v3812_v44 = vshrl.u32 %v11271_v36, 16  ;;  %v3814_v52 = vshll.u32 %v11271_v36, 16  ;;  %v5344_v25 = vsel %vm2998_vm6, %v5335_v60, %v5343_v26  ;;  %v4511_v21 = vsel %vm3351_vm12, %v4509_v17, %v4510_v1  ;;  %v11300_v26 = vpop.f32.mrf.mxu1  ;;  %v4722_v36 = vld [vmem:[#allocation2 + $0x60] sm:$0xc] }
 0x292   : > { %6659 = vrot.lane.b32.xlu0 %v6448_v50, %s10322_s10  ;;  %v11284_v6 = vpop.permute.xlu1 %2793  ;;  %v2682_v3 = vshrl.u32 %v11278_v37, 16  ;;  %v2684_v9 = vshll.u32 %v11278_v37, 16  ;;  %v3821_v20 = vrot.slane %v3819_v48, 1  ;;  %v2691_v63 = vrot.slane %v2689_v4, 1 }
 0x293   : > { %14258 = vst [vmem:[#allocation38_spill] sm:$0xff] %v11284_v6  ;;  %v3816_v18 = vrot.slane %v3814_v52, 1  ;;  %v4244_v27 = vrot.slane %v4242_v57, 1  ;;  %v4245_v60 = vshll.u32 %v11197_v59, 16  ;;  %v4250_v17 = vshrl.u32 %v11242_v47, 16  ;;  %v11307_v59 = vpop.f32.mrf.mxu1 }
 0x294   : > { %5540 = vrot.lane.b32.xlu1 %v5344_v25, %s10322_s10  ;;  %v2686_v6 = vrot.slane %v2684_v9, 1  ;;  %v4253_v1 = vshll.u32 %v11242_v47, 16  ;;  %v5629_v37 = vsel %vm3351_vm12, %v5627_v40, %v5628_v55  ;;  %v3119_v48 = vshrl.u32 %v11226_v34, 16 }
 0x295   : > { %v11295_v50 = vpop.permute.xlu0 %3275  ;;  %v3817_v25 = vor.u32 %v3816_v18, %v3812_v44  ;;  %v3122_v4 = vshll.u32 %v11226_v34, 16  ;;  %v4252_v9 = vrot.slane %v4250_v17, 1  ;;  %v3127_v40 = vshrl.u32 %v9903_v33, 16  ;;  %v4646_v18 = vld [vmem:[#allocation2 + $0x54] sm:$0xf] }
 0x296   : > { %8056 = vrot.lane.b32.xlu0 %v4511_v21, %s10321_s30  ;;  %14259 = vst [vmem:[#allocation39_spill] sm:$0xff] %v11295_v50  ;;  %v11303_v52 = vpop.permute.xlu1 %2924  ;;  %v2687_v57 = vor.u32 %v2686_v6, %v2682_v3  ;;  %v4247_v21 = vrot.slane %v4245_v60, 2  ;;  %v4255_v50 = vrot.slane %v4253_v1, 2  ;;  %v3121_v22 = vrot.slane %v3119_v48, 1 }
 0x297   : > { %14260 = vst [vmem:[#allocation40_spill] sm:$0xff] %v11303_v52  ;;  %v3822_v47 = vsel %vm2596_vm4, %v3817_v25, %v3821_v20  ;;  %v3124_v51 = vrot.slane %v3122_v4, 2  ;;  %v3130_v3 = vshll.u32 %v9903_v33, 16  ;;  %v3129_v1 = vrot.slane %v3127_v40, 1  ;;  %v5765_v25 = vld [vmem:[#allocation2 + $0x54] sm:$0xf] }
 0x298   : > { %8149 = vrot.lane.b32.xlu1 %v5629_v37, %s10320_s29  ;;  %v2692_v44 = vsel %vm2596_vm4, %v2687_v57, %v2691_v63  ;;  %v4248_v34 = vor.u32 %v4247_v21, %v4244_v27  ;;  %v4256_v6 = vor.u32 %v4255_v50, %v4252_v9  ;;  %v5346_v37 = vshrl.u32 %v11173_v23, 16  ;;  %v11322_v27 = vpop.f32.mrf.mxu1  ;;  %v9905_v40 = vld [vmem:[#allocation2 + $0x5c] ss:$0 sps:$4 sm:$0x33]  }
 0x299   : > { %v11312_v55 = vpop.permute.xlu0 %5182  ;;  %v3125_v17 = vor.u32 %v3124_v51, %v3121_v22  ;;  %v5349_v20 = vshll.u32 %v11173_v23, 16  ;;  %v3132_v4 = vrot.slane %v3130_v3, 2  ;;  %v5357_v63 = vshll.u32 %v11256_v61, 16 }
 0x29a   : > { %3943 = vrot.lane.b32.xlu0 %v3822_v47, %s10321_s30  ;;  %14261 = vst [vmem:[#allocation41_spill] sm:$0xff] %v11312_v55  ;;  %v11315_v60 = vpop.permute.xlu1 %4063  ;;  %v4257_v48 = vsel %vm2998_vm6, %v4248_v34, %v4256_v6  ;;  %v5354_v47 = vshrl.u32 %v11256_v61, 16  ;;  %v5348_v33 = vrot.slane %v5346_v37, 1  ;;  %v11326_v22 = vcombine.low %v4646_v18, %v11163_v7  ;;  %v11335_v34 = vpop.f32.mrf.mxu1 }
 0x29b   : > { %v5351_v50 = vrot.slane %v5349_v20, 2  ;;  %v4928_v51 = vshll.u32 %v11146_v43, 16  ;;  %v3133_v57 = vor.u32 %v3132_v4, %v3129_v1  ;;  %v5359_v9 = vrot.slane %v5357_v63, 2 }
 0x29c   : > { %2803 = vrot.lane.b32.xlu1 %v2692_v44, %s10321_s30  ;;  %14262 = vst [vmem:[#allocation42_spill] sm:$0xff] %v11326_v22  ;;  %v5356_v21 = vrot.slane %v5354_v47, 1  ;;  %v11333_v61 = vcombine.low %v5765_v25, %v11199_v32  ;;  %v4921_v7 = vshrl.u32 %v11326_v22, 16  ;;  %v4923_v43 = vshll.u32 %v11326_v22, 16 }
 0x29d   : > { %v11330_v23 = vpop.permute.xlu0 %6301  ;;  %v5352_v44 = vor.u32 %v5351_v50, %v5348_v33  ;;  %v3134_v3 = vsel %vm2998_vm6, %v3125_v17, %v3133_v57  ;;  %v4930_v37 = vrot.slane %v4928_v51, 1  ;;  %v6037_v25 = vshll.u32 %v11187_v2, 16  ;;  %v11353_v50 = vld [vmem:[#allocation2 + $0x68] ss:$0 sps:$4 sm:$0x33]   ;;  %v11355_v51 = vpop.f32.mrf.mxu1 }
 0x29e   : > { %4423 = vrot.lane.b32.xlu0 %v4257_v48, %s10322_s10  ;;  %14263 = vst [vmem:[#allocation43_spill] sm:$0xff] %v11330_v23  ;;  %14264 = vst [vmem:[#allocation44_spill] sm:$0xff] %v11333_v61  ;;  %v11337_v6 = vpop.permute.xlu1 %5532  ;;  %v5360_v18 = vor.u32 %v5359_v9, %v5356_v21  ;;  %v6030_v1 = vshrl.u32 %v11333_v61, 16  ;;  %v4925_v32 = vrot.slane %v4923_v43, 1  ;;  %v6032_v20 = vshll.u32 %v11333_v61, 16 }
 0x29f   : > { %14265 = vst [vmem:[#allocation45_spill] sm:$0xff] %v11337_v6  ;;  %v1671_v48 = vadd.f32 %v11092_v31, %v11070_v35  ;;  %v6450_v17 = vshrl.u32 %v11215_v62, 16  ;;  %v6453_v63 = vshll.u32 %v11215_v62, 16  ;;  %v6458_v33 = vshrl.u32 %v9905_v40, 16  ;;  %v11362_v55 = vpop.f32.mrf.mxu1  ;;  %v3570_v23 = vld [vmem:[#allocation2 + $0x60] sm:$0xe] }
 0x2a0   : > { %3285 = vrot.lane.b32.xlu1 %v3134_v3, %s10322_s10  ;;  %v5361_v4 = vsel %vm2998_vm6, %v5352_v44, %v5360_v18  ;;  %v4926_v57 = vor.u32 %v4925_v32, %v4921_v7  ;;  %v6034_v2 = vrot.slane %v6032_v20, 1  ;;  %v6039_v21 = vrot.slane %v6037_v25, 1  ;;  %v11360_v35 = vld [vmem:[#allocation2 + $0x68] ss:$0 sps:$4 sm:$0x11]  }
 0x2a1   : > { %v11349_v47 = vpop.permute.xlu0 %3935  ;;  %v1855_v44 = vmax.f32 %v1671_v48, 0.0  ;;  %v6452_v43 = vrot.slane %v6450_v17, 1  ;;  %v3529_v3 = vld [vmem:[#allocation2 + $0x60] sm:$0xf]  ;;  %v6455_v6 = vrot.slane %v6453_v63, 2  ;;  %v6460_v20 = vrot.slane %v6458_v33, 1 }
 0x2a2   : > { %5542 = vrot.lane.b32.xlu0 %v5361_v4, %s10322_s10  ;;  %v11358_v9 = vpop.permute.xlu1 %2795  ;;  %v3602_v18 = vld [vmem:[#allocation2 + $0x60] sm:$0xc]  ;;  %v4931_v62 = vsel %vm2596_vm4, %v4926_v57, %v4930_v37  ;;  %v6035_v52 = vor.u32 %v6034_v2, %v6030_v1  ;;  %v6461_v25 = vshll.u32 %v9905_v40, 16  ;;  %v1663_v48 = vadd.f32 %v11092_v31, %v11098_v41  ;;  %v3530_v4 = vld [vmem:[#allocation2 + $0x64] sm:$0xf]  ;;  %v11380_v41 = vpop.f32.mrf.mxu1 }
 0x2a3   : > { %14266 = vst [vmem:[#allocation46_spill] sm:$0xff] %v11358_v9  ;;  %v9521_v7 = vpack.c.bf16 %v1855_v44, %v1855_v44  ;;  %v9240_v9 = vcombine.low %v3602_v18, %v3530_v4  ;;  %v2388_v1 = vld [vmem:[#allocation2 + $0x60] sm:$0xf]  ;;  %v11375_v63 = vld [vmem:[#allocation2 + $0x64] sm:$0xf]  ;;  %v6456_v57 = vor.u32 %v6455_v6, %v6452_v43  ;;  %v4513_v40 = vrot.slane %v11353_v50, 2 }
 0x2a4   : > { %5062 = vrot.lane.b32.xlu1 %v4931_v62, %s10321_s30  ;;  %v6040_v17 = vsel %vm2596_vm4, %v6035_v52, %v6039_v21  ;;  %v6463_v2 = vrot.slane %v6461_v25, 2  ;;  %v1853_v33 = vmax.f32 %v1663_v48, 0.0  ;;  %v4690_v44 = vld [vmem:[#allocation2 + $0x60] sm:$0xe]  ;;  %v11382_v62 = vcombine.low %v3529_v3, %v3530_v4  ;;  %v11395_v25 = vpop.f32.mrf.mxu1 }
 0x2a5   : > { %v11368_v32 = vpop.permute.xlu0 %4415  ;;  %2334 = vst.msk [vmem:[#allocation2 + $0x88] sm:$0xf] %vm2299_vm3, %v9521_v7  ;;  %v4512_v52 = vrot.slane %v9240_v9, 2  ;;  %v9208_v21 = vcombine.low %v3570_v23, %v3530_v4  ;;  %v4033_v18 = vrot.slane %v11360_v35, 1  ;;  %v11390_v6 = vcombine.low %v2388_v1, %v11375_v63  ;;  %v11393_v7 = vld [vmem:[#allocation2 + $0x64] sm:$0xf] }
 0x2a6   : > { %v11373_v37 = vpop.permute.xlu1 %3277  ;;  %6181 = vrot.lane.b32.xlu0 %v6040_v17, %s10321_s30  ;;  %14268 = vst [vmem:[#allocation48_spill] sm:$0xff] %v11382_v62  ;;  %v1947_v17 = vsel %vm1908_vm11, %v1853_v33, 0.0  ;;  %v2701_v43 = vshll.u32 %v11365_v58, 16  ;;  %v11407_v33 = vld [vmem:[#allocation2 + $0x68] ss:$0 sps:$4 sm:$0x11]  }
 0x2a7   : > { %14267 = vst [vmem:[#allocation47_spill] sm:$0xff] %v11373_v37  ;;  %v6464_v37 = vor.u32 %v6463_v2, %v6460_v20  ;;  %14270 = vst [vmem:[#allocation50_spill] sm:$0xff] %v11390_v6  ;;  %v9519_v3 = vpack.c.bf16 %v1947_v17, %v1947_v17  ;;  %v4514_v23 = vsel %vm3351_vm12, %v4512_v52, %v4513_v40  ;;  %v4032_v9 = vrot.slane %v9208_v21, 1  ;;  %v5810_v40 = vld [vmem:[#allocation2 + $0x60] sm:$0xe] }
 0x2a8   : > { %v11399_v20 = vcombine.low %v4690_v44, %v11393_v7  ;;  %v2694_v4 = vshrl.u32 %v11390_v6, 16  ;;  %v2696_v1 = vshll.u32 %v11390_v6, 16  ;;  %v11413_v44 = vld [vmem:[#allocation2 + $0x68] ss:$0 sps:$4 sm:$0x11]   ;;  %v3824_v17 = vshrl.u32 %v11382_v62, 16 }
 0x2a9   : > { %v11387_v56 = vpop.permute.xlu0 %5534  ;;  %v6465_v48 = vsel %vm2998_vm6, %v6456_v57, %v6464_v37  ;;  %2332 = vst.msk [vmem:[#allocation2 + $0x80] sm:$0xf] %vm2299_vm3, %v9519_v3  ;;  %v2703_v57 = vrot.slane %v2701_v43, 1  ;;  %v4034_v6 = vsel %vm2869_vm5, %v4032_v9, %v4033_v18  ;;  %v3831_v16 = vshll.u32 %v11360_v35, 16  ;;  %v2428_v3 = vld [vmem:[#allocation2 + $0x60] sm:$0xe] }
 0x2aa   : > { %14269 = vst [vmem:[#allocation49_spill] sm:$0xff] %v11387_v56  ;;  %8060 = vrot.lane.b32.xlu0 %v4514_v23, %s10321_s30  ;;  %v11409_v56 = vpop.f32.mrf.mxu1  ;;  %6661 = vrot.lane.b32.xlu1 %v6465_v48, %s10322_s10  ;;  %v2698_v37 = vrot.slane %v2696_v1, 1  ;;  %v3826_v23 = vshll.u32 %v11382_v62, 16  ;;  %v11422_v48 = vld [vmem:[#allocation2 + $0x64] sm:$0xf]  ;;  %v5151_v1 = vrot.slane %v11407_v33, 1 }
 0x2ab   : > { %v4648_v61 = vld [vmem:[#allocation2 + $0x60] sm:$0xf]  ;;  %v4259_v18 = vshrl.u32 %v9208_v21, 16  ;;  %v4262_v9 = vshll.u32 %v9208_v21, 16 }
 0x2ac   : > { %v11405_v2 = vpop.permute.xlu1 %5054  ;;  %v2699_v38 = vor.u32 %v2698_v37, %v2694_v4  ;;  %v3828_v43 = vrot.slane %v3826_v23, 1  ;;  %v4267_v4 = vshrl.u32 %v11353_v50, 16 }
 0x2ad   : > { %14271 = vst [vmem:[#allocation51_spill] sm:$0xff] %v11405_v2  ;;  %v11415_v52 = vpop.permute.xlu0 %6173  ;;  %v5150_v2 = vrot.slane %v11399_v20, 1  ;;  %v4261_v37 = vrot.slane %v4259_v18, 1  ;;  %v4264_v23 = vrot.slane %v4262_v9, 2 }
 0x2ae   : > { %14272 = vst [vmem:[#allocation52_spill] sm:$0xff] %v11415_v52  ;;  %v9366_v52 = vcombine.low %v5810_v40, %v11422_v48  ;;  %4073 = vrot.lane.b32.xlu1 %v4034_v6, %s10320_s29  ;;  %v2704_v35 = vsel %vm2596_vm4, %v2699_v38, %v2703_v57  ;;  %v3829_v53 = vor.u32 %v3828_v43, %v3824_v17  ;;  %v6269_v40 = vrot.slane %v11413_v44, 1  ;;  %v9921_v9 = vld [vmem:[#allocation2 + $0x68] ss:$0 sps:$4 sm:$0x33]  }
 0x2af   : > { %v9661_v45 = vpop.f32.mrf.mxu1  ;;  %2805 = vrot.lane.b32.xlu0 %v2704_v35, %s10321_s30  ;;  %v4270_v6 = vshll.u32 %v11353_v50, 16  ;;  %v5152_v21 = vsel %vm2869_vm5, %v5150_v2, %v5151_v1  ;;  %v11440_v38 = vcombine.low %v2428_v3, %v11375_v63  ;;  %v11446_v17 = vcombine.low %v4648_v61, %v11393_v7  ;;  %v9919_v1 = vld [vmem:[#allocation2 + $0x68] ss:$0 sps:$4 sm:$0x33]  }
 0x2b0   : > { %v11427_v62 = vpop.permute.xlu1 %6653  ;;  %v3833_v45 = vrot.slane %v3831_v16, 1  ;;  %v6268_v54 = vrot.slane %v9366_v52, 1  ;;  %v4940_v2 = vshll.u32 %v11407_v33, 16  ;;  %v9319_v43 = vcombine.low %v4722_v36, %v11393_v7 }
 0x2b1   : > { %14273 = vst [vmem:[#allocation53_spill] sm:$0xff] %v11427_v62  ;;  %v11429_v22 = vpop.f32.mrf.mxu1  ;;  %v4272_v16 = vrot.slane %v4270_v6, 2  ;;  %14276 = vst [vmem:[#allocation56_spill] sm:$0xff] %v11446_v17  ;;  %v4933_v3 = vshrl.u32 %v11446_v17, 16  ;;  %v4935_v18 = vshll.u32 %v11446_v17, 16  ;;  %v6467_v35 = vshrl.u32 %v9366_v52, 16 }
 0x2b2   : > { %14274 = vst [vmem:[#allocation54_spill] sm:$0xff] %v11429_v22  ;;  %v4269_v22 = vrot.slane %v4267_v4, 1  ;;  %5192 = vrot.lane.b32.xlu1 %v5152_v21, %s10320_s29  ;;  %v3834_v50 = vsel %vm2596_vm4, %v3829_v53, %v3833_v45  ;;  %v6270_v61 = vsel %vm2869_vm5, %v6268_v54, %v6269_v40  ;;  %v2894_v53 = vrot.slane %v11440_v38, 1  ;;  %v3571_v54 = vld [vmem:[#allocation2 + $0x6c] sm:$0xe] }
 0x2b3   : > { %v9662_v62 = vpop.f32.mrf.mxu1  ;;  %3945 = vrot.lane.b32.xlu0 %v3834_v50, %s10321_s30  ;;  %v2895_v33 = vrot.slane %v11365_v58, 1  ;;  %v6470_v45 = vshll.u32 %v9366_v52, 16  ;;  %v4937_v36 = vrot.slane %v4935_v18, 1  ;;  %v4942_v7 = vrot.slane %v4940_v2, 1  ;;  %v5767_v52 = vld [vmem:[#allocation2 + $0x60] sm:$0xf] }
 0x2b4   : > { %v11437_v28 = vpop.permute.xlu0 %2797  ;;  %v11443_v57 = vpop.permute.xlu1 %4065  ;;  %v4265_v62 = vor.u32 %v4264_v23, %v4261_v37  ;;  %v4273_v63 = vor.u32 %v4272_v16, %v4269_v22  ;;  %v6469_v37 = vrot.slane %v6467_v35, 1  ;;  %v5630_v6 = vrot.slane %v9319_v43, 2  ;;  %v11469_v43 = vld [vmem:[#allocation2 + $0x70] sm:$0xf] }
 0x2b5   : > { %14275 = vst [vmem:[#allocation55_spill] sm:$0xff] %v11437_v28  ;;  %v5631_v21 = vrot.slane %v9919_v1, 2  ;;  %v6472_v16 = vrot.slane %v6470_v45, 2  ;;  %v4938_v40 = vor.u32 %v4937_v36, %v4933_v3  ;;  %v6475_v50 = vshrl.u32 %v9921_v9, 16 }
 0x2b6   : > { %6311 = vrot.lane.b32.xlu1 %v6270_v61, %s10320_s29  ;;  %v4274_v23 = vsel %vm2998_vm6, %v4265_v62, %v4273_v63  ;;  %v6478_v28 = vshll.u32 %v9921_v9, 16  ;;  %v5363_v58 = vshrl.u32 %v11399_v20, 16  ;;  %v2896_v18 = vsel %vm2869_vm5, %v2894_v53, %v2895_v33  ;;  %v11471_v63 = vld [vmem:[#allocation2 + $0x74] ss:$0 sps:$4 sm:$0x11]  }
 0x2b7   : > { %4425 = vrot.lane.b32.xlu0 %v4274_v23, %s10322_s10  ;;  %v5366_v35 = vshll.u32 %v11399_v20, 16  ;;  %v5371_v61 = vshrl.u32 %v9919_v1, 16  ;;  %v5374_v62 = vshll.u32 %v9919_v1, 16  ;;  %v4943_v3 = vsel %vm2596_vm4, %v4938_v40, %v4942_v7  ;;  %v11477_v20 = vld [vmem:[#allocation2 + $0x74] ss:$0 sps:$4 sm:$0x11]  }
 0x2b8   : > { %v11455_v4 = vpop.permute.xlu0 %3937  ;;  %v11460_v22 = vpop.permute.xlu1 %2926  ;;  %v6473_v9 = vor.u32 %v6472_v16, %v6469_v37  ;;  %v6477_v45 = vrot.slane %v6475_v50, 1  ;;  %v6480_v36 = vrot.slane %v6478_v28, 2  ;;  %v5365_v53 = vrot.slane %v5363_v58, 1  ;;  %v4691_v28 = vld [vmem:[#allocation2 + $0x6c] sm:$0xe] }
 0x2b9   : > { %14277 = vst [vmem:[#allocation57_spill] sm:$0xff] %v11460_v22  ;;  %v5368_v33 = vrot.slane %v5366_v35, 2  ;;  %v5373_v22 = vrot.slane %v5371_v61, 1  ;;  %v5376_v17 = vrot.slane %v5374_v62, 2  ;;  %v5632_v1 = vsel %vm3351_vm12, %v5630_v6, %v5631_v21 }
 0x2ba   : > { %2934 = vrot.lane.b32.xlu1 %v2896_v18, %s10320_s29  ;;  %v11482_v18 = vcombine.low %v3571_v54, %v11469_v43  ;;  %v1674_v7 = vadd.f32 %v11092_v31, %v11105_v13  ;;  %v11489_v50 = vcombine.low %v5767_v52, %v11422_v48  ;;  %v6049_v58 = vshll.u32 %v11413_v44, 16  ;;  %v11497_v13 = vld [vmem:[#allocation2 + $0x70] sm:$0xf]  ;;  %v9926_v44 = vld [vmem:[#allocation2 + $0x68] ss:$0 sps:$4 sm:$0x33]  }
 0x2bb   : > { %5064 = vrot.lane.b32.xlu0 %v4943_v3, %s10321_s30  ;;  %v5369_v16 = vor.u32 %v5368_v33, %v5365_v53  ;;  %v5377_v40 = vor.u32 %v5376_v17, %v5373_v22  ;;  %v4036_v21 = vrot.slane %v11471_v63, 1  ;;  %v1666_v62 = vadd.f32 %v11092_v31, %v11121_v30 }
 0x2bc   : > { %v11466_v2 = vpop.permute.xlu0 %4417  ;;  %v11475_v23 = vpop.permute.xlu1 %5184  ;;  %14281 = vst [vmem:[#allocation61_spill] sm:$0xff] %v11489_v50  ;;  %v1856_v35 = vmax.f32 %v1674_v7, 0.0  ;;  %v4035_v17 = vrot.slane %v11482_v18, 1  ;;  %v6042_v48 = vshrl.u32 %v11489_v50, 16  ;;  %v6044_v22 = vshll.u32 %v11489_v50, 16 }
 0x2bd   : > { %14278 = vst [vmem:[#allocation58_spill] sm:$0xff] %v11466_v2  ;;  %14279 = vst [vmem:[#allocation59_spill] sm:$0xff] %v11475_v23  ;;  %v6481_v2 = vor.u32 %v6480_v36, %v6477_v45  ;;  %v5378_v61 = vsel %vm2998_vm6, %v5369_v16, %v5377_v40  ;;  %v11509_v3 = vcombine.low %v4691_v28, %v11497_v13  ;;  %v5154_v33 = vrot.slane %v11477_v20, 1  ;;  %v5811_v7 = vld [vmem:[#allocation2 + $0x6c] sm:$0xe] }
 0x2be   : > { %8153 = vrot.lane.b32.xlu1 %v5632_v1, %s10320_s29  ;;  %v1950_v52 = vsel %vm1908_vm11, %v1856_v35, 0.0  ;;  %v6046_v53 = vrot.slane %v6044_v22, 1  ;;  %v3136_v1 = vshrl.u32 %v11440_v38, 16  ;;  %v4723_v16 = vld [vmem:[#allocation2 + $0x6c] sm:$0xc]  ;;  %v1854_v40 = vmax.f32 %v1666_v62, 0.0 }
 0x2bf   : > { %v6482_v6 = vsel %vm2998_vm6, %v6473_v9, %v6481_v2  ;;  %v6051_v2 = vrot.slane %v6049_v58, 1  ;;  %v11511_v9 = vld [vmem:[#allocation2 + $0x74] ss:$0 sps:$4 sm:$0x11]   ;;  %v9522_v45 = vpack.c.bf16 %v1950_v52, %v1950_v52  ;;  %v5153_v31 = vrot.slane %v11509_v3, 1 }
 0x2c0   : > { %v11486_v37 = vpop.permute.xlu0 %3279  ;;  %v11495_v54 = vpop.permute.xlu1 %6303  ;;  %6663 = vrot.lane.b32.xlu0 %v6482_v6, %s10322_s10  ;;  %v3139_v28 = vshll.u32 %v11440_v38, 16  ;;  %v11522_v58 = vld [vmem:[#allocation2 + $0x74] ss:$0 sps:$4 sm:$0x33]   ;;  %v4037_v6 = vsel %vm2869_vm5, %v4035_v17, %v4036_v21  ;;  %v6047_v35 = vor.u32 %v6046_v53, %v6042_v48  ;;  %v3138_v22 = vrot.slane %v3136_v1, 1 }
 0x2c1   : > { %14280 = vst [vmem:[#allocation60_spill] sm:$0xff] %v11486_v37  ;;  %14282 = vst [vmem:[#allocation62_spill] sm:$0xff] %v11495_v54  ;;  %v3144_v52 = vshrl.u32 %v9926_v44, 16  ;;  %v9931_v54 = vld [vmem:[#allocation2 + $0x74] ss:$0 sps:$4 sm:$0x11]   ;;  %v5155_v62 = vsel %vm2869_vm5, %v5153_v31, %v5154_v33  ;;  %v9320_v33 = vcombine.low %v4723_v16, %v11497_v13 }
 0x2c2   : > { %5544 = vrot.lane.b32.xlu1 %v5378_v61, %s10322_s10  ;;  %2335 = vst.msk [vmem:[#allocation2 + $0x8c] sm:$0xf] %vm2299_vm3, %v9522_v45  ;;  %v1948_v61 = vsel %vm1897_vm10, %v1854_v40, 0.0  ;;  %v3141_v37 = vrot.slane %v3139_v28, 2  ;;  %v2429_v38 = vld [vmem:[#allocation2 + $0x6c] sm:$0xe]  ;;  %v6052_v23 = vsel %vm2596_vm4, %v6047_v35, %v6051_v2 }
 0x2c3   : > { %v9520_v50 = vpack.c.bf16 %v1948_v61, %v1948_v61  ;;  %v3146_v17 = vrot.slane %v3144_v52, 1  ;;  %v3147_v48 = vshll.u32 %v9926_v44, 16  ;;  %v2391_v45 = vld [vmem:[#allocation2 + $0x70] sm:$0xf]  ;;  %v2390_v53 = vld [vmem:[#allocation2 + $0x6c] sm:$0xf] }
 0x2c4   : > { %v11513_v36 = vpop.permute.xlu0 %5056  ;;  %v11519_v30 = vpop.permute.xlu1 %5536  ;;  %4075 = vrot.lane.b32.xlu0 %v4037_v6, %s10320_s29  ;;  %v3142_v1 = vor.u32 %v3141_v37, %v3138_v22  ;;  %v6272_v40 = vrot.slane %v11511_v9, 1  ;;  %v5634_v2 = vrot.slane %v11522_v58, 2  ;;  %v11540_v28 = vcombine.low %v2429_v38, %v2391_v45  ;;  %v11554_v16 = vld [vmem:[%s14126_s4] ss:$0 sm:$0xff] }
 0x2c5   : > { %14283 = vst [vmem:[#allocation63_spill] sm:$0xff] %v11513_v36  ;;  %14284 = vst [vmem:[#allocation64_spill] sm:$0xff] %v11519_v30  ;;  %v5770_v30 = vld [vmem:[#allocation2 + $0x70] sm:$0xf]  ;;  %v3149_v31 = vrot.slane %v3147_v48, 2  ;;  %v2898_v35 = vrot.slane %v9931_v54, 1  ;;  %v1687_v61 = vadd.f32 %v11554_v16, %v11139_v39 }
 0x2c6   : > { %6183 = vrot.lane.b32.xlu1 %v6052_v23, %s10321_s30  ;;  %v11534_v6 = vcombine.low %v5811_v7, %v5770_v30  ;;  %2333 = vst.msk [vmem:[#allocation2 + $0x84] sm:$0xf] %vm2299_vm3, %v9520_v50  ;;  %v5633_v37 = vrot.slane %v9320_v33, 2  ;;  %v11546_v7 = vcombine.low %v2390_v53, %v2391_v45  ;;  %v2897_v50 = vrot.slane %v11540_v28, 1  ;;  %v3531_v53 = vld [vmem:[#allocation2 + $0x6c] sm:$0xf] }
 0x2c7   : > { %v3150_v22 = vor.u32 %v3149_v31, %v3146_v17  ;;  %v2713_v45 = vshll.u32 %v9931_v54, 16  ;;  %v6061_v54 = vshll.u32 %v11511_v9, 16 }
 0x2c8   : > { %v11531_v21 = vpop.permute.xlu0 %6655  ;;  %5194 = vrot.lane.b32.xlu0 %v5155_v62, %s10320_s29  ;;  %v6271_v44 = vrot.slane %v11534_v6, 1  ;;  %14287 = vst [vmem:[#allocation67_spill] sm:$0xff] %v11546_v7  ;;  %v5769_v62 = vld [vmem:[#allocation2 + $0x6c] sm:$0xf]  ;;  %v5635_v48 = vsel %vm3351_vm12, %v5633_v37, %v5634_v2  ;;  %v2899_v33 = vsel %vm2869_vm5, %v2897_v50, %v2898_v35  ;;  %v2706_v31 = vshrl.u32 %v11546_v7, 16 }
 0x2c9   : > { %14285 = vst [vmem:[#allocation65_spill] sm:$0xff] %v11531_v21  ;;  %v3151_v17 = vsel %vm2998_vm6, %v3142_v1, %v3150_v22  ;;  %v2708_v21 = vshll.u32 %v11546_v7, 16  ;;  %v1679_v1 = vadd.f32 %v11554_v16, %v11155_v11  ;;  %v3843_v37 = vshll.u32 %v11471_v63, 16 }
 0x2ca   : > { %v11544_v23 = vpop.permute.xlu1 %6175  ;;  %v6273_v38 = vsel %vm2869_vm5, %v6271_v44, %v6272_v40  ;;  %3287 = vrot.lane.b32.xlu1 %v3151_v17, %s10322_s10  ;;  %v11568_v40 = vcombine.low %v5769_v62, %v5770_v30  ;;  %v11576_v44 = vcombine.low %v3531_v53, %v11469_v43  ;;  %v1690_v22 = vadd.f32 %v11554_v16, %v11189_v8 }
 0x2cb   : > { %14286 = vst [vmem:[#allocation66_spill] sm:$0xff] %v11544_v23  ;;  %v1859_v23 = vmax.f32 %v1687_v61, 0.0  ;;  %v2710_v35 = vrot.slane %v2708_v21, 1  ;;  %v2715_v50 = vrot.slane %v2713_v45, 1  ;;  %v1857_v21 = vmax.f32 %v1679_v1, 0.0 }
 0x2cc   : > { %v11548_v52 = vpop.permute.xlu0 %5186  ;;  %6313 = vrot.lane.b32.xlu0 %v6273_v38, %s10320_s29  ;;  %14289 = vst [vmem:[#allocation69_spill] sm:$0xff] %v11568_v40  ;;  %14291 = vst [vmem:[#allocation71_spill] sm:$0xff] %v11576_v44  ;;  %v6054_v9 = vshrl.u32 %v11568_v40, 16  ;;  %v6056_v61 = vshll.u32 %v11568_v40, 16  ;;  %v6063_v38 = vrot.slane %v6061_v54, 1  ;;  %v3836_v8 = vshrl.u32 %v11576_v44, 16 }
 0x2cd   : > { %14288 = vst [vmem:[#allocation68_spill] sm:$0xff] %v11548_v52  ;;  %v1953_v30 = vsel %vm1908_vm11, %v1859_v23, 0.0  ;;  %v2711_v11 = vor.u32 %v2710_v35, %v2706_v31  ;;  %v3838_v45 = vshll.u32 %v11576_v44, 16  ;;  %v1860_v23 = vmax.f32 %v1690_v22, 0.0 }
 0x2ce   : > { %v11566_v39 = vpop.permute.xlu1 %4067  ;;  %v9525_v62 = vpack.c.bf16 %v1953_v30, %v1953_v30  ;;  %8157 = vrot.lane.b32.xlu1 %v5635_v48, %s10320_s29  ;;  %v6058_v43 = vrot.slane %v6056_v61, 1  ;;  %v1951_v53 = vsel %vm1897_vm10, %v1857_v21, 0.0  ;;  %v3845_v31 = vrot.slane %v3843_v37, 1  ;;  %v4650_v61 = vld [vmem:[#allocation2 + $0x6c] sm:$0xf] }
 0x2cf   : > { %v5380_v48 = vshrl.u32 %v11509_v3, 16  ;;  %v2716_v54 = vsel %vm2596_vm4, %v2711_v11, %v2715_v50  ;;  %v9523_v35 = vpack.c.bf16 %v1951_v53, %v1951_v53  ;;  %v3840_v30 = vrot.slane %v3838_v45, 1 }
 0x2d0   : > { %v11573_v2 = vpop.permute.xlu0 %6305  ;;  %2936 = vrot.lane.b32.xlu0 %v2899_v33, %s10320_s29  ;;  %2338 = vst.msk [vmem:[#allocation2 + $0x98] sm:$0xf] %vm2299_vm3, %v9525_v62  ;;  %v5383_v33 = vshll.u32 %v11509_v3, 16  ;;  %v6059_v1 = vor.u32 %v6058_v43, %v6054_v9  ;;  %v1954_v22 = vsel %vm1897_vm10, %v1860_v23, 0.0  ;;  %v5388_v21 = vshrl.u32 %v11522_v58, 16 }
 0x2d1   : > { %14290 = vst [vmem:[#allocation70_spill] sm:$0xff] %v11573_v2  ;;  %v5382_v62 = vrot.slane %v5380_v48, 1  ;;  %2336 = vst.msk [vmem:[#allocation2 + $0x90] sm:$0xf] %vm2299_vm3, %v9523_v35  ;;  %v3841_v3 = vor.u32 %v3840_v30, %v3836_v8  ;;  %v9526_v2 = vpack.c.bf16 %v1954_v22, %v1954_v22  ;;  %v5391_v50 = vshll.u32 %v11522_v58, 16 }
 0x2d2   : > { %v11587_v63 = vpop.permute.xlu1 %2928  ;;  %v5385_v7 = vrot.slane %v5383_v33, 2  ;;  %2807 = vrot.lane.b32.xlu1 %v2716_v54, %s10321_s30  ;;  %v6064_v37 = vsel %vm2596_vm4, %v6059_v1, %v6063_v38  ;;  %v5390_v11 = vrot.slane %v5388_v21, 1  ;;  %v1682_v43 = vadd.f32 %v11554_v16, %v11219_v24  ;;  %v9934_v58 = vld [vmem:[#allocation2 + $0x74] ss:$0 sps:$4 sm:$0x33]  }
 0x2d3   : > { %14292 = vst [vmem:[#allocation72_spill] sm:$0xff] %v11587_v63  ;;  %v3846_v23 = vsel %vm2596_vm4, %v3841_v3, %v3845_v31  ;;  %2339 = vst.msk [vmem:[#allocation2 + $0x9c] sm:$0xf] %vm2299_vm3, %v9526_v2  ;;  %v5393_v53 = vrot.slane %v5391_v50, 2  ;;  %v11616_v8 = vcombine.low %v4650_v61, %v11497_v13  ;;  %v4952_v33 = vshll.u32 %v11477_v20, 16 }
 0x2d4   : > { %v11594_v17 = vpop.permute.xlu0 %3939  ;;  %6185 = vrot.lane.b32.xlu0 %v6064_v37, %s10321_s30  ;;  %v5386_v38 = vor.u32 %v5385_v7, %v5382_v62  ;;  %v1858_v48 = vmax.f32 %v1682_v43, 0.0  ;;  %v1703_v54 = vadd.f32 %v11554_v16, %v11244_v19  ;;  %v3153_v24 = vshrl.u32 %v11540_v28, 16  ;;  %v9935_v19 = vld [vmem:[#allocation2 + $0x74] ss:$0 sps:$4 sm:$0x33]  }
 0x2d5   : > { %14295 = vst [vmem:[#allocation75_spill] sm:$0xff] %v11616_v8  ;;  %v5394_v1 = vor.u32 %v5393_v53, %v5390_v11  ;;  %v4945_v31 = vshrl.u32 %v11616_v8, 16  ;;  %v4947_v7 = vshll.u32 %v11616_v8, 16  ;;  %v3156_v2 = vshll.u32 %v11540_v28, 16  ;;  %v2392_v43 = vld [vmem:[#allocation2 + $0x78] sm:$0xf] }
 0x2d6   : > { %v11606_v9 = vpop.permute.xlu1 %2799  ;;  %3947 = vrot.lane.b32.xlu1 %v3846_v23, %s10321_s30  ;;  %v9524_v35 = vpack.c.bf16 %v1858_v48, %v1858_v48  ;;  %v4954_v30 = vrot.slane %v4952_v33, 1  ;;  %v1863_v61 = vmax.f32 %v1703_v54, 0.0  ;;  %v3155_v20 = vrot.slane %v3153_v24, 1  ;;  %v11637_v33 = vld [vmem:[#allocation2 + $0x7c] sm:$0xf] }
 0x2d7   : > { %14293 = vst [vmem:[#allocation73_spill] sm:$0xff] %v11606_v9  ;;  %v5395_v62 = vsel %vm2998_vm6, %v5386_v38, %v5394_v1  ;;  %v4949_v21 = vrot.slane %v4947_v7, 1  ;;  %v3158_v37 = vrot.slane %v3156_v2, 2  ;;  %v3161_v3 = vshrl.u32 %v9934_v58, 16 }
 0x2d8   : > { %v11611_v45 = vpop.permute.xlu0 %6177  ;;  %5546 = vrot.lane.b32.xlu0 %v5395_v62, %s10322_s10  ;;  %2337 = vst.msk [vmem:[#allocation2 + $0x94] sm:$0xf] %vm2299_vm3, %v9524_v35  ;;  %v1957_v28 = vsel %vm1897_vm10, %v1863_v61, 0.0  ;;  %v3164_v50 = vshll.u32 %v9934_v58, 16  ;;  %v1695_v11 = vadd.f32 %v11554_v16, %v11261_v42  ;;  %v4276_v2 = vshrl.u32 %v11482_v18, 16 }
 0x2d9   : > { %14294 = vst [vmem:[#allocation74_spill] sm:$0xff] %v11611_v45  ;;  %v4950_v23 = vor.u32 %v4949_v21, %v4945_v31  ;;  %v9529_v53 = vpack.c.bf16 %v1957_v28, %v1957_v28  ;;  %v3163_v48 = vrot.slane %v3161_v3, 1  ;;  %v11639_v38 = vld [vmem:[#allocation2 + $0x80] ss:$0 sps:$4 sm:$0x11]   ;;  %v3159_v24 = vor.u32 %v3158_v37, %v3155_v20 }
 0x2da   : > { %v11626_v13 = vpop.permute.xlu1 %5058  ;;  %v3166_v1 = vrot.slane %v3164_v50, 2  ;;  %v1861_v7 = vmax.f32 %v1695_v11, 0.0  ;;  %v4279_v42 = vshll.u32 %v11482_v18, 16  ;;  %v4284_v31 = vshrl.u32 %v9935_v19, 16 }
 0x2db   : > { %14296 = vst [vmem:[#allocation76_spill] sm:$0xff] %v11626_v13  ;;  %v4955_v58 = vsel %vm2596_vm4, %v4950_v23, %v4954_v30  ;;  %2342 = vst.msk [vmem:[#allocation2 + $0xa8] sm:$0xf] %vm2299_vm3, %v9529_v53  ;;  %v4278_v21 = vrot.slane %v4276_v2, 1  ;;  %v4287_v3 = vshll.u32 %v9935_v19, 16  ;;  %v1706_v28 = vadd.f32 %v11554_v16, %v11282_v46 }
 0x2dc   : > { %v11628_v22 = vpop.permute.xlu0 %4419  ;;  %5066 = vrot.lane.b32.xlu1 %v4955_v58, %s10321_s30  ;;  %v3167_v61 = vor.u32 %v3166_v1, %v3163_v48  ;;  %v9527_v62 = vpack.c.bf16 %v1861_v7, %v1861_v7  ;;  %v4281_v20 = vrot.slane %v4279_v42, 2  ;;  %v4286_v37 = vrot.slane %v4284_v31, 1  ;;  %v9938_v53 = vld [vmem:[#allocation2 + $0x74] ss:$0 sps:$4 sm:$0x33]  }
 0x2dd   : > { %v11653_v50 = vcombine.low %v2392_v43, %v11637_v33  ;;  %v4289_v18 = vrot.slane %v4287_v3, 2  ;;  %v2725_v23 = vshll.u32 %v11639_v38, 16  ;;  %v1864_v1 = vmax.f32 %v1706_v28, 0.0  ;;  %v3533_v7 = vld [vmem:[#allocation2 + $0x78] sm:$0xf] }
 0x2de   : > { %v11641_v54 = vpop.permute.xlu1 %3281  ;;  %v3168_v11 = vsel %vm2998_vm6, %v3159_v24, %v3167_v61  ;;  %2340 = vst.msk [vmem:[#allocation2 + $0xa0] sm:$0xf] %vm2299_vm3, %v9527_v62  ;;  %v4282_v19 = vor.u32 %v4281_v20, %v4278_v21  ;;  %v1698_v24 = vadd.f32 %v11554_v16, %v11300_v26  ;;  %v3534_v58 = vld [vmem:[#allocation2 + $0x7c] sm:$0xf]  ;;  %v6484_v3 = vshrl.u32 %v11534_v6, 16 }
 0x2df   : > { %14297 = vst [vmem:[#allocation77_spill] sm:$0xff] %v11641_v54  ;;  %14299 = vst [vmem:[#allocation79_spill] sm:$0xff] %v11653_v50  ;;  %3289 = vrot.lane.b32.xlu0 %v3168_v11, %s10322_s10  ;;  %v2718_v46 = vshrl.u32 %v11653_v50, 16  ;;  %v2720_v43 = vshll.u32 %v11653_v50, 16  ;;  %v4290_v2 = vor.u32 %v4289_v18, %v4286_v37  ;;  %v9530_v31 = vpack.c.bf16 %v1864_v1, %v1864_v1 }
 0x2e0   : > { %v11644_v35 = vpop.permute.xlu0 %5538  ;;  %v11667_v42 = vld [vmem:[#allocation2 + $0x80] ss:$0 sps:$4 sm:$0x11]   ;;  %v2727_v62 = vrot.slane %v2725_v23, 1  ;;  %v1862_v20 = vmax.f32 %v1698_v24, 0.0  ;;  %v6487_v28 = vshll.u32 %v11534_v6, 16 }
 0x2e1   : > { %14298 = vst [vmem:[#allocation78_spill] sm:$0xff] %v11644_v35  ;;  %v2722_v61 = vrot.slane %v2720_v43, 1  ;;  %v4291_v21 = vsel %vm2998_vm6, %v4282_v19, %v4290_v2  ;;  %2343 = vst.msk [vmem:[#allocation2 + $0xac] sm:$0xf] %vm2299_vm3, %v9530_v31  ;;  %v6486_v37 = vrot.slane %v6484_v3, 1  ;;  %v6492_v18 = vshrl.u32 %v9938_v53, 16 }
 0x2e2   : > { %v11655_v30 = vpop.permute.xlu1 %6657  ;;  %4427 = vrot.lane.b32.xlu1 %v4291_v21, %s10322_s10  ;;  %v6495_v1 = vshll.u32 %v9938_v53, 16  ;;  %v3572_v23 = vld [vmem:[#allocation2 + $0x78] sm:$0xe]  ;;  %v1956_v43 = vsel %vm1908_vm11, %v1862_v20, 0.0  ;;  %v6489_v50 = vrot.slane %v6487_v28, 2  ;;  %v3855_v19 = vshll.u32 %v11667_v42, 16 }
 0x2e3   : > { %14300 = vst [vmem:[#allocation80_spill] sm:$0xff] %v11655_v30  ;;  %v2723_v26 = vor.u32 %v2722_v61, %v2718_v46  ;;  %v11680_v30 = vcombine.low %v3533_v7, %v3534_v58  ;;  %v5812_v6 = vld [vmem:[#allocation2 + $0x78] sm:$0xe]  ;;  %v9528_v24 = vpack.c.bf16 %v1956_v43, %v1956_v43  ;;  %v6494_v21 = vrot.slane %v6492_v18, 1  ;;  %v11684_v31 = vld [vmem:[#allocation2 + $0x88] sm:$0xf] }
 0x2e4   : > { %v11660_v48 = vpop.permute.xlu0 %8052  ;;  %v3573_v46 = vld [vmem:[#allocation2 + $0x84] sm:$0xe]  ;;  %v6490_v53 = vor.u32 %v6489_v50, %v6486_v37  ;;  %v11691_v20 = vld [vmem:[#allocation2 + $0x8c] ss:$0 sps:$4 sm:$0x11]   ;;  %v4039_v63 = vrot.slane %v11667_v42, 1 }
 0x2e5   : > { %14301 = vst [vmem:[#allocation81_spill] sm:$0xff] %v11660_v48  ;;  %14303 = vst [vmem:[#allocation83_spill] sm:$0xff] %v11680_v30  ;;  %v2728_v2 = vsel %vm2596_vm4, %v2723_v26, %v2727_v62  ;;  %v3848_v3 = vshrl.u32 %v11680_v30, 16  ;;  %v3850_v7 = vshll.u32 %v11680_v30, 16  ;;  %v11693_v28 = vld [vmem:[#allocation2 + $0x7c] sm:$0xf]  ;;  %v11701_v50 = vcombine.low %v3573_v46, %v11684_v31 }
 0x2e6   : > { %v11670_v11 = vpop.permute.xlu1 %4069  ;;  %2809 = vrot.lane.b32.xlu0 %v2728_v2, %s10321_s30  ;;  %v11695_v62 = vld [vmem:[#allocation2 + $0x80] ss:$0 sps:$4 sm:$0x11]   ;;  %2341 = vst.msk [vmem:[#allocation2 + $0xa4] sm:$0xf] %vm2299_vm3, %v9528_v24  ;;  %v3857_v2 = vrot.slane %v3855_v19, 1  ;;  %v9368_v45 = vcombine.low %v5812_v6, %v11693_v28 }
 0x2e7   : > { %v9946_v43 = vld [vmem:[#allocation2 + $0x80] ss:$0 sps:$4 sm:$0x33]   ;;  %v2430_v19 = vld [vmem:[#allocation2 + $0x78] sm:$0xe]  ;;  %v6275_v6 = vrot.slane %v11695_v62, 1 }
 0x2e8   : > { %v11674_v48 = vpop.permute.xlu0 %2801  ;;  %v4304_v8 = vshll.u32 %v9946_v43, 16 }
 0x2e9   : > { %14302 = vst [vmem:[#allocation82_spill] sm:$0xff] %v11674_v48  ;;  %v6497_v48 = vrot.slane %v6495_v1, 2  ;;  %v9210_v1 = vcombine.low %v3572_v23, %v3534_v58  ;;  %v4042_v58 = vrot.slane %v11691_v20, 1 }
 0x2ea   : > { %v11686_v61 = vpop.permute.xlu1 %2930  ;;  %v4306_v40 = vrot.slane %v4304_v8, 2  ;;  %v1719_v8 = vadd.f32 %v11554_v16, %v11307_v59 }
 0x2eb   : > { %14304 = vst [vmem:[#allocation84_spill] sm:$0xff] %v11686_v61  ;;  %v6498_v18 = vor.u32 %v6497_v48, %v6494_v21  ;;  %v3852_v61 = vrot.slane %v3850_v7, 1  ;;  %v4038_v54 = vrot.slane %v9210_v1, 1  ;;  %v4041_v48 = vrot.slane %v11701_v50, 1 }
 0x2ec   : > { %v11697_v26 = vpop.permute.xlu0 %3941  ;;  %v4293_v23 = vshrl.u32 %v9210_v1, 16  ;;  %v4296_v46 = vshll.u32 %v9210_v1, 16  ;;  %v9947_v7 = vld [vmem:[#allocation2 + $0x80] ss:$0 sps:$4 sm:$0x33]  }
 0x2ed   : > { %v6499_v37 = vsel %vm2998_vm6, %v6490_v53, %v6498_v18  ;;  %v3853_v24 = vor.u32 %v3852_v61, %v3848_v3  ;;  %v4301_v53 = vshrl.u32 %v9946_v43, 16  ;;  %v4040_v61 = vsel %vm2869_vm5, %v4038_v54, %v4039_v63 }
 0x2ee   : > { %v11706_v9 = vpop.permute.xlu1 %5188  ;;  %6665 = vrot.lane.b32.xlu1 %v6499_v37, %s10322_s10  ;;  %v4295_v18 = vrot.slane %v4293_v23, 1  ;;  %v6274_v3 = vrot.slane %v9368_v45, 1  ;;  %v4298_v37 = vrot.slane %v4296_v46, 2  ;;  %v4043_v1 = vsel %vm2869_vm5, %v4041_v48, %v4042_v58  ;;  %v11727_v46 = vld [vmem:[#allocation2 + $0x8c] ss:$0 sps:$4 sm:$0x11]  }
 0x2ef   : > { %v3858_v42 = vsel %vm2596_vm4, %v3853_v24, %v3857_v2  ;;  %v4303_v44 = vrot.slane %v4301_v53, 1  ;;  %v11722_v2 = vcombine.low %v2430_v19, %v11637_v33  ;;  %v2901_v24 = vrot.slane %v11639_v38, 1  ;;  %v5771_v48 = vld [vmem:[#allocation2 + $0x78] sm:$0xf]  ;;  %v2431_v33 = vld [vmem:[#allocation2 + $0x84] sm:$0xe] }
 0x2f0   : > { %v11711_v21 = vpop.permute.xlu0 %5060  ;;  %3949 = vrot.lane.b32.xlu0 %v3858_v42, %s10321_s30  ;;  %v4299_v23 = vor.u32 %v4298_v37, %v4295_v18  ;;  %v6501_v42 = vshrl.u32 %v9368_v45, 16  ;;  %v6504_v63 = vshll.u32 %v9368_v45, 16  ;;  %v6509_v54 = vshrl.u32 %v9947_v7, 16  ;;  %v11738_v37 = vld [vmem:[#allocation2 + $0x88] sm:$0xf] }
 0x2f1   : > { %v4307_v53 = vor.u32 %v4306_v40, %v4303_v44  ;;  %v2900_v36 = vrot.slane %v11722_v2, 1  ;;  %v6276_v38 = vsel %vm2869_vm5, %v6274_v3, %v6275_v6  ;;  %v6073_v6 = vshll.u32 %v11695_v62, 16 }
 0x2f2   : > { %v11717_v30 = vpop.permute.xlu1 %6307  ;;  %4077 = vrot.lane.b32.xlu1 %v4040_v61, %s10320_s29  ;;  %v6512_v61 = vshll.u32 %v9947_v7, 16  ;;  %v6503_v58 = vrot.slane %v6501_v42, 1  ;;  %v6506_v19 = vrot.slane %v6504_v63, 2  ;;  %v6511_v18 = vrot.slane %v6509_v54, 1 }
 0x2f3   : > { %14305 = vst [vmem:[#allocation85_spill] sm:$0xff] %v11717_v30  ;;  %v4308_v40 = vsel %vm2998_vm6, %v4299_v23, %v4307_v53  ;;  %v1867_v7 = vmax.f32 %v1719_v8, 0.0  ;;  %v1711_v3 = vadd.f32 %v11554_v16, %v11322_v27  ;;  %v9950_v42 = vld [vmem:[#allocation2 + $0x80] ss:$0 sps:$4 sm:$0x33]   ;;  %v2902_v63 = vsel %vm2869_vm5, %v2900_v36, %v2901_v24 }
 0x2f4   : > { %v11725_v43 = vpop.permute.xlu0 %4421  ;;  %4079 = vrot.lane.b32.xlu0 %v4043_v1, %s10320_s29  ;;  %v6514_v44 = vrot.slane %v6512_v61, 2  ;;  %v6507_v35 = vor.u32 %v6506_v19, %v6503_v58  ;;  %v11743_v1 = vcombine.low %v5771_v48, %v11693_v28  ;;  %v9132_v53 = vcombine.low %v2431_v33, %v11738_v37  ;;  %v9951_v61 = vld [vmem:[#allocation2 + $0x8c] ss:$0 sps:$4 sm:$0x33]   ;;  %v10006_v27 = vld [vmem:[%s10393_s16 + $0x1c0] ss:$8 sps:$4 sm:$0xff]  }
 0x2f5   : > { %v9533_v54 = vpack.c.bf16 %v1867_v7, %v1867_v7  ;;  %v10004_v8 = vld [vmem:[%s10393_s16 + $0x1c4] ss:$8 sps:$4 sm:$0xff]   ;;  %v2904_v62 = vrot.slane %v11727_v46, 1  ;;  %v6075_v36 = vrot.slane %v6073_v6, 1  ;;  %v3170_v24 = vshrl.u32 %v11722_v2, 16 }
 0x2f6   : > { %v11734_v45 = vpop.permute.xlu1 %8145  ;;  %6315 = vrot.lane.b32.xlu1 %v6276_v38, %s10320_s29  ;;  %14308 = vst [vmem:[#allocation88_spill] sm:$0xff] %v11743_v1  ;;  %v6515_v23 = vor.u32 %v6514_v44, %v6511_v18  ;;  %v6066_v28 = vshrl.u32 %v11743_v1, 16  ;;  %v6068_v48 = vshll.u32 %v11743_v1, 16  ;;  %v1865_v38 = vmax.f32 %v1711_v3, 0.0  ;;  %8968 = vmatprep.mubr.msk.bf16.mxu0 %vm807_vm0, %v10004_v8  ;;  %v2394_v6 = vld [vmem:[#allocation2 + $0x84] sm:$0xf] }
 0x2f7   : > { %14306 = vst [vmem:[#allocation86_spill] sm:$0xff] %v11734_v45  ;;  %2346 = vst.msk [vmem:[#allocation2 + $0xb8] sm:$0xf] %vm2299_vm3, %v9533_v54  ;;  %v3173_v44 = vshll.u32 %v11722_v2, 16  ;;  %1180 = vmatmul.mubr.bf16.gmra.mxu0 %v10006_v27  ;;  %v2903_v3 = vrot.slane %v9132_v53, 1  ;;  %v3178_v54 = vshrl.u32 %v9950_v42, 16  ;;  %v11784_v13 = vcombine.low %v2394_v6, %v11738_v37 }
 0x2f8   : > { %v11740_v59 = vpop.permute.xlu0 %3283  ;;  %4429 = vrot.lane.b32.xlu0 %v4308_v40, %s10322_s10  ;;  %v6516_v19 = vsel %vm2998_vm6, %v6507_v35, %v6515_v23  ;;  %v6070_v18 = vrot.slane %v6068_v48, 1  ;;  %v1959_v40 = vsel %vm1908_vm11, %v1865_v38, 0.0  ;;  %v11768_v45 = vld [vmem:[#allocation2 + $0x98] ss:$0 sps:$4 sm:$0x11]   ;;  %v3181_v35 = vshll.u32 %v9950_v42, 16 }
 0x2f9   : > { %14307 = vst [vmem:[#allocation87_spill] sm:$0xff] %v11740_v59  ;;  %v9531_v7 = vpack.c.bf16 %v1959_v40, %v1959_v40  ;;  %v3175_v8 = vrot.slane %v3173_v44, 2  ;;  %v3187_v23 = vshrl.u32 %v9132_v53, 16  ;;  %v2396_v48 = vld [vmem:[#allocation2 + $0x90] sm:$0xf]  ;;  %v3180_v2 = vrot.slane %v3178_v54, 1 }
 0x2fa   : > { %v11755_v58 = vpop.permute.xlu1 %6179  ;;  %2938 = vrot.lane.b32.xlu1 %v2902_v63, %s10320_s29  ;;  %v3172_v63 = vrot.slane %v3170_v24, 1  ;;  %v6071_v59 = vor.u32 %v6070_v18, %v6066_v28  ;;  %v3190_v38 = vshll.u32 %v9132_v53, 16  ;;  %v3195_v27 = vshrl.u32 %v9951_v61, 16  ;;  %v11774_v40 = vld [vmem:[#allocation2 + $0x94] sm:$0xf]  ;;  %14310 = vst [vmem:[#allocation90_spill] sm:$0xff] %v11784_v13 }
 0x2fb   : > { %14309 = vst [vmem:[#allocation89_spill] sm:$0xff] %v11755_v58  ;;  %2344 = vst.msk [vmem:[#allocation2 + $0xb0] sm:$0xf] %vm2299_vm3, %v9531_v7  ;;  %v3198_v24 = vshll.u32 %v9951_v61, 16  ;;  %v3183_v18 = vrot.slane %v3181_v35, 2  ;;  %v3189_v44 = vrot.slane %v3187_v23, 1  ;;  %v2905_v52 = vsel %vm2869_vm5, %v2903_v3, %v2904_v62 }
 0x2fc   : > { %v11761_v33 = vpop.permute.xlu0 %5190  ;;  %6667 = vrot.lane.b32.xlu0 %v6516_v19, %s10322_s10  ;;  %v6076_v19 = vsel %vm2596_vm4, %v6071_v59, %v6075_v36  ;;  %v3176_v28 = vor.u32 %v3175_v8, %v3172_v63  ;;  %v10009_v42 = vld [vmem:[%s10393_s16 + $0x1d4] ss:$8 sps:$4 sm:$0xff]   ;;  %v3192_v58 = vrot.slane %v3190_v38, 2  ;;  %v3197_v7 = vrot.slane %v3195_v27, 1  ;;  %v3535_v53 = vld [vmem:[#allocation2 + $0x84] sm:$0xf] }
 0x2fd   : > { %v3200_v54 = vrot.slane %v3198_v24, 2  ;;  %v3184_v61 = vor.u32 %v3183_v18, %v3180_v2  ;;  %v2737_v59 = vshll.u32 %v11727_v46, 16  ;;  %v11788_v36 = vcombine.low %v2396_v48, %v11774_v40  ;;  %v3537_v63 = vld [vmem:[#allocation2 + $0x90] sm:$0xf]  ;;  %8969 = vmatprep.mubr.msk.bf16.mxu0 %vm807_vm0, %v10009_v42  ;;  %v3538_v23 = vld [vmem:[#allocation2 + $0x94] sm:$0xf] }
 0x2fe   : > { %v11771_v1 = vpop.permute.xlu1 %4071  ;;  %6187 = vrot.lane.b32.xlu1 %v6076_v19, %s10321_s30  ;;  %v11790_v8 = vld [vmem:[#allocation2 + $0x98] ss:$0 sps:$4 sm:$0x11]   ;;  %v3193_v3 = vor.u32 %v3192_v58, %v3189_v44  ;;  %v2730_v6 = vshrl.u32 %v11784_v13, 16  ;;  %v2732_v48 = vshll.u32 %v11784_v13, 16  ;;  %v3867_v44 = vshll.u32 %v11691_v20, 16 }
 0x2ff   : > { %14311 = vst [vmem:[#allocation91_spill] sm:$0xff] %v11788_v36  ;;  %v3201_v35 = vor.u32 %v3200_v54, %v3197_v7  ;;  %v10012_v37 = vld [vmem:[%s10393_s16 + $0x1d0] ss:$8 sps:$4 sm:$0xff]   ;;  %v3185_v46 = vsel %vm2998_vm6, %v3176_v28, %v3184_v61  ;;  %v2739_v38 = vrot.slane %v2737_v59, 1  ;;  %v2742_v58 = vshrl.u32 %v11788_v36, 16 }
 0x300   : > { %v11776_v30 = vpop.permute.xlu0 %6309  ;;  %2940 = vrot.lane.b32.xlu0 %v2905_v52, %s10320_s29  ;;  %v2749_v52 = vshll.u32 %v11768_v45, 16  ;;  %v2744_v24 = vshll.u32 %v11788_v36, 16  ;;  %1188 = vmatmul.mubr.bf16.gmra.mxu0 %v10012_v37  ;;  %v2734_v18 = vrot.slane %v2732_v48, 1  ;;  %v11808_v28 = vcombine.low %v3535_v53, %v11684_v31 }
 0x301   : > { %v3202_v27 = vsel %vm2998_vm6, %v3193_v3, %v3201_v35  ;;  %v11811_v42 = vcombine.low %v3537_v63, %v3538_v23  ;;  %v3879_v61 = vshll.u32 %v11790_v8, 16  ;;  %v1722_v59 = vadd.f32 %v11554_v16, %v11335_v34  ;;  %v9957_v3 = vld [vmem:[#allocation2 + $0x8c] ss:$0 sps:$4 sm:$0x33]  }
 0x302   : > { %v11792_v62 = vpop.permute.xlu1 %2932  ;;  %3291 = vrot.lane.b32.xlu1 %v3185_v46, %s10322_s10  ;;  %v2751_v19 = vrot.slane %v2749_v52, 1  ;;  %14314 = vst [vmem:[#allocation94_spill] sm:$0xff] %v11808_v28  ;;  %v2746_v54 = vrot.slane %v2744_v24, 1  ;;  %v4310_v35 = vshrl.u32 %v11701_v50, 16  ;;  %v2735_v37 = vor.u32 %v2734_v18, %v2730_v6  ;;  %v3574_v24 = vld [vmem:[#allocation2 + $0x90] sm:$0xe] }
 0x303   : > { %14312 = vst [vmem:[#allocation92_spill] sm:$0xff] %v11792_v62  ;;  %14315 = vst [vmem:[#allocation95_spill] sm:$0xff] %v11811_v42  ;;  %v3860_v31 = vshrl.u32 %v11808_v28, 16  ;;  %v3862_v20 = vshll.u32 %v11808_v28, 16  ;;  %v3869_v53 = vrot.slane %v3867_v44, 1  ;;  %v3872_v46 = vshrl.u32 %v11811_v42, 16 }
 0x304   : > { %v11796_v2 = vpop.permute.xlu0 %6659  ;;  %3293 = vrot.lane.b32.xlu0 %v3202_v27, %s10322_s10  ;;  %v2747_v63 = vor.u32 %v2746_v54, %v2742_v58  ;;  %v3874_v48 = vshll.u32 %v11811_v42, 16  ;;  %v3881_v27 = vrot.slane %v3879_v61, 1  ;;  %v2740_v34 = vsel %vm2596_vm4, %v2735_v37, %v2739_v38 }
 0x305   : > { %14313 = vst [vmem:[#allocation93_spill] sm:$0xff] %v11796_v2  ;;  %v3864_v36 = vrot.slane %v3862_v20, 1  ;;  %v1868_v13 = vmax.f32 %v1722_v59, 0.0  ;;  %v4312_v62 = vrot.slane %v4310_v35, 1  ;;  %v4313_v58 = vshll.u32 %v11701_v50, 16 }
 0x306   : > { %v11813_v7 = vpop.permute.xlu1 %5540  ;;  %v9958_v2 = vld [vmem:[#allocation2 + $0x98] ss:$0 sps:$4 sm:$0x33]   ;;  %2811 = vrot.lane.b32.xlu1 %v2740_v34, %s10321_s30  ;;  %v2752_v6 = vsel %vm2596_vm4, %v2747_v63, %v2751_v19  ;;  %v3876_v18 = vrot.slane %v3874_v48, 1  ;;  %v4318_v44 = vshrl.u32 %v9957_v3, 16  ;;  %v4321_v59 = vshll.u32 %v9957_v3, 16 }
 0x307   : > { %v3865_v61 = vor.u32 %v3864_v36, %v3860_v31  ;;  %v1962_v38 = vsel %vm1908_vm11, %v1868_v13, 0.0  ;;  %v1714_v35 = vadd.f32 %v11554_v16, %v11355_v51  ;;  %v4315_v34 = vrot.slane %v4313_v58, 2  ;;  %v2432_v31 = vld [vmem:[#allocation2 + $0x90] sm:$0xe] }
 0x308   : > { %v11819_v52 = vpop.permute.xlu0 %8056  ;;  %2813 = vrot.lane.b32.xlu0 %v2752_v6, %s10321_s30  ;;  %v3877_v37 = vor.u32 %v3876_v18, %v3872_v46  ;;  %v9534_v20 = vpack.c.bf16 %v1962_v38, %v1962_v38  ;;  %v4320_v19 = vrot.slane %v4318_v44, 1  ;;  %v4323_v50 = vrot.slane %v4321_v59, 2  ;;  %v11844_v46 = vld [vmem:[#allocation2 + $0xa4] ss:$0 sps:$4 sm:$0x11]  }
 0x309   : > { %14316 = vst [vmem:[#allocation96_spill] sm:$0xff] %v11819_v52  ;;  %v3870_v63 = vsel %vm2596_vm4, %v3865_v61, %v3869_v53  ;;  %v1866_v48 = vmax.f32 %v1714_v35, 0.0  ;;  %v4316_v51 = vor.u32 %v4315_v34, %v4312_v62  ;;  %v4335_v36 = vshrl.u32 %v9958_v2, 16  ;;  %v10018_v18 = vld [vmem:[%s10393_s16 + $0x1e4] ss:$8 sps:$4 sm:$0xff]  }
 0x30a   : > { %v11826_v52 = vpop.permute.xlu1 %8149  ;;  %3951 = vrot.lane.b32.xlu1 %v3870_v63, %s10321_s30  ;;  %v3882_v13 = vsel %vm2596_vm4, %v3877_v37, %v3881_v27  ;;  %2347 = vst.msk [vmem:[#allocation2 + $0xbc] sm:$0xf] %vm2299_vm3, %v9534_v20  ;;  %v4338_v3 = vshll.u32 %v9958_v2, 16  ;;  %v10020_v61 = vld [vmem:[%s10393_s16 + $0x1e0] ss:$8 sps:$4 sm:$0xff]   ;;  %8970 = vmatprep.mubr.msk.bf16.mxu0 %vm807_vm0, %v10018_v18  ;;  %v4045_v63 = vrot.slane %v11790_v8, 1 }
 0x30b   : > { %14317 = vst [vmem:[#allocation97_spill] sm:$0xff] %v11826_v52  ;;  %v9212_v52 = vcombine.low %v3574_v24, %v3538_v23  ;;  %v4324_v23 = vor.u32 %v4323_v50, %v4320_v19  ;;  %v1960_v24 = vsel %vm1897_vm10, %v1866_v48, 0.0  ;;  %v4337_v44 = vrot.slane %v4335_v36, 1  ;;  %v10021_v38 = vld [vmem:[%s10393_s16 + $0x1f4] ss:$8 sps:$4 sm:$0xff]   ;;  %1196 = vmatmul.mubr.bf16.gmra.mxu0 %v10020_v61 }
 0x30c   : > { %v11831_v54 = vpop.permute.xlu0 %3943  ;;  %3953 = vrot.lane.b32.xlu0 %v3882_v13, %s10321_s30  ;;  %v9532_v58 = vpack.c.bf16 %v1960_v24, %v1960_v24  ;;  %v4340_v62 = vrot.slane %v4338_v3, 2  ;;  %v3575_v37 = vld [vmem:[#allocation2 + $0x9c] sm:$0xe]  ;;  %v9961_v50 = vld [vmem:[#allocation2 + $0x98] ss:$0 sps:$4 sm:$0x33]   ;;  %v4542_v48 = vsel %vm3400_vm8, %v10705_v15, %v11238_v10  ;;  %8971 = vmatprep.mubr.msk.bf16.mxu0 %vm807_vm0, %v10021_v38 }
 0x30d   : > { %v4327_v6 = vshrl.u32 %v9212_v52, 16  ;;  %v4330_v27 = vshll.u32 %v9212_v52, 16  ;;  %v4325_v2 = vsel %vm2998_vm6, %v4316_v51, %v4324_v23  ;;  %v4044_v19 = vrot.slane %v9212_v52, 1  ;;  %v11865_v36 = vld [vmem:[#allocation2 + $0xa0] sm:$0xf] }
 0x30e   : > { %v11839_v28 = vpop.permute.xlu1 %2803  ;;  %4431 = vrot.lane.b32.xlu1 %v4325_v2, %s10322_s10  ;;  %2345 = vst.msk [vmem:[#allocation2 + $0xb4] sm:$0xf] %vm2299_vm3, %v9532_v58  ;;  %v4341_v34 = vor.u32 %v4340_v62, %v4337_v44  ;;  %v9133_v51 = vcombine.low %v2432_v31, %v11774_v40  ;;  %v2433_v3 = vld [vmem:[#allocation2 + $0x9c] sm:$0xe]  ;;  %v2907_v8 = vrot.slane %v11768_v45, 1  ;;  %v11873_v24 = vcombine.low %v3575_v37, %v11865_v36 }
 0x30f   : > { %14318 = vst [vmem:[#allocation98_spill] sm:$0xff] %v11839_v28  ;;  %v4329_v59 = vrot.slane %v4327_v6, 1  ;;  %v4332_v35 = vrot.slane %v4330_v27, 2  ;;  %v4046_v52 = vsel %vm2869_vm5, %v4044_v19, %v4045_v63  ;;  %v4048_v6 = vrot.slane %v11844_v46, 1  ;;  %v2399_v15 = vld [vmem:[#allocation2 + $0xa0] sm:$0xf] }
 0x310   : > { %v11846_v53 = vpop.permute.xlu0 %4423  ;;  %v11876_v10 = vld [vmem:[#allocation2 + $0xa4] ss:$0 sps:$4 sm:$0x11]   ;;  %v2906_v31 = vrot.slane %v9133_v51, 1  ;;  %v3204_v27 = vshrl.u32 %v9133_v51, 16  ;;  %v3207_v18 = vshll.u32 %v9133_v51, 16  ;;  %v9134_v62 = vcombine.low %v2433_v3, %v2399_v15 }
 0x311   : > { %v4333_v13 = vor.u32 %v4332_v35, %v4329_v59  ;;  %v4047_v45 = vrot.slane %v11873_v24, 1  ;;  %v3212_v58 = vshrl.u32 %v9961_v50, 16  ;;  %v3215_v44 = vshll.u32 %v9961_v50, 16  ;;  %v9964_v61 = vld [vmem:[#allocation2 + $0xa4] ss:$0 sps:$4 sm:$0x33]  }
 0x312   : > { %v11855_v20 = vpop.permute.xlu1 %3285  ;;  %4081 = vrot.lane.b32.xlu1 %v4046_v52, %s10320_s29  ;;  %v4574_v38 = vsel %vm1391_vm7, %v4542_v48, %v11246_v5  ;;  %v3206_v2 = vrot.slane %v3204_v27, 1  ;;  %v3209_v59 = vrot.slane %v3207_v18, 2  ;;  %v10023_v37 = vld [vmem:[%s10393_s16 + $0x1f0] ss:$8 sps:$4 sm:$0xff]   ;;  %v4544_v50 = vsel %vm3400_vm8, %v10828_v14, %v11349_v47  ;;  %v2398_v27 = vld [vmem:[#allocation2 + $0x9c] sm:$0xf] }
 0x313   : > { %14319 = vst [vmem:[#allocation99_spill] sm:$0xff] %v11855_v20  ;;  %v4342_v40 = vsel %vm2998_vm6, %v4333_v13, %v4341_v34  ;;  %v4606_v34 = vsel %vm3465_vm9, %v4574_v38, %v11275_v29  ;;  %v3214_v19 = vrot.slane %v3212_v58, 1  ;;  %v3217_v63 = vrot.slane %v3215_v44, 2  ;;  %1204 = vmatmul.mubr.bf16.gmra.mxu0 %v10023_v37  ;;  %v10032_v20 = vld [vmem:[%s10393_s16 + $0x200] ss:$8 sps:$4 sm:$0xff]  }
 0x314   : > { %v11867_v23 = vpop.permute.xlu0 %5542  ;;  %4433 = vrot.lane.b32.xlu0 %v4342_v40, %s10322_s10  ;;  %v2908_v51 = vsel %vm2869_vm5, %v2906_v31, %v2907_v8  ;;  %v3210_v3 = vor.u32 %v3209_v59, %v3206_v2  ;;  %v1735_v5 = vadd.f32 %v11554_v16, %v11362_v55  ;;  %v4049_v29 = vsel %vm2869_vm5, %v4047_v45, %v4048_v6 }
 0x315   : > { %v3218_v48 = vor.u32 %v3217_v63, %v3214_v19  ;;  %v2910_v52 = vrot.slane %v11876_v10, 1  ;;  %v3221_v40 = vshrl.u32 %v9134_v62, 16  ;;  %v3224_v58 = vshll.u32 %v9134_v62, 16  ;;  %v3539_v19 = vld [vmem:[#allocation2 + $0x9c] sm:$0xf] }
 0x316   : > { %v11884_v35 = vpop.permute.xlu1 %5062  ;;  %2942 = vrot.lane.b32.xlu1 %v2908_v51, %s10320_s29  ;;  %v1871_v18 = vmax.f32 %v1735_v5, 0.0  ;;  %v3229_v14 = vshrl.u32 %v9964_v61, 16  ;;  %v3232_v47 = vshll.u32 %v9964_v61, 16  ;;  %v2909_v31 = vrot.slane %v9134_v62, 1  ;;  %v2400_v63 = vld [vmem:[#allocation2 + $0xa8] sm:$0xf] }
 0x317   : > { %v3219_v8 = vsel %vm2998_vm6, %v3210_v3, %v3218_v48  ;;  %v3223_v55 = vrot.slane %v3221_v40, 1  ;;  %v1727_v44 = vadd.f32 %v11554_v16, %v11380_v41  ;;  %v3226_v45 = vrot.slane %v3224_v58, 2  ;;  %v11932_v40 = vld [vmem:[#allocation2 + $0xb0] ss:$0 sps:$4 sm:$0x11]  }
 0x318   : > { %v11889_v13 = vpop.permute.xlu0 %6181  ;;  %8034 = vrot.lane.b32.xlu0 %v4606_v34, %s10321_s30  ;;  %v1965_v6 = vsel %vm1908_vm11, %v1871_v18, 0.0  ;;  %v3231_v38 = vrot.slane %v3229_v14, 1  ;;  %v3234_v2 = vrot.slane %v3232_v47, 2  ;;  %v4576_v61 = vsel %vm1391_vm7, %v4544_v50, %v11315_v60  ;;  %v11924_v50 = vld [vmem:[#allocation2 + $0xac] sm:$0xf] }
 0x319   : > { %v9537_v62 = vpack.c.bf16 %v1965_v6, %v1965_v6  ;;  %v1869_v37 = vmax.f32 %v1727_v44, 0.0  ;;  %v11914_v41 = vcombine.low %v2398_v27, %v2399_v15  ;;  %v4608_v51 = vsel %vm3465_vm9, %v4576_v61, %v11368_v32  ;;  %v11943_v58 = vld [vmem:[%s14126_s4] ss:$0 sm:$0xff]  ;;  %v10028_v44 = vld [vmem:[%s10393_s16 + $0x204] ss:$8 sps:$4 sm:$0xff]  }
 0x31a   : > { %3295 = vrot.lane.b32.xlu1 %v3219_v8, %s10322_s10  ;;  %v4546_v3 = vsel %vm3400_vm8, %v10907_v12, %v11455_v4  ;;  %v2761_v5 = vshll.u32 %v11876_v10, 16  ;;  %v1738_v60 = vadd.f32 %v11554_v16, %v11395_v25  ;;  %v3227_v12 = vor.u32 %v3226_v45, %v3223_v55  ;;  %8972 = vmatprep.mubr.msk.bf16.mxu0 %vm807_vm0, %v10028_v44 }
 0x31b   : > { %14321 = vst [vmem:[#allocation101_spill] sm:$0xff] %v11914_v41  ;;  %2350 = vst.msk [vmem:[#allocation2 + $0xc8] sm:$0xf] %vm2299_vm3, %v9537_v62  ;;  %v1963_v15 = vsel %vm1897_vm10, %v1869_v37, 0.0  ;;  %v2754_v32 = vshrl.u32 %v11914_v41, 16  ;;  %v2756_v48 = vshll.u32 %v11914_v41, 16  ;;  %v3235_v4 = vor.u32 %v3234_v2, %v3231_v38  ;;  %1212 = vmatmul.mubr.bf16.gmra.mxu0 %v10032_v20 }
 0x31c   : > { %v11906_v59 = vpop.permute.xlu1 %6661  ;;  %v11908_v34 = vpop.permute.xlu0 %8060  ;;  %4083 = vrot.lane.b32.xlu0 %v4049_v29, %s10320_s29  ;;  %v2911_v29 = vsel %vm2869_vm5, %v2909_v31, %v2910_v52  ;;  %v9535_v10 = vpack.c.bf16 %v1963_v15, %v1963_v15  ;;  %v1872_v25 = vmax.f32 %v1738_v60, 0.0  ;;  %v4578_v52 = vsel %vm1391_vm7, %v4546_v3, %v11443_v57  ;;  %v9967_v2 = vld [vmem:[#allocation2 + $0xa4] ss:$0 sps:$4 sm:$0x33]   ;;  %v14325_v15 = vld [vmem:[#allocation58_spill] sm:$0xff] }
 0x31d   : > { %14320 = vst [vmem:[#allocation100_spill] sm:$0xff] %v11908_v34  ;;  %v2758_v27 = vrot.slane %v2756_v48, 1  ;;  %v2763_v18 = vrot.slane %v2761_v5, 1  ;;  %v1730_v14 = vadd.f32 %v11943_v58, %v11409_v56  ;;  %v11951_v57 = vcombine.low %v3539_v19, %v11865_v36  ;;  %v3542_v19 = vld [vmem:[#allocation2 + $0xac] sm:$0xf] }
 0x31e   : > { %8038 = vrot.lane.b32.xlu1 %v4608_v51, %s10321_s30  ;;  %2348 = vst.msk [vmem:[#allocation2 + $0xc0] sm:$0xf] %vm2299_vm3, %v9535_v10  ;;  %v1966_v47 = vsel %vm1897_vm10, %v1872_v25, 0.0  ;;  %v3891_v8 = vshll.u32 %v11844_v46, 16  ;;  %v11955_v31 = vcombine.low %v2400_v63, %v11924_v50  ;;  %v2773_v56 = vshll.u32 %v11932_v40, 16 }
 0x31f   : > { %14322 = vst [vmem:[#allocation102_spill] sm:$0xff] %v11951_v57  ;;  %v2759_v6 = vor.u32 %v2758_v27, %v2754_v32  ;;  %v9538_v45 = vpack.c.bf16 %v1966_v47, %v1966_v47  ;;  %v1870_v38 = vmax.f32 %v1730_v14, 0.0  ;;  %v3236_v61 = vsel %vm2998_vm6, %v3227_v12, %v3235_v4  ;;  %v3541_v46 = vld [vmem:[#allocation2 + $0xa8] sm:$0xf]  ;;  %v14326_v12 = vld [vmem:[#allocation54_spill] sm:$0xff] }
 0x320   : > { %v11934_v16 = vpop.permute.xlu1 %4073  ;;  %2944 = vrot.lane.b32.xlu0 %v2911_v29, %s10320_s29  ;;  %14323 = vst [vmem:[#allocation103_spill] sm:$0xff] %v11955_v31  ;;  %v3884_v62 = vshrl.u32 %v11951_v57, 16  ;;  %v3886_v36 = vshll.u32 %v11951_v57, 16  ;;  %v3893_v37 = vrot.slane %v3891_v8, 1  ;;  %v2766_v5 = vshrl.u32 %v11955_v31, 16 }
 0x321   : > { %v11957_v55 = vpop.permute.xlu0 %2805  ;;  %v2764_v51 = vsel %vm2596_vm4, %v2759_v6, %v2763_v18  ;;  %2351 = vst.msk [vmem:[#allocation2 + $0xcc] sm:$0xf] %vm2299_vm3, %v9538_v45  ;;  %v9536_v3 = vpack.c.bf16 %v1870_v38, %v1870_v38  ;;  %v2768_v60 = vshll.u32 %v11955_v31, 16  ;;  %v11972_v29 = vld [vmem:[#allocation2 + $0xb0] ss:$0 sps:$4 sm:$0x11]   ;;  %v4610_v32 = vsel %vm3465_vm9, %v4578_v52, %v14325_v15  ;;  %v1745_v15 = vpop.f32.mrf.mxu1 }
 0x322   : > { %14324 = vst [vmem:[#allocation104_spill] sm:$0xff] %v11957_v55  ;;  %2815 = vrot.lane.b32.xlu1 %v2764_v51, %s10321_s30  ;;  %v3888_v48 = vrot.slane %v3886_v36, 1  ;;  %v1743_v4 = vadd.f32 %v11943_v58, %v14326_v12  ;;  %v4344_v10 = vshrl.u32 %v11873_v24, 16  ;;  %v2775_v18 = vrot.slane %v2773_v56, 1  ;;  %v2434_v12 = vld [vmem:[#allocation2 + $0xa8] sm:$0xe] }
 0x323   : > { %2349 = vst.msk [vmem:[#allocation2 + $0xc4] sm:$0xf] %vm2299_vm3, %v9536_v3  ;;  %v2770_v27 = vrot.slane %v2768_v60, 1  ;;  %v4347_v14 = vshll.u32 %v11873_v24, 16  ;;  %v4352_v47 = vshrl.u32 %v9967_v2, 16  ;;  %v4355_v6 = vshll.u32 %v9967_v2, 16 }
 0x324   : > { %v11964_v63 = vpop.permute.xlu1 %5192  ;;  %3297 = vrot.lane.b32.xlu0 %v3236_v61, %s10322_s10  ;;  %v3889_v8 = vor.u32 %v3888_v48, %v3884_v62  ;;  %v1873_v44 = vmax.f32 %v1743_v4, 0.0  ;;  %v4346_v52 = vrot.slane %v4344_v10, 1  ;;  %v11987_v51 = vcombine.low %v3541_v46, %v3542_v19  ;;  %v3576_v3 = vld [vmem:[#allocation2 + $0xa8] sm:$0xe]  ;;  %v3577_v48 = vld [vmem:[#allocation2 + $0xb4] sm:$0xe] }
 0x325   : > { %v11980_v25 = vpop.permute.xlu0 %3945  ;;  %v2771_v38 = vor.u32 %v2770_v27, %v2766_v5  ;;  %v4349_v61 = vrot.slane %v4347_v14, 2  ;;  %v4354_v36 = vrot.slane %v4352_v47, 1  ;;  %v4357_v24 = vrot.slane %v4355_v6, 2  ;;  %v11996_v4 = vld [vmem:[#allocation2 + $0xbc] ss:$0 sps:$4 sm:$0x11]  }
 0x326   : > { %14327 = vst [vmem:[#allocation58_spill] sm:$0xff] %v11987_v51  ;;  %v3894_v56 = vsel %vm2596_vm4, %v3889_v8, %v3893_v37  ;;  %v9539_v60 = vpack.c.bf16 %v1873_v44, %v1873_v44  ;;  %v3903_v62 = vshll.u32 %v11972_v29, 16  ;;  %v3896_v5 = vshrl.u32 %v11987_v51, 16  ;;  %v12001_v47 = vld [vmem:[#allocation2 + $0xb8] sm:$0xf] }
 0x327   : > { %3955 = vrot.lane.b32.xlu1 %v3894_v56, %s10321_s30  ;;  %v3898_v46 = vshll.u32 %v11987_v51, 16  ;;  %v2776_v10 = vsel %vm2596_vm4, %v2771_v38, %v2775_v18  ;;  %v4358_v37 = vor.u32 %v4357_v24, %v4354_v36  ;;  %v1746_v14 = vadd.f32 %v11943_v58, %v1745_v15  ;;  %v9972_v36 = vld [vmem:[#allocation2 + $0xb0] ss:$0 sps:$4 sm:$0x33]   ;;  %v4697_v41 = vld [vmem:[#allocation2 + $0xb4] sm:$0xe] }
 0x328   : > { %v11984_v45 = vpop.permute.xlu1 %6311  ;;  %8042 = vrot.lane.b32.xlu0 %v4610_v32, %s10321_s30  ;;  %v4350_v32 = vor.u32 %v4349_v61, %v4346_v52  ;;  %2352 = vst.msk [vmem:[#allocation2 + $0xd0] sm:$0xf] %vm2299_vm3, %v9539_v60  ;;  %v3905_v27 = vrot.slane %v3903_v62, 1  ;;  %v9214_v52 = vcombine.low %v3576_v3, %v3542_v19  ;;  %v4051_v6 = vrot.slane %v11972_v29, 1 }
 0x329   : > { %v11991_v2 = vpop.permute.xlu0 %4425  ;;  %v3900_v44 = vrot.slane %v3898_v46, 1  ;;  %v12008_v61 = vcombine.low %v3577_v48, %v12001_v47  ;;  %v1874_v38 = vmax.f32 %v1746_v14, 0.0  ;;  %v4054_v60 = vrot.slane %v11996_v4, 1  ;;  %v9973_v19 = vld [vmem:[#allocation2 + $0xb0] ss:$0 sps:$4 sm:$0x33]  }
 0x32a   : > { %v4359_v18 = vsel %vm2998_vm6, %v4350_v32, %v4358_v37  ;;  %v4050_v15 = vrot.slane %v9214_v52, 1  ;;  %v9135_v24 = vcombine.low %v2434_v12, %v11924_v50  ;;  %v4361_v62 = vshrl.u32 %v9214_v52, 16  ;;  %v12024_v14 = vld [vmem:[#allocation2 + $0xbc] ss:$0 sps:$4 sm:$0x11]  }
 0x32b   : > { %4435 = vrot.lane.b32.xlu1 %v4359_v18, %s10322_s10  ;;  %v3901_v58 = vor.u32 %v3900_v44, %v3896_v5  ;;  %v1968_v29 = vsel %vm1908_vm11, %v1874_v38, 0.0  ;;  %v4053_v3 = vrot.slane %v12008_v61, 1  ;;  %v4364_v48 = vshll.u32 %v9214_v52, 16 }
 0x32c   : > { %v12003_v8 = vpop.permute.xlu1 %2934  ;;  %2817 = vrot.lane.b32.xlu0 %v2776_v10, %s10321_s30  ;;  %v9540_v10 = vpack.c.bf16 %v1968_v29, %v1968_v29  ;;  %v4052_v5 = vsel %vm2869_vm5, %v4050_v15, %v4051_v6  ;;  %v2913_v37 = vrot.slane %v11932_v40, 1  ;;  %v2912_v50 = vrot.slane %v9135_v24, 1  ;;  %v2435_v6 = vld [vmem:[#allocation2 + $0xb4] sm:$0xe]  ;;  %v2403_v29 = vld [vmem:[#allocation2 + $0xb8] sm:$0xf] }
 0x32d   : > { %14328 = vst [vmem:[#allocation54_spill] sm:$0xff] %v12003_v8  ;;  %v12011_v56 = vpop.permute.xlu0 %5064  ;;  %v3906_v46 = vsel %vm2596_vm4, %v3901_v58, %v3905_v27  ;;  %v4363_v0 = vrot.slane %v4361_v62, 1  ;;  %v4366_v12 = vrot.slane %v4364_v48, 2  ;;  %v4369_v44 = vshrl.u32 %v9972_v36, 16 }
 0x32e   : > { %2353 = vst.msk [vmem:[#allocation2 + $0xd4] sm:$0xf] %vm2299_vm3, %v9540_v10  ;;  %v4372_v27 = vshll.u32 %v9972_v36, 16  ;;  %v3238_v52 = vshrl.u32 %v9135_v24, 16  ;;  %v3241_v38 = vshll.u32 %v9135_v24, 16  ;;  %v4055_v40 = vsel %vm2869_vm5, %v4053_v3, %v4054_v60 }
 0x32f   : > { %4085 = vrot.lane.b32.xlu1 %v4052_v5, %s10320_s29  ;;  %v4367_v58 = vor.u32 %v4366_v12, %v4363_v0  ;;  %v4371_v15 = vrot.slane %v4369_v44, 1  ;;  %v3246_v8 = vshrl.u32 %v9973_v19, 16  ;;  %v2914_v36 = vsel %vm2869_vm5, %v2912_v50, %v2913_v37  ;;  %v9976_v60 = vld [vmem:[#allocation2 + $0xbc] ss:$0 sps:$4 sm:$0x11]  }
 0x330   : > { %v12019_v32 = vpop.permute.xlu1 %8153  ;;  %3957 = vrot.lane.b32.xlu0 %v3906_v46, %s10321_s30  ;;  %v9978_v46 = vld [vmem:[#allocation2 + $0xbc] ss:$0 sps:$4 sm:$0x33]   ;;  %v4374_v62 = vrot.slane %v4372_v27, 2  ;;  %v3240_v48 = vrot.slane %v3238_v52, 1  ;;  %v3243_v34 = vrot.slane %v3241_v38, 2  ;;  %v9136_v24 = vcombine.low %v2435_v6, %v2403_v29 }
 0x331   : > { %14329 = vst [vmem:[#allocation105_spill] sm:$0xff] %v12019_v32  ;;  %v3249_v10 = vshll.u32 %v9973_v19, 16  ;;  %v2916_v5 = vrot.slane %v12024_v14, 1  ;;  %v3248_v12 = vrot.slane %v3246_v8, 1  ;;  %v4663_v44 = vld [vmem:[#allocation2 + $0xb8] sm:$0xf] }
 0x332   : > { %v12027_v18 = vpop.permute.xlu0 %6663  ;;  %v4375_v0 = vor.u32 %v4374_v62, %v4371_v15  ;;  %v3244_v27 = vor.u32 %v3243_v34, %v3240_v48  ;;  %v2915_v38 = vrot.slane %v9136_v24, 1  ;;  %v12040_v55 = vcombine.low %v4697_v41, %v4663_v44  ;;  %v4662_v37 = vld [vmem:[#allocation2 + $0xb4] sm:$0xf] }
 0x333   : > { %2946 = vrot.lane.b32.xlu1 %v2914_v36, %s10320_s29  ;;  %v3251_v52 = vrot.slane %v3249_v10, 2  ;;  %v3255_v6 = vshrl.u32 %v9136_v24, 16  ;;  %v3258_v31 = vshll.u32 %v9136_v24, 16  ;;  %v3263_v49 = vshrl.u32 %v9978_v46, 16 }
 0x334   : > { %v12032_v32 = vpop.permute.xlu1 %5544  ;;  %4087 = vrot.lane.b32.xlu0 %v4055_v40, %s10320_s29  ;;  %v2402_v40 = vld [vmem:[#allocation2 + $0xb4] sm:$0xf]  ;;  %v4376_v50 = vsel %vm2998_vm6, %v4367_v58, %v4375_v0  ;;  %v2917_v8 = vsel %vm2869_vm5, %v2915_v38, %v2916_v5  ;;  %v5172_v34 = vrot.slane %v9976_v60, 1  ;;  %v3266_v62 = vshll.u32 %v9978_v46, 16 }
 0x335   : > { %v3252_v15 = vor.u32 %v3251_v52, %v3248_v12  ;;  %v3257_v41 = vrot.slane %v3255_v6, 1  ;;  %v3260_v36 = vrot.slane %v3258_v31, 2  ;;  %v3265_v10 = vrot.slane %v3263_v49, 1  ;;  %v3543_v12 = vld [vmem:[#allocation2 + $0xb4] sm:$0xf] }
 0x336   : > { %v12037_v3 = vpop.permute.xlu0 %4075  ;;  %v12050_v28 = vcombine.low %v2402_v40, %v2403_v29  ;;  %v5171_v24 = vrot.slane %v12040_v55, 1  ;;  %v3268_v0 = vrot.slane %v3266_v62, 2  ;;  %v12058_v31 = vcombine.low %v4662_v37, %v4663_v44  ;;  %v5818_v29 = vld [vmem:[#allocation2 + $0xc0] sm:$0xe] }
 0x337   : > { %v3253_v58 = vsel %vm2998_vm6, %v3244_v27, %v3252_v15  ;;  %v3261_v5 = vor.u32 %v3260_v36, %v3257_v41  ;;  %v5024_v20 = vshll.u32 %v9976_v60, 16  ;;  %v12061_v27 = vld [vmem:[#allocation2 + $0xc8] ss:$0 sps:$4 sm:$0x11]   ;;  %v12072_v60 = vcombine.low %v3543_v12, %v12001_v47  ;;  %v12075_v36 = vld [vmem:[#allocation2 + $0xc4] sm:$0xf] }
 0x338   : > { %v12042_v19 = vpop.permute.xlu1 %6183  ;;  %4437 = vrot.lane.b32.xlu0 %v4376_v50, %s10322_s10  ;;  %14330 = vst [vmem:[#allocation106_spill] sm:$0xff] %v12050_v28  ;;  %v2785_v50 = vshll.u32 %v12024_v14, 16  ;;  %3299 = vrot.lane.b32.xlu1 %v3253_v58, %s10322_s10  ;;  %v2778_v46 = vshrl.u32 %v12050_v28, 16  ;;  %v2780_v52 = vshll.u32 %v12050_v28, 16  ;;  %14331 = vst [vmem:[#allocation107_spill] sm:$0xff] %v12058_v31  ;;  %v3269_v49 = vor.u32 %v3268_v0, %v3265_v10 }
 0x339   : > { %v9984_v38 = vld [vmem:[#allocation2 + $0xbc] ss:$0 sps:$4 sm:$0x33]   ;;  %v5017_v62 = vshrl.u32 %v12058_v31, 16  ;;  %v5019_v44 = vshll.u32 %v12058_v31, 16  ;;  %v5173_v37 = vsel %vm2869_vm5, %v5171_v24, %v5172_v34  ;;  %14333 = vst [vmem:[#allocation109_spill] sm:$0xff] %v12072_v60 }
 0x33a   : > { %v12048_v48 = vpop.permute.xlu0 %5194  ;;  %v2782_v6 = vrot.slane %v2780_v52, 1  ;;  %v2787_v15 = vrot.slane %v2785_v50, 1  ;;  %v3915_v41 = vshll.u32 %v11996_v4, 16  ;;  %v10035_v10 = vld [vmem:[%s10393_s16 + $0x214] ss:$8 sps:$4 sm:$0xff]   ;;  %v5026_v50 = vrot.slane %v5024_v20, 1 }
 0x33b   : > { %v5021_v0 = vrot.slane %v5019_v44, 1  ;;  %v12080_v52 = vcombine.low %v5818_v29, %v12075_v36  ;;  %v3545_v34 = vld [vmem:[#allocation2 + $0xc0] sm:$0xf]  ;;  %v3546_v24 = vld [vmem:[#allocation2 + $0xc4] sm:$0xf]  ;;  %v3908_v4 = vshrl.u32 %v12072_v60, 16  ;;  %8973 = vmatprep.mubr.msk.bf16.mxu0 %vm807_vm0, %v10035_v10 }
 0x33c   : > { %2948 = vrot.lane.b32.xlu0 %v2917_v8, %s10320_s29  ;;  %v12063_v14 = vpop.permute.xlu1 %3287  ;;  %v3270_v8 = vsel %vm2998_vm6, %v3261_v5, %v3269_v49  ;;  %5206 = vrot.lane.b32.xlu1 %v5173_v37, %s10320_s29  ;;  %v2783_v58 = vor.u32 %v2782_v6, %v2778_v46  ;;  %v12082_v5 = vld [vmem:[#allocation2 + $0xc8] ss:$0 sps:$4 sm:$0x11]   ;;  %v3910_v47 = vshll.u32 %v12072_v60, 16  ;;  %v6293_v12 = vrot.slane %v12061_v27, 1 }
 0x33d   : > { %14332 = vst [vmem:[#allocation108_spill] sm:$0xff] %v12063_v14  ;;  %v10037_v46 = vld [vmem:[%s10393_s16 + $0x210] ss:$8 sps:$4 sm:$0xff]   ;;  %v5022_v29 = vor.u32 %v5021_v0, %v5017_v62  ;;  %v3917_v6 = vrot.slane %v3915_v41, 1  ;;  %v6292_v44 = vrot.slane %v12080_v52, 1  ;;  %v4381_v28 = vshll.u32 %v12008_v61, 16 }
 0x33e   : > { %v12065_v40 = vpop.permute.xlu0 %6313  ;;  %v2788_v20 = vsel %vm2596_vm4, %v2783_v58, %v2787_v15  ;;  %v10038_v37 = vld [vmem:[%s10393_s16 + $0x224] ss:$8 sps:$4 sm:$0xff]   ;;  %v3912_v14 = vrot.slane %v3910_v47, 1  ;;  %v4386_v31 = vshrl.u32 %v9984_v38, 16  ;;  %1220 = vmatmul.mubr.bf16.gmra.mxu0 %v10037_v46  ;;  %v12101_v15 = vcombine.low %v3545_v34, %v3546_v24  ;;  %v3578_v34 = vld [vmem:[#allocation2 + $0xc0] sm:$0xe] }
 0x33f   : > { %v5027_v10 = vsel %vm2596_vm4, %v5022_v29, %v5026_v50  ;;  %v9987_v62 = vld [vmem:[#allocation2 + $0xbc] ss:$0 sps:$4 sm:$0x33]   ;;  %8974 = vmatprep.mubr.msk.bf16.mxu0 %vm807_vm0, %v10038_v37  ;;  %v9989_v47 = vld [vmem:[#allocation2 + $0xc8] ss:$0 sps:$4 sm:$0x33]   ;;  %v6294_v37 = vsel %vm2869_vm5, %v6292_v44, %v6293_v12 }
 0x340   : > { %3301 = vrot.lane.b32.xlu0 %v3270_v8, %s10322_s10  ;;  %v12088_v49 = vpop.permute.xlu1 %8157  ;;  %v4378_v8 = vshrl.u32 %v12008_v61, 16  ;;  %2819 = vrot.lane.b32.xlu1 %v2788_v20, %s10321_s30  ;;  %14336 = vst [vmem:[#allocation112_spill] sm:$0xff] %v12101_v15  ;;  %v3913_v41 = vor.u32 %v3912_v14, %v3908_v4  ;;  %v4383_v61 = vrot.slane %v4381_v28, 2  ;;  %v4388_v0 = vrot.slane %v4386_v31, 1  ;;  %v10040_v31 = vld [vmem:[%s10393_s16 + $0x220] ss:$8 sps:$4 sm:$0xff]  }
 0x341   : > { %14334 = vst [vmem:[#allocation110_spill] sm:$0xff] %v12088_v49  ;;  %v4389_v49 = vshll.u32 %v9984_v38, 16  ;;  %v3920_v46 = vshrl.u32 %v12101_v15, 16  ;;  %v3922_v50 = vshll.u32 %v12101_v15, 16  ;;  %v3927_v38 = vshll.u32 %v12082_v5, 16 }
 0x342   : > { %v12097_v60 = vpop.permute.xlu0 %2936  ;;  %v4380_v58 = vrot.slane %v4378_v8, 1  ;;  %v3918_v29 = vsel %vm2596_vm4, %v3913_v41, %v3917_v6  ;;  %v5482_v28 = vshrl.u32 %v12040_v55, 16  ;;  %v10041_v15 = vld [vmem:[%s10393_s16 + $0x234] ss:$8 sps:$4 sm:$0xff]   ;;  %v5493_v51 = vshll.u32 %v9987_v62, 16 }
 0x343   : > { %14335 = vst [vmem:[#allocation111_spill] sm:$0xff] %v12097_v60  ;;  %v4391_v60 = vrot.slane %v4389_v49, 2  ;;  %v3924_v49 = vrot.slane %v3922_v50, 1  ;;  %v3929_v8 = vrot.slane %v3927_v38, 1  ;;  %v9216_v6 = vcombine.low %v3578_v34, %v3546_v24  ;;  %v4665_v50 = vld [vmem:[#allocation2 + $0xc4] sm:$0xf] }
 0x344   : > { %5078 = vrot.lane.b32.xlu0 %v5027_v10, %s10321_s30  ;;  %v12108_v20 = vpop.permute.xlu1 %2807  ;;  %v4384_v14 = vor.u32 %v4383_v61, %v4380_v58  ;;  %3959 = vrot.lane.b32.xlu1 %v3918_v29, %s10321_s30  ;;  %v5485_v10 = vshll.u32 %v12040_v55, 16  ;;  %v5484_v57 = vrot.slane %v5482_v28, 1  ;;  %v12118_v41 = vld [vmem:[#allocation2 + $0xc8] ss:$0 sps:$4 sm:$0x11]   ;;  %v5495_v55 = vrot.slane %v5493_v51, 2 }
 0x345   : > { %14337 = vst [vmem:[#allocation113_spill] sm:$0xff] %v12108_v20  ;;  %v4392_v4 = vor.u32 %v4391_v60, %v4388_v0  ;;  %v5490_v20 = vshrl.u32 %v9987_v62, 16  ;;  %v3925_v58 = vor.u32 %v3924_v49, %v3920_v46  ;;  %v4403_v60 = vshrl.u32 %v9989_v47, 16  ;;  %v4664_v0 = vld [vmem:[#allocation2 + $0xc0] sm:$0xf] }
 0x346   : > { %v12120_v12 = vpop.permute.xlu0 %6185  ;;  %v5487_v61 = vrot.slane %v5485_v10, 2  ;;  %v4395_v29 = vshrl.u32 %v9216_v6, 16  ;;  %v4398_v42 = vshll.u32 %v9216_v6, 16  ;;  %1228 = vmatmul.mubr.bf16.gmra.mxu0 %v10040_v31  ;;  %v5783_v28 = vld [vmem:[#allocation2 + $0xc0] sm:$0xf] }
 0x347   : > { %v4393_v44 = vsel %vm2998_vm6, %v4384_v14, %v4392_v4  ;;  %v5492_v38 = vrot.slane %v5490_v20, 1  ;;  %v3930_v24 = vsel %vm2596_vm4, %v3925_v58, %v3929_v8  ;;  %v4405_v34 = vrot.slane %v4403_v60, 1  ;;  %8975 = vmatprep.mubr.msk.bf16.mxu0 %vm807_vm0, %v10041_v15  ;;  %v4698_v31 = vld [vmem:[#allocation2 + $0xc0] sm:$0xe]  ;;  %v10043_v10 = vld [vmem:[%s10393_s16 + $0x230] ss:$8 sps:$4 sm:$0xff]  }
 0x348   : > { %6327 = vrot.lane.b32.xlu0 %v6294_v37, %s10320_s29  ;;  %4439 = vrot.lane.b32.xlu1 %v4393_v44, %s10322_s10  ;;  %v5488_v62 = vor.u32 %v5487_v61, %v5484_v57  ;;  %v4406_v37 = vshll.u32 %v9989_v47, 16  ;;  %v12125_v14 = vpop.permute.xlu1 %3947  ;;  %v4397_v51 = vrot.slane %v4395_v29, 1  ;;  %v4400_v20 = vrot.slane %v4398_v42, 2  ;;  %v14339_v49 = vld [vmem:[#allocation19_spill] sm:$0xff] }
 0x349   : > { %v5496_v46 = vor.u32 %v5495_v55, %v5492_v38  ;;  %v12129_v4 = vcombine.low %v4664_v0, %v4665_v50  ;;  %v4548_v8 = vsel %vm3400_vm8, %v14339_v49, %v11594_v17  ;;  %v5036_v47 = vshll.u32 %v12118_v41, 16 }
 0x34a   : > { %v4408_v57 = vrot.slane %v4406_v37, 2  ;;  %v4401_v58 = vor.u32 %v4400_v20, %v4397_v51  ;;  %v12139_v60 = vpop.permute.xlu0 %5546  ;;  %v4056_v0 = vrot.slane %v9216_v6, 1  ;;  %v4057_v38 = vrot.slane %v12082_v5, 1  ;;  %v9994_v20 = vld [vmem:[#allocation2 + $0xc8] ss:$0 sps:$4 sm:$0x33]  }
 0x34b   : > { %14338 = vst [vmem:[#allocation114_spill] sm:$0xff] %v12129_v4  ;;  %v5497_v44 = vsel %vm2998_vm6, %v5488_v62, %v5496_v46  ;;  %v5029_v15 = vshrl.u32 %v12129_v4, 16  ;;  %v5031_v61 = vshll.u32 %v12129_v4, 16  ;;  %v12144_v55 = vcombine.low %v5783_v28, %v12075_v36 }
 0x34c   : > { %3961 = vrot.lane.b32.xlu0 %v3930_v24, %s10321_s30  ;;  %5558 = vrot.lane.b32.xlu1 %v5497_v44, %s10322_s10  ;;  %v4409_v42 = vor.u32 %v4408_v57, %v4405_v34  ;;  %v6145_v29 = vshll.u32 %v12061_v27, 16  ;;  %v4580_v24 = vsel %vm1391_vm7, %v4548_v8, %v11566_v39  ;;  %v5038_v37 = vrot.slane %v5036_v47, 1 }
 0x34d   : > { %v5033_v17 = vrot.slane %v5031_v61, 1  ;;  %14340 = vst [vmem:[#allocation19_spill] sm:$0xff] %v12144_v55  ;;  %v9295_v46 = vcombine.low %v4698_v31, %v4665_v50  ;;  %v4612_v6 = vsel %vm3465_vm9, %v4580_v24, %v11628_v22  ;;  %v6138_v36 = vshrl.u32 %v12144_v55, 16  ;;  %v9995_v22 = vld [vmem:[#allocation2 + $0xc8] ss:$0 sps:$4 sm:$0x33]  }
 0x34e   : > { %v4410_v62 = vsel %vm2998_vm6, %v4401_v58, %v4409_v42  ;;  %v12150_v51 = vpop.permute.xlu1 %5066  ;;  %v6140_v27 = vshll.u32 %v12144_v55, 16  ;;  %1236 = vmatmul.mubr.bf16.gmra.mxu0 %v10043_v10  ;;  %v4058_v34 = vsel %vm2869_vm5, %v4056_v0, %v4057_v38  ;;  %v6147_v28 = vrot.slane %v6145_v29, 1 }
 0x34f   : > { %v5034_v5 = vor.u32 %v5033_v17, %v5029_v15  ;;  %v5499_v39 = vshrl.u32 %v9295_v46, 16  ;;  %v5175_v31 = vrot.slane %v12118_v41, 1  ;;  %v5174_v57 = vrot.slane %v9295_v46, 1  ;;  %v14342_v17 = vld [vmem:[#allocation23_spill] sm:$0xff] }
 0x350   : > { %4441 = vrot.lane.b32.xlu0 %v4410_v62, %s10322_s10  ;;  %8046 = vrot.lane.b32.xlu1 %v4612_v6, %s10321_s30  ;;  %v6142_v50 = vrot.slane %v6140_v27, 1  ;;  %v5502_v47 = vshll.u32 %v9295_v46, 16  ;;  %v5507_v44 = vshrl.u32 %v9994_v20, 16  ;;  %v5510_v15 = vshll.u32 %v9994_v20, 16 }
 0x351   : > { %v12160_v49 = vpop.permute.xlu0 %3289  ;;  %v5039_v8 = vsel %vm2596_vm4, %v5034_v5, %v5038_v37  ;;  %v5501_v58 = vrot.slane %v5499_v39, 1  ;;  %v6603_v61 = vshrl.u32 %v12080_v52, 16  ;;  %v6606_v38 = vshll.u32 %v12080_v52, 16  ;;  %v4667_v5 = vld [vmem:[#allocation2 + $0xd0] sm:$0xf] }
 0x352   : > { %14341 = vst [vmem:[#allocation115_spill] sm:$0xff] %v12160_v49  ;;  %v6143_v10 = vor.u32 %v6142_v50, %v6138_v36  ;;  %v5504_v42 = vrot.slane %v5502_v47, 2  ;;  %v5509_v0 = vrot.slane %v5507_v44, 1  ;;  %v4550_v29 = vsel %vm3400_vm8, %v14342_v17, %v11697_v26  ;;  %v4666_v36 = vld [vmem:[#allocation2 + $0xcc] sm:$0xf] }
 0x353   : > { %v5512_v24 = vrot.slane %v5510_v15, 2  ;;  %v6611_v62 = vshrl.u32 %v9995_v22, 16  ;;  %v5176_v46 = vsel %vm2869_vm5, %v5174_v57, %v5175_v31  ;;  %v6605_v20 = vrot.slane %v6603_v61, 1  ;;  %v14345_v57 = vld [vmem:[#allocation42_spill] sm:$0xff]  ;;  %v5819_v44 = vld [vmem:[#allocation2 + $0xcc] sm:$0xe] }
 0x354   : > { %5080 = vrot.lane.b32.xlu0 %v5039_v8, %s10321_s30  ;;  %4089 = vrot.lane.b32.xlu1 %v4058_v34, %s10320_s29  ;;  %v12166_v41 = vpop.permute.xlu1 %4427  ;;  %v6148_v37 = vsel %vm2596_vm4, %v6143_v10, %v6147_v28  ;;  %v6614_v6 = vshll.u32 %v9995_v22, 16  ;;  %v5505_v27 = vor.u32 %v5504_v42, %v5501_v58  ;;  %v6608_v52 = vrot.slane %v6606_v38, 2  ;;  %v4699_v8 = vld [vmem:[#allocation2 + $0xcc] sm:$0xe]  ;;  %v14344_v28 = vld [vmem:[#allocation25_spill] sm:$0xff] }
 0x355   : > { %v5513_v39 = vor.u32 %v5512_v24, %v5509_v0  ;;  %v6613_v50 = vrot.slane %v6611_v62, 1  ;;  %v5669_v31 = vsel %vm3400_vm8, %v14344_v28, %v11711_v21  ;;  %v4582_v22 = vsel %vm1391_vm7, %v4550_v29, %v11670_v11  ;;  %v10001_v58 = vld [vmem:[#allocation2 + $0xd4] ss:$0 sps:$4 sm:$0x33]   ;;  %v14347_v61 = vld [vmem:[#allocation36_spill] sm:$0xff] }
 0x356   : > { %v6616_v26 = vrot.slane %v6614_v6, 2  ;;  %v5671_v47 = vsel %vm3400_vm8, %v14345_v57, %v11884_v35  ;;  %v12186_v10 = vcombine.low %v4666_v36, %v4667_v5  ;;  %v4614_v15 = vsel %vm3465_vm9, %v4582_v22, %v11725_v43  ;;  %v5786_v17 = vld [vmem:[#allocation2 + $0xd0] sm:$0xf]  ;;  %v5785_v29 = vld [vmem:[#allocation2 + $0xcc] sm:$0xf] }
 0x357   : > { %v4552_v42 = vsel %vm3400_vm8, %v14347_v61, %v11831_v54  ;;  %v9296_v21 = vcombine.low %v4699_v8, %v4667_v5  ;;  %v5514_v11 = vsel %vm2998_vm6, %v5505_v27, %v5513_v39  ;;  %v6609_v38 = vor.u32 %v6608_v52, %v6605_v20  ;;  %v9996_v54 = vld [vmem:[#allocation2 + $0xd4] ss:$0 sps:$4 sm:$0x11]  }
 0x358   : > { %6199 = vrot.lane.b32.xlu0 %v6148_v37, %s10321_s30  ;;  %v12175_v34 = vpop.permute.xlu0 %2809  ;;  %5208 = vrot.lane.b32.xlu1 %v5176_v46, %s10320_s29  ;;  %14346 = vst [vmem:[#allocation25_spill] sm:$0xff] %v12186_v10  ;;  %v6617_v35 = vor.u32 %v6616_v26, %v6613_v50  ;;  %v5701_v24 = vsel %vm1391_vm7, %v5669_v31, %v11706_v9  ;;  %v9998_v37 = vld [vmem:[#allocation2 + $0xd4] ss:$0 sps:$4 sm:$0x11]   ;;  %v5043_v5 = vshll.u32 %v12186_v10, 16  ;;  %v5524_v36 = vshrl.u32 %v10001_v58, 16 }
 0x359   : > { %14343 = vst [vmem:[#allocation23_spill] sm:$0xff] %v12175_v34  ;;  %v5703_v43 = vsel %vm1391_vm7, %v5671_v47, %v11761_v33  ;;  %v9375_v62 = vcombine.low %v5819_v44, %v5786_v17  ;;  %v5733_v46 = vsel %vm3465_vm9, %v5701_v24, %v11813_v7  ;;  %v4584_v20 = vsel %vm1391_vm7, %v4552_v42, %v11771_v1  ;;  %v10003_v8 = vld [vmem:[#allocation2 + $0xd4] ss:$0 sps:$4 sm:$0x33]  }
 0x35a   : > { %v5516_v27 = vshrl.u32 %v9296_v21, 16  ;;  %v5519_v33 = vshll.u32 %v9296_v21, 16  ;;  %v5527_v39 = vshll.u32 %v10001_v58, 16  ;;  %v12211_v52 = vcombine.low %v5785_v29, %v5786_v17 }
 0x35b   : > { %v4616_v50 = vsel %vm3465_vm9, %v4584_v20, %v11846_v53  ;;  %v6618_v7 = vsel %vm2998_vm6, %v6609_v38, %v6617_v35  ;;  %v5735_v1 = vsel %vm3465_vm9, %v5703_v43, %v11867_v23  ;;  %v6295_v26 = vrot.slane %v9375_v62, 1 }
 0x35c   : > { %8050 = vrot.lane.b32.xlu0 %v4614_v15, %s10321_s30  ;;  %5560 = vrot.lane.b32.xlu1 %v5514_v11, %s10322_s10  ;;  %14348 = vst [vmem:[#allocation42_spill] sm:$0xff] %v12211_v52  ;;  %v6296_v28 = vrot.slane %v9996_v54, 1  ;;  %v5178_v31 = vrot.slane %v9998_v37, 1  ;;  %v5048_v22 = vshll.u32 %v9998_v37, 16  ;;  %v5177_v47 = vrot.slane %v9296_v21, 1 }
 0x35d   : > { %v5041_v44 = vshrl.u32 %v12186_v10, 16  ;;  %v5045_v53 = vrot.slane %v5043_v5, 1  ;;  %v6152_v58 = vshll.u32 %v12211_v52, 16  ;;  %v5518_v61 = vrot.slane %v5516_v27, 1 }
 0x35e   : > { %v5521_v42 = vrot.slane %v5519_v33, 2  ;;  %v5526_v23 = vrot.slane %v5524_v36, 1  ;;  %v5529_v11 = vrot.slane %v5527_v39, 2  ;;  %v6620_v38 = vshrl.u32 %v9375_v62, 16 }
 0x35f   : > { %v6623_v35 = vshll.u32 %v9375_v62, 16  ;;  %v6628_v17 = vshrl.u32 %v10003_v8, 16  ;;  %v6631_v29 = vshll.u32 %v10003_v8, 16  ;;  %v6297_v21 = vsel %vm2869_vm5, %v6295_v26, %v6296_v28  ;;  %v4661_v62 = vld [vmem:[#allocation2 + $0xac] sm:$0xf] }
 0x360   : > { %v12193_v0 = vpop.permute.xlu1 %6665  ;;  %8143 = vrot.lane.b32.xlu0 %v5733_v46, %s10320_s29  ;;  %6679 = vrot.lane.b32.xlu1 %v6618_v7, %s10322_s10  ;;  %v5050_v24 = vrot.slane %v5048_v22, 1  ;;  %v6150_v37 = vshrl.u32 %v12211_v52, 16  ;;  %v6154_v46 = vrot.slane %v6152_v58, 1  ;;  %v6157_v20 = vshll.u32 %v9996_v54, 16  ;;  %v4696_v7 = vld [vmem:[#allocation2 + $0xa8] sm:$0xe] }
 0x361   : > { %v5179_v5 = vsel %vm2869_vm5, %v5177_v47, %v5178_v31  ;;  %v5046_v36 = vor.u32 %v5045_v53, %v5041_v44  ;;  %v5522_v27 = vor.u32 %v5521_v42, %v5518_v61  ;;  %v5530_v33 = vor.u32 %v5529_v11, %v5526_v23  ;;  %v14350_v22 = vld [vmem:[#allocation44_spill] sm:$0xff]  ;;  %v3599_v53 = vld [vmem:[#allocation2 + $0x3c] sm:$0xc] }
 0x362   : > { %v12206_v6 = vpop.permute.xlu0 %3949  ;;  %v6625_v8 = vrot.slane %v6623_v35, 2  ;;  %v6630_v26 = vrot.slane %v6628_v17, 1  ;;  %v6633_v28 = vrot.slane %v6631_v29, 2  ;;  %v6790_v54 = vsel %vm3400_vm8, %v14350_v22, %v11889_v13  ;;  %v14352_v42 = vld [vmem:[#allocation48_spill] sm:$0xff]  ;;  %v5781_v29 = vld [vmem:[#allocation2 + $0xb4] sm:$0xf] }
 0x363   : > { %v6155_v31 = vor.u32 %v6154_v46, %v6150_v37  ;;  %v6159_v47 = vrot.slane %v6157_v20, 1  ;;  %v9293_v58 = vcombine.low %v4696_v7, %v4661_v62  ;;  %v4554_v23 = vsel %vm3400_vm8, %v14352_v42, %v11980_v25  ;;  %v10171_v20 = vld [vmem:[#allocation2 + $0x40] sm:$0xf]  ;;  %v12269_v22 = vld [vmem:[#allocation2 + $0xbc] ss:$0 sps:$4 sm:$0x11]  }
 0x364   : > { %v12209_v9 = vpop.permute.xlu1 %4077  ;;  %8147 = vrot.lane.b32.xlu0 %v5735_v1, %s10320_s29  ;;  %8054 = vrot.lane.b32.xlu1 %v4616_v50, %s10321_s30  ;;  %v4660_v1 = vld [vmem:[#allocation2 + $0xa8] sm:$0xf]  ;;  %v6622_v50 = vrot.slane %v6620_v38, 1  ;;  %v5051_v11 = vsel %vm2596_vm4, %v5046_v36, %v5050_v24  ;;  %v10013_v38 = vld [vmem:[#allocation2 + $0xb0] ss:$0 sps:$4 sm:$0x33]   ;;  %v5531_v13 = vsel %vm2998_vm6, %v5522_v27, %v5530_v33  ;;  %v6634_v17 = vor.u32 %v6633_v28, %v6630_v26 }
 0x365   : > { %v12242_v61 = vcombine.low %v4660_v1, %v4661_v62  ;;  %v6822_v37 = vsel %vm1391_vm7, %v6790_v54, %v11776_v30  ;;  %v9237_v25 = vcombine.low %v3599_v53, %v10171_v20  ;;  %v5817_v24 = vld [vmem:[#allocation2 + $0xb4] sm:$0xe]  ;;  %v4586_v36 = vsel %vm1391_vm7, %v4554_v23, %v11934_v16  ;;  %v10172_v53 = vld [vmem:[#allocation2 + $0x44] ss:$0 sps:$4 sm:$0x33]  }
 0x366   : > { %v12220_v57 = vpop.permute.xlu0 %4079  ;;  %v6626_v35 = vor.u32 %v6625_v8, %v6622_v50  ;;  %v6160_v27 = vsel %vm2596_vm4, %v6155_v31, %v6159_v47  ;;  %v5465_v7 = vshrl.u32 %v9293_v58, 16  ;;  %v5468_v1 = vshll.u32 %v9293_v58, 16  ;;  %v10017_v31 = vld [vmem:[#allocation2 + $0xbc] ss:$0 sps:$4 sm:$0x33]  }
 0x367   : > { %14351 = vst [vmem:[#allocation44_spill] sm:$0xff] %v12242_v61  ;;  %v5007_v62 = vshll.u32 %v12242_v61, 16  ;;  %v5473_v30 = vshrl.u32 %v10013_v38, 16  ;;  %v5476_v50 = vshll.u32 %v10013_v38, 16  ;;  %v6854_v26 = vsel %vm3465_vm9, %v6822_v37, %v11906_v59 }
 0x368   : > { %v12224_v15 = vpop.permute.xlu1 %6315  ;;  %6329 = vrot.lane.b32.xlu0 %v6297_v21, %s10320_s29  ;;  %5210 = vrot.lane.b32.xlu1 %v5179_v5, %s10320_s29  ;;  %v5782_v21 = vld [vmem:[#allocation2 + $0xb8] sm:$0xf]  ;;  %v10007_v5 = vld [vmem:[#allocation2 + $0xb0] ss:$0 sps:$4 sm:$0x11]   ;;  %v4618_v28 = vsel %vm3465_vm9, %v4586_v36, %v11991_v2  ;;  %v6635_v16 = vsel %vm2998_vm6, %v6626_v35, %v6634_v17  ;;  %v4503_v47 = vrot.slane %v9237_v25, 2 }
 0x369   : > { %v12261_v8 = vcombine.low %v5781_v29, %v5782_v21  ;;  %v12271_v54 = vcombine.low %v5817_v24, %v5782_v21  ;;  %v4504_v42 = vrot.slane %v10172_v53, 2  ;;  %v5168_v59 = vrot.slane %v9293_v58, 1 }
 0x36a   : > { %v12229_v43 = vpop.permute.xlu0 %4429  ;;  %v5005_v2 = vshrl.u32 %v12242_v61, 16  ;;  %v5012_v35 = vshll.u32 %v10007_v5, 16  ;;  %v5467_v17 = vrot.slane %v5465_v7, 1  ;;  %v5470_v29 = vrot.slane %v5468_v1, 2  ;;  %v5813_v61 = vld [vmem:[#allocation2 + $0x84] sm:$0xe] }
 0x36b   : > { %14354 = vst [vmem:[#allocation116_spill] sm:$0xff] %v12261_v8  ;;  %v5475_v21 = vrot.slane %v5473_v30, 1  ;;  %v5478_v37 = vrot.slane %v5476_v50, 2  ;;  %v6128_v20 = vshll.u32 %v12261_v8, 16  ;;  %v6586_v25 = vshrl.u32 %v12271_v54, 16 }
 0x36c   : > { %v12233_v39 = vpop.permute.xlu1 %2938  ;;  %5082 = vrot.lane.b32.xlu0 %v5051_v11, %s10321_s30  ;;  %5562 = vrot.lane.b32.xlu1 %v5531_v13, %s10322_s10  ;;  %v5169_v11 = vrot.slane %v10007_v5, 1  ;;  %v5009_v13 = vrot.slane %v5007_v62, 1  ;;  %v6589_v24 = vshll.u32 %v12271_v54, 16  ;;  %v6594_v58 = vshrl.u32 %v10017_v31, 16 }
 0x36d   : > { %14349 = vst [vmem:[#allocation36_spill] sm:$0xff] %v12233_v39  ;;  %v6597_v36 = vshll.u32 %v10017_v31, 16  ;;  %v5014_v7 = vrot.slane %v5012_v35, 1  ;;  %v6133_v1 = vshll.u32 %v12269_v22, 16  ;;  %v5471_v50 = vor.u32 %v5470_v29, %v5467_v17  ;;  %v4695_v29 = vld [vmem:[#allocation2 + $0x9c] sm:$0xe] }
 0x36e   : > { %v12240_v44 = vpop.permute.xlu0 %6667  ;;  %v5170_v5 = vsel %vm2869_vm5, %v5168_v59, %v5169_v11  ;;  %v5010_v62 = vor.u32 %v5009_v13, %v5005_v2  ;;  %v6130_v53 = vrot.slane %v6128_v20, 1  ;;  %v4719_v59 = vld [vmem:[#allocation2 + $0x3c] sm:$0xc]  ;;  %v4659_v11 = vld [vmem:[#allocation2 + $0xa0] sm:$0xf] }
 0x36f   : > { %v6135_v35 = vrot.slane %v6133_v1, 1  ;;  %v6290_v1 = vrot.slane %v12269_v22, 1  ;;  %v10034_v39 = vld [vmem:[#allocation2 + $0xb0] ss:$0 sps:$4 sm:$0x33]  }
 0x370   : > { %v12253_v46 = vpop.permute.xlu1 %6187  ;;  %6201 = vrot.lane.b32.xlu0 %v6160_v27, %s10321_s30  ;;  %6681 = vrot.lane.b32.xlu1 %v6635_v16, %s10322_s10  ;;  %v4505_v27 = vsel %vm3351_vm12, %v4503_v47, %v4504_v42  ;;  %v6126_v16 = vshrl.u32 %v12261_v8, 16  ;;  %v6596_v47 = vrot.slane %v6594_v58, 1  ;;  %v6599_v42 = vrot.slane %v6597_v36, 2  ;;  %v14359_v36 = vld [vmem:[#allocation76_spill] sm:$0xff] }
 0x371   : > { %v5015_v2 = vsel %vm2596_vm4, %v5010_v62, %v5014_v7  ;;  %v6289_v7 = vrot.slane %v12271_v54, 1 }
 0x372   : > { %v12258_v33 = vpop.permute.xlu0 %2940  ;;  %v6131_v13 = vor.u32 %v6130_v53, %v6126_v16  ;;  %v3598_v16 = vld [vmem:[#allocation2 + $0x30] sm:$0xc]  ;;  %v9292_v53 = vcombine.low %v4695_v29, %v4659_v11  ;;  %v5780_v29 = vld [vmem:[#allocation2 + $0xac] sm:$0xf] }
 0x373   : > { %14353 = vst [vmem:[#allocation48_spill] sm:$0xff] %v12258_v33 }
 0x374   : > { %v12274_v23 = vpop.permute.xlu1 %3291  ;;  %8058 = vrot.lane.b32.xlu0 %v4618_v28, %s10321_s30  ;;  %8240 = vrot.lane.b32.xlu1 %v6854_v26, %s10322_s10  ;;  %v5479_v28 = vor.u32 %v5478_v37, %v5475_v21  ;;  %v6588_v26 = vrot.slane %v6586_v25, 1  ;;  %v4658_v21 = vld [vmem:[#allocation2 + $0x9c] sm:$0xf]  ;;  %v6600_v25 = vor.u32 %v6599_v42, %v6596_v47  ;;  %v10027_v42 = vld [vmem:[#allocation2 + $0xa4] ss:$0 sps:$4 sm:$0x33]  }
 0x375   : > { %14355 = vst [vmem:[#allocation117_spill] sm:$0xff] %v12274_v23  ;;  %v6591_v23 = vrot.slane %v6589_v24, 2  ;;  %v10173_v24 = vld [vmem:[#allocation2 + $0x40] sm:$0xf]  ;;  %v5451_v49 = vshll.u32 %v9292_v53, 16 }
 0x376   : > { %v12276_v38 = vpop.permute.xlu0 %3293  ;;  %v5480_v37 = vsel %vm2998_vm6, %v5471_v50, %v5479_v28  ;;  %v9316_v58 = vcombine.low %v4719_v59, %v10173_v24  ;;  %v14363_v50 = vld [vmem:[#allocation29_spill] sm:$0xff]  ;;  %v5779_v24 = vld [vmem:[#allocation2 + $0xa8] sm:$0xf] }
 0x377   : > { %14356 = vst [vmem:[#allocation118_spill] sm:$0xff] %v12276_v38  ;;  %v6592_v20 = vor.u32 %v6591_v23, %v6588_v26  ;;  %v14362_v23 = vld [vmem:[#allocation89_spill] sm:$0xff]  ;;  %v6136_v26 = vsel %vm2596_vm4, %v6131_v13, %v6135_v35  ;;  %v10024_v13 = vld [vmem:[#allocation2 + $0xa4] ss:$0 sps:$4 sm:$0x11]  }
 0x378   : > { %v12287_v30 = vpop.permute.xlu1 %2811  ;;  %8048 = vrot.lane.b32.xlu0 %v4505_v27, %s10321_s30  ;;  %5204 = vrot.lane.b32.xlu1 %v5170_v5, %s10320_s29  ;;  %v14360_v27 = vld [vmem:[#allocation22_spill] sm:$0xff]  ;;  %v6788_v28 = vsel %vm3400_vm8, %v14363_v50, %v14362_v23  ;;  %v5621_v54 = vrot.slane %v9316_v58, 2  ;;  %v5816_v35 = vld [vmem:[#allocation2 + $0xa8] sm:$0xe]  ;;  %v14365_v23 = vld [vmem:[#allocation85_spill] sm:$0xff]  ;;  %v5166_v33 = vrot.slane %v10024_v13, 1 }
 0x379   : > { %14357 = vst [vmem:[#allocation119_spill] sm:$0xff] %v12287_v30  ;;  %v5667_v5 = vsel %vm3400_vm8, %v14360_v27, %v14359_v36  ;;  %v6601_v59 = vsel %vm2998_vm6, %v6592_v20, %v6600_v25  ;;  %v10175_v36 = vld [vmem:[#allocation2 + $0x34] sm:$0xf]  ;;  %v6820_v50 = vsel %vm1391_vm7, %v6788_v28, %v14365_v23  ;;  %v5448_v25 = vshrl.u32 %v9292_v53, 16 }
 0x37a   : > { %v12291_v31 = vpop.permute.xlu0 %2813  ;;  %v9236_v27 = vcombine.low %v3598_v16, %v10175_v36  ;;  %v14367_v16 = vld [vmem:[#allocation78_spill] sm:$0xff]  ;;  %v14368_v38 = vld [vmem:[#allocation93_spill] sm:$0xff]  ;;  %v12338_v23 = vcombine.low %v5816_v35, %v5780_v29  ;;  %v5000_v34 = vshll.u32 %v10024_v13, 16 }
 0x37b   : > { %14358 = vst [vmem:[#allocation120_spill] sm:$0xff] %v12291_v31  ;;  %v6852_v28 = vsel %vm3465_vm9, %v6820_v50, %v14368_v38  ;;  %v5450_v50 = vrot.slane %v5448_v25, 1 }
 0x37c   : > { %v12295_v17 = vpop.permute.xlu1 %3951  ;;  %5076 = vrot.lane.b32.xlu0 %v5015_v2, %s10321_s30  ;;  %5556 = vrot.lane.b32.xlu1 %v5480_v37, %s10322_s10  ;;  %v12307_v2 = vcombine.low %v4658_v21, %v4659_v11  ;;  %v10174_v37 = vld [vmem:[#allocation2 + $0x44] ss:$0 sps:$4 sm:$0x33]   ;;  %v14364_v11 = vld [vmem:[#allocation68_spill] sm:$0xff]  ;;  %v6572_v13 = vshll.u32 %v12338_v23, 16 }
 0x37d   : > { %v5622_v22 = vrot.slane %v10174_v37, 2  ;;  %v5699_v21 = vsel %vm1391_vm7, %v5667_v5, %v14364_v11  ;;  %v5456_v5 = vshrl.u32 %v10027_v42, 16  ;;  %v5459_v11 = vshll.u32 %v10027_v42, 16 }
 0x37e   : > { %v12303_v62 = vpop.permute.xlu0 %3953  ;;  %14361 = vst [vmem:[#allocation76_spill] sm:$0xff] %v12307_v2  ;;  %v4995_v20 = vshll.u32 %v12307_v2, 16  ;;  %v5731_v36 = vsel %vm3465_vm9, %v5699_v21, %v14367_v16  ;;  %v4500_v42 = vrot.slane %v9236_v27, 2  ;;  %v5165_v21 = vrot.slane %v9292_v53, 1 }
 0x37f   : > { %v4993_v16 = vshrl.u32 %v12307_v2, 16  ;;  %v5461_v35 = vrot.slane %v5459_v11, 2  ;;  %v6569_v27 = vshrl.u32 %v12338_v23, 16  ;;  %v6577_v53 = vshrl.u32 %v10034_v39, 16 }
 0x380   : > { %v12313_v47 = vpop.permute.xlu1 %4431  ;;  %6197 = vrot.lane.b32.xlu0 %v6136_v26, %s10321_s30  ;;  %6677 = vrot.lane.b32.xlu1 %v6601_v59, %s10322_s10  ;;  %v6291_v26 = vsel %vm2869_vm5, %v6289_v7, %v6290_v1  ;;  %v12328_v59 = vcombine.low %v5779_v24, %v5780_v29  ;;  %v5623_v7 = vsel %vm3351_vm12, %v5621_v54, %v5622_v22  ;;  %v12336_v1 = vld [vmem:[#allocation2 + $0xb0] ss:$0 sps:$4 sm:$0x11]   ;;  %v10176_v24 = vld [vmem:[#allocation2 + $0x38] ss:$0 sps:$4 sm:$0x33]  }
 0x381   : > { %v4501_v31 = vrot.slane %v10176_v24, 2  ;;  %v4997_v38 = vrot.slane %v4995_v20, 1  ;;  %v5453_v22 = vrot.slane %v5451_v49, 2  ;;  %v5458_v29 = vrot.slane %v5456_v5, 1 }
 0x382   : > { %14366 = vst [vmem:[#allocation22_spill] sm:$0xff] %v12328_v59  ;;  %v6116_v30 = vshll.u32 %v12328_v59, 16  ;;  %v5167_v25 = vsel %vm2869_vm5, %v5165_v21, %v5166_v33  ;;  %v5002_v49 = vrot.slane %v5000_v34, 1  ;;  %v6121_v5 = vshll.u32 %v12336_v1, 16  ;;  %v4718_v34 = vld [vmem:[#allocation2 + $0x30] sm:$0xc] }
 0x383   : > { %v4502_v20 = vsel %vm3351_vm12, %v4500_v42, %v4501_v31  ;;  %v4998_v24 = vor.u32 %v4997_v38, %v4993_v16  ;;  %v5462_v52 = vor.u32 %v5461_v35, %v5458_v29  ;;  %v6114_v10 = vshrl.u32 %v12328_v59, 16  ;;  %v10177_v35 = vld [vmem:[#allocation2 + $0x34] sm:$0xf] }
 0x384   : > { %v12326_v37 = vpop.permute.xlu1 %4081  ;;  %6325 = vrot.lane.b32.xlu0 %v6291_v26, %s10320_s29  ;;  %8141 = vrot.lane.b32.xlu1 %v5623_v7, %s10320_s29  ;;  %v6580_v7 = vshll.u32 %v10034_v39, 16  ;;  %v6118_v55 = vrot.slane %v6116_v30, 1  ;;  %v6571_v39 = vrot.slane %v6569_v27, 1  ;;  %v6579_v31 = vrot.slane %v6577_v53, 1 }
 0x385   : > { %v5003_v33 = vsel %vm2596_vm4, %v4998_v24, %v5002_v49  ;;  %v6123_v38 = vrot.slane %v6121_v5, 1  ;;  %v9315_v27 = vcombine.low %v4718_v34, %v10177_v35  ;;  %v3597_v49 = vld [vmem:[#allocation2 + $0x24] sm:$0xc] }
 0x386   : > { %v12324_v58 = vpop.permute.xlu0 %4433  ;;  %v6582_v42 = vrot.slane %v6580_v7, 2  ;;  %v6119_v16 = vor.u32 %v6118_v55, %v6114_v10  ;;  %v6286_v7 = vrot.slane %v12338_v23, 1  ;;  %v6287_v55 = vrot.slane %v12336_v1, 1  ;;  %v14376_v5 = vld [vmem:[#allocation63_spill] sm:$0xff]  ;;  %v14378_v23 = vld [vmem:[#allocation61_spill] sm:$0xff] }
 0x387   : > { %v6792_v1 = vsel %vm3400_vm8, %v14378_v23, %v12042_v19  ;;  %v14381_v19 = vld [vmem:[#allocation64_spill] sm:$0xff] }
 0x388   : > { %v12344_v54 = vpop.permute.xlu1 %2942  ;;  %8139 = vrot.lane.b32.xlu0 %v5731_v36, %s10320_s29  ;;  %8236 = vrot.lane.b32.xlu1 %v6852_v28, %s10322_s10  ;;  %v5454_v36 = vor.u32 %v5453_v22, %v5450_v50  ;;  %v6574_v28 = vrot.slane %v6572_v13, 2  ;;  %v6583_v29 = vor.u32 %v6582_v42, %v6579_v31  ;;  %v6124_v13 = vsel %vm2596_vm4, %v6119_v16, %v6123_v38  ;;  %v10179_v42 = vld [vmem:[#allocation2 + $0x28] sm:$0xf] }
 0x389   : > { %14370 = vst [vmem:[#allocation29_spill] sm:$0xff] %v12344_v54  ;;  %v9235_v34 = vcombine.low %v3597_v49, %v10179_v42 }
 0x38a   : > { %v12342_v26 = vpop.permute.xlu0 %8034  ;;  %v5463_v30 = vsel %vm2998_vm6, %v5454_v36, %v5462_v52  ;;  %v6575_v22 = vor.u32 %v6574_v28, %v6571_v39  ;;  %v5618_v52 = vrot.slane %v9315_v27, 2  ;;  %v14377_v36 = vld [vmem:[#allocation17_spill] sm:$0xff]  ;;  %v6288_v28 = vsel %vm2869_vm5, %v6286_v7, %v6287_v55 }
 0x38b   : > { %14369 = vst [vmem:[#allocation89_spill] sm:$0xff] %v12342_v26  ;;  %v5665_v39 = vsel %vm3400_vm8, %v14377_v36, %v14376_v5  ;;  %v4497_v27 = vrot.slane %v9235_v34, 2  ;;  %v14385_v36 = vld [vmem:[#allocation83_spill] sm:$0xff] }
 0x38c   : > { %v12356_v54 = vpop.permute.xlu1 %3295  ;;  %8044 = vrot.lane.b32.xlu0 %v4502_v20, %s10321_s30  ;;  %5202 = vrot.lane.b32.xlu1 %v5167_v25, %s10320_s29  ;;  %v6584_v10 = vsel %vm2998_vm6, %v6575_v22, %v6583_v29  ;;  %v10178_v25 = vld [vmem:[#allocation2 + $0x38] ss:$0 sps:$4 sm:$0x33]  }
 0x38d   : > { %14371 = vst [vmem:[#allocation68_spill] sm:$0xff] %v12356_v54  ;;  %v5619_v24 = vrot.slane %v10178_v25, 2  ;;  %v14384_v25 = vld [vmem:[#allocation56_spill] sm:$0xff] }
 0x38e   : > { %v12354_v11 = vpop.permute.xlu0 %4083 }
 0x38f   : > { %v5620_v38 = vsel %vm3351_vm12, %v5618_v52, %v5619_v24  ;;  %v5673_v24 = vsel %vm3400_vm8, %v14384_v25, %v12011_v56 }
 0x390   : > { %v12364_v50 = vpop.permute.xlu1 %8038  ;;  %5074 = vrot.lane.b32.xlu0 %v5003_v33, %s10321_s30  ;;  %5554 = vrot.lane.b32.xlu1 %v5463_v30, %s10322_s10  ;;  %v14380_v33 = vld [vmem:[#allocation59_spill] sm:$0xff]  ;;  %v6824_v30 = vsel %vm1391_vm7, %v6792_v1, %v11984_v45  ;;  %v10180_v45 = vld [vmem:[#allocation2 + $0x2c] ss:$0 sps:$4 sm:$0x33]   ;;  %v5705_v56 = vsel %vm1391_vm7, %v5673_v24, %v11964_v63 }
 0x391   : > { %14373 = vst [vmem:[#allocation78_spill] sm:$0xff] %v12364_v50  ;;  %v5697_v16 = vsel %vm1391_vm7, %v5665_v39, %v14380_v33  ;;  %v6856_v55 = vsel %vm3465_vm9, %v6824_v30, %v12027_v18  ;;  %v4558_v18 = vsel %vm3400_vm8, %v14385_v36, %v12206_v6  ;;  %v14388_v33 = vld [vmem:[#allocation75_spill] sm:$0xff]  ;;  %v12496_v36 = vld [vmem:[#allocation2 + $0x98] ss:$0 sps:$4 sm:$0x11]  }
 0x392   : > { %v12362_v21 = vpop.permute.xlu0 %2944  ;;  %v5729_v29 = vsel %vm3465_vm9, %v5697_v16, %v14381_v19  ;;  %v4590_v42 = vsel %vm1391_vm7, %v4558_v18, %v12209_v9 }
 0x393   : > { %14372 = vst [vmem:[#allocation85_spill] sm:$0xff] %v12362_v21  ;;  %v4622_v34 = vsel %vm3465_vm9, %v4590_v42, %v12229_v43 }
 0x394   : > { %6195 = vrot.lane.b32.xlu0 %v6124_v13, %s10321_s30  ;;  %v12376_v20 = vpop.permute.xlu1 %2815  ;;  %6675 = vrot.lane.b32.xlu1 %v6584_v10, %s10322_s10  ;;  %v14383_v13 = vld [vmem:[#allocation69_spill] sm:$0xff]  ;;  %v4498_v10 = vrot.slane %v10180_v45, 2 }
 0x395   : > { %14375 = vst [vmem:[#allocation121_spill] sm:$0xff] %v12376_v20  ;;  %v6794_v7 = vsel %vm3400_vm8, %v14383_v13, %v12120_v12  ;;  %v4656_v13 = vld [vmem:[#allocation2 + $0x90] sm:$0xf] }
 0x396   : > { %v12370_v53 = vpop.permute.xlu0 %3297  ;;  %v6826_v49 = vsel %vm1391_vm7, %v6794_v7, %v12065_v40  ;;  %v4499_v5 = vsel %vm3351_vm12, %v4497_v27, %v4498_v10  ;;  %v14386_v40 = vld [vmem:[#allocation88_spill] sm:$0xff]  ;;  %v12472_v7 = vld [vmem:[#allocation2 + $0x94] sm:$0xf] }
 0x397   : > { %14374 = vst [vmem:[#allocation93_spill] sm:$0xff] %v12370_v53  ;;  %v6858_v12 = vsel %vm3465_vm9, %v6826_v49, %v12193_v0  ;;  %v6796_v1 = vsel %vm3400_vm8, %v14386_v40, %v12253_v46  ;;  %v5737_v0 = vsel %vm3465_vm9, %v5705_v56, %v12032_v32  ;;  %v5675_v46 = vsel %vm3400_vm8, %v14388_v33, %v12150_v51  ;;  %v10055_v53 = vld [vmem:[#allocation2 + $0xa4] ss:$0 sps:$4 sm:$0x33]  }
 0x398   : > { %6323 = vrot.lane.b32.xlu0 %v6288_v28, %s10320_s29  ;;  %8137 = vrot.lane.b32.xlu1 %v5620_v38, %s10320_s29  ;;  %v14387_v28 = vld [vmem:[#allocation71_spill] sm:$0xff]  ;;  %v6828_v32 = vsel %vm1391_vm7, %v6796_v1, %v12224_v15  ;;  %v5707_v43 = vsel %vm1391_vm7, %v5675_v46, %v12048_v48  ;;  %v12488_v49 = vcombine.low %v4656_v13, %v12472_v7  ;;  %v4988_v1 = vshll.u32 %v12496_v36, 16  ;;  %v14404_v46 = vld [vmem:[#allocation30_spill] sm:$0xff] }
 0x399   : > { %v3956_v22 = vpop.permute.xlu1 %3955  ;;  %v4556_v6 = vsel %vm3400_vm8, %v14387_v28, %v12125_v14  ;;  %v14390_v38 = vld [vmem:[#allocation95_spill] sm:$0xff]  ;;  %v6860_v30 = vsel %vm3465_vm9, %v6828_v32, %v12240_v44  ;;  %v5739_v48 = vsel %vm3465_vm9, %v5707_v43, %v12139_v60  ;;  %v14405_v32 = vld [vmem:[#allocation6_spill] sm:$0xff] }
 0x39a   : > { %v12386_v31 = vpop.permute.xlu0 %8042  ;;  %v4588_v14 = vsel %vm1391_vm7, %v4556_v6, %v12037_v3  ;;  %v4562_v51 = vsel %vm3400_vm8, %v14390_v38, %v12303_v62  ;;  %v14391_v3 = vld [vmem:[#allocation94_spill] sm:$0xff]  ;;  %14398 = vst [vmem:[#allocation83_spill] sm:$0xff] %v12488_v49  ;;  %v4981_v6 = vshrl.u32 %v12488_v49, 16  ;;  %v14407_v43 = vld [vmem:[#allocation11_spill] sm:$0xff] }
 0x39b   : > { %14379 = vst [vmem:[#allocation63_spill] sm:$0xff] %v12386_v31  ;;  %v4620_v9 = vsel %vm3465_vm9, %v4588_v14, %v12166_v41  ;;  %v4594_v19 = vsel %vm1391_vm7, %v4562_v51, %v12326_v37  ;;  %v4560_v41 = vsel %vm3400_vm8, %v14391_v3, %v12295_v17  ;;  %v14393_v62 = vld [vmem:[#allocation58_spill] sm:$0xff]  ;;  %v6812_v14 = vsel %vm3400_vm8, %v14405_v32, %v14404_v46  ;;  %v14410_v3 = vld [vmem:[#allocation52_spill] sm:$0xff]  ;;  %v14419_v46 = vld [vmem:[#allocation43_spill] sm:$0xff] }
 0x39c   : > { %8135 = vrot.lane.b32.xlu0 %v5729_v29, %s10320_s29  ;;  %8244 = vrot.lane.b32.xlu1 %v6856_v55, %s10322_s10  ;;  %v4626_v37 = vsel %vm3465_vm9, %v4594_v19, %v12324_v58  ;;  %v4592_v60 = vsel %vm1391_vm7, %v4560_v41, %v12220_v57  ;;  %v14395_v55 = vld [vmem:[#allocation102_spill] sm:$0xff]  ;;  %v14411_v41 = vld [vmem:[#allocation15_spill] sm:$0xff] }
 0x39d   : > { %v4436_v52 = vpop.permute.xlu1 %4435  ;;  %v4624_v17 = vsel %vm3465_vm9, %v4592_v60, %v12313_v47  ;;  %v4564_v45 = vsel %vm3400_vm8, %v14395_v55, %v3956_v22  ;;  %v5777_v57 = vld [vmem:[#allocation2 + $0x9c] sm:$0xf]  ;;  %v5778_v47 = vld [vmem:[#allocation2 + $0xa0] sm:$0xf] }
 0x39e   : > { %v12397_v35 = vpop.permute.xlu0 %2817  ;;  %v4596_v22 = vsel %vm1391_vm7, %v4564_v45, %v12354_v11  ;;  %v12507_v11 = vld [vmem:[#allocation2 + $0xa4] ss:$0 sps:$4 sm:$0x11]   ;;  %v14408_v51 = vld [vmem:[#allocation38_spill] sm:$0xff] }
 0x39f   : > { %14382 = vst [vmem:[#allocation17_spill] sm:$0xff] %v12397_v35  ;;  %v6109_v13 = vshll.u32 %v12507_v11, 16 }
 0x3a0   : > { %8040 = vrot.lane.b32.xlu0 %v4499_v5, %s10321_s30  ;;  %8248 = vrot.lane.b32.xlu1 %v6858_v12, %s10322_s10  ;;  %v4628_v5 = vsel %vm3465_vm9, %v4596_v22, %v4436_v52  ;;  %v14402_v52 = vld [vmem:[#allocation109_spill] sm:$0xff]  ;;  %v14412_v22 = vld [vmem:[#allocation32_spill] sm:$0xff] }
 0x3a1   : > { %v4086_v23 = vpop.permute.xlu1 %4085 }
 0x3a2   : > { %v3958_v39 = vpop.permute.xlu0 %3957 }
 0x3a3   : > { %v4566_v27 = vsel %vm3400_vm8, %v14393_v62, %v3958_v39  ;;  %v4983_v39 = vshll.u32 %v12488_v49, 16 }
 0x3a4   : > { %8151 = vrot.lane.b32.xlu0 %v5737_v0, %s10320_s29  ;;  %8066 = vrot.lane.b32.xlu1 %v4622_v34, %s10321_s30  ;;  %v4598_v10 = vsel %vm1391_vm7, %v4566_v27, %v4086_v23  ;;  %v12502_v23 = vcombine.low %v5777_v57, %v5778_v47  ;;  %v5815_v57 = vld [vmem:[#allocation2 + $0x9c] sm:$0xe] }
 0x3a5   : > { %v12440_v16 = vpop.permute.xlu1 %2946  ;;  %v4985_v42 = vrot.slane %v4983_v39, 1  ;;  %v14414_v39 = vld [vmem:[#allocation13_spill] sm:$0xff] }
 0x3a6   : > { %v4088_v63 = vpop.permute.xlu0 %4087  ;;  %14389 = vst [vmem:[#allocation61_spill] sm:$0xff] %v12440_v16  ;;  %14401 = vst [vmem:[#allocation75_spill] sm:$0xff] %v12502_v23  ;;  %v6104_v34 = vshll.u32 %v12502_v23, 16  ;;  %v6102_v45 = vshrl.u32 %v12502_v23, 16 }
 0x3a7   : > { %v4986_v55 = vor.u32 %v4985_v42, %v4981_v6  ;;  %v14417_v42 = vld [vmem:[#allocation51_spill] sm:$0xff]  ;;  %v12636_v23 = vld [vmem:[#allocation2 + $0x8c] ss:$0 sps:$4 sm:$0x11]  }
 0x3a8   : > { %8062 = vrot.lane.b32.xlu0 %v4620_v9, %s10321_s30  ;;  %8252 = vrot.lane.b32.xlu1 %v6860_v30, %s10322_s10  ;;  %v14406_v9 = vld [vmem:[#allocation34_spill] sm:$0xff] }
 0x3a9   : > { %v5661_v38 = vsel %vm3400_vm8, %v14407_v43, %v14406_v9  ;;  %v4694_v9 = vld [vmem:[#allocation2 + $0x90] sm:$0xe] }
 0x3aa   : > { %v4438_v15 = vpop.permute.xlu0 %4437  ;;  %v12462_v29 = vpop.permute.xlu1 %3299 }
 0x3ab   : > { %14392 = vst [vmem:[#allocation59_spill] sm:$0xff] %v12462_v29  ;;  %v4630_v58 = vsel %vm3465_vm9, %v4598_v10, %v4438_v15  ;;  %v14409_v15 = vld [vmem:[#allocation12_spill] sm:$0xff]  ;;  %v6106_v10 = vrot.slane %v6104_v34, 1  ;;  %v14418_v34 = vld [vmem:[#allocation14_spill] sm:$0xff] }
 0x3ac   : > { %8155 = vrot.lane.b32.xlu0 %v5739_v48, %s10320_s29  ;;  %8074 = vrot.lane.b32.xlu1 %v4626_v37, %s10321_s30  ;;  %v3406_v30 = vsel %vm3400_vm8, %v14409_v15, %v14408_v51  ;;  %v6782_v48 = vsel %vm3400_vm8, %v14411_v41, %v14410_v3  ;;  %v4990_v37 = vrot.slane %v4988_v1, 1  ;;  %v14415_v1 = vld [vmem:[#allocation35_spill] sm:$0xff]  ;;  %v12557_v3 = vcombine.low %v5815_v57, %v5778_v47  ;;  %v12559_v41 = vld [vmem:[#allocation2 + $0x88] sm:$0xf]  ;;  %v14428_v57 = vld [vmem:[#allocation57_spill] sm:$0xff] }
 0x3ad   : > { %v6814_v32 = vsel %vm1391_vm7, %v6782_v48, %v14419_v46  ;;  %v6107_v15 = vor.u32 %v6106_v10, %v6102_v45  ;;  %v14427_v45 = vld [vmem:[#allocation41_spill] sm:$0xff] }
 0x3ae   : > { %v12467_v44 = vpop.permute.xlu0 %2948  ;;  %v12481_v25 = vpop.permute.xlu1 %5206  ;;  %v4991_v51 = vsel %vm2596_vm4, %v4986_v55, %v4990_v37  ;;  %v14425_v37 = vld [vmem:[#allocation73_spill] sm:$0xff]  ;;  %v14426_v55 = vld [vmem:[#allocation20_spill] sm:$0xff] }
 0x3af   : > { %14394 = vst [vmem:[#allocation64_spill] sm:$0xff] %v12467_v44  ;;  %14396 = vst [vmem:[#allocation69_spill] sm:$0xff] %v12481_v25  ;;  %v3412_v47 = vsel %vm3400_vm8, %v14426_v55, %v14425_v37  ;;  %v12599_v37 = vcombine.low %v4694_v9, %v12472_v7  ;;  %v14439_v7 = vld [vmem:[#allocation77_spill] sm:$0xff] }
 0x3b0   : > { %8070 = vrot.lane.b32.xlu0 %v4624_v17, %s10321_s30  ;;  %8082 = vrot.lane.b32.xlu1 %v4630_v58, %s10321_s30 }
 0x3b2   : > { %v12485_v24 = vpop.permute.xlu0 %3301  ;;  %v12494_v12 = vpop.permute.xlu1 %2819 }
 0x3b3   : > { %14397 = vst [vmem:[#allocation56_spill] sm:$0xff] %v12485_v24  ;;  %14399 = vst [vmem:[#allocation88_spill] sm:$0xff] %v12494_v12  ;;  %v14451_v24 = vld [vmem:[#allocation37_spill] sm:$0xff] }
 0x3b4   : > { %8078 = vrot.lane.b32.xlu0 %v4628_v5, %s10321_s30  ;;  %v12536_v5 = vsel %vm1391_vm7, %v6812_v14, %v14412_v22  ;;  %v14424_v22 = vld [vmem:[#allocation16_spill] sm:$0xff] }
 0x3b6   : > { %v12499_v18 = vpop.permute.xlu0 %5078  ;;  %v3960_v40 = vpop.permute.xlu1 %3959 }
 0x3b7   : > { %14400 = vst [vmem:[#allocation71_spill] sm:$0xff] %v12499_v18  ;;  %v12504_v56 = vpop.f32.mrf.mxu0  ;;  %v4568_v0 = vsel %vm3400_vm8, %v14402_v52, %v3960_v40  ;;  %v5693_v52 = vsel %vm1391_vm7, %v5661_v38, %v14415_v1  ;;  %v6111_v38 = vrot.slane %v6109_v13, 1  ;;  %v14429_v1 = vld [vmem:[#allocation66_spill] sm:$0xff]  ;;  %v10190_v18 = vld [vmem:[#allocation2 + $0x50] ss:$0 sps:$4 sm:$0x33]  }
 0x3b8   : > { %v4600_v62 = vsel %vm1391_vm7, %v4568_v0, %v4088_v63  ;;  %v14413_v63 = vld [vmem:[#allocation46_spill] sm:$0xff]  ;;  %v14416_v0 = vld [vmem:[#allocation33_spill] sm:$0xff]  ;;  %v3371_v26 = vrot.slane %v10190_v18, 2 }
 0x3b9   : > { %v1183_v33 = vpop.f32.mrf.mxu0  ;;  %v3408_v40 = vsel %vm3400_vm8, %v14414_v39, %v14413_v63  ;;  %v12545_v6 = vsel %vm1391_vm7, %v3406_v30, %v14416_v0  ;;  %v4654_v30 = vld [vmem:[#allocation2 + $0x84] sm:$0xf]  ;;  %v14431_v0 = vld [vmem:[#allocation74_spill] sm:$0xff] }
 0x3ba   : > { %v12511_v28 = vpop.permute.xlu0 %6327  ;;  %v4440_v27 = vpop.permute.xlu1 %4439  ;;  %v5663_v33 = vsel %vm3400_vm8, %v14418_v34, %v14417_v42  ;;  %v14432_v42 = vld [vmem:[#allocation21_spill] sm:$0xff]  ;;  %v12602_v55 = vcombine.low %v4654_v30, %v12559_v41  ;;  %v14440_v30 = vld [vmem:[#allocation70_spill] sm:$0xff] }
 0x3bb   : > { %14403 = vst [vmem:[#allocation95_spill] sm:$0xff] %v12511_v28  ;;  %v12524_v19 = vpop.f32.mrf.mxu0  ;;  %v4632_v60 = vsel %vm3465_vm9, %v4600_v62, %v4440_v27  ;;  %v14421_v62 = vld [vmem:[#allocation45_spill] sm:$0xff]  ;;  %v5695_v10 = vsel %vm1391_vm7, %v5663_v33, %v14427_v45  ;;  %v6786_v34 = vsel %vm3400_vm8, %v14432_v42, %v14431_v0  ;;  %v14434_v33 = vld [vmem:[#allocation60_spill] sm:$0xff] }
 0x3bc   : > { %8086 = vrot.lane.b32.xlu0 %v4632_v60, %s10321_s30  ;;  %v12563_v27 = vsel %vm3465_vm9, %v5693_v52, %v14421_v62  ;;  %v14422_v60 = vld [vmem:[#allocation40_spill] sm:$0xff]  ;;  %v5775_v62 = vld [vmem:[#allocation2 + $0x90] sm:$0xf]  ;;  %14436 = vst [vmem:[#allocation102_spill] sm:$0xff] %v12602_v55  ;;  %v6818_v42 = vsel %vm1391_vm7, %v6786_v34, %v14440_v30 }
 0x3bd   : > { %v1186_v58 = vpop.f32.mrf.mxu0  ;;  %v12567_v48 = vsel %vm1391_vm7, %v3408_v40, %v14422_v60  ;;  %v14430_v40 = vld [vmem:[#allocation18_spill] sm:$0xff]  ;;  %v12586_v60 = vld [vmem:[#allocation2 + $0x94] sm:$0xf]  ;;  %v14437_v45 = vld [vmem:[#allocation72_spill] sm:$0xff] }
 0x3be   : > { %v3962_v17 = vpop.permute.xlu0 %3961  ;;  %v12552_v14 = vpop.permute.xlu1 %5558  ;;  %v14423_v58 = vld [vmem:[#allocation55_spill] sm:$0xff]  ;;  %v6784_v52 = vsel %vm3400_vm8, %v14430_v40, %v14429_v1  ;;  %v6283_v1 = vrot.slane %v12557_v3, 1  ;;  %v14438_v40 = vld [vmem:[#allocation62_spill] sm:$0xff] }
 0x3bf   : > { %14420 = vst [vmem:[#allocation94_spill] sm:$0xff] %v12552_v14  ;;  %v3410_v63 = vsel %vm3400_vm8, %v14424_v22, %v14423_v58  ;;  %v12613_v0 = vsel %vm1391_vm7, %v6784_v52, %v14438_v40  ;;  %v14443_v52 = vld [vmem:[#allocation82_spill] sm:$0xff] }
 0x3c0   : > { %v12554_v43 = vpop.f32.mrf.mxu0  ;;  %5072 = vrot.lane.b32.xlu0 %v4991_v51, %s10321_s30  ;;  %v3442_v39 = vsel %vm1391_vm7, %v3410_v63, %v14428_v57  ;;  %v14433_v51 = vld [vmem:[#allocation53_spill] sm:$0xff]  ;;  %v3444_v57 = vsel %vm1391_vm7, %v3412_v47, %v14437_v45  ;;  %v3596_v47 = vld [vmem:[#allocation2 + $0x18] sm:$0xc]  ;;  %v14444_v45 = vld [vmem:[#allocation24_spill] sm:$0xff] }
 0x3c1   : > { %v12590_v58 = vsel %vm3465_vm9, %v6814_v32, %v14433_v51  ;;  %v12594_v22 = vsel %vm3465_vm9, %v3442_v39, %v14434_v33  ;;  %v6112_v32 = vsel %vm2596_vm4, %v6107_v15, %v6111_v38  ;;  %v6284_v39 = vrot.slane %v12507_v11, 1  ;;  %v10052_v51 = vld [vmem:[#allocation2 + $0x98] ss:$0 sps:$4 sm:$0x33]   ;;  %v14442_v11 = vld [vmem:[#allocation80_spill] sm:$0xff] }
 0x3c2   : > { %v1191_v13 = vpop.f32.mrf.mxu0  ;;  %v4442_v46 = vpop.permute.xlu0 %4441  ;;  %v12617_v9 = vsel %vm3465_vm9, %v3444_v57, %v14439_v7  ;;  %v12623_v15 = vcombine.low %v5775_v62, %v12586_v60  ;;  %v6850_v33 = vsel %vm3465_vm9, %v6818_v42, %v14442_v11  ;;  %v12630_v40 = vsel %vm3400_vm8, %v14444_v45, %v14443_v52  ;;  %v14446_v7 = vld [vmem:[#allocation49_spill] sm:$0xff]  ;;  %v14447_v62 = vld [vmem:[#allocation112_spill] sm:$0xff]  ;;  %v12643_v45 = vld [vmem:[#allocation2 + $0x98] ss:$0 sps:$4 sm:$0x11]  }
 0x3c3   : > { %v12596_v63 = vpop.permute.xlu1 %8046  ;;  %v5727_v34 = vsel %vm3465_vm9, %v5695_v10, %v14446_v7  ;;  %v4971_v42 = vshll.u32 %v12602_v55, 16  ;;  %v5431_v11 = vshrl.u32 %v12599_v37, 16  ;;  %v5434_v52 = vshll.u32 %v12599_v37, 16  ;;  %v10182_v7 = vld [vmem:[#allocation2 + $0x20] ss:$0 sps:$4 sm:$0x33]  }
 0x3c4   : > { %14435 = vst [vmem:[#allocation58_spill] sm:$0xff] %v12596_v63  ;;  %v12604_v13 = vpop.f32.mrf.mxu0  ;;  %6193 = vrot.lane.b32.xlu0 %v6112_v32, %s10321_s30  ;;  %14441 = vst [vmem:[#allocation109_spill] sm:$0xff] %v12623_v15  ;;  %v10181_v32 = vld [vmem:[#allocation2 + $0x1c] sm:$0xf]  ;;  %v6285_v10 = vsel %vm2869_vm5, %v6283_v1, %v6284_v39  ;;  %v5442_v59 = vshll.u32 %v10052_v51, 16  ;;  %v6092_v21 = vshll.u32 %v12623_v15, 16 }
 0x3c5   : > { %v9234_v30 = vcombine.low %v3596_v47, %v10181_v32  ;;  %v4495_v47 = vrot.slane %v10182_v7, 2  ;;  %v5163_v32 = vrot.slane %v12496_v36, 1  ;;  %v5162_v1 = vrot.slane %v12599_v37, 1 }
 0x3c6   : > { %v1194_v38 = vpop.f32.mrf.mxu0  ;;  %v12632_v57 = vpop.permute.xlu0 %5080  ;;  %v4969_v39 = vshrl.u32 %v12602_v55, 16  ;;  %v4976_v36 = vshll.u32 %v12636_v23, 16  ;;  %v12659_v7 = vrot.slane %v5431_v11, 1  ;;  %v6097_v20 = vshll.u32 %v12643_v45, 16  ;;  %v4717_v11 = vld [vmem:[#allocation2 + $0x24] sm:$0xc] }
 0x3c7   : > { %14445 = vst [vmem:[#allocation30_spill] sm:$0xff] %v12632_v57  ;;  %v4570_v38 = vsel %vm3400_vm8, %v14447_v62, %v3962_v17  ;;  %v4090_v49 = vpop.permute.xlu1 %4089  ;;  %v5439_v62 = vshrl.u32 %v10052_v51, 16  ;;  %v5814_v51 = vld [vmem:[#allocation2 + $0x90] sm:$0xe]  ;;  %v6563_v37 = vshll.u32 %v10055_v53, 16  ;;  %v5444_v28 = vrot.slane %v5442_v59, 2 }
 0x3c8   : > { %v4602_v54 = vsel %vm1391_vm7, %v4570_v38, %v4090_v49  ;;  %6321 = vrot.lane.b32.xlu0 %v6285_v10, %s10320_s29  ;;  %v4494_v49 = vrot.slane %v9234_v30, 2  ;;  %v4973_v10 = vrot.slane %v4971_v42, 1  ;;  %v6555_v30 = vshll.u32 %v12557_v3, 16  ;;  %v3595_v57 = vld [vmem:[#allocation2 + $0xc] sm:$0xc] }
 0x3c9   : > { %v4634_v17 = vsel %vm3465_vm9, %v4602_v54, %v4442_v46  ;;  %v12661_v54 = vrot.slane %v5434_v52, 2  ;;  %v6552_v46 = vshrl.u32 %v12557_v3, 16  ;;  %v5441_v55 = vrot.slane %v5439_v62, 1  ;;  %v14450_v52 = vld [vmem:[#allocation98_spill] sm:$0xff] }
 0x3ca   : > { %v12651_v29 = vpop.permute.xlu0 %6199  ;;  %8090 = vrot.lane.b32.xlu1 %v4634_v17, %s10321_s30  ;;  %v6560_v17 = vshrl.u32 %v10055_v53, 16  ;;  %v6090_v16 = vshrl.u32 %v12623_v15, 16  ;;  %v6094_v42 = vrot.slane %v6092_v21, 1  ;;  %v4496_v53 = vsel %vm3351_vm12, %v4494_v49, %v4495_v47  ;;  %v12681_v21 = vld [vmem:[#allocation2 + $0x7c] sm:$0xf] }
 0x3cb   : > { %14448 = vst [vmem:[#allocation6_spill] sm:$0xff] %v12651_v29  ;;  %v12657_v38 = vpop.permute.xlu1 %5208  ;;  %v12668_v35 = vpop.f32.mrf.mxu0  ;;  %v5164_v3 = vsel %vm2869_vm5, %v5162_v1, %v5163_v32  ;;  %v12679_v59 = vcombine.low %v5814_v51, %v12586_v60  ;;  %v4974_v15 = vor.u32 %v4973_v10, %v4969_v39  ;;  %v4978_v4 = vrot.slane %v4976_v36, 1  ;;  %v10183_v32 = vld [vmem:[#allocation2 + $0x28] sm:$0xf]  ;;  %v4693_v60 = vld [vmem:[#allocation2 + $0x84] sm:$0xe] }
 0x3cc   : > { %14449 = vst [vmem:[#allocation34_spill] sm:$0xff] %v12657_v38  ;;  %8131 = vrot.lane.b32.xlu0 %v5727_v34, %s10320_s29  ;;  %v3416_v38 = vsel %vm3400_vm8, %v14451_v24, %v14450_v52  ;;  %v4652_v34 = vld [vmem:[#allocation2 + $0x78] sm:$0xf]  ;;  %v5437_v24 = vor.u32 %v12661_v54, %v12659_v7  ;;  %v6554_v52 = vrot.slane %v6552_v46, 1  ;;  %v6557_v44 = vrot.slane %v6555_v30, 2  ;;  %v14454_v54 = vld [vmem:[#allocation84_spill] sm:$0xff] }
 0x3cd   : > { %v6562_v47 = vrot.slane %v6560_v17, 1  ;;  %v6565_v49 = vrot.slane %v6563_v37, 2  ;;  %v9314_v1 = vcombine.low %v4717_v11, %v10183_v32  ;;  %v5445_v51 = vor.u32 %v5444_v28, %v5441_v55  ;;  %v5773_v36 = vld [vmem:[#allocation2 + $0x84] sm:$0xf]  ;;  %v12691_v10 = vld [vmem:[#allocation2 + $0x88] sm:$0xf] }
 0x3ce   : > { %v12673_v29 = vpop.permute.xlu0 %8050  ;;  %8232 = vrot.lane.b32.xlu1 %v6850_v33, %s10322_s10  ;;  %v1199_v33 = vpop.f32.mrf.mxu0  ;;  %v6095_v12 = vor.u32 %v6094_v42, %v6090_v16  ;;  %v6099_v2 = vrot.slane %v6097_v20, 1  ;;  %v12689_v39 = vcombine.low %v4652_v34, %v12681_v21  ;;  %v3446_v46 = vsel %vm1391_vm7, %v12630_v40, %v14454_v54  ;;  %v10184_v16 = vld [vmem:[#allocation2 + $0x10] sm:$0xf]  ;;  %v14456_v17 = vld [vmem:[#allocation87_spill] sm:$0xff]  ;;  %v14457_v42 = vld [vmem:[#allocation92_spill] sm:$0xff] }
 0x3cf   : > { %v12683_v62 = vpop.permute.xlu1 %5560  ;;  %v6280_v28 = vrot.slane %v12679_v59, 1  ;;  %v6281_v20 = vrot.slane %v12643_v45, 1  ;;  %v9233_v55 = vcombine.low %v3595_v57, %v10184_v16  ;;  %v12705_v37 = vsel %vm3465_vm9, %v3446_v46, %v14456_v17  ;;  %v10060_v34 = vld [vmem:[#allocation2 + $0x8c] ss:$0 sps:$4 sm:$0x33]  }
 0x3d0   : > { %14452 = vst [vmem:[#allocation11_spill] sm:$0xff] %v12683_v62  ;;  %8036 = vrot.lane.b32.xlu0 %v4496_v53, %s10321_s30  ;;  %14453 = vst [vmem:[#allocation38_spill] sm:$0xff] %v12689_v39  ;;  %v12693_v7 = vpop.f32.mrf.mxu0  ;;  %v12709_v11 = vsel %vm1391_vm7, %v3416_v38, %v14457_v42  ;;  %v4979_v40 = vsel %vm2596_vm4, %v4974_v15, %v4978_v4  ;;  %v6558_v45 = vor.u32 %v6557_v44, %v6554_v52  ;;  %v2459_v54 = vld [vmem:[#allocation2 + $0x54] sm:$0xc] }
 0x3d1   : > { %v6566_v32 = vor.u32 %v6565_v49, %v6562_v47  ;;  %v5615_v57 = vrot.slane %v9314_v1, 2  ;;  %v12718_v46 = vcombine.low %v5773_v36, %v12691_v10  ;;  %v5446_v38 = vsel %vm2998_vm6, %v5437_v24, %v5445_v51  ;;  %v10185_v17 = vld [vmem:[#allocation2 + $0x2c] ss:$0 sps:$4 sm:$0x33]  }
 0x3d2   : > { %v12698_v30 = vpop.permute.xlu0 %8143  ;;  %5200 = vrot.lane.b32.xlu1 %v5164_v3, %s10320_s29  ;;  %v12715_v3 = vcombine.low %v4693_v60, %v12559_v41  ;;  %v1202_v33 = vpop.f32.mrf.mxu0  ;;  %v6100_v16 = vsel %vm2596_vm4, %v6095_v12, %v6099_v2  ;;  %v5616_v4 = vrot.slane %v10185_v17, 2  ;;  %v12723_v15 = vld [vmem:[#allocation2 + $0x80] ss:$0 sps:$4 sm:$0x11]   ;;  %v4959_v41 = vshll.u32 %v12689_v39, 16 }
 0x3d3   : > { %14455 = vst [vmem:[#allocation12_spill] sm:$0xff] %v12698_v30  ;;  %v12711_v53 = vpop.permute.xlu1 %6679  ;;  %14459 = vst [vmem:[#allocation15_spill] sm:$0xff] %v12718_v46  ;;  %v6282_v44 = vsel %vm2869_vm5, %v6280_v28, %v6281_v20  ;;  %v12730_v52 = vrot.slane %v9233_v55, 2  ;;  %v12732_v47 = vld [vmem:[#allocation2 + $0x14] ss:$0 sps:$4 sm:$0x33]   ;;  %v6567_v28 = vsel %vm2998_vm6, %v6558_v45, %v6566_v32  ;;  %v9369_v18 = vcombine.low %v5813_v61, %v12691_v10 }
 0x3d4   : > { %14458 = vst [vmem:[#allocation52_spill] sm:$0xff] %v12711_v53  ;;  %5070 = vrot.lane.b32.xlu0 %v4979_v40, %s10321_s30  ;;  %v2458_v12 = vld [vmem:[#allocation2 + $0x48] sm:$0xc]  ;;  %v12736_v49 = vpop.f32.mrf.mxu0  ;;  %v5414_v51 = vshrl.u32 %v12715_v3, 16  ;;  %v5417_v36 = vshll.u32 %v12715_v3, 16  ;;  %v5422_v42 = vshrl.u32 %v10060_v34, 16  ;;  %v5617_v20 = vsel %vm3351_vm12, %v5615_v57, %v5616_v4 }
 0x3d5   : > { %v5425_v40 = vshll.u32 %v10060_v34, 16  ;;  %v10187_v55 = vld [vmem:[#allocation2 + $0x58] sm:$0xf]  ;;  %v6080_v17 = vshll.u32 %v12718_v46, 16  ;;  %v4957_v24 = vshrl.u32 %v12689_v39, 16  ;;  %v4964_v30 = vshll.u32 %v12723_v15, 16 }
 0x3d6   : > { %v12726_v60 = vpop.permute.xlu0 %8147  ;;  %5552 = vrot.lane.b32.xlu1 %v5446_v38, %s10322_s10  ;;  %v9160_v33 = vcombine.low %v2459_v54, %v10187_v55  ;;  %v12744_v38 = vld [vmem:[#allocation2 + $0x8c] ss:$0 sps:$4 sm:$0x11]   ;;  %v1207_v2 = vpop.f32.mrf.mxu0  ;;  %v10063_v62 = vld [vmem:[#allocation2 + $0x98] ss:$0 sps:$4 sm:$0x33]  }
 0x3d7   : > { %14460 = vst [vmem:[#allocation32_spill] sm:$0xff] %v12726_v60  ;;  %v12738_v1 = vpop.permute.xlu1 %8054  ;;  %v4961_v60 = vrot.slane %v4959_v41, 1  ;;  %v10188_v53 = vld [vmem:[#allocation2 + $0x4c] sm:$0xf]  ;;  %v5159_v32 = vrot.slane %v12715_v3, 1  ;;  %v6535_v4 = vshrl.u32 %v12679_v59, 16 }
 0x3d8   : > { %6191 = vrot.lane.b32.xlu0 %v6100_v16, %s10321_s30  ;;  %v9159_v34 = vcombine.low %v2458_v12, %v10188_v53  ;;  %v10189_v57 = vld [vmem:[#allocation2 + $0x5c] ss:$0 sps:$4 sm:$0x33]   ;;  %v6538_v16 = vshll.u32 %v12679_v59, 16  ;;  %v12756_v2 = vpop.f32.mrf.mxu0  ;;  %v5416_v55 = vrot.slane %v5414_v51, 1  ;;  %v5419_v39 = vrot.slane %v5417_v36, 2 }
 0x3d9   : > { %v3374_v54 = vrot.slane %v10189_v57, 2  ;;  %v5424_v53 = vrot.slane %v5422_v42, 1  ;;  %v5427_v12 = vrot.slane %v5425_v40, 2  ;;  %v3373_v8 = vrot.slane %v9160_v33, 2 }
 0x3da   : > { %v12750_v45 = vpop.permute.xlu0 %6329  ;;  %6673 = vrot.lane.b32.xlu1 %v6567_v28, %s10322_s10  ;;  %v6082_v28 = vrot.slane %v6080_v17, 1  ;;  %v6085_v3 = vshll.u32 %v12744_v38, 16  ;;  %v1210_v57 = vpop.f32.mrf.mxu0  ;;  %v4962_v14 = vor.u32 %v4961_v60, %v4957_v24  ;;  %v4966_v59 = vrot.slane %v4964_v30, 1  ;;  %v14463_v17 = vld [vmem:[#allocation99_spill] sm:$0xff] }
 0x3db   : > { %14461 = vst [vmem:[#allocation46_spill] sm:$0xff] %v12750_v45  ;;  %v12758_v41 = vpop.permute.xlu1 %5210  ;;  %v6078_v45 = vshrl.u32 %v12718_v46, 16  ;;  %v3370_v25 = vrot.slane %v9159_v34, 2  ;;  %v12766_v36 = vrot.slane %v6535_v4, 1  ;;  %v12768_v42 = vrot.slane %v6538_v16, 2  ;;  %v14464_v34 = vld [vmem:[#allocation65_spill] sm:$0xff] }
 0x3dc   : > { %14462 = vst [vmem:[#allocation13_spill] sm:$0xff] %v12758_v41  ;;  %6319 = vrot.lane.b32.xlu0 %v6282_v44, %s10320_s29  ;;  %v2457_v41 = vld [vmem:[#allocation2 + $0x3c] sm:$0xc]  ;;  %v6543_v40 = vshrl.u32 %v10063_v62, 16  ;;  %v6546_v33 = vshll.u32 %v10063_v62, 16  ;;  %v3488_v44 = vsel %vm3465_vm9, %v12709_v11, %v14463_v17  ;;  %v5420_v30 = vor.u32 %v5419_v39, %v5416_v55 }
 0x3dd   : > { %v5428_v24 = vor.u32 %v5427_v12, %v5424_v53  ;;  %v6083_v4 = vor.u32 %v6082_v28, %v6078_v45  ;;  %v6087_v57 = vrot.slane %v6085_v3, 1  ;;  %v10191_v16 = vld [vmem:[#allocation2 + $0x40] sm:$0xf]  ;;  %v14465_v62 = vrot.slane %v12732_v47, 2  ;;  %v6933_v55 = vld [vmem:[#allocation2 + $0x84] sm:$0xe] }
 0x3de   : > { %v12763_v51 = vpop.permute.xlu0 %5082  ;;  %8133 = vrot.lane.b32.xlu1 %v5617_v20, %s10320_s29  ;;  %v6848_v20 = vsel %vm3465_vm9, %v12613_v0, %v14464_v34  ;;  %v9158_v46 = vcombine.low %v2457_v41, %v10191_v16  ;;  %v14466_v39 = vrot.slane %v12636_v23, 1  ;;  %v3375_v10 = vsel %vm3351_vm12, %v3373_v8, %v3374_v54  ;;  %v10065_v45 = vld [vmem:[#allocation2 + $0x8c] ss:$0 sps:$4 sm:$0x33]   ;;  %v12802_v54 = vld [vmem:[#allocation2 + $0x88] sm:$0xf] }
 0x3df   : > { %v12773_v60 = vpop.permute.xlu1 %5562  ;;  %v4493_v11 = vsel %vm3351_vm12, %v12730_v52, %v14465_v62  ;;  %v3372_v0 = vsel %vm3351_vm12, %v3370_v25, %v3371_v26  ;;  %v6541_v47 = vor.u32 %v12768_v42, %v12766_v36  ;;  %v12796_v52 = vrot.slane %v6543_v40, 1  ;;  %v10067_v41 = vld [vmem:[#allocation2 + $0x8c] ss:$0 sps:$4 sm:$0x33]  }
 0x3e0   : > { %8127 = vrot.lane.b32.xlu0 %v12563_v27, %s10320_s29  ;;  %v5161_v61 = vsel %vm2869_vm5, %v5159_v32, %v14466_v39  ;;  %v4967_v27 = vsel %vm2596_vm4, %v4962_v14, %v4966_v59  ;;  %v6548_v23 = vrot.slane %v6546_v33, 2  ;;  %v5429_v8 = vsel %vm2998_vm6, %v5420_v30, %v5428_v24  ;;  %v12807_v14 = vld [vmem:[%s14124_s2] ss:$0 sm:$0xff]  ;;  %v10193_v59 = vld [vmem:[#allocation2 + $0x44] ss:$0 sps:$4 sm:$0x33]  }
 0x3e1   : > { %v6277_v26 = vrot.slane %v9369_v18, 1  ;;  %v6278_v25 = vrot.slane %v12744_v38, 1  ;;  %v1182_v12 = vadd.f32 %v12807_v14, %v12504_v56  ;;  %v6088_v28 = vsel %vm2596_vm4, %v6083_v4, %v6087_v57  ;;  %v4716_v33 = vld [vmem:[#allocation2 + $0x18] sm:$0xc]  ;;  %v10194_v38 = vld [vmem:[#allocation2 + $0x1c] sm:$0xf] }
 0x3e2   : > { %v12790_v53 = vpop.permute.xlu0 %6201  ;;  %8228 = vrot.lane.b32.xlu1 %v6848_v20, %s10322_s10  ;;  %v3367_v3 = vrot.slane %v9158_v46, 2  ;;  %v3368_v40 = vrot.slane %v10193_v59, 2  ;;  %v12813_v17 = vcombine.low %v6933_v55, %v12802_v54  ;;  %v9313_v30 = vcombine.low %v4716_v33, %v10194_v38  ;;  %v10195_v24 = vld [vmem:[#allocation2 + $0x20] ss:$0 sps:$4 sm:$0x33]  }
 0x3e3   : > { %v12798_v32 = vpop.permute.xlu1 %6681  ;;  %v5613_v34 = vrot.slane %v10195_v24, 2  ;;  %v6518_v20 = vshrl.u32 %v9369_v18, 16  ;;  %v6521_v16 = vshll.u32 %v9369_v18, 16  ;;  %v6549_v56 = vor.u32 %v6548_v23, %v12796_v52  ;;  %v4692_v59 = vld [vmem:[#allocation2 + $0x78] sm:$0xe] }
 0x3e4   : > { %8032 = vrot.lane.b32.xlu0 %v4493_v11, %s10321_s30  ;;  %v6526_v46 = vshrl.u32 %v10065_v45, 16  ;;  %v6529_v4 = vshll.u32 %v10065_v45, 16  ;;  %v7630_v57 = vshrl.u32 %v10067_v41, 16  ;;  %v7633_v11 = vshll.u32 %v10067_v41, 16 }
 0x3e5   : > { %v1300_v33 = vmax.f32 %v1182_v12, 0.0  ;;  %v1185_v18 = vadd.f32 %v12807_v14, %v12524_v19  ;;  %v6279_v38 = vsel %vm2869_vm5, %v6277_v26, %v6278_v25  ;;  %v7622_v52 = vshrl.u32 %v12813_v17, 16  ;;  %v2456_v19 = vld [vmem:[#allocation2 + $0x30] sm:$0xc] }
 0x3e6   : > { %v12816_v62 = vpop.permute.xlu0 %8058  ;;  %5198 = vrot.lane.b32.xlu1 %v5161_v61, %s10320_s29  ;;  %v3369_v61 = vsel %vm3351_vm12, %v3367_v3, %v3368_v40  ;;  %v7625_v45 = vshll.u32 %v12813_v17, 16  ;;  %v12833_v23 = vrot.slane %v6518_v20, 1  ;;  %v12835_v41 = vrot.slane %v6521_v16, 2 }
 0x3e7   : > { %v8351_v39 = vsel %vm3400_vm8, %v3375_v10, %v12816_v62  ;;  %v12822_v55 = vpop.permute.xlu1 %8240  ;;  %v8347_v10 = vsel %vm3400_vm8, %v3372_v0, %v12738_v1  ;;  %v1301_v12 = vmax.f32 %v1185_v18, 0.0  ;;  %v12840_v26 = vrot.slane %v6526_v46, 1 }
 0x3e8   : > { %14467 = vst [vmem:[#allocation35_spill] sm:$0xff] %v12822_v55  ;;  %8613 = vmatprep.subr.bf16.mxu1 %v8351_v39  ;;  %5068 = vrot.lane.b32.xlu0 %v4967_v27, %s10321_s30  ;;  %v12842_v25 = vrot.slane %v6529_v4, 2  ;;  %v4731_v27 = vld [vmem:[#allocation2 + $0xcc] sm:$0xc]  ;;  %v1190_v0 = vadd.f32 %v12807_v14, %v12554_v43  ;;  %v5612_v40 = vrot.slane %v9313_v30, 2  ;;  %v12851_v20 = vrot.slane %v7630_v57, 1 }
 0x3e9   : > { %8614 = vmatpush1.bf16.xpose.msra.mxu1 %v3488_v44  ;;  %v12845_v44 = vcombine.low %v4692_v59, %v12681_v21  ;;  %v12853_v16 = vrot.slane %v7633_v11, 2  ;;  %v10070_v39 = vld [vmem:[#allocation2 + $0x80] ss:$0 sps:$4 sm:$0x33]   ;;  %v6550_v46 = vsel %vm2998_vm6, %v6541_v47, %v6549_v56  ;;  %v7624_v21 = vrot.slane %v7622_v52, 1 }
 0x3ea   : > { %v12837_v24 = vpop.permute.xlu0 %8048  ;;  %8615 = vmatprep.subr.bf16.mxu1 %v8347_v10  ;;  %5550 = vrot.lane.b32.xlu1 %v5429_v8, %s10322_s10  ;;  %v1344_v8 = vpack.c.bf16 %v1301_v12, %v1300_v33  ;;  %v7627_v4 = vrot.slane %v7625_v45, 2  ;;  %v10196_v59 = vld [vmem:[#allocation2 + $0x34] sm:$0xf]  ;;  %v5614_v43 = vsel %vm3351_vm12, %v5612_v40, %v5613_v34  ;;  %v6524_v30 = vor.u32 %v12835_v41, %v12833_v23  ;;  %v10197_v57 = vld [vmem:[#allocation2 + $0x38] ss:$0 sps:$4 sm:$0x33]  }
 0x3eb   : > { %14468 = vst [vmem:[#allocation33_spill] sm:$0xff] %v12837_v24  ;;  %v12849_v3 = vpop.permute.xlu1 %5204  ;;  %v9157_v18 = vcombine.low %v2456_v19, %v10196_v59  ;;  %v3365_v11 = vrot.slane %v10197_v57, 2  ;;  %v10198_v10 = vld [vmem:[#allocation2 + $0xd0] sm:$0xf]  ;;  %v6532_v42 = vor.u32 %v12842_v25, %v12840_v26  ;;  %v5397_v47 = vshrl.u32 %v12845_v44, 16 }
 0x3ec   : > { %6189 = vrot.lane.b32.xlu0 %v6088_v28, %s10321_s30  ;;  %v9328_v33 = vcombine.low %v4731_v27, %v10198_v10  ;;  %9663 = vmatprep.mubr.msk.bf16.mxu1 %vm1391_vm7, %v1344_v8  ;;  %v6892_v28 = vld [vmem:[#allocation2 + $0x84] sm:$0xf]  ;;  %v6890_v34 = vld [vmem:[#allocation2 + $0x78] sm:$0xf]  ;;  %v1302_v56 = vmax.f32 %v1190_v0, 0.0  ;;  %v1193_v52 = vadd.f32 %v12807_v14, %v12604_v13  ;;  %v7636_v23 = vor.u32 %v12853_v16, %v12851_v20 }
 0x3ed   : > { %v5400_v41 = vshll.u32 %v12845_v44, 16  ;;  %v5405_v19 = vshrl.u32 %v10070_v39, 16  ;;  %v5408_v12 = vshll.u32 %v10070_v39, 16  ;;  %v6891_v27 = vld [vmem:[#allocation2 + $0x7c] sm:$0xf]  ;;  %v7628_v40 = vor.u32 %v7627_v4, %v7624_v21 }
 0x3ee   : > { %v12864_v36 = vpop.permute.xlu0 %5076  ;;  %6671 = vrot.lane.b32.xlu1 %v6550_v46, %s10322_s10  ;;  %v3364_v26 = vrot.slane %v9157_v18, 2  ;;  %v5157_v25 = vrot.slane %v12723_v15, 1  ;;  %v1303_v8 = vmax.f32 %v1193_v52, 0.0  ;;  %v8343_v13 = vsel %vm3400_vm8, %v3369_v61, %v12673_v29  ;;  %v2455_v16 = vld [vmem:[#allocation2 + $0x24] sm:$0xc] }
 0x3ef   : > { %v12872_v45 = vpop.permute.xlu1 %5556  ;;  %v5156_v0 = vrot.slane %v12845_v44, 1  ;;  %v5657_v20 = vrot.slane %v9328_v33, 2  ;;  %v12884_v46 = vcombine.low %v6892_v28, %v12802_v54  ;;  %v10199_v15 = vld [vmem:[#allocation2 + $0xd4] ss:$0 sps:$4 sm:$0x33]   ;;  %v5402_v44 = vrot.slane %v5400_v41, 2 }
 0x3f0   : > { %6317 = vrot.lane.b32.xlu0 %v6279_v38, %s10320_s29  ;;  %v5658_v21 = vrot.slane %v10199_v15, 2  ;;  %v3610_v4 = vld [vmem:[#allocation2 + $0xc0] sm:$0xc]  ;;  %v12889_v38 = vcombine.low %v6890_v34, %v6891_v27  ;;  %v1345_v59 = vpack.c.bf16 %v1303_v8, %v1302_v56  ;;  %v5407_v18 = vrot.slane %v5405_v19, 1  ;;  %v10200_v28 = vld [vmem:[#allocation2 + $0x28] sm:$0xf] }
 0x3f1   : > { %8616 = vmatpush1.bf16.xpose.msra.mxu1 %v12705_v37  ;;  %v5399_v37 = vrot.slane %v5397_v47, 1  ;;  %v5410_v57 = vrot.slane %v5408_v12, 2  ;;  %v12893_v10 = vld [vmem:[#allocation2 + $0x8c] ss:$0 sps:$4 sm:$0x11]   ;;  %v1198_v54 = vadd.f32 %v12807_v14, %v12668_v35  ;;  %v6533_v33 = vsel %vm2998_vm6, %v6524_v30, %v6532_v42 }
 0x3f2   : > { %v12886_v39 = vpop.permute.xlu0 %6197  ;;  %8617 = vmatprep.subr.bf16.mxu1 %v8343_v13  ;;  %8129 = vrot.lane.b32.xlu1 %v5614_v43, %s10320_s29  ;;  %v3366_v43 = vsel %vm3351_vm12, %v3364_v26, %v3365_v11  ;;  %v9156_v47 = vcombine.low %v2455_v16, %v10200_v28  ;;  %v12899_v52 = vld [vmem:[#allocation2 + $0x80] ss:$0 sps:$4 sm:$0x11]   ;;  %v1201_v34 = vadd.f32 %v12807_v14, %v12693_v7  ;;  %v7189_v35 = vshll.u32 %v12884_v46, 16  ;;  %v6932_v30 = vld [vmem:[#allocation2 + $0x78] sm:$0xe] }
 0x3f3   : > { %v12891_v61 = vpop.permute.xlu1 %6677  ;;  %9664 = vmatmul.mubr.msk.bf16.gmra.mxu1 %vm1391_vm7, %v1345_v59  ;;  %v7637_v56 = vsel %vm2998_vm6, %v7628_v40, %v7636_v23  ;;  %v5158_v41 = vsel %vm2869_vm5, %v5156_v0, %v5157_v25  ;;  %v1304_v42 = vmax.f32 %v1198_v54, 0.0  ;;  %v5659_v19 = vsel %vm3351_vm12, %v5657_v20, %v5658_v21  ;;  %v10201_v7 = vld [vmem:[#allocation2 + $0xc4] sm:$0xf]  ;;  %v10077_v8 = vld [vmem:[#allocation2 + $0x80] ss:$0 sps:$4 sm:$0x33]   ;;  %v1213_v59 = vpop.f32.mrf.mxu0 }
 0x3f4   : > { %6669 = vrot.lane.b32.xlu0 %v6533_v33, %s10322_s10  ;;  %v9248_v12 = vcombine.low %v3610_v4, %v10201_v7  ;;  %v7177_v26 = vshll.u32 %v12889_v38, 16  ;;  %v1305_v13 = vmax.f32 %v1201_v34, 0.0  ;;  %v5403_v40 = vor.u32 %v5402_v44, %v5399_v37  ;;  %v10202_v0 = vld [vmem:[#allocation2 + $0x2c] ss:$0 sps:$4 sm:$0x33]  }
 0x3f5   : > { %v5411_v25 = vor.u32 %v5410_v57, %v5407_v18  ;;  %v3362_v16 = vrot.slane %v10202_v0, 2  ;;  %v7194_v15 = vshll.u32 %v12893_v10, 16  ;;  %v3361_v54 = vrot.slane %v9156_v47, 2  ;;  %v1215_v18 = vpop.f32.mrf.mxu0  ;;  %v10240_v24 = vld [vmem:[#allocation2 + $0xa0] sm:$0xf] }
 0x3f6   : > { %v12908_v11 = vpop.permute.xlu0 %6325  ;;  %8224 = vrot.lane.b32.xlu1 %v12590_v58, %s10322_s10  ;;  %v7187_v58 = vshrl.u32 %v12884_v46, 16  ;;  %v12918_v33 = vcombine.low %v6932_v30, %v6891_v27  ;;  %v1346_v20 = vpack.c.bf16 %v1305_v13, %v1304_v42  ;;  %v8339_v21 = vsel %vm3400_vm8, %v3366_v43, %v12596_v63 }
 0x3f7   : > { %v12914_v23 = vpop.permute.xlu1 %8141  ;;  %v7191_v37 = vrot.slane %v7189_v35, 1  ;;  %v7175_v4 = vshrl.u32 %v12889_v38, 16  ;;  %v7182_v44 = vshll.u32 %v12899_v52, 16  ;;  %v7179_v27 = vrot.slane %v7177_v26, 1  ;;  %v1216_v7 = vpop.f32.mrf.mxu0 }
 0x3f8   : > { %14469 = vst [vmem:[#allocation51_spill] sm:$0xff] %v12914_v23  ;;  %7788 = vrot.lane.b32.xlu0 %v7637_v56, %s10322_s10  ;;  %v7613_v28 = vshrl.u32 %v10077_v8, 16  ;;  %v7616_v47 = vshll.u32 %v10077_v8, 16  ;;  %v5412_v43 = vsel %vm2998_vm6, %v5403_v40, %v5411_v25  ;;  %v4536_v56 = vrot.slane %v9248_v12, 2  ;;  %9667 = vmatprep.mubr.msk.bf16.mxu1 %vm1391_vm7, %v1346_v20  ;;  %v5844_v12 = vld [vmem:[#allocation2 + $0x78] sm:$0xc] }
 0x3f9   : > { %8618 = vmatpush1.bf16.xpose.msra.mxu1 %v12617_v9  ;;  %v1206_v9 = vadd.f32 %v12807_v14, %v12736_v49  ;;  %v10203_v35 = vld [vmem:[#allocation2 + $0xc8] ss:$0 sps:$4 sm:$0x33]   ;;  %v7196_v42 = vrot.slane %v7194_v15, 1  ;;  %v3363_v13 = vsel %vm3351_vm12, %v3361_v54, %v3362_v16  ;;  %v7605_v26 = vshrl.u32 %v12918_v33, 16  ;;  %v1218_v15 = vpop.f32.mrf.mxu0 }
 0x3fa   : > { %v12926_v57 = vpop.permute.xlu0 %8139  ;;  %8619 = vmatprep.subr.bf16.mxu1 %v8339_v21  ;;  %5196 = vrot.lane.b32.xlu1 %v5158_v41, %s10320_s29  ;;  %v4537_v30 = vrot.slane %v10203_v35, 2  ;;  %v7395_v41 = vrot.slane %v12813_v17, 1  ;;  %v7608_v8 = vshll.u32 %v12918_v33, 16  ;;  %v7192_v49 = vor.u32 %v7191_v37, %v7187_v58  ;;  %v2454_v37 = vld [vmem:[#allocation2 + $0x18] sm:$0xc] }
 0x3fb   : > { %14470 = vst [vmem:[#allocation14_spill] sm:$0xff] %v12926_v57  ;;  %v12931_v34 = vpop.permute.xlu1 %8236  ;;  %v7396_v40 = vrot.slane %v12893_v10, 1  ;;  %v1306_v25 = vmax.f32 %v1206_v9, 0.0  ;;  %v1209_v0 = vadd.f32 %v12807_v14, %v12756_v2  ;;  %v7180_v17 = vor.u32 %v7179_v27, %v7175_v4  ;;  %v10204_v15 = vld [vmem:[#allocation2 + $0x1c] sm:$0xf] }
 0x3fc   : > { %14471 = vst [vmem:[#allocation43_spill] sm:$0xff] %v12931_v34  ;;  %8189 = vrot.lane.b32.xlu0 %v5659_v19, %s10320_s29  ;;  %v7184_v16 = vrot.slane %v7182_v44, 1  ;;  %v12946_v54 = vrot.slane %v7613_v28, 1  ;;  %v12948_v21 = vrot.slane %v7616_v47, 2  ;;  %v4730_v19 = vld [vmem:[#allocation2 + $0xc0] sm:$0xc]  ;;  %v4538_v58 = vsel %vm3351_vm12, %v4536_v56, %v4537_v30 }
 0x3fd   : > { %v8335_v10 = vsel %vm3400_vm8, %v3363_v13, %v12386_v31  ;;  %v1307_v18 = vmax.f32 %v1209_v0, 0.0  ;;  %v1214_v2 = vadd.f32 %v12807_v14, %v1213_v59  ;;  %v7607_v9 = vrot.slane %v7605_v26, 1  ;;  %v10205_v4 = vld [vmem:[#allocation2 + $0x7c] sm:$0xf]  ;;  %v6888_v27 = vld [vmem:[#allocation2 + $0x6c] sm:$0xf] }
 0x3fe   : > { %v12943_v20 = vpop.permute.xlu0 %8044  ;;  %5548 = vrot.lane.b32.xlu1 %v5412_v43, %s10322_s10  ;;  %v7610_v35 = vrot.slane %v7608_v8, 2  ;;  %v9155_v43 = vcombine.low %v2454_v37, %v10204_v15  ;;  %v9400_v44 = vcombine.low %v5844_v12, %v10205_v4  ;;  %v6889_v28 = vld [vmem:[#allocation2 + $0x70] sm:$0xf]  ;;  %v12954_v47 = vpop.f32.mrf.mxu0  ;;  %v7197_v56 = vsel %vm2596_vm4, %v7192_v49, %v7196_v42  ;;  %v10206_v30 = vld [vmem:[#allocation2 + $0xc4] sm:$0xf] }
 0x3ff   : > { %14472 = vst [vmem:[#allocation45_spill] sm:$0xff] %v12943_v20  ;;  %v12956_v34 = vpop.permute.xlu1 %5202  ;;  %v9327_v59 = vcombine.low %v4730_v19, %v10206_v30  ;;  %v1347_v13 = vpack.c.bf16 %v1307_v18, %v1306_v25  ;;  %v7185_v8 = vsel %vm2596_vm4, %v7180_v17, %v7184_v16  ;;  %v7397_v12 = vsel %vm2869_vm5, %v7395_v41, %v7396_v40  ;;  %v2453_v42 = vld [vmem:[#allocation2 + $0xc] sm:$0xc]  ;;  %v10208_v16 = vld [vmem:[#allocation2 + $0x80] ss:$0 sps:$4 sm:$0x33]  }
 0x400   : > { %8092 = vrot.lane.b32.xlu0 %v4538_v58, %s10321_s30  ;;  %v7619_v0 = vor.u32 %v12948_v21, %v12946_v54  ;;  %v1223_v37 = vpop.f32.mrf.mxu0  ;;  %v10207_v58 = vld [vmem:[#allocation2 + $0x20] ss:$0 sps:$4 sm:$0x33]   ;;  %v12968_v49 = vcombine.low %v6888_v27, %v6889_v28  ;;  %v1308_v25 = vmax.f32 %v1214_v2, 0.0  ;;  %v1217_v19 = vadd.f32 %v12807_v14, %v1216_v7  ;;  %v6931_v27 = vld [vmem:[#allocation2 + $0x6c] sm:$0xe] }
 0x401   : > { %8620 = vmatpush1.bf16.xpose.msra.mxu1 %v12594_v22  ;;  %v3609_v22 = vld [vmem:[#allocation2 + $0xb4] sm:$0xc]  ;;  %v3359_v15 = vrot.slane %v10207_v58, 2  ;;  %v3358_v18 = vrot.slane %v9155_v43, 2  ;;  %v6754_v17 = vrot.slane %v9400_v44, 2  ;;  %v6755_v41 = vrot.slane %v10208_v16, 2 }
 0x402   : > { %v12961_v26 = vpop.permute.xlu0 %5074  ;;  %8621 = vmatprep.subr.bf16.mxu1 %v8335_v10  ;;  %7308 = vrot.lane.b32.xlu1 %v7197_v56, %s10321_s30  ;;  %14473 = vst [vmem:[#allocation40_spill] sm:$0xff] %v12968_v49  ;;  %v7611_v10 = vor.u32 %v7610_v35, %v7607_v9  ;;  %v1224_v40 = vpop.f32.mrf.mxu0  ;;  %v5654_v54 = vrot.slane %v9327_v59, 2  ;;  %v10209_v21 = vld [vmem:[#allocation2 + $0xc8] ss:$0 sps:$4 sm:$0x33]   ;;  %v1309_v37 = vmax.f32 %v1217_v19, 0.0 }
 0x403   : > { %9668 = vmatmul.mubr.msk.bf16.gmra.mxu1 %vm1391_vm7, %v1347_v13  ;;  %v5655_v4 = vrot.slane %v10209_v21, 2  ;;  %v10210_v56 = vld [vmem:[#allocation2 + $0xb8] sm:$0xf]  ;;  %v14474_v2 = vld [vmem:[#allocation8_spill] sm:$0xff]  ;;  %v14476_v9 = vld [vmem:[#allocation39_spill] sm:$0xff]  ;;  %v12991_v16 = vpop.permute.xlu1 %5554  ;;  %v3360_v21 = vsel %vm3351_vm12, %v3358_v18, %v3359_v15 }
 0x404   : > { %7306 = vrot.lane.b32.xlu0 %v7185_v8, %s10321_s30  ;;  %v9247_v30 = vcombine.low %v3609_v22, %v10210_v56  ;;  %v14475_v58 = vld [vmem:[#allocation4_spill] sm:$0xff]  ;;  %v12981_v35 = vsel %vm3465_vm9, %v12545_v6, %v14476_v9  ;;  %v14477_v43 = vld [vmem:[#allocation47_spill] sm:$0xff]  ;;  %v10211_v13 = vld [vmem:[#allocation2 + $0x10] sm:$0xf]  ;;  %v1226_v19 = vpop.f32.mrf.mxu0  ;;  %v7620_v9 = vsel %vm2998_vm6, %v7611_v10, %v7619_v0  ;;  %v1222_v0 = vadd.f32 %v12807_v14, %v12954_v47 }
 0x405   : > { %v12976_v7 = vsel %vm3400_vm8, %v14475_v58, %v14474_v2  ;;  %v3476_v44 = vsel %vm3465_vm9, %v12567_v48, %v14477_v43  ;;  %v9154_v8 = vcombine.low %v2453_v42, %v10211_v13  ;;  %v12989_v22 = vld [vmem:[#allocation2 + $0x74] ss:$0 sps:$4 sm:$0x11]   ;;  %v14478_v56 = vld [vmem:[#allocation28_spill] sm:$0xff]  ;;  %v7165_v2 = vshll.u32 %v12968_v49, 16 }
 0x406   : > { %v12986_v59 = vpop.permute.xlu0 %6195  ;;  %7436 = vrot.lane.b32.xlu1 %v7397_v12, %s10320_s29  ;;  %v6876_v6 = vsel %vm3465_vm9, %v12536_v5, %v14478_v56  ;;  %v10083_v48 = vld [vmem:[#allocation2 + $0x74] ss:$0 sps:$4 sm:$0x33]   ;;  %v1348_v58 = vpack.c.bf16 %v1309_v37, %v1308_v25  ;;  %v8331_v12 = vsel %vm3400_vm8, %v3360_v21, %v12364_v50  ;;  %v6756_v42 = vsel %vm3351_vm12, %v6754_v17, %v6755_v41  ;;  %v5843_v43 = vld [vmem:[#allocation2 + $0x6c] sm:$0xc]  ;;  %v1229_v19 = vpop.f32.mrf.mxu0 }
 0x407   : > { %v13002_v13 = vcombine.low %v6931_v27, %v6889_v28  ;;  %v5656_v5 = vsel %vm3351_vm12, %v5654_v54, %v5655_v4  ;;  %v4533_v15 = vrot.slane %v9247_v30, 2  ;;  %v10212_v18 = vld [vmem:[#allocation2 + $0xbc] ss:$0 sps:$4 sm:$0x33]   ;;  %v3355_v10 = vrot.slane %v9154_v8, 2 }
 0x408   : > { %7786 = vrot.lane.b32.xlu0 %v7620_v9, %s10322_s10  ;;  %v4534_v56 = vrot.slane %v10212_v18, 2  ;;  %v10213_v28 = vld [vmem:[#allocation2 + $0x14] ss:$0 sps:$4 sm:$0x33]   ;;  %v7163_v41 = vshrl.u32 %v12968_v49, 16  ;;  %v7170_v27 = vshll.u32 %v12989_v22, 16  ;;  %v1231_v54 = vpop.f32.mrf.mxu0  ;;  %9671 = vmatprep.mubr.msk.bf16.mxu1 %vm1391_vm7, %v1348_v58  ;;  %v1230_v31 = vadd.f32 %v12807_v14, %v1229_v19 }
 0x409   : > { %8622 = vmatpush1.bf16.xpose.msra.mxu1 %v3476_v44  ;;  %v3356_v17 = vrot.slane %v10213_v28, 2  ;;  %v2452_v37 = vld [vmem:[#allocation2] sm:$0xc]  ;;  %v7167_v4 = vrot.slane %v7165_v2, 1  ;;  %v10214_v30 = vld [vmem:[#allocation2 + $0x70] sm:$0xf]  ;;  %v13017_v28 = vpop.permute.xlu1 %6675 }
 0x40a   : > { %v13008_v25 = vpop.permute.xlu0 %6323  ;;  %8623 = vmatprep.subr.bf16.mxu1 %v8331_v12  ;;  %8254 = vrot.lane.b32.xlu1 %v6756_v42, %s10322_s10  ;;  %v9399_v44 = vcombine.low %v5843_v43, %v10214_v30  ;;  %v7596_v21 = vshrl.u32 %v10083_v48, 16  ;;  %v7599_v9 = vshll.u32 %v10083_v48, 16  ;;  %v7588_v47 = vshrl.u32 %v13002_v13, 16  ;;  %v1232_v18 = vpop.f32.mrf.mxu0  ;;  %v10215_v54 = vld [vmem:[#allocation2 + $0x4] sm:$0xf] }
 0x40b   : > { %v7591_v12 = vshll.u32 %v13002_v13, 16  ;;  %v1310_v8 = vmax.f32 %v1222_v0, 0.0  ;;  %v1225_v42 = vadd.f32 %v12807_v14, %v1224_v40  ;;  %v4535_v2 = vsel %vm3351_vm12, %v4533_v15, %v4534_v56  ;;  %v10216_v15 = vld [vmem:[#allocation2 + $0x74] ss:$0 sps:$4 sm:$0x33]  }
 0x40c   : > { %8185 = vrot.lane.b32.xlu0 %v5656_v5, %s10320_s29  ;;  %v7392_v43 = vrot.slane %v12918_v33, 1  ;;  %v7393_v48 = vrot.slane %v12899_v52, 1  ;;  %v9153_v58 = vcombine.low %v2452_v37, %v10215_v54  ;;  %v3357_v0 = vsel %vm3351_vm12, %v3355_v10, %v3356_v17  ;;  %v1234_v20 = vpop.f32.mrf.mxu0  ;;  %v4729_v23 = vld [vmem:[#allocation2 + $0xb4] sm:$0xc] }
 0x40d   : > { %v7172_v40 = vrot.slane %v7170_v27, 1  ;;  %v1311_v50 = vmax.f32 %v1225_v42, 0.0  ;;  %v7168_v5 = vor.u32 %v7167_v4, %v7163_v41  ;;  %v6751_v57 = vrot.slane %v9399_v44, 2  ;;  %v10217_v17 = vld [vmem:[#allocation2 + $0x8] ss:$0 sps:$4 sm:$0x33]  }
 0x40e   : > { %v13023_v30 = vpop.permute.xlu0 %8135  ;;  %8284 = vrot.lane.b32.xlu1 %v6876_v6, %s10322_s10  ;;  %v6752_v56 = vrot.slane %v10216_v15, 2  ;;  %v7598_v33 = vrot.slane %v7596_v21, 1  ;;  %v7590_v52 = vrot.slane %v7588_v47, 1  ;;  %v7593_v63 = vrot.slane %v7591_v12, 2  ;;  %v14480_v6 = vld [vmem:[#allocation89_spill] sm:$0xff]  ;;  %v14482_v21 = vld [vmem:[#allocation3_spill] sm:$0xff] }
 0x40f   : > { %14479 = vst [vmem:[#allocation55_spill] sm:$0xff] %v13023_v30  ;;  %v7601_v37 = vrot.slane %v7599_v9, 2  ;;  %v1349_v54 = vpack.c.bf16 %v1311_v50, %v1310_v8  ;;  %v1237_v30 = vpop.f32.mrf.mxu0  ;;  %v8327_v10 = vsel %vm3400_vm8, %v3357_v0, %v14480_v6  ;;  %v7394_v20 = vsel %vm2869_vm5, %v7392_v43, %v7393_v48  ;;  %v6886_v27 = vld [vmem:[#allocation2 + $0x60] sm:$0xf]  ;;  %v6887_v4 = vld [vmem:[#allocation2 + $0x64] sm:$0xf] }
 0x410   : > { %8088 = vrot.lane.b32.xlu0 %v4535_v2, %s10321_s30  ;;  %v3352_v19 = vrot.slane %v9153_v58, 2  ;;  %v3353_v41 = vrot.slane %v10217_v17, 2  ;;  %v14481_v44 = vld [vmem:[#allocation5_spill] sm:$0xff]  ;;  %v1312_v12 = vmax.f32 %v1230_v31, 0.0  ;;  %v1233_v8 = vadd.f32 %v12807_v14, %v1232_v18  ;;  %v14485_v48 = vld [vmem:[#allocation71_spill] sm:$0xff] }
 0x411   : > { %8624 = vmatpush1.bf16.xpose.msra.mxu1 %v12981_v35  ;;  %v3402_v9 = vsel %vm3400_vm8, %v14482_v21, %v14481_v44  ;;  %v10218_v35 = vld [vmem:[#allocation2 + $0xb8] sm:$0xf]  ;;  %v1239_v42 = vpop.f32.mrf.mxu0  ;;  %v14484_v2 = vld [vmem:[#allocation9_spill] sm:$0xff]  ;;  %v14486_v58 = vld [vmem:[#allocation107_spill] sm:$0xff]  ;;  %v7173_v15 = vsel %vm2596_vm4, %v7168_v5, %v7172_v40  ;;  %v7594_v31 = vor.u32 %v7593_v63, %v7590_v52  ;;  %v7602_v18 = vor.u32 %v7601_v37, %v7598_v33 }
 0x412   : > { %v13036_v50 = vpop.permute.xlu0 %8040  ;;  %8625 = vmatprep.subr.bf16.mxu1 %v8327_v10  ;;  %7434 = vrot.lane.b32.xlu1 %v7394_v20, %s10320_s29  ;;  %v9326_v47 = vcombine.low %v4729_v23, %v10218_v35  ;;  %v3436_v43 = vsel %vm1391_vm7, %v12976_v7, %v14484_v2  ;;  %v5687_v0 = vsel %vm3400_vm8, %v14486_v58, %v14485_v48  ;;  %v3608_v17 = vld [vmem:[#allocation2 + $0xa8] sm:$0xc]  ;;  %v13049_v23 = vpop.permute.xlu1 %8137  ;;  %v6930_v44 = vld [vmem:[#allocation2 + $0x60] sm:$0xe]  ;;  %v1313_v21 = vmax.f32 %v1233_v8, 0.0  ;;  %v14490_v48 = vld [vmem:[#allocation26_spill] sm:$0xff] }
 0x413   : > { %14483 = vst [vmem:[#allocation16_spill] sm:$0xff] %v13036_v50  ;;  %v6753_v10 = vsel %vm3351_vm12, %v6751_v57, %v6752_v56  ;;  %9672 = vmatmul.mubr.msk.bf16.gmra.mxu1 %vm1391_vm7, %v1349_v54  ;;  %14487 = vst [vmem:[#allocation73_spill] sm:$0xff] %v13049_v23  ;;  %v13051_v20 = vcombine.low %v6886_v27, %v6887_v4  ;;  %v1240_v7 = vpop.f32.mrf.mxu0  ;;  %v3354_v35 = vsel %vm3351_vm12, %v3352_v19, %v3353_v41  ;;  %v10219_v5 = vld [vmem:[#allocation2 + $0xbc] ss:$0 sps:$4 sm:$0x33]   ;;  %v14489_v2 = vld [vmem:[#allocation7_spill] sm:$0xff] }
 0x414   : > { %7304 = vrot.lane.b32.xlu0 %v7173_v15, %s10321_s30  ;;  %v7389_v40 = vrot.slane %v13002_v13, 1  ;;  %v7390_v57 = vrot.slane %v12989_v22, 1  ;;  %v5652_v56 = vrot.slane %v10219_v5, 2  ;;  %v5651_v63 = vrot.slane %v9326_v47, 2  ;;  %v10220_v33 = vld [vmem:[#allocation2 + $0xac] sm:$0xf] }
 0x415   : > { %14488 = vst [vmem:[#allocation20_spill] sm:$0xff] %v13051_v20  ;;  %v9246_v52 = vcombine.low %v3608_v17, %v10220_v33  ;;  %v5842_v37 = vld [vmem:[#allocation2 + $0x60] sm:$0xc]  ;;  %v1350_v27 = vpack.c.bf16 %v1313_v21, %v1312_v12  ;;  %v1238_v8 = vadd.f32 %v12807_v14, %v1237_v30  ;;  %v1242_v42 = vpop.f32.mrf.mxu0  ;;  %v3434_v19 = vsel %vm1391_vm7, %v3402_v9, %v14489_v2  ;;  %v13063_v13 = vld [vmem:[#allocation2 + $0x68] ss:$0 sps:$4 sm:$0x11]  }
 0x416   : > { %v13057_v54 = vpop.permute.xlu0 %8151  ;;  %8250 = vrot.lane.b32.xlu1 %v6753_v10, %s10322_s10  ;;  %v13065_v22 = vcombine.low %v6930_v44, %v6887_v4  ;;  %v10088_v41 = vld [vmem:[#allocation2 + $0x68] ss:$0 sps:$4 sm:$0x33]   ;;  %v3470_v58 = vsel %vm3465_vm9, %v3436_v43, %v14490_v48  ;;  %v14491_v15 = vld [vmem:[#allocation69_spill] sm:$0xff]  ;;  %v7603_v10 = vsel %vm2998_vm6, %v7594_v31, %v7602_v18  ;;  %v7153_v12 = vshll.u32 %v13051_v20, 16  ;;  %v14492_v30 = vld [vmem:[#allocation31_spill] sm:$0xff]  ;;  %v13078_v5 = vpop.permute.xlu1 %8244 }
 0x417   : > { %v5719_v47 = vsel %vm1391_vm7, %v5687_v0, %v14491_v15  ;;  %9675 = vmatprep.mubr.msk.bf16.mxu1 %vm1391_vm7, %v1350_v27  ;;  %v8323_v4 = vsel %vm3400_vm8, %v3354_v35, %v14492_v30  ;;  %v7391_v9 = vsel %vm2869_vm5, %v7389_v40, %v7390_v57  ;;  %v10221_v17 = vld [vmem:[#allocation2 + $0xb0] ss:$0 sps:$4 sm:$0x33]   ;;  %v10222_v43 = vld [vmem:[#allocation2 + $0x64] sm:$0xf]  ;;  %v5653_v31 = vsel %vm3351_vm12, %v5651_v63, %v5652_v56  ;;  %v14494_v15 = vld [vmem:[#allocation94_spill] sm:$0xff] }
 0x418   : > { %7784 = vrot.lane.b32.xlu0 %v7603_v10, %s10322_s10  ;;  %v4531_v44 = vrot.slane %v10221_v17, 2  ;;  %v9398_v21 = vcombine.low %v5842_v37, %v10222_v43  ;;  %v4530_v18 = vrot.slane %v9246_v52, 2  ;;  %v1314_v33 = vmax.f32 %v1238_v8, 0.0  ;;  %v10223_v63 = vld [vmem:[#allocation2 + $0x68] ss:$0 sps:$4 sm:$0x33]  }
 0x419   : > { %8626 = vmatpush1.bf16.xpose.msra.mxu1 %v3470_v58  ;;  %v1241_v27 = vadd.f32 %v12807_v14, %v1240_v7  ;;  %v7151_v35 = vshrl.u32 %v13051_v20, 16  ;;  %v7158_v40 = vshll.u32 %v13063_v13, 16  ;;  %v7571_v57 = vshrl.u32 %v13065_v22, 16  ;;  %v14495_v52 = vld [vmem:[#allocation27_spill] sm:$0xff]  ;;  %v4728_v17 = vld [vmem:[#allocation2 + $0xa8] sm:$0xc] }
 0x41a   : > { %v13080_v0 = vpop.permute.xlu0 %8062  ;;  %8627 = vmatprep.subr.bf16.mxu1 %v8323_v4  ;;  %7432 = vrot.lane.b32.xlu1 %v7391_v9, %s10320_s29  ;;  %v7579_v37 = vshrl.u32 %v10088_v41, 16  ;;  %v7155_v42 = vrot.slane %v7153_v12, 1  ;;  %v7574_v2 = vshll.u32 %v13065_v22, 16  ;;  %v7582_v48 = vshll.u32 %v10088_v41, 16  ;;  %v6884_v43 = vld [vmem:[#allocation2 + $0x54] sm:$0xf] }
 0x41b   : > { %14493 = vst [vmem:[#allocation41_spill] sm:$0xff] %v13080_v0  ;;  %v1315_v58 = vmax.f32 %v1241_v27, 0.0  ;;  %v5751_v10 = vsel %vm3465_vm9, %v5719_v47, %v14494_v15  ;;  %v6748_v56 = vrot.slane %v9398_v21, 2  ;;  %v6749_v14 = vrot.slane %v10223_v63, 2  ;;  %v13098_v47 = vpop.permute.xlu1 %8248  ;;  %v6885_v63 = vld [vmem:[#allocation2 + $0x58] sm:$0xf] }
 0x41c   : > { %8181 = vrot.lane.b32.xlu0 %v5653_v31, %s10320_s29  ;;  %v3467_v8 = vsel %vm3465_vm9, %v3434_v19, %v14495_v52  ;;  %v4532_v12 = vsel %vm3351_vm12, %v4530_v18, %v4531_v44  ;;  %v7160_v41 = vrot.slane %v7158_v40, 1  ;;  %v7581_v9 = vrot.slane %v7579_v37, 1  ;;  %v10226_v52 = vld [vmem:[#allocation2 + $0x58] sm:$0xf]  ;;  %v6883_v30 = vld [vmem:[#allocation2 + $0x4c] sm:$0xf] }
 0x41d   : > { %v1351_v7 = vpack.c.bf16 %v1315_v58, %v1314_v33  ;;  %v7156_v31 = vor.u32 %v7155_v42, %v7151_v35  ;;  %v7573_v21 = vrot.slane %v7571_v57, 1  ;;  %v7576_v27 = vrot.slane %v7574_v2, 2  ;;  %v10224_v33 = vld [vmem:[#allocation2 + $0xac] sm:$0xf]  ;;  %v5841_v35 = vld [vmem:[#allocation2 + $0x54] sm:$0xc] }
 0x41e   : > { %8179 = vrot.lane.b32.xlu1 %v5751_v10, %s10320_s29  ;;  %v13095_v4 = vpop.permute.xlu0 %8155  ;;  %v7584_v15 = vrot.slane %v7582_v48, 2  ;;  %v6750_v19 = vsel %vm3351_vm12, %v6748_v56, %v6749_v14  ;;  %v7386_v44 = vrot.slane %v13065_v22, 1  ;;  %v7387_v18 = vrot.slane %v13063_v13, 1  ;;  %v14496_v57 = vld [vmem:[#allocation44_spill] sm:$0xff]  ;;  %v3607_v42 = vld [vmem:[#allocation2 + $0x9c] sm:$0xc] }
 0x41f   : > { %9676 = vmatmul.mubr.msk.bf16.gmra.mxu1 %vm1391_vm7, %v1351_v7  ;;  %v9325_v40 = vcombine.low %v4728_v17, %v10224_v33  ;;  %v5685_v37 = vsel %vm3400_vm8, %v14496_v57, %v12864_v36  ;;  %v13109_v2 = vcombine.low %v6884_v43, %v6885_v63  ;;  %v7161_v48 = vsel %vm2596_vm4, %v7156_v31, %v7160_v41  ;;  %v6929_v56 = vld [vmem:[#allocation2 + $0x54] sm:$0xe]  ;;  %v10225_v14 = vld [vmem:[#allocation2 + $0xb0] ss:$0 sps:$4 sm:$0x33]   ;;  %v13133_v57 = vld [vmem:[%s14127_s5] sm:$0xff] }
 0x420   : > { %8084 = vrot.lane.b32.xlu0 %v4532_v12, %s10321_s30  ;;  %v7577_v58 = vor.u32 %v7576_v27, %v7573_v21  ;;  %v7585_v10 = vor.u32 %v7584_v15, %v7581_v9  ;;  %v7388_v13 = vsel %vm2869_vm5, %v7386_v44, %v7387_v18  ;;  %v5649_v7 = vrot.slane %v10225_v14, 2  ;;  %v13118_v12 = vpop.permute.xlu1 %8066  ;;  %v10227_v9 = vld [vmem:[#allocation2 + $0xa0] sm:$0xf]  ;;  %v13121_v21 = vld [vmem:[#allocation2 + $0x5c] ss:$0 sps:$4 sm:$0x11]  }
 0x421   : > { %8628 = vmatpush1.bf16.xpose.msra.mxu1 %v3467_v8  ;;  %14497 = vst [vmem:[#allocation57_spill] sm:$0xff] %v13109_v2  ;;  %v9397_v8 = vcombine.low %v5841_v35, %v10226_v52  ;;  %v5717_v36 = vsel %vm1391_vm7, %v5685_v37, %v12849_v3  ;;  %14499 = vst [vmem:[#allocation18_spill] sm:$0xff] %v13118_v12  ;;  %v5648_v41 = vrot.slane %v9325_v40, 2  ;;  %v10323_v43 = vmov 1983009808   ;;  %v14517_v23 = vld [vmem:[#allocation56_spill] sm:$0xff] }
 0x422   : > { %8246 = vrot.lane.b32.xlu1 %v6750_v19, %s10322_s10  ;;  %v13112_v22 = vpop.permute.xlu0 %8070  ;;  %v9245_v17 = vcombine.low %v3607_v42, %v10227_v9  ;;  %v8525_v31 = vunpack.c.l.s4 %v10323_v43  ;;  %v7141_v27 = vshll.u32 %v13109_v2, 16  ;;  %v13124_v15 = vcombine.low %v6929_v56, %v6885_v63  ;;  %v10093_v44 = vld [vmem:[#allocation2 + $0x5c] ss:$0 sps:$4 sm:$0x33]   ;;  %v10233_v6 = vld [vmem:[#allocation2 + $0x4c] sm:$0xf] }
 0x423   : > { %14498 = vst [vmem:[#allocation66_spill] sm:$0xff] %v13112_v22  ;;  %v7586_v19 = vsel %vm2998_vm6, %v7577_v58, %v7585_v10  ;;  %v5749_v3 = vsel %vm3465_vm9, %v5717_v36, %v12872_v45  ;;  %v6745_v33 = vrot.slane %v9397_v8, 2  ;;  %v10228_v40 = vld [vmem:[#allocation2 + $0x5c] ss:$0 sps:$4 sm:$0x33]   ;;  %v5650_v63 = vsel %vm3351_vm12, %v5648_v41, %v5649_v7 }
 0x424   : > { %7302 = vrot.lane.b32.xlu0 %v7161_v48, %s10321_s30  ;;  %v8526_v18 = vunpack.c.0.s8 %v8525_v31  ;;  %v6746_v35 = vrot.slane %v10228_v40, 2  ;;  %v4527_v37 = vrot.slane %v9245_v17, 2  ;;  %v10229_v42 = vld [vmem:[#allocation2 + $0xa4] ss:$0 sps:$4 sm:$0x33]   ;;  %v14500_v58 = vld [vmem:[#allocation10_spill] sm:$0xff]  ;;  %v13145_v8 = vpop.permute.xlu1 %8252 }
 0x425   : > { %v4528_v48 = vrot.slane %v10229_v42, 2  ;;  %v7139_v56 = vshrl.u32 %v13109_v2, 16  ;;  %v7146_v14 = vshll.u32 %v13121_v21, 16  ;;  %v7554_v52 = vshrl.u32 %v13124_v15, 16  ;;  %v14502_v17 = vld [vmem:[#allocation116_spill] sm:$0xff] }
 0x426   : > { %7430 = vrot.lane.b32.xlu1 %v7388_v13, %s10320_s29  ;;  %v13138_v10 = vsub.s32 %v8526_v18, %v14500_v58  ;;  %v13140_v45 = vpop.permute.xlu0 %8078  ;;  %v7143_v13 = vrot.slane %v7141_v27, 1  ;;  %v7557_v36 = vshll.u32 %v13124_v15, 16  ;;  %v7562_v7 = vshrl.u32 %v10093_v44, 16  ;;  %v6882_v58 = vld [vmem:[#allocation2 + $0x48] sm:$0xf] }
 0x427   : > { %14501 = vst [vmem:[#allocation74_spill] sm:$0xff] %v13140_v45  ;;  %v7565_v41 = vshll.u32 %v10093_v44, 16  ;;  %v6806_v43 = vsel %vm3400_vm8, %v14502_v17, %v12886_v39  ;;  %v6747_v31 = vsel %vm3351_vm12, %v6745_v33, %v6746_v35  ;;  %v7148_v42 = vrot.slane %v7146_v14, 1  ;;  %v2467_v39 = vld [vmem:[#allocation2 + $0xb4] sm:$0xc] }
 0x428   : > { %7782 = vrot.lane.b32.xlu0 %v7586_v19, %s10322_s10  ;;  %v13150_v9 = vrot.slane %v13133_v57, %v13138_v10  ;;  %v6838_v27 = vsel %vm1391_vm7, %v6806_v43, %v12908_v11  ;;  %v4727_v19 = vld [vmem:[#allocation2 + $0x9c] sm:$0xc]  ;;  %v7144_v40 = vor.u32 %v7143_v13, %v7139_v56  ;;  %v7559_v17 = vrot.slane %v7557_v36, 2  ;;  %v13170_v56 = vpop.permute.xlu1 %8074  ;;  %v5840_v13 = vld [vmem:[#allocation2 + $0x48] sm:$0xc] }
 0x429   : > { %v7564_v33 = vrot.slane %v7562_v7, 1  ;;  %v7567_v35 = vrot.slane %v7565_v41, 2  ;;  %v6870_v11 = vsel %vm3465_vm9, %v6838_v27, %v12891_v61  ;;  %v7383_v43 = vrot.slane %v13124_v15, 1  ;;  %14504 = vst [vmem:[#allocation53_spill] sm:$0xff] %v13170_v56  ;;  %v10231_v14 = vld [vmem:[#allocation2 + $0xb8] sm:$0xf] }
 0x42a   : > { %8175 = vrot.lane.b32.xlu1 %v5749_v3, %s10320_s29  ;;  %v8538_v44 = vcombine.high %v13150_v9, %v13150_v9  ;;  %v4529_v3 = vsel %vm3351_vm12, %v4527_v37, %v4528_v48  ;;  %v10230_v37 = vld [vmem:[#allocation2 + $0xa0] sm:$0xf]  ;;  %v14505_v36 = vld [vmem:[#allocation76_spill] sm:$0xff]  ;;  %v13178_v27 = vcombine.low %v6882_v58, %v6883_v30  ;;  %v9396_v2 = vcombine.low %v5840_v13, %v10233_v6 }
 0x42b   : > { %v9324_v48 = vcombine.low %v4727_v19, %v10230_v37  ;;  %v5683_v7 = vsel %vm3400_vm8, %v14505_v36, %v12961_v26  ;;  %v2466_v61 = vld [vmem:[#allocation2 + $0xa8] sm:$0xc]  ;;  %v3606_v37 = vld [vmem:[#allocation2 + $0x90] sm:$0xc] }
 0x42c   : > { %8177 = vrot.lane.b32.xlu0 %v5650_v63, %s10320_s29  ;;  %v7556_v63 = vrot.slane %v7554_v52, 1  ;;  %8645 = vmatprep.mubr.bf16.mxu1 %v8538_v44  ;;  %v9168_v52 = vcombine.low %v2467_v39, %v10231_v14  ;;  %14506 = vst [vmem:[#allocation60_spill] sm:$0xff] %v13178_v27  ;;  %v14507_v15 = vld [vmem:[#allocation88_spill] sm:$0xff]  ;;  %v7149_v44 = vsel %vm2596_vm4, %v7144_v40, %v7148_v42  ;;  %v10232_v26 = vld [vmem:[#allocation2 + $0xa4] ss:$0 sps:$4 sm:$0x33]  }
 0x42d   : > { %v5645_v14 = vrot.slane %v9324_v48, 2  ;;  %v5646_v36 = vrot.slane %v10232_v26, 2  ;;  %v6928_v58 = vld [vmem:[#allocation2 + $0x48] sm:$0xe]  ;;  %v5715_v50 = vsel %vm1391_vm7, %v5683_v7, %v12956_v34  ;;  %v7129_v48 = vshll.u32 %v13178_v27, 16  ;;  %v14511_v34 = vld [vmem:[#allocation114_spill] sm:$0xff] }
 0x42e   : > { %8242 = vrot.lane.b32.xlu1 %v6747_v31, %s10322_s10  ;;  %v13162_v18 = vpop.permute.xlu0 %8086  ;;  %v7384_v31 = vrot.slane %v13121_v21, 1  ;;  %v14508_v21 = vld [vmem:[#allocation106_spill] sm:$0xff]  ;;  %v14509_v6 = vld [vmem:[#allocation64_spill] sm:$0xff] }
 0x42f   : > { %14503 = vst [vmem:[#allocation21_spill] sm:$0xff] %v13162_v18  ;;  %v3432_v19 = vsel %vm3400_vm8, %v14508_v21, %v14507_v15  ;;  %v3397_v15 = vrot.slane %v9168_v52, 2  ;;  %v10234_v40 = vld [vmem:[#allocation2 + $0xbc] ss:$0 sps:$4 sm:$0x33]   ;;  %v13199_v52 = vpop.permute.xlu1 %8082  ;;  %v5647_v26 = vsel %vm3351_vm12, %v5645_v14, %v5646_v36 }
 0x430   : > { %8080 = vrot.lane.b32.xlu0 %v4529_v3, %s10321_s30  ;;  %v7560_v3 = vor.u32 %v7559_v17, %v7556_v63  ;;  %v7385_v39 = vsel %vm2869_vm5, %v7383_v43, %v7384_v31  ;;  %v3398_v42 = vrot.slane %v10234_v40, 2  ;;  %v10235_v63 = vld [vmem:[#allocation2 + $0xac] sm:$0xf]  ;;  %v13191_v31 = vld [vmem:[#allocation2 + $0x50] ss:$0 sps:$4 sm:$0x11]   ;;  %v3464_v13 = vsel %vm1391_vm7, %v3432_v19, %v14509_v6 }
 0x431   : > { %v9167_v17 = vcombine.low %v2466_v61, %v10235_v63  ;;  %v14510_v21 = vld [vmem:[#allocation30_spill] sm:$0xff]  ;;  %14512 = vst [vmem:[#allocation72_spill] sm:$0xff] %v13199_v52  ;;  %v13202_v61 = vcombine.low %v6928_v58, %v6883_v30  ;;  %v6742_v40 = vrot.slane %v9396_v2, 2  ;;  %v10237_v19 = vld [vmem:[#allocation2 + $0x50] ss:$0 sps:$4 sm:$0x33]  }
 0x432   : > { %8272 = vrot.lane.b32.xlu1 %v6870_v11, %s10322_s10  ;;  %v13176_v41 = vpop.permute.xlu0 %5072  ;;  %v7568_v11 = vor.u32 %v7567_v35, %v7564_v33  ;;  %v10236_v35 = vld [vmem:[#allocation2 + $0x94] sm:$0xf]  ;;  %v5689_v7 = vsel %vm3400_vm8, %v14511_v34, %v14510_v21  ;;  %v6743_v63 = vrot.slane %v10237_v19, 2  ;;  %v10238_v21 = vld [vmem:[#allocation2 + $0xb0] ss:$0 sps:$4 sm:$0x33]  }
 0x433   : > { %v9244_v43 = vcombine.low %v3606_v37, %v10236_v35  ;;  %v5747_v37 = vsel %vm3465_vm9, %v5715_v50, %v12991_v16  ;;  %v3399_v35 = vsel %vm3351_vm12, %v3397_v15, %v3398_v42  ;;  %v3394_v6 = vrot.slane %v9167_v17, 2  ;;  %v10239_v30 = vld [vmem:[#allocation2 + $0x98] ss:$0 sps:$4 sm:$0x33]   ;;  %v2465_v2 = vld [vmem:[#allocation2 + $0x9c] sm:$0xc] }
 0x434   : > { %7300 = vrot.lane.b32.xlu0 %v7149_v44, %s10321_s30  ;;  %v7569_v44 = vsel %vm2998_vm6, %v7560_v3, %v7568_v11  ;;  %v3395_v3 = vrot.slane %v10238_v21, 2  ;;  %v4525_v11 = vrot.slane %v10239_v30, 2  ;;  %v7127_v16 = vshrl.u32 %v13178_v27, 16  ;;  %v14515_v19 = vld [vmem:[#allocation19_spill] sm:$0xff]  ;;  %v14516_v30 = vld [vmem:[#allocation34_spill] sm:$0xff] }
 0x435   : > { %v4524_v34 = vrot.slane %v9244_v43, 2  ;;  %v7131_v50 = vrot.slane %v7129_v48, 1  ;;  %v7134_v14 = vshll.u32 %v13191_v31, 16  ;;  %v7540_v15 = vshll.u32 %v13202_v61, 16 }
 0x436   : > { %7428 = vrot.lane.b32.xlu1 %v7385_v39, %s10320_s29  ;;  %v13189_v33 = vpop.permute.xlu0 %6193  ;;  %v10099_v39 = vld [vmem:[#allocation2 + $0x50] ss:$0 sps:$4 sm:$0x33]   ;;  %v5721_v43 = vsel %vm1391_vm7, %v5689_v7, %v14516_v30  ;;  %v6744_v48 = vsel %vm3351_vm12, %v6742_v40, %v6743_v63  ;;  %v3396_v20 = vsel %vm3351_vm12, %v3394_v6, %v3395_v3 }
 0x437   : > { %v7545_v42 = vshrl.u32 %v10099_v39, 16  ;;  %v7548_v17 = vshll.u32 %v10099_v39, 16  ;;  %v3512_v39 = vsel %vm3465_vm9, %v3464_v13, %v14517_v23  ;;  %v8379_v7 = vsel %vm3400_vm8, %v3396_v20, %v13162_v18  ;;  %v14520_v3 = vld [vmem:[#allocation17_spill] sm:$0xff]  ;;  %v6880_v20 = vld [vmem:[#allocation2 + $0x3c] sm:$0xf] }
 0x438   : > { %7780 = vrot.lane.b32.xlu0 %v7569_v44, %s10322_s10  ;;  %v7537_v44 = vshrl.u32 %v13202_v61, 16  ;;  %v7132_v40 = vor.u32 %v7131_v50, %v7127_v16  ;;  %v7136_v63 = vrot.slane %v7134_v14, 1  ;;  %v7542_v23 = vrot.slane %v7540_v15, 2  ;;  %v10241_v14 = vld [vmem:[#allocation2 + $0xa4] ss:$0 sps:$4 sm:$0x33]  }
 0x439   : > { %v7547_v13 = vrot.slane %v7545_v42, 1  ;;  %v7550_v6 = vrot.slane %v7548_v17, 2  ;;  %v10242_v15 = vld [vmem:[#allocation2 + $0x94] sm:$0xf]  ;;  %v14524_v17 = vld [vmem:[#allocation104_spill] sm:$0xff] }
 0x43a   : > { %8171 = vrot.lane.b32.xlu1 %v5747_v37, %s10320_s29  ;;  %v13210_v58 = vpop.permute.xlu0 %6321  ;;  %v14514_v37 = vld [vmem:[#allocation6_spill] sm:$0xff]  ;;  %v7539_v30 = vrot.slane %v7537_v44, 1  ;;  %v3392_v44 = vrot.slane %v10241_v14, 2 }
 0x43b   : > { %v6808_v21 = vsel %vm3400_vm8, %v14515_v19, %v14514_v37  ;;  %v9166_v37 = vcombine.low %v2465_v2, %v10240_v24  ;;  %v14521_v24 = vld [vmem:[#allocation103_spill] sm:$0xff]  ;;  %v7551_v14 = vor.u32 %v7550_v6, %v7547_v13 }
 0x43c   : > { %v13214_v36 = vpop.permute.xlu1 %8090  ;;  %8173 = vrot.lane.b32.xlu0 %v5647_v26, %s10320_s29  ;;  %v4526_v26 = vsel %vm3351_vm12, %v4524_v34, %v4525_v11  ;;  %v3430_v2 = vsel %vm3400_vm8, %v14521_v24, %v14520_v3  ;;  %v6881_v11 = vld [vmem:[#allocation2 + $0x40] sm:$0xf]  ;;  %v14523_v34 = vld [vmem:[#allocation25_spill] sm:$0xff] }
 0x43d   : > { %14513 = vst [vmem:[#allocation62_spill] sm:$0xff] %v13214_v36  ;;  %v8383_v27 = vsel %vm3400_vm8, %v3399_v35, %v13214_v36  ;;  %v4726_v35 = vld [vmem:[#allocation2 + $0x90] sm:$0xc]  ;;  %v5691_v16 = vsel %vm3400_vm8, %v14523_v34, %v12763_v51  ;;  %v3391_v50 = vrot.slane %v9166_v37, 2  ;;  %v14527_v24 = vld [vmem:[#allocation95_spill] sm:$0xff]  ;;  %v7137_v37 = vsel %vm2596_vm4, %v7132_v40, %v7136_v63 }
 0x43e   : > { %8238 = vrot.lane.b32.xlu1 %v6744_v48, %s10322_s10  ;;  %8629 = vmatprep.subr.bf16.mxu1 %v8383_v27  ;;  %v13231_v19 = vpop.permute.xlu0 %8131  ;;  %v14522_v48 = vld [vmem:[#allocation11_spill] sm:$0xff]  ;;  %v9323_v42 = vcombine.low %v4726_v35, %v10242_v15  ;;  %v2464_v51 = vld [vmem:[#allocation2 + $0x90] sm:$0xc]  ;;  %v13260_v35 = vcombine.low %v6880_v20, %v6881_v11  ;;  %v6927_v15 = vld [vmem:[#allocation2 + $0x3c] sm:$0xe] }
 0x43f   : > { %14518 = vst [vmem:[#allocation77_spill] sm:$0xff] %v13231_v19  ;;  %8630 = vmatpush2.bf16.xpose.msra.mxu1 %v3512_v39  ;;  %v5753_v39 = vsel %vm3465_vm9, %v5721_v43, %v14522_v48  ;;  %v14526_v43 = vld [vmem:[#allocation61_spill] sm:$0xff]  ;;  %v6840_v48 = vsel %vm1391_vm7, %v6808_v21, %v14527_v24  ;;  %v14533_v21 = vld [vmem:[#allocation52_spill] sm:$0xff]  ;;  %v3605_v40 = vld [vmem:[#allocation2 + $0x84] sm:$0xc]  ;;  %v3393_v63 = vsel %vm3351_vm12, %v3391_v50, %v3392_v44 }
 0x440   : > { %8631 = vmatprep.subr.bf16.mxu1 %v8379_v7  ;;  %v13236_v27 = vpop.permute.xlu1 %8232  ;;  %8076 = vrot.lane.b32.xlu0 %v4526_v26, %s10321_s30  ;;  %v14525_v7 = vld [vmem:[#allocation50_spill] sm:$0xff]  ;;  %v3462_v26 = vsel %vm1391_vm7, %v3430_v2, %v14526_v43  ;;  %14529 = vst [vmem:[#allocation82_spill] sm:$0xff] %v13260_v35  ;;  %v14530_v36 = vld [vmem:[#allocation121_spill] sm:$0xff]  ;;  %v14532_v2 = vld [vmem:[#allocation59_spill] sm:$0xff]  ;;  %v6872_v24 = vsel %vm3465_vm9, %v6840_v48, %v14533_v21 }
 0x441   : > { %14519 = vst [vmem:[#allocation70_spill] sm:$0xff] %v13236_v27  ;;  %v3418_v3 = vsel %vm3400_vm8, %v14525_v7, %v14524_v17  ;;  %v14531_v17 = vld [vmem:[#allocation101_spill] sm:$0xff]  ;;  %v3509_v43 = vsel %vm3465_vm9, %v3462_v26, %v14532_v2  ;;  %v10104_v20 = vld [vmem:[#allocation2 + $0x44] ss:$0 sps:$4 sm:$0x33]   ;;  %v14535_v26 = vld [vmem:[#allocation54_spill] sm:$0xff] }
 0x442   : > { %8183 = vrot.lane.b32.xlu1 %v5753_v39, %s10320_s29  ;;  %v13255_v18 = vpop.permute.xlu0 %8036  ;;  %v7543_v39 = vor.u32 %v7542_v23, %v7539_v30  ;;  %v3428_v7 = vsel %vm3400_vm8, %v14531_v17, %v14530_v36  ;;  %v5642_v30 = vrot.slane %v9323_v42, 2  ;;  %v10243_v23 = vld [vmem:[#allocation2 + $0x98] ss:$0 sps:$4 sm:$0x33]   ;;  %v10244_v36 = vld [vmem:[#allocation2 + $0x94] sm:$0xf]  ;;  %v3450_v17 = vsel %vm1391_vm7, %v3418_v3, %v14535_v26 }
 0x443   : > { %14528 = vst [vmem:[#allocation80_spill] sm:$0xff] %v13255_v18  ;;  %v14534_v18 = vld [vmem:[#allocation13_spill] sm:$0xff]  ;;  %v5643_v13 = vrot.slane %v10243_v23, 2  ;;  %v9165_v6 = vcombine.low %v2464_v51, %v10244_v36  ;;  %v10245_v51 = vld [vmem:[#allocation2 + $0x88] sm:$0xf]  ;;  %v7117_v3 = vshll.u32 %v13260_v35, 16 }
 0x444   : > { %v13257_v34 = vpop.permute.xlu1 %5200  ;;  %v5723_v19 = vsel %vm1391_vm7, %v5691_v16, %v14534_v18  ;;  %7298 = vrot.lane.b32.xlu0 %v7137_v37, %s10321_s30  ;;  %v8375_v18 = vsel %vm3400_vm8, %v3393_v63, %v13199_v52  ;;  %v13280_v16 = vcombine.low %v6927_v15, %v6881_v11  ;;  %v14536_v37 = vld [vmem:[#allocation85_spill] sm:$0xff]  ;;  %v7552_v42 = vsel %vm2998_vm6, %v7543_v39, %v7551_v14  ;;  %v13287_v21 = vld [vmem:[#allocation2 + $0x44] ss:$0 sps:$4 sm:$0x11]   ;;  %v14537_v11 = vld [vmem:[#allocation42_spill] sm:$0xff] }
 0x445   : > { %v3460_v50 = vsel %vm1391_vm7, %v3428_v7, %v14536_v37  ;;  %v9243_v2 = vcombine.low %v3605_v40, %v10245_v51  ;;  %v6810_v15 = vsel %vm3400_vm8, %v14537_v11, %v12790_v53  ;;  %v14538_v7 = vld [vmem:[#allocation22_spill] sm:$0xff]  ;;  %v5644_v63 = vsel %vm3351_vm12, %v5642_v30, %v5643_v13  ;;  %v10247_v53 = vld [vmem:[#allocation2 + $0x8c] ss:$0 sps:$4 sm:$0x33]   ;;  %v10251_v27 = vld [vmem:[#allocation2 + $0x40] sm:$0xf] }
 0x446   : > { %8276 = vrot.lane.b32.xlu1 %v6872_v24, %s10322_s10  ;;  %v13276_v48 = vpop.permute.xlu0 %5070  ;;  %v6804_v24 = vsel %vm3400_vm8, %v14538_v7, %v12986_v59  ;;  %v10246_v39 = vld [vmem:[#allocation2 + $0x98] ss:$0 sps:$4 sm:$0x33]   ;;  %v7528_v23 = vshrl.u32 %v10104_v20, 16  ;;  %v4522_v26 = vrot.slane %v10247_v53, 2  ;;  %v7520_v59 = vshrl.u32 %v13280_v16, 16 }
 0x447   : > { %8632 = vmatpush2.bf16.xpose.msra.mxu1 %v3509_v43  ;;  %v5755_v43 = vsel %vm3465_vm9, %v5723_v19, %v12773_v60  ;;  %v3389_v14 = vrot.slane %v10246_v39, 2  ;;  %v6836_v40 = vsel %vm1391_vm7, %v6804_v24, %v13008_v25  ;;  %v3388_v60 = vrot.slane %v9165_v6, 2  ;;  %v2463_v19 = vld [vmem:[#allocation2 + $0x84] sm:$0xc]  ;;  %v14539_v13 = vld [vmem:[#allocation108_spill] sm:$0xff]  ;;  %v14540_v11 = vld [vmem:[#allocation46_spill] sm:$0xff] }
 0x448   : > { %8633 = vmatprep.subr.bf16.mxu1 %v8375_v18  ;;  %v13284_v44 = vpop.permute.xlu1 %5552  ;;  %7778 = vrot.lane.b32.xlu0 %v7552_v42, %s10322_s10  ;;  %v7523_v18 = vshll.u32 %v13280_v16, 16  ;;  %v7531_v37 = vshll.u32 %v10104_v20, 16  ;;  %v4521_v51 = vrot.slane %v9243_v2, 2  ;;  %v7115_v25 = vshrl.u32 %v13260_v35, 16  ;;  %v10248_v24 = vld [vmem:[#allocation2 + $0x88] sm:$0xf] }
 0x449   : > { %v7122_v30 = vshll.u32 %v13287_v21, 16  ;;  %v13313_v6 = vsel %vm3465_vm9, %v3450_v17, %v14539_v13  ;;  %v6842_v7 = vsel %vm1391_vm7, %v6810_v15, %v14540_v11  ;;  %v6868_v20 = vsel %vm3465_vm9, %v6836_v40, %v13017_v28  ;;  %v14541_v2 = vld [vmem:[#allocation119_spill] sm:$0xff]  ;;  %v14542_v53 = vld [vmem:[#allocation90_spill] sm:$0xff]  ;;  %v14543_v35 = vld [vmem:[#allocation93_spill] sm:$0xff] }
 0x44a   : > { %8187 = vrot.lane.b32.xlu1 %v5755_v43, %s10320_s29  ;;  %v13303_v36 = vpop.permute.xlu0 %6191  ;;  %v7119_v43 = vrot.slane %v7117_v3, 1  ;;  %v9164_v39 = vcombine.low %v2463_v19, %v10248_v24  ;;  %v3424_v3 = vsel %vm3400_vm8, %v14542_v53, %v14541_v2  ;;  %v3506_v17 = vsel %vm3465_vm9, %v3460_v50, %v14543_v35  ;;  %v13329_v15 = vld [vmem:[#allocation2 + $0x3c] sm:$0xc]  ;;  %v4725_v24 = vld [vmem:[#allocation2 + $0x84] sm:$0xc] }
 0x44b   : > { %v3390_v13 = vsel %vm3351_vm12, %v3388_v60, %v3389_v14  ;;  %v13327_v52 = vrot.slane %v7528_v23, 1  ;;  %v7522_v40 = vrot.slane %v7520_v59, 1  ;;  %v7525_v19 = vrot.slane %v7523_v18, 2  ;;  %v6878_v23 = vld [vmem:[#allocation2 + $0x30] sm:$0xf] }
 0x44c   : > { %v13307_v42 = vpop.permute.xlu1 %6673  ;;  %8169 = vrot.lane.b32.xlu0 %v5644_v63, %s10320_s29  ;;  %v8371_v28 = vsel %vm3400_vm8, %v3390_v13, %v13140_v45  ;;  %v7533_v11 = vrot.slane %v7531_v37, 2  ;;  %v4523_v50 = vsel %vm3351_vm12, %v4521_v51, %v4522_v26  ;;  %v7120_v14 = vor.u32 %v7119_v43, %v7115_v25  ;;  %v6879_v2 = vld [vmem:[#allocation2 + $0x34] sm:$0xf]  ;;  %v10249_v37 = vld [vmem:[#allocation2 + $0x8c] ss:$0 sps:$4 sm:$0x33]  }
 0x44d   : > { %v7124_v60 = vrot.slane %v7122_v30, 1  ;;  %v7380_v53 = vrot.slane %v13202_v61, 1  ;;  %v7381_v59 = vrot.slane %v13191_v31, 1  ;;  %v3385_v18 = vrot.slane %v9164_v39, 2  ;;  %v2462_v13 = vld [vmem:[#allocation2 + $0x78] sm:$0xc] }
 0x44e   : > { %8268 = vrot.lane.b32.xlu1 %v6868_v20, %s10322_s10  ;;  %v13331_v63 = vpop.permute.xlu0 %6319  ;;  %v6874_v20 = vsel %vm3465_vm9, %v6842_v7, %v12798_v32  ;;  %v14545_v32 = vld [vmem:[#allocation113_spill] sm:$0xff]  ;;  %v14546_v7 = vld [vmem:[#allocation67_spill] sm:$0xff]  ;;  %v14549_v25 = vld [vmem:[#allocation48_spill] sm:$0xff]  ;;  %v13366_v49 = vcombine.low %v6878_v23, %v6879_v2 }
 0x44f   : > { %8634 = vmatpush2.bf16.xpose.msra.mxu1 %v3506_v17  ;;  %v3386_v17 = vrot.slane %v10249_v37, 2  ;;  %v14547_v45 = vld [vmem:[#allocation23_spill] sm:$0xff]  ;;  %v13351_v43 = vsel %vm1391_vm7, %v3424_v3, %v14549_v25  ;;  %v10250_v61 = vld [vmem:[#allocation2 + $0x88] sm:$0xf]  ;;  %v3604_v30 = vld [vmem:[#allocation2 + $0x78] sm:$0xc] }
 0x450   : > { %8635 = vmatprep.subr.bf16.mxu1 %v8371_v28  ;;  %v13337_v35 = vpop.permute.xlu1 %8133  ;;  %8072 = vrot.lane.b32.xlu0 %v4523_v50, %s10321_s30  ;;  %v3420_v28 = vsel %vm3400_vm8, %v14546_v7, %v14545_v32  ;;  %v14548_v26 = vld [vmem:[#allocation79_spill] sm:$0xff]  ;;  %v9322_v31 = vcombine.low %v4725_v24, %v10250_v61  ;;  %v14550_v39 = vld [vmem:[#allocation120_spill] sm:$0xff]  ;;  %v7526_v32 = vor.u32 %v7525_v19, %v7522_v40  ;;  %v14553_v3 = vld [vmem:[#allocation29_spill] sm:$0xff] }
 0x451   : > { %14544 = vst [vmem:[#allocation24_spill] sm:$0xff] %v13337_v35  ;;  %v3422_v51 = vsel %vm3400_vm8, %v14548_v26, %v14547_v45  ;;  %v14551_v50 = vld [vmem:[#allocation91_spill] sm:$0xff]  ;;  %v7534_v7 = vor.u32 %v7533_v11, %v13327_v52  ;;  %v9395_v45 = vcombine.low %v13329_v15, %v10251_v27  ;;  %v6926_v26 = vld [vmem:[#allocation2 + $0x30] sm:$0xe]  ;;  %v7125_v24 = vsel %vm2596_vm4, %v7120_v14, %v7124_v60  ;;  %v10252_v61 = vld [vmem:[#allocation2 + $0x7c] sm:$0xf] }
 0x452   : > { %8280 = vrot.lane.b32.xlu1 %v6874_v20, %s10322_s10  ;;  %v3426_v37 = vsel %vm3400_vm8, %v14551_v50, %v14550_v39  ;;  %v13357_v35 = vpop.permute.xlu0 %8127  ;;  %v9163_v55 = vcombine.low %v2462_v13, %v10252_v61  ;;  %14554 = vst [vmem:[#allocation112_spill] sm:$0xff] %v13366_v49  ;;  %v14555_v39 = vld [vmem:[#allocation68_spill] sm:$0xff]  ;;  %v7382_v52 = vsel %vm2869_vm5, %v7380_v53, %v7381_v59  ;;  %v10253_v15 = vld [vmem:[#allocation2 + $0x7c] sm:$0xf]  ;;  %v5639_v14 = vrot.slane %v9322_v31, 2 }
 0x453   : > { %14552 = vst [vmem:[#allocation49_spill] sm:$0xff] %v13357_v35  ;;  %v3458_v25 = vsel %vm1391_vm7, %v3426_v37, %v14553_v3  ;;  %v3387_v27 = vsel %vm3351_vm12, %v3385_v18, %v3386_v17  ;;  %v9242_v19 = vcombine.low %v3604_v30, %v10253_v15  ;;  %v13373_v11 = vld [vmem:[#allocation2 + $0x38] ss:$0 sps:$4 sm:$0x11]   ;;  %v13376_v37 = vcombine.low %v6926_v26, %v6879_v2  ;;  %v5837_v35 = vld [vmem:[#allocation2 + $0x24] sm:$0xc] }
 0x454   : > { %v13363_v20 = vpop.permute.xlu1 %8228  ;;  %v3503_v40 = vsel %vm3465_vm9, %v3458_v25, %v14555_v39  ;;  %7296 = vrot.lane.b32.xlu0 %v7125_v24, %s10321_s30  ;;  %v10254_v60 = vld [vmem:[#allocation2 + $0x8c] ss:$0 sps:$4 sm:$0x33]   ;;  %v10255_v23 = vld [vmem:[#allocation2 + $0x44] ss:$0 sps:$4 sm:$0x33]   ;;  %v8367_v18 = vsel %vm3400_vm8, %v3387_v27, %v13170_v56  ;;  %v7535_v17 = vsel %vm2998_vm6, %v7526_v32, %v7534_v7 }
 0x455   : > { %v5640_v13 = vrot.slane %v10254_v60, 2  ;;  %v6740_v50 = vrot.slane %v10255_v23, 2  ;;  %v10109_v3 = vld [vmem:[#allocation2 + $0x38] ss:$0 sps:$4 sm:$0x33]   ;;  %v14556_v25 = vld [vmem:[#allocation83_spill] sm:$0xff] }
 0x456   : > { %7426 = vrot.lane.b32.xlu1 %v7382_v52, %s10320_s29  ;;  %v5681_v53 = vsel %vm3400_vm8, %v14556_v25, %v13176_v41  ;;  %v13381_v59 = vpop.permute.xlu0 %8032  ;;  %v6739_v31 = vrot.slane %v9395_v45, 2  ;;  %v3382_v26 = vrot.slane %v9163_v55, 2  ;;  %v10256_v24 = vld [vmem:[#allocation2 + $0x80] ss:$0 sps:$4 sm:$0x33]   ;;  %v7105_v41 = vshll.u32 %v13366_v49, 16 }
 0x457   : > { %14557 = vst [vmem:[#allocation98_spill] sm:$0xff] %v13381_v59  ;;  %8636 = vmatpush2.bf16.xpose.msra.mxu1 %v3503_v40  ;;  %v5713_v30 = vsel %vm1391_vm7, %v5681_v53, %v13257_v34  ;;  %v3383_v61 = vrot.slane %v10256_v24, 2  ;;  %v4518_v40 = vrot.slane %v9242_v19, 2  ;;  %v10257_v52 = vld [vmem:[#allocation2 + $0x80] ss:$0 sps:$4 sm:$0x33]   ;;  %v5641_v53 = vsel %vm3351_vm12, %v5639_v14, %v5640_v13 }
 0x458   : > { %8637 = vmatprep.subr.bf16.mxu1 %v8367_v18  ;;  %v13388_v2 = vpop.permute.xlu1 %5198  ;;  %v5745_v39 = vsel %vm3465_vm9, %v5713_v30, %v13284_v44  ;;  %7776 = vrot.lane.b32.xlu0 %v7535_v17, %s10322_s10  ;;  %v4519_v32 = vrot.slane %v10257_v52, 2  ;;  %v7110_v7 = vshll.u32 %v13373_v11, 16  ;;  %v2461_v45 = vld [vmem:[#allocation2 + $0x6c] sm:$0xc]  ;;  %v7503_v34 = vshrl.u32 %v13376_v37, 16  ;;  %v14558_v60 = vld [vmem:[#allocation111_spill] sm:$0xff] }
 0x459   : > { %v7506_v55 = vshll.u32 %v13376_v37, 16  ;;  %v7511_v27 = vshrl.u32 %v10109_v3, 16  ;;  %v7514_v15 = vshll.u32 %v10109_v3, 16  ;;  %v3452_v23 = vsel %vm1391_vm7, %v3420_v28, %v14558_v60  ;;  %v14559_v44 = vld [vmem:[#allocation36_spill] sm:$0xff]  ;;  %v14560_v18 = vld [vmem:[#allocation118_spill] sm:$0xff] }
 0x45a   : > { %8167 = vrot.lane.b32.xlu1 %v5745_v39, %s10320_s29  ;;  %v3454_v25 = vsel %vm1391_vm7, %v3422_v51, %v14559_v44  ;;  %v13402_v19 = vpop.permute.xlu0 %5068  ;;  %v3500_v17 = vsel %vm3465_vm9, %v13351_v43, %v14560_v18  ;;  %v6741_v24 = vsel %vm3351_vm12, %v6739_v31, %v6740_v50  ;;  %v7103_v3 = vshrl.u32 %v13366_v49, 16  ;;  %v10258_v52 = vld [vmem:[#allocation2 + $0x70] sm:$0xf]  ;;  %v6908_v44 = vld [vmem:[#allocation2 + $0xe4] sm:$0xf] }
 0x45b   : > { %v7107_v39 = vrot.slane %v7105_v41, 1  ;;  %v9162_v28 = vcombine.low %v2461_v45, %v10258_v52  ;;  %v3384_v51 = vsel %vm3351_vm12, %v3382_v26, %v3383_v61  ;;  %v4520_v60 = vsel %vm3351_vm12, %v4518_v40, %v4519_v32  ;;  %v6909_v43 = vld [vmem:[#allocation2 + $0xe8] sm:$0xf]  ;;  %v14561_v41 = vld [vmem:[#allocation75_spill] sm:$0xff]  ;;  %v4724_v32 = vld [vmem:[#allocation2 + $0x78] sm:$0xc] }
 0x45c   : > { %v13408_v30 = vpop.permute.xlu1 %5550  ;;  %8165 = vrot.lane.b32.xlu0 %v5641_v53, %s10320_s29  ;;  %v7112_v14 = vrot.slane %v7110_v7, 1  ;;  %v7377_v13 = vrot.slane %v13280_v16, 1  ;;  %v7505_v18 = vrot.slane %v7503_v34, 1  ;;  %v7508_v50 = vrot.slane %v7506_v55, 2  ;;  %v5838_v7 = vld [vmem:[#allocation2 + $0x30] sm:$0xc] }
 0x45d   : > { %v7513_v31 = vrot.slane %v7511_v27, 1  ;;  %v7516_v49 = vrot.slane %v7514_v15, 2  ;;  %v6802_v45 = vsel %vm3400_vm8, %v14561_v41, %v13189_v33  ;;  %v8363_v26 = vsel %vm3400_vm8, %v3384_v51, %v13112_v22  ;;  %v10259_v61 = vld [vmem:[#allocation2 + $0x74] ss:$0 sps:$4 sm:$0x33]   ;;  %v14563_v52 = vld [vmem:[#allocation115_spill] sm:$0xff] }
 0x45e   : > { %8234 = vrot.lane.b32.xlu1 %v6741_v24, %s10322_s10  ;;  %v13420_v53 = vpop.permute.xlu0 %6189  ;;  %v7378_v16 = vrot.slane %v13287_v21, 1  ;;  %v3380_v40 = vrot.slane %v10259_v61, 2  ;;  %v6834_v34 = vsel %vm1391_vm7, %v6802_v45, %v13210_v58  ;;  %v7108_v27 = vor.u32 %v7107_v39, %v7103_v3  ;;  %v2460_v15 = vld [vmem:[#allocation2 + $0x60] sm:$0xc]  ;;  %v3603_v24 = vld [vmem:[#allocation2 + $0x6c] sm:$0xc] }
 0x45f   : > { %8638 = vmatpush2.bf16.xpose.msra.mxu1 %v3500_v17  ;;  %v3379_v33 = vrot.slane %v9162_v28, 2  ;;  %v13429_v17 = vcombine.low %v6908_v44, %v6909_v43  ;;  %v13433_v51 = vsel %vm3465_vm9, %v3452_v23, %v14563_v52  ;;  %v14564_v21 = vld [vmem:[#allocation117_spill] sm:$0xff]  ;;  %v6866_v3 = vsel %vm3465_vm9, %v6834_v34, %v13307_v42  ;;  %v10260_v44 = vld [vmem:[#allocation2 + $0x7c] sm:$0xf]  ;;  %v6941_v52 = vld [vmem:[#allocation2 + $0xe4] sm:$0xe] }
 0x460   : > { %8639 = vmatprep.subr.bf16.mxu1 %v8363_v26  ;;  %v13427_v55 = vpop.permute.xlu1 %6671  ;;  %v3497_v41 = vsel %vm3465_vm9, %v3454_v25, %v14564_v21  ;;  %v14565_v61 = vld [vmem:[#allocation81_spill] sm:$0xff]  ;;  %8068 = vrot.lane.b32.xlu0 %v4520_v60, %s10321_s30  ;;  %v7509_v39 = vor.u32 %v7508_v50, %v7505_v18  ;;  %v7517_v28 = vor.u32 %v7516_v49, %v7513_v31  ;;  %v14566_v25 = vld [vmem:[#allocation86_spill] sm:$0xff]  ;;  %v14567_v21 = vld [vmem:[#allocation12_spill] sm:$0xff] }
 0x461   : > { %14562 = vst [vmem:[#allocation37_spill] sm:$0xff] %v13429_v17  ;;  %v13440_v58 = vsel %vm3400_vm8, %v12673_v29, %v14565_v61  ;;  %v9321_v23 = vcombine.low %v4724_v32, %v10260_v44  ;;  %v10261_v45 = vld [vmem:[#allocation2 + $0x34] sm:$0xf]  ;;  %v13449_v22 = vsel %vm1391_vm7, %v14567_v21, %v14566_v25  ;;  %v14569_v61 = vld [vmem:[#allocation32_spill] sm:$0xff]  ;;  %v10262_v34 = vld [vmem:[#allocation2 + $0x64] sm:$0xf]  ;;  %v7113_v32 = vsel %vm2596_vm4, %v7108_v27, %v7112_v14 }
 0x462   : > { %8264 = vrot.lane.b32.xlu1 %v6866_v3, %s10322_s10  ;;  %v9394_v26 = vcombine.low %v5838_v7, %v10261_v45  ;;  %v14568_v29 = vld [vmem:[#allocation97_spill] sm:$0xff]  ;;  %v13456_v60 = vpop.permute.xlu0 %6317  ;;  %v9161_v18 = vcombine.low %v2460_v15, %v10262_v34  ;;  %v7379_v7 = vsel %vm2869_vm5, %v7377_v13, %v7378_v16  ;;  %v3381_v3 = vsel %vm3351_vm12, %v3379_v33, %v3380_v40  ;;  %v13463_v44 = vld [vmem:[#allocation2 + $0xec] ss:$0 sps:$4 sm:$0x11]   ;;  %v6906_v56 = vld [vmem:[#allocation2 + $0xd8] sm:$0xf] }
 0x463   : > { %v13454_v42 = vsel %vm1391_vm7, %v14569_v61, %v14568_v29  ;;  %v10263_v49 = vld [vmem:[#allocation2 + $0x70] sm:$0xf]  ;;  %v7285_v45 = vshll.u32 %v13429_v17, 16  ;;  %v8359_v25 = vsel %vm3400_vm8, %v3381_v3, %v13118_v12  ;;  %v10264_v15 = vld [vmem:[#allocation2 + $0x80] ss:$0 sps:$4 sm:$0x33]   ;;  %v7518_v13 = vsel %vm2998_vm6, %v7509_v39, %v7517_v28 }
 0x464   : > { %v9241_v50 = vcombine.low %v3603_v24, %v10263_v49  ;;  %v13458_v31 = vpop.permute.xlu1 %8129  ;;  %7294 = vrot.lane.b32.xlu0 %v7113_v32, %s10321_s30  ;;  %v5637_v29 = vrot.slane %v10264_v15, 2  ;;  %v10265_v24 = vld [vmem:[#allocation2 + $0x38] ss:$0 sps:$4 sm:$0x33]   ;;  %v13469_v49 = vcombine.low %v6941_v52, %v6909_v43  ;;  %v5636_v16 = vrot.slane %v9321_v23, 2 }
 0x465   : > { %v6737_v34 = vrot.slane %v10265_v24, 2  ;;  %v10114_v14 = vld [vmem:[#allocation2 + $0xec] ss:$0 sps:$4 sm:$0x33]   ;;  %v6736_v40 = vrot.slane %v9394_v26, 2  ;;  %v14570_v32 = vld [vmem:[#allocation102_spill] sm:$0xff] }
 0x466   : > { %7424 = vrot.lane.b32.xlu1 %v7379_v7, %s10320_s29  ;;  %v10266_v27 = vld [vmem:[#allocation2 + $0x68] ss:$0 sps:$4 sm:$0x33]   ;;  %v5679_v3 = vsel %vm3400_vm8, %v14570_v32, %v13276_v48  ;;  %v13476_v12 = vpop.permute.xlu0 %6669  ;;  %v3376_v15 = vrot.slane %v9161_v18, 2  ;;  %v4515_v43 = vrot.slane %v9241_v50, 2  ;;  %v7283_v23 = vshrl.u32 %v13429_v17, 16 }
 0x467   : > { %v3377_v33 = vrot.slane %v10266_v27, 2  ;;  %8640 = vmatpush2.bf16.xpose.msra.mxu1 %v3497_v41  ;;  %v10267_v52 = vld [vmem:[#allocation2 + $0x74] ss:$0 sps:$4 sm:$0x33]   ;;  %v6907_v59 = vld [vmem:[#allocation2 + $0xdc] sm:$0xf]  ;;  %v5711_v39 = vsel %vm1391_vm7, %v5679_v3, %v13388_v2 }
 0x468   : > { %v4516_v24 = vrot.slane %v10267_v52, 2  ;;  %8641 = vmatprep.subr.bf16.mxu1 %v8359_v25  ;;  %v13480_v28 = vpop.permute.xlu1 %8224  ;;  %v7287_v26 = vrot.slane %v7285_v45, 1  ;;  %v7290_v7 = vshll.u32 %v13463_v44, 16  ;;  %v6940_v48 = vld [vmem:[#allocation2 + $0xd8] sm:$0xe]  ;;  %v5743_v41 = vsel %vm3465_vm9, %v5711_v39, %v13408_v30  ;;  %7774 = vrot.lane.b32.xlu0 %v7518_v13, %s10322_s10  ;;  %v14572_v32 = vld [vmem:[#allocation96_spill] sm:$0xff] }
 0x469   : > { %14571 = vst [vmem:[#allocation84_spill] sm:$0xff] %v13480_v28  ;;  %v7758_v18 = vshrl.u32 %v13469_v49, 16  ;;  %v7766_v50 = vshrl.u32 %v10114_v14, 16  ;;  %v7769_v27 = vshll.u32 %v10114_v14, 16  ;;  %v13491_v2 = vsel %vm3400_vm8, %v12738_v1, %v14572_v32  ;;  %v14574_v1 = vld [vmem:[#allocation110_spill] sm:$0xff] }
 0x46a   : > { %8163 = vrot.lane.b32.xlu1 %v5743_v41, %s10320_s29  ;;  %v5638_v45 = vsel %vm3351_vm12, %v5636_v16, %v5637_v29  ;;  %v7761_v25 = vshll.u32 %v13469_v49, 16  ;;  %v13496_v3 = vcombine.low %v6906_v56, %v6907_v59  ;;  %v10118_v30 = vld [vmem:[#allocation2 + $0xe0] ss:$0 sps:$4 sm:$0x33]   ;;  %v13498_v52 = vpop.permute.xlu0 %7788  ;;  %v6738_v13 = vsel %vm3351_vm12, %v6736_v40, %v6737_v34  ;;  %v6904_v34 = vld [vmem:[#allocation2 + $0xcc] sm:$0xf] }
 0x46b   : > { %v3378_v14 = vsel %vm3351_vm12, %v3376_v15, %v3377_v33  ;;  %v7374_v39 = vrot.slane %v13376_v37, 1  ;;  %v13503_v17 = vcombine.low %v6940_v48, %v6907_v59  ;;  %v8199_v41 = vsel %vm1391_vm7, %v13095_v4, %v14574_v1  ;;  %v13512_v28 = vld [vmem:[#allocation2 + $0xe0] ss:$0 sps:$4 sm:$0x11]   ;;  %v6905_v15 = vld [vmem:[#allocation2 + $0xd0] sm:$0xf] }
 0x46c   : > { %14573 = vst [vmem:[#allocation87_spill] sm:$0xff] %v13496_v3  ;;  %v13508_v29 = vpop.permute.xlu1 %5196  ;;  %v8355_v56 = vsel %vm3400_vm8, %v3378_v14, %v13080_v0  ;;  %v7288_v16 = vor.u32 %v7287_v26, %v7283_v23  ;;  %v7292_v32 = vrot.slane %v7290_v7, 1  ;;  %8161 = vrot.lane.b32.xlu0 %v5638_v45, %s10320_s29  ;;  %v4517_v37 = vsel %vm3351_vm12, %v4515_v43, %v4516_v24  ;;  %v14575_v26 = vld [vmem:[#allocation109_spill] sm:$0xff] }
 0x46d   : > { %v7760_v59 = vrot.slane %v7758_v18, 1  ;;  %v7768_v40 = vrot.slane %v7766_v50, 1  ;;  %v7771_v33 = vrot.slane %v7769_v27, 2  ;;  %v7763_v48 = vrot.slane %v7761_v25, 2 }
 0x46e   : > { %8230 = vrot.lane.b32.xlu1 %v6738_v13, %s10322_s10  ;;  %v7273_v1 = vshll.u32 %v13496_v3, 16  ;;  %v7749_v14 = vshrl.u32 %v10118_v30, 16  ;;  %v7752_v23 = vshll.u32 %v10118_v30, 16  ;;  %v6800_v7 = vsel %vm3400_vm8, %v14575_v26, %v13303_v36  ;;  %v13521_v0 = vpop.permute.xlu0 %8189  ;;  %v10268_v13 = vld [vmem:[#allocation2 + $0x28] sm:$0xf] }
 0x46f   : > { %14576 = vst [vmem:[#allocation92_spill] sm:$0xff] %v13521_v0  ;;  %8642 = vmatpush2.bf16.xpose.msra.mxu1 %v13433_v51  ;;  %v7375_v43 = vrot.slane %v13373_v11, 1  ;;  %v7741_v24 = vshrl.u32 %v13503_v17, 16  ;;  %v7744_v18 = vshll.u32 %v13503_v17, 16  ;;  %v6832_v50 = vsel %vm1391_vm7, %v6800_v7, %v13331_v63  ;;  %v14577_v7 = vld [vmem:[#allocation100_spill] sm:$0xff] }
 0x470   : > { %8643 = vmatprep.subr.bf16.mxu1 %v8355_v56  ;;  %v5549_v27 = vpop.permute.xlu1 %5548  ;;  %v7293_v45 = vsel %vm2596_vm4, %v7288_v16, %v7292_v32  ;;  %v7278_v25 = vshll.u32 %v13512_v28, 16  ;;  %v13531_v36 = vcombine.low %v6904_v34, %v6905_v15  ;;  %v6864_v51 = vsel %vm3465_vm9, %v6832_v50, %v13427_v55  ;;  %8064 = vrot.lane.b32.xlu0 %v4517_v37, %s10321_s30  ;;  %v13537_v0 = vld [vmem:[#allocation2 + $0xd4] ss:$0 sps:$4 sm:$0x11]   ;;  %v6939_v34 = vld [vmem:[#allocation2 + $0xcc] sm:$0xe] }
 0x471   : > { %v7772_v11 = vor.u32 %v7771_v33, %v7768_v40  ;;  %v7271_v30 = vshrl.u32 %v13496_v3, 16  ;;  %v9393_v26 = vcombine.low %v5837_v35, %v10268_v13  ;;  %v7764_v63 = vor.u32 %v7763_v48, %v7760_v59  ;;  %v14578_v50 = vld [vmem:[#allocation105_spill] sm:$0xff] }
 0x472   : > { %8260 = vrot.lane.b32.xlu1 %v6864_v51, %s10322_s10  ;;  %v7275_v56 = vrot.slane %v7273_v1, 1  ;;  %v7751_v16 = vrot.slane %v7749_v14, 1  ;;  %v7754_v32 = vrot.slane %v7752_v23, 2  ;;  %v8102_v55 = vsel %vm3400_vm8, %v12816_v62, %v14577_v7  ;;  %v13546_v40 = vpop.permute.xlu0 %8092  ;;  %v13548_v13 = vld [vmem:[#allocation2 + $0xd4] ss:$0 sps:$4 sm:$0x33]  }
 0x473   : > { %v8198_v37 = vsel %vm1391_vm7, %v13057_v54, %v14578_v50  ;;  %14579 = vst [vmem:[#allocation99_spill] sm:$0xff] %v13546_v40  ;;  %v7743_v35 = vrot.slane %v7741_v24, 1  ;;  %v7746_v33 = vrot.slane %v7744_v18, 2  ;;  %v7376_v59 = vsel %vm2869_vm5, %v7374_v39, %v7375_v43  ;;  %v6902_v62 = vld [vmem:[#allocation2 + $0xc0] sm:$0xf]  ;;  %v14580_v40 = vld [vmem:[#allocation38_spill] sm:$0xff] }
 0x474   : > { %v7309_v51 = vpop.permute.xlu1 %7308  ;;  %v8479_v48 = vsel %vm3465_vm9, %v8199_v41, %v13145_v8  ;;  %v7280_v1 = vrot.slane %v7278_v25, 1  ;;  %v7261_v14 = vshll.u32 %v13531_v36, 16  ;;  %v6903_v23 = vld [vmem:[#allocation2 + $0xc4] sm:$0xf]  ;;  %7324 = vrot.lane.b32.xlu0 %v7293_v45, %s10321_s30  ;;  %v6733_v7 = vrot.slane %v9393_v26, 2 }
 0x475   : > { %v10269_v50 = vld [vmem:[#allocation2 + $0x2c] ss:$0 sps:$4 sm:$0x33]   ;;  %v13557_v24 = vsel %vm1391_vm7, %v8102_v55, %v13095_v4  ;;  %v13559_v18 = vcombine.low %v6939_v34, %v6905_v15  ;;  %v7773_v39 = vsel %vm2998_vm6, %v7764_v63, %v7772_v11  ;;  %v7276_v41 = vor.u32 %v7275_v56, %v7271_v30 }
 0x476   : > { %v6734_v3 = vrot.slane %v10269_v50, 2  ;;  %7422 = vrot.lane.b32.xlu1 %v7376_v59, %s10320_s29  ;;  %v7755_v43 = vor.u32 %v7754_v32, %v7751_v16  ;;  %v7266_v25 = vshll.u32 %v13537_v0, 16  ;;  %v5677_v45 = vsel %vm3400_vm8, %v14580_v40, %v13402_v19  ;;  %v13567_v26 = vpop.permute.xlu0 %7306 }
 0x477   : > { %8644 = vmatpush2.bf16.xpose.msra.mxu1 %v13313_v6  ;;  %v7747_v4 = vor.u32 %v7746_v33, %v7743_v35  ;;  %v7259_v15 = vshrl.u32 %v13531_v36, 16  ;;  %v13571_v34 = vcombine.low %v6902_v62, %v6903_v23  ;;  %v5709_v11 = vsel %vm1391_vm7, %v5677_v45, %v13508_v29  ;;  %v5852_v29 = vld [vmem:[#allocation2 + $0xd8] sm:$0xc]  ;;  %v13590_v33 = vld [vmem:[#allocation2 + $0xc8] ss:$0 sps:$4 sm:$0x11]  }
 0x478   : > { %v7917_v30 = vsel %vm3400_vm8, %v12884_v46, %v7309_v51  ;;  %8654 = vmatprep.subr.bf16.mxu1 %v8479_v48  ;;  %v7437_v63 = vpop.permute.xlu1 %7436  ;;  %v7263_v56 = vrot.slane %v7261_v14, 1  ;;  %v7732_v19 = vshrl.u32 %v13548_v13, 16  ;;  %v5741_v16 = vsel %vm3465_vm9, %v5709_v11, %v5549_v27  ;;  %7804 = vrot.lane.b32.xlu0 %v7773_v39, %s10322_s10  ;;  %v6938_v62 = vld [vmem:[#allocation2 + $0xc0] sm:$0xe] }
 0x479   : > { %v7949_v6 = vsel %vm1391_vm7, %v7917_v30, %v7437_v63  ;;  %v8475_v32 = vsel %vm3465_vm9, %v8198_v37, %v13098_v47  ;;  %v7724_v55 = vshrl.u32 %v13559_v18, 16  ;;  %v7281_v40 = vsel %vm2596_vm4, %v7276_v41, %v7280_v1 }
 0x47a   : > { %8159 = vrot.lane.b32.xlu1 %v5741_v16, %s10320_s29  ;;  %v7988_v46 = vsel %vm3465_vm9, %v7949_v6, %v13498_v52  ;;  %v7727_v35 = vshll.u32 %v13559_v18, 16  ;;  %v7735_v27 = vshll.u32 %v13548_v13, 16  ;;  %v13592_v51 = vpop.permute.xlu0 %7786  ;;  %v6735_v37 = vsel %vm3351_vm12, %v6733_v7, %v6734_v3  ;;  %v10270_v7 = vld [vmem:[#allocation2 + $0xdc] sm:$0xf] }
 0x47b   : > { %8695 = vmatprep.subr.bf16.mxu0 %v7988_v46  ;;  %v7268_v59 = vrot.slane %v7266_v25, 1  ;;  %v7419_v48 = vrot.slane %v13469_v49, 1  ;;  %v7249_v14 = vshll.u32 %v13571_v34, 16  ;;  %v7756_v1 = vsel %vm2998_vm6, %v7747_v4, %v7755_v43  ;;  %v13631_v6 = vld [vmem:[#allocation2 + $0xc8] ss:$0 sps:$4 sm:$0x33]  }
 0x47c   : > { %v8255_v52 = vpop.permute.xlu1 %8254  ;;  %v7264_v50 = vor.u32 %v7263_v56, %v7259_v15  ;;  %v7420_v39 = vrot.slane %v13463_v44, 1  ;;  %v13599_v13 = vrot.slane %v7732_v19, 1  ;;  %7322 = vrot.lane.b32.xlu0 %v7281_v40, %s10321_s30  ;;  %v13604_v3 = vrot.slane %v7724_v55, 1  ;;  %v13637_v46 = vld [vmem:[#allocation2 + $0xb8] sm:$0xf] }
 0x47d   : > { %v8296_v41 = vsel %vm3465_vm9, %v13145_v8, %v8255_v52  ;;  %v9408_v49 = vcombine.low %v5852_v29, %v10270_v7  ;;  %v8523_v25 = vcombine.high %v13133_v57, %v13133_v57  ;;  %v7729_v43 = vrot.slane %v7727_v35, 2  ;;  %v14581_v8 = vld [vmem:[#allocation15_spill] sm:$0xff]  ;;  %v6900_v29 = vld [vmem:[#allocation2 + $0xb4] sm:$0xf]  ;;  %v5851_v35 = vld [vmem:[#allocation2 + $0xcc] sm:$0xc] }
 0x47e   : > { %8226 = vrot.lane.b32.xlu1 %v6735_v37, %s10322_s10  ;;  %8696 = vmatpush1.bf16.xpose.msra.mxu0 %v8296_v41  ;;  %v7737_v45 = vrot.slane %v7735_v27, 2  ;;  %v7247_v44 = vshrl.u32 %v13571_v34, 16  ;;  %v13610_v4 = vcombine.low %v6938_v62, %v6903_v23  ;;  %v6798_v15 = vsel %vm3400_vm8, %v14581_v8, %v13420_v53  ;;  %v13615_v11 = vpop.permute.xlu0 %8185  ;;  %v6937_v41 = vld [vmem:[#allocation2 + $0xb4] sm:$0xe] }
 0x47f   : > { %8646 = vmatmul.mubr.bf16.vlgmr.msra.gmra.mxu1 %v13150_v9  ;;  %v7251_v30 = vrot.slane %v7249_v14, 1  ;;  %v7254_v57 = vshll.u32 %v13590_v33, 16  ;;  %v13620_v63 = vrot.slane %v8523_v25, %v13138_v10  ;;  %v6830_v56 = vsel %vm1391_vm7, %v6798_v15, %v13456_v60  ;;  %v10271_v9 = vld [vmem:[#allocation2 + $0xe0] ss:$0 sps:$4 sm:$0x33]  }
 0x480   : > { %8655 = vmatpush1.bf16.xpose.msra.mxu1 %v13557_v24  ;;  %v13625_v23 = vpop.permute.xlu1 %8284  ;;  %v7421_v19 = vsel %vm2869_vm5, %v7419_v48, %v7420_v39  ;;  %v8411_v53 = vsel %vm1391_vm7, %v13491_v2, %v13057_v54  ;;  %v6779_v16 = vrot.slane %v10271_v9, 2  ;;  %v6862_v55 = vsel %vm3465_vm9, %v6830_v56, %v13476_v12  ;;  %7802 = vrot.lane.b32.xlu0 %v7756_v1, %s10322_s10  ;;  %v13668_v25 = vld [vmem:[#allocation2 + $0xa4] ss:$0 sps:$4 sm:$0x33]   ;;  %v6967_v15 = vld [vmem:[#allocation2 + $0x9c] sm:$0xc] }
 0x481   : > { %8656 = vmatprep.subr.bf16.mxu1 %v8475_v32  ;;  %v7269_v60 = vsel %vm2596_vm4, %v7264_v50, %v7268_v59  ;;  %v6778_v24 = vrot.slane %v9408_v49, 2  ;;  %v8539_v40 = vcombine.high %v13620_v63, %v13620_v63  ;;  %v7730_v54 = vor.u32 %v7729_v43, %v13604_v3  ;;  %v6898_v3 = vld [vmem:[#allocation2 + $0xa8] sm:$0xf]  ;;  %v13666_v49 = vld [vmem:[#allocation2 + $0xac] sm:$0xf] }
 0x482   : > { %8256 = vrot.lane.b32.xlu1 %v6862_v55, %s10322_s10  ;;  %v7738_v2 = vor.u32 %v7737_v45, %v13599_v13  ;;  %v7707_v12 = vshrl.u32 %v13610_v4, 16  ;;  %v7710_v32 = vshll.u32 %v13610_v4, 16  ;;  %v13646_v27 = vpop.permute.xlu0 %8088  ;;  %v7252_v37 = vor.u32 %v7251_v30, %v7247_v44  ;;  %v13658_v13 = vld [vmem:[#allocation2 + $0xbc] ss:$0 sps:$4 sm:$0x11]  }
 0x483   : > { %v7256_v59 = vrot.slane %v7254_v57, 1  ;;  %v7416_v48 = vrot.slane %v13503_v17, 1  ;;  %v7417_v14 = vrot.slane %v13512_v28, 1  ;;  %8686 = vmatprep.mubr.bf16.mxu1 %v8539_v40  ;;  %v7915_v62 = vsel %vm3400_vm8, %v12889_v38, %v13567_v26  ;;  %v10272_v26 = vld [vmem:[#allocation2 + $0xd0] sm:$0xf] }
 0x484   : > { %v7435_v52 = vpop.permute.xlu1 %7434  ;;  %v7715_v1 = vshrl.u32 %v13631_v6, 16  ;;  %v7718_v50 = vshll.u32 %v13631_v6, 16  ;;  %v13656_v39 = vcombine.low %v6900_v29, %v13637_v46  ;;  %7320 = vrot.lane.b32.xlu0 %v7269_v60, %s10321_s30  ;;  %v8471_v38 = vsel %vm3465_vm9, %v13454_v42, %v13078_v5  ;;  %v13678_v42 = vld [vmem:[#allocation2 + $0xa0] sm:$0xf] }
 0x485   : > { %v7947_v17 = vsel %vm1391_vm7, %v7915_v62, %v7435_v52  ;;  %v6780_v28 = vsel %vm3351_vm12, %v6778_v24, %v6779_v16  ;;  %v9407_v7 = vcombine.low %v5851_v35, %v10272_v26  ;;  %v7739_v45 = vsel %vm2998_vm6, %v7730_v54, %v7738_v2  ;;  %v13685_v9 = vld [vmem:[#allocation2 + $0xbc] ss:$0 sps:$4 sm:$0x33]   ;;  %v10273_v24 = vld [vmem:[#allocation2 + $0xd4] ss:$0 sps:$4 sm:$0x33]  }
 0x486   : > { %7452 = vrot.lane.b32.xlu1 %v7421_v19, %s10320_s29  ;;  %v7985_v43 = vsel %vm3465_vm9, %v7947_v17, %v13592_v51  ;;  %v13674_v44 = vrot.slane %v7707_v12, 1  ;;  %v13676_v8 = vrot.slane %v7710_v32, 2  ;;  %v7305_v30 = vpop.permute.xlu0 %7304  ;;  %v7257_v57 = vsel %vm2596_vm4, %v7252_v37, %v7256_v59 }
 0x487   : > { %8697 = vmatprep.subr.bf16.mxu0 %v7985_v43  ;;  %v7418_v56 = vsel %vm2869_vm5, %v7416_v48, %v7417_v14  ;;  %v13683_v19 = vcombine.low %v6937_v41, %v13637_v46  ;;  %v9482_v51 = vcombine.low %v6967_v15, %v13678_v42  ;;  %v7717_v55 = vrot.slane %v7715_v1, 1  ;;  %v5850_v1 = vld [vmem:[#allocation2 + $0xc0] sm:$0xc]  ;;  %v6936_v15 = vld [vmem:[#allocation2 + $0xa8] sm:$0xe] }
 0x488   : > { %8657 = vmatpush1.bf16.xpose.msra.mxu1 %v8411_v53  ;;  %v8251_v16 = vpop.permute.xlu1 %8250  ;;  %v7720_v60 = vrot.slane %v7718_v50, 2  ;;  %v6776_v29 = vrot.slane %v10273_v24, 2  ;;  %v7237_v40 = vshll.u32 %v13656_v39, 16  ;;  %7800 = vrot.lane.b32.xlu0 %v7739_v45, %s10322_s10  ;;  %v6775_v2 = vrot.slane %v9407_v7, 2  ;;  %v14582_v50 = vld [vmem:[#allocation40_spill] sm:$0xff]  ;;  %v14583_v43 = vld [vmem:[#allocation35_spill] sm:$0xff] }
 0x489   : > { %8658 = vmatprep.subr.bf16.mxu1 %v8471_v38  ;;  %v8295_v54 = vsel %vm3465_vm9, %v13098_v47, %v8251_v16  ;;  %v13693_v12 = vcombine.low %v6898_v3, %v13666_v49  ;;  %v7881_v32 = vrot.slane %v9482_v51, 2  ;;  %v7713_v53 = vor.u32 %v13676_v8, %v13674_v44  ;;  %v13718_v44 = vld [vmem:[#allocation2 + $0xb0] ss:$0 sps:$4 sm:$0x11]   ;;  %v10274_v16 = vld [vmem:[#allocation2 + $0xc4] sm:$0xf] }
 0x48a   : > { %8286 = vrot.lane.b32.xlu1 %v6780_v28, %s10322_s10  ;;  %8698 = vmatpush1.bf16.xpose.msra.mxu0 %v8295_v54  ;;  %v7235_v35 = vshrl.u32 %v13656_v39, 16  ;;  %v7242_v37 = vshll.u32 %v13658_v13, 16  ;;  %v7882_v59 = vrot.slane %v13668_v25, 2  ;;  %v7785_v47 = vpop.permute.xlu0 %7784  ;;  %v7690_v48 = vshrl.u32 %v13683_v19, 16 }
 0x48b   : > { %v7693_v14 = vshll.u32 %v13683_v19, 16  ;;  %v7698_v62 = vshrl.u32 %v13685_v9, 16  ;;  %v7701_v52 = vshll.u32 %v13685_v9, 16  ;;  %v7913_v41 = vsel %vm3400_vm8, %v14582_v50, %v7305_v30 }
 0x48c   : > { %v7433_v3 = vpop.permute.xlu1 %7432  ;;  %v7721_v17 = vor.u32 %v7720_v60, %v7717_v55  ;;  %v7239_v38 = vrot.slane %v7237_v40, 1  ;;  %v13708_v28 = vsel %vm3351_vm12, %v7881_v32, %v7882_v59  ;;  %7318 = vrot.lane.b32.xlu0 %v7257_v57, %s10321_s30  ;;  %v8407_v7 = vsel %vm1391_vm7, %v13440_v58, %v14569_v61  ;;  %v13724_v60 = vld [vmem:[#allocation2 + $0xb0] ss:$0 sps:$4 sm:$0x33]  }
 0x48d   : > { %v7945_v26 = vsel %vm1391_vm7, %v7913_v41, %v7433_v3  ;;  %v8467_v45 = vsel %vm3465_vm9, %v13449_v22, %v14583_v43  ;;  %v7225_v8 = vshll.u32 %v13693_v12, 16  ;;  %v6777_v51 = vsel %vm3351_vm12, %v6775_v2, %v6776_v29 }
 0x48e   : > { %7450 = vrot.lane.b32.xlu1 %v7418_v56, %s10320_s29  ;;  %v7982_v30 = vsel %vm3465_vm9, %v7945_v26, %v7785_v47  ;;  %v7244_v57 = vrot.slane %v7242_v37, 1  ;;  %v9406_v55 = vcombine.low %v5850_v1, %v10274_v16  ;;  %v13726_v58 = vpop.permute.xlu0 %8181  ;;  %v7692_v22 = vrot.slane %v7690_v48, 1  ;;  %v10275_v26 = vld [vmem:[#allocation2 + $0xc8] ss:$0 sps:$4 sm:$0x33]  }
 0x48f   : > { %8699 = vmatprep.subr.bf16.mxu0 %v7982_v30  ;;  %v7695_v61 = vrot.slane %v7693_v14, 2  ;;  %v7700_v24 = vrot.slane %v7698_v62, 1  ;;  %v7703_v40 = vrot.slane %v7701_v52, 2  ;;  %v7722_v56 = vsel %vm2998_vm6, %v7713_v53, %v7721_v17  ;;  %v6896_v14 = vld [vmem:[#allocation2 + $0x9c] sm:$0xf]  ;;  %v14584_v62 = vld [vmem:[#allocation33_spill] sm:$0xff] }
 0x490   : > { %8659 = vmatpush1.bf16.xpose.msra.mxu1 %v8407_v7  ;;  %v13728_v54 = vpop.permute.xlu1 %8179  ;;  %v7240_v32 = vor.u32 %v7239_v38, %v7235_v35  ;;  %v7413_v29 = vrot.slane %v13559_v18, 1  ;;  %v13733_v2 = vcombine.low %v6936_v15, %v13666_v49  ;;  %7798 = vrot.lane.b32.xlu0 %v7722_v56, %s10322_s10  ;;  %v7414_v37 = vrot.slane %v13537_v0, 1  ;;  %v14585_v52 = vld [vmem:[#allocation58_spill] sm:$0xff]  ;;  %v14586_v35 = vld [vmem:[#allocation51_spill] sm:$0xff] }
 0x491   : > { %8660 = vmatprep.subr.bf16.mxu1 %v8467_v45  ;;  %v7223_v59 = vshrl.u32 %v13693_v12, 16  ;;  %v7227_v47 = vrot.slane %v7225_v8, 1  ;;  %v7230_v48 = vshll.u32 %v13718_v44, 16  ;;  %v8099_v53 = vsel %vm3400_vm8, %v14585_v52, %v14584_v62  ;;  %v14587_v18 = vld [vmem:[#allocation14_spill] sm:$0xff] }
 0x492   : > { %v8195_v1 = vsel %vm1391_vm7, %v14587_v18, %v14586_v35  ;;  %8282 = vrot.lane.b32.xlu1 %v6777_v51, %s10322_s10  ;;  %v7681_v50 = vshrl.u32 %v13724_v60, 16  ;;  %v7684_v0 = vshll.u32 %v13724_v60, 16  ;;  %v13748_v41 = vpop.permute.xlu0 %8084  ;;  %v7696_v3 = vor.u32 %v7695_v61, %v7692_v22  ;;  %v6935_v16 = vld [vmem:[#allocation2 + $0x9c] sm:$0xe] }
 0x493   : > { %v7704_v17 = vor.u32 %v7703_v40, %v7700_v24  ;;  %v6772_v38 = vrot.slane %v9406_v55, 2  ;;  %v6773_v7 = vrot.slane %v10275_v26, 2  ;;  %v7245_v8 = vsel %vm2596_vm4, %v7240_v32, %v7244_v57  ;;  %v5849_v24 = vld [vmem:[#allocation2 + $0xb4] sm:$0xc]  ;;  %v14589_v57 = vld [vmem:[#allocation63_spill] sm:$0xff] }
 0x494   : > { %v8247_v45 = vpop.permute.xlu1 %8246  ;;  %v7673_v15 = vshrl.u32 %v13733_v2, 16  ;;  %v7676_v30 = vshll.u32 %v13733_v2, 16  ;;  %v13754_v51 = vcombine.low %v6896_v14, %v13678_v42  ;;  %7316 = vrot.lane.b32.xlu0 %v7245_v8, %s10321_s30  ;;  %v7415_v55 = vsel %vm2869_vm5, %v7413_v29, %v7414_v37  ;;  %v14588_v40 = vld [vmem:[#allocation45_spill] sm:$0xff]  ;;  %v13768_v52 = vld [vmem:[#allocation2 + $0xa4] ss:$0 sps:$4 sm:$0x11]  }
 0x495   : > { %v8294_v56 = vsel %vm3465_vm9, %v13078_v5, %v8247_v45  ;;  %v7228_v22 = vor.u32 %v7227_v47, %v7223_v59  ;;  %v7232_v61 = vrot.slane %v7230_v48, 1  ;;  %v8098_v32 = vsel %vm3400_vm8, %v14589_v57, %v14588_v40  ;;  %v14590_v29 = vld [vmem:[#allocation43_spill] sm:$0xff]  ;;  %v6894_v26 = vld [vmem:[#allocation2 + $0x90] sm:$0xf]  ;;  %v14591_v45 = vld [vmem:[#allocation20_spill] sm:$0xff] }
 0x496   : > { %7448 = vrot.lane.b32.xlu1 %v7415_v55, %s10320_s29  ;;  %8700 = vmatpush1.bf16.xpose.msra.mxu0 %v8294_v56  ;;  %v8403_v14 = vsel %vm1391_vm7, %v8099_v53, %v14567_v21  ;;  %v13766_v62 = vrot.slane %v7681_v50, 1  ;;  %v7686_v5 = vrot.slane %v7684_v0, 2  ;;  %v7303_v35 = vpop.permute.xlu0 %7302  ;;  %v8463_v37 = vsel %vm3465_vm9, %v8195_v1, %v14590_v29  ;;  %v13780_v56 = vld [vmem:[#allocation2 + $0x94] sm:$0xf] }
 0x497   : > { %v7705_v59 = vsel %vm2998_vm6, %v7696_v3, %v7704_v17  ;;  %v6774_v47 = vsel %vm3351_vm12, %v6772_v38, %v6773_v7  ;;  %v13775_v48 = vcombine.low %v6935_v16, %v13678_v42  ;;  %v7911_v21 = vsel %vm3400_vm8, %v14591_v45, %v7303_v35  ;;  %v10276_v17 = vld [vmem:[#allocation2 + $0xb8] sm:$0xf]  ;;  %v14594_v35 = vld [vmem:[#allocation55_spill] sm:$0xff] }
 0x498   : > { %8661 = vmatpush1.bf16.xpose.msra.mxu1 %v8403_v14  ;;  %v7431_v53 = vpop.permute.xlu1 %7430  ;;  %v7675_v50 = vrot.slane %v7673_v15, 1  ;;  %v7678_v0 = vrot.slane %v7676_v30, 2  ;;  %v7213_v8 = vshll.u32 %v13754_v51, 16  ;;  %7796 = vrot.lane.b32.xlu0 %v7705_v59, %s10322_s10  ;;  %v7233_v1 = vsel %vm2596_vm4, %v7228_v22, %v7232_v61 }
 0x499   : > { %8662 = vmatprep.subr.bf16.mxu1 %v8463_v37  ;;  %v7410_v42 = vrot.slane %v13610_v4, 1  ;;  %v7411_v3 = vrot.slane %v13590_v33, 1  ;;  %v9405_v38 = vcombine.low %v5849_v24, %v10276_v17  ;;  %v7687_v7 = vor.u32 %v7686_v5, %v13766_v62  ;;  %v13801_v5 = vld [vmem:[#allocation2 + $0x98] ss:$0 sps:$4 sm:$0x11]  }
 0x49a   : > { %8278 = vrot.lane.b32.xlu1 %v6774_v47, %s10322_s10  ;;  %v7218_v15 = vshll.u32 %v13768_v52, 16  ;;  %v7664_v30 = vshrl.u32 %v13668_v25, 16  ;;  %v7667_v16 = vshll.u32 %v13668_v25, 16  ;;  %v7943_v55 = vsel %vm1391_vm7, %v7911_v21, %v7431_v53  ;;  %v7783_v40 = vpop.permute.xlu0 %7782  ;;  %v14593_v25 = vld [vmem:[#allocation73_spill] sm:$0xff]  ;;  %v5848_v21 = vld [vmem:[#allocation2 + $0xa8] sm:$0xc] }
 0x49b   : > { %v7656_v22 = vshrl.u32 %v13775_v48, 16  ;;  %v7659_v4 = vshll.u32 %v13775_v48, 16  ;;  %v13795_v33 = vcombine.low %v6894_v26, %v13780_v56  ;;  %v7979_v24 = vsel %vm3465_vm9, %v7943_v55, %v7783_v40  ;;  %v10277_v26 = vld [vmem:[#allocation2 + $0xbc] ss:$0 sps:$4 sm:$0x33]  }
 0x49c   : > { %v13797_v61 = vpop.permute.xlu1 %8175  ;;  %v7679_v57 = vor.u32 %v7678_v0, %v7675_v50  ;;  %v7211_v14 = vshrl.u32 %v13754_v51, 16  ;;  %v7215_v62 = vrot.slane %v7213_v8, 1  ;;  %v8194_v37 = vsel %vm1391_vm7, %v14594_v35, %v14593_v25  ;;  %7314 = vrot.lane.b32.xlu0 %v7233_v1, %s10321_s30  ;;  %8701 = vmatprep.subr.bf16.mxu0 %v7979_v24  ;;  %v6934_v53 = vld [vmem:[#allocation2 + $0x90] sm:$0xe]  ;;  %v14595_v0 = vld [vmem:[#allocation70_spill] sm:$0xff] }
 0x49d   : > { %14592 = vst [vmem:[#allocation65_spill] sm:$0xff] %v13795_v33  ;;  %v7412_v59 = vsel %vm2869_vm5, %v7410_v42, %v7411_v3  ;;  %v6769_v47 = vrot.slane %v9405_v38, 2  ;;  %v6770_v45 = vrot.slane %v10277_v26, 2  ;;  %v8399_v50 = vsel %vm1391_vm7, %v8098_v32, %v14587_v18  ;;  %v13813_v40 = vld [vmem:[#allocation2 + $0x98] ss:$0 sps:$4 sm:$0x33]  }
 0x49e   : > { %7446 = vrot.lane.b32.xlu1 %v7412_v59, %s10320_s29  ;;  %v8459_v8 = vsel %vm3465_vm9, %v8194_v37, %v14595_v0  ;;  %v7666_v17 = vrot.slane %v7664_v30, 1  ;;  %v7669_v55 = vrot.slane %v7667_v16, 2  ;;  %v13815_v1 = vpop.permute.xlu0 %8177  ;;  %v7407_v42 = vrot.slane %v13683_v19, 1  ;;  %v14596_v26 = vld [vmem:[#allocation16_spill] sm:$0xff] }
 0x49f   : > { %v7658_v3 = vrot.slane %v7656_v22, 1  ;;  %v7661_v38 = vrot.slane %v7659_v4, 2  ;;  %v7201_v24 = vshll.u32 %v13795_v33, 16  ;;  %v7688_v59 = vsel %vm2998_vm6, %v7679_v57, %v7687_v7  ;;  %v10278_v22 = vld [vmem:[#allocation2 + $0xac] sm:$0xf] }
 0x4a0   : > { %8663 = vmatpush1.bf16.xpose.msra.mxu1 %v8399_v50  ;;  %v8243_v25 = vpop.permute.xlu1 %8242  ;;  %v7216_v18 = vor.u32 %v7215_v62, %v7211_v14  ;;  %v7220_v32 = vrot.slane %v7218_v15, 1  ;;  %v13821_v37 = vcombine.low %v6934_v53, %v13780_v56  ;;  %7794 = vrot.lane.b32.xlu0 %v7688_v59, %s10322_s10  ;;  %v6771_v19 = vsel %vm3351_vm12, %v6769_v47, %v6770_v45  ;;  %v14597_v50 = vld [vmem:[#allocation78_spill] sm:$0xff] }
 0x4a1   : > { %8664 = vmatprep.subr.bf16.mxu1 %v8459_v8  ;;  %v8293_v30 = vsel %vm3465_vm9, %v14583_v43, %v8243_v25  ;;  %v7408_v16 = vrot.slane %v13658_v13, 1  ;;  %v9404_v4 = vcombine.low %v5848_v21, %v10278_v22  ;;  %v8097_v7 = vsel %vm3400_vm8, %v14597_v50, %v14596_v26  ;;  %v14599_v25 = vld [vmem:[#allocation77_spill] sm:$0xff] }
 0x4a2   : > { %8274 = vrot.lane.b32.xlu1 %v6771_v19, %s10322_s10  ;;  %8702 = vmatpush1.bf16.xpose.msra.mxu0 %v8293_v30  ;;  %v7670_v15 = vor.u32 %v7669_v55, %v7666_v17  ;;  %v7206_v57 = vshll.u32 %v13801_v5, 16  ;;  %v13833_v14 = vpop.permute.xlu0 %8080  ;;  %v7662_v43 = vor.u32 %v7661_v38, %v7658_v3  ;;  %v7199_v62 = vshrl.u32 %v13795_v33, 16  ;;  %v14598_v55 = vld [vmem:[#allocation24_spill] sm:$0xff]  ;;  %v5847_v19 = vld [vmem:[#allocation2 + $0x9c] sm:$0xc]  ;;  %v14600_v33 = vld [vmem:[#allocation57_spill] sm:$0xff] }
 0x4a3   : > { %v7203_v47 = vrot.slane %v7201_v24, 1  ;;  %v7647_v13 = vshrl.u32 %v13813_v40, 16  ;;  %v7221_v21 = vsel %vm2596_vm4, %v7216_v18, %v7220_v32  ;;  %v7639_v53 = vshrl.u32 %v13821_v37, 16  ;;  %v10279_v24 = vld [vmem:[#allocation2 + $0xb0] ss:$0 sps:$4 sm:$0x33]  }
 0x4a4   : > { %v13837_v45 = vpop.permute.xlu1 %8272  ;;  %v7642_v8 = vshll.u32 %v13821_v37, 16  ;;  %v7650_v17 = vshll.u32 %v13813_v40, 16  ;;  %v8193_v59 = vsel %vm1391_vm7, %v14599_v25, %v14598_v55  ;;  %7312 = vrot.lane.b32.xlu0 %v7221_v21, %s10321_s30  ;;  %v7409_v3 = vsel %vm2869_vm5, %v7407_v42, %v7408_v16 }
 0x4a5   : > { %v6766_v38 = vrot.slane %v9404_v4, 2  ;;  %v6767_v30 = vrot.slane %v10279_v24, 2  ;;  %v8395_v18 = vsel %vm1391_vm7, %v8097_v7, %v14594_v35  ;;  %v8455_v32 = vsel %vm3465_vm9, %v8193_v59, %v13363_v20 }
 0x4a6   : > { %7444 = vrot.lane.b32.xlu1 %v7409_v3, %s10320_s29  ;;  %v7301_v22 = vpop.permute.xlu0 %7300  ;;  %v7671_v26 = vsel %vm2998_vm6, %v7662_v43, %v7670_v15  ;;  %v7204_v50 = vor.u32 %v7203_v47, %v7199_v62  ;;  %v7208_v55 = vrot.slane %v7206_v57, 1  ;;  %v7649_v21 = vrot.slane %v7647_v13, 1  ;;  %v10280_v43 = vld [vmem:[#allocation2 + $0xa0] sm:$0xf]  ;;  %v14601_v62 = vld [vmem:[#allocation80_spill] sm:$0xff] }
 0x4a7   : > { %v7909_v42 = vsel %vm3400_vm8, %v14600_v33, %v7301_v22  ;;  %v7641_v4 = vrot.slane %v7639_v53, 1  ;;  %v7644_v3 = vrot.slane %v7642_v8, 2  ;;  %v7652_v24 = vrot.slane %v7650_v17, 2  ;;  %v14602_v33 = vld [vmem:[#allocation89_spill] sm:$0xff] }
 0x4a8   : > { %8665 = vmatpush1.bf16.xpose.msra.mxu1 %v8395_v18  ;;  %v7429_v16 = vpop.permute.xlu1 %7428  ;;  %7792 = vrot.lane.b32.xlu0 %v7671_v26, %s10322_s10  ;;  %v6768_v35 = vsel %vm3351_vm12, %v6766_v38, %v6767_v30  ;;  %v7404_v7 = vrot.slane %v13733_v2, 1  ;;  %v7405_v15 = vrot.slane %v13718_v44, 1  ;;  %v9403_v57 = vcombine.low %v5847_v19, %v10280_v43  ;;  %v10281_v18 = vld [vmem:[#allocation2 + $0xa4] ss:$0 sps:$4 sm:$0x33]   ;;  %v14603_v22 = vld [vmem:[#allocation49_spill] sm:$0xff] }
 0x4a9   : > { %8666 = vmatprep.subr.bf16.mxu1 %v8455_v32  ;;  %v8096_v47 = vsel %vm3400_vm8, %v14602_v33, %v14601_v62  ;;  %v7941_v13 = vsel %vm1391_vm7, %v7909_v42, %v7429_v16  ;;  %v7209_v17 = vsel %vm2596_vm4, %v7204_v50, %v7208_v55  ;;  %v7645_v2 = vor.u32 %v7644_v3, %v7641_v4  ;;  %v5846_v19 = vld [vmem:[#allocation2 + $0x90] sm:$0xc]  ;;  %v14605_v43 = vld [vmem:[#allocation98_spill] sm:$0xff] }
 0x4aa   : > { %8270 = vrot.lane.b32.xlu1 %v6768_v35, %s10322_s10  ;;  %v7781_v53 = vpop.permute.xlu0 %7780  ;;  %v7653_v38 = vor.u32 %v7652_v24, %v7649_v21  ;;  %v7406_v44 = vsel %vm2869_vm5, %v7404_v7, %v7405_v15  ;;  %v6763_v30 = vrot.slane %v9403_v57, 2  ;;  %v6764_v32 = vrot.slane %v10281_v18, 2  ;;  %v14604_v21 = vld [vmem:[#allocation84_spill] sm:$0xff]  ;;  %v8515_v15 = vld [vmem:[%s14128_s6] sm:$0x7] }
 0x4ab   : > { %v7976_v59 = vsel %vm3465_vm9, %v7941_v13, %v7781_v53  ;;  %v8192_v26 = vsel %vm1391_vm7, %v14603_v22, %v13458_v31  ;;  %v8391_v55 = vsel %vm1391_vm7, %v8096_v47, %v14599_v25  ;;  %v7401_v3 = vrot.slane %v13775_v48, 1  ;;  %v10282_v25 = vld [vmem:[#allocation2 + $0x94] sm:$0xf]  ;;  %v14606_v57 = vld [vmem:[#allocation31_spill] sm:$0xff]  ;;  %v13907_v18 = vld [vmem:[%s14127_s5 + $0x8] sm:$0x3f] }
 0x4ac   : > { %v13865_v8 = vpop.permute.xlu1 %8171  ;;  %7310 = vrot.lane.b32.xlu0 %v7209_v17, %s10321_s30  ;;  %8703 = vmatprep.subr.bf16.mxu0 %v7976_v59  ;;  %v8451_v42 = vsel %vm3465_vm9, %v8192_v26, %v14604_v21  ;;  %v7654_v4 = vsel %vm2998_vm6, %v7645_v2, %v7653_v38  ;;  %v6765_v31 = vsel %vm3351_vm12, %v6763_v30, %v6764_v32  ;;  %v7402_v35 = vrot.slane %v13768_v52, 1  ;;  %v10283_v13 = vld [vmem:[#allocation2 + $0x98] ss:$0 sps:$4 sm:$0x33]   ;;  %v5845_v17 = vld [vmem:[#allocation2 + $0x84] sm:$0xc] }
 0x4ad   : > { %v9402_v7 = vcombine.low %v5846_v19, %v10282_v25  ;;  %v6761_v53 = vrot.slane %v10283_v13, 2  ;;  %v7398_v30 = vrot.slane %v13821_v37, 1  ;;  %v7399_v26 = vrot.slane %v13801_v5, 1  ;;  %v10285_v25 = vld [vmem:[#allocation2 + $0x8c] ss:$0 sps:$4 sm:$0x33]  }
 0x4ae   : > { %7442 = vrot.lane.b32.xlu1 %v7406_v44, %s10320_s29  ;;  %v13875_v50 = vpop.permute.xlu0 %8173  ;;  %v7403_v47 = vsel %vm2869_vm5, %v7401_v3, %v7402_v35 }
 0x4af   : > { %v6760_v52 = vrot.slane %v9402_v7, 2  ;;  %v7400_v35 = vsel %vm2869_vm5, %v7398_v30, %v7399_v26  ;;  %v6758_v7 = vrot.slane %v10285_v25, 2 }
 0x4b0   : > { %8667 = vmatpush1.bf16.xpose.msra.mxu1 %v8391_v55  ;;  %v8239_v16 = vpop.permute.xlu1 %8238  ;;  %7790 = vrot.lane.b32.xlu0 %v7654_v4, %s10322_s10  ;;  %v10284_v55 = vld [vmem:[#allocation2 + $0x88] sm:$0xf] }
 0x4b1   : > { %8668 = vmatprep.subr.bf16.mxu1 %v8451_v42  ;;  %v8292_v24 = vsel %vm3465_vm9, %v14590_v29, %v8239_v16  ;;  %v8095_v29 = vsel %vm3400_vm8, %v14606_v57, %v14605_v43  ;;  %v6762_v19 = vsel %vm3351_vm12, %v6760_v52, %v6761_v53  ;;  %v9401_v42 = vcombine.low %v5845_v17, %v10284_v55  ;;  %v14609_v43 = vld [vmem:[#allocation62_spill] sm:$0xff] }
 0x4b2   : > { %8266 = vrot.lane.b32.xlu1 %v6765_v31, %s10322_s10  ;;  %8704 = vmatpush1.bf16.xpose.msra.mxu0 %v8292_v24  ;;  %v13892_v48 = vpop.permute.xlu0 %8076  ;;  %v8387_v38 = vsel %vm1391_vm7, %v8095_v29, %v14603_v22  ;;  %v13913_v22 = vrot.slane %v13907_v18, %v13138_v10  ;;  %v14607_v24 = vld [vmem:[#allocation92_spill] sm:$0xff]  ;;  %v8205_v55 = vsel %vm1391_vm7, %v13728_v54, %v13726_v58 }
 0x4b3   : > { %v9665_v33 = vpop.f32.mrf.mxu1  ;;  %v6757_v5 = vrot.slane %v9401_v42, 2  ;;  %v14612_v58 = vld [vmem:[#allocation72_spill] sm:$0xff] }
 0x4b4   : > { %v8184_v62 = vpop.permute.xlu1 %8183  ;;  %8518 = vperm.xlu0 %9703, %v8515_v15   ;;  %v8555_v4 = vcombine.high %v13913_v22, %v13913_v22  ;;  %v14608_v15 = vld [vmem:[#allocation99_spill] sm:$0xff] }
 0x4b5   : > { %v1758_v59 = vpop.f32.mrf.mxu1  ;;  %v8110_v57 = vsel %vm3400_vm8, %v14609_v43, %v14608_v15  ;;  %v6759_v13 = vsel %vm3351_vm12, %v6757_v5, %v6758_v7 }
 0x4b6   : > { %7440 = vrot.lane.b32.xlu1 %v7403_v47, %s10320_s29  ;;  %v7299_v2 = vpop.permute.xlu0 %7298  ;;  %8727 = vmatprep.mubr.bf16.mxu0 %v8555_v4  ;;  %v8206_v59 = vsel %vm1391_vm7, %v8184_v62, %v13615_v11  ;;  %v14611_v11 = vld [vmem:[#allocation60_spill] sm:$0xff] }
 0x4b7   : > { %v9666_v32 = vpop.f32.mrf.mxu1 }
 0x4b8   : > { %8669 = vmatpush1.bf16.xpose.msra.mxu1 %v8387_v38  ;;  %v13901_v44 = vpop.permute.xlu1 %8276 }
 0x4b9   : > { %v1761_v16 = vpop.f32.mrf.mxu1 }
 0x4ba   : > { %8262 = vrot.lane.b32.xlu1 %v6762_v19, %s10322_s10  ;;  %v7779_v37 = vpop.permute.xlu0 %7778  ;;  %v14610_v19 = vld [vmem:[#allocation21_spill] sm:$0xff] }
 0x4bb   : > { %v8109_v26 = vsel %vm3400_vm8, %v14610_v19, %v13646_v27  ;;  %v14614_v19 = vld [vmem:[#allocation82_spill] sm:$0xff] }
 0x4bc   : > { %v8188_v3 = vpop.permute.xlu1 %8187  ;;  %v8443_v42 = vsel %vm1391_vm7, %v8109_v26, %v8184_v62  ;;  %v8108_v62 = vsel %vm3400_vm8, %v14612_v58, %v13748_v41 }
 0x4bd   : > { %v8207_v31 = vsel %vm1391_vm7, %v8188_v3, %v14607_v24  ;;  %v8447_v33 = vsel %vm1391_vm7, %v8110_v57, %v8188_v3  ;;  %v7907_v3 = vsel %vm3400_vm8, %v14611_v11, %v7299_v2  ;;  %v8204_v2 = vsel %vm1391_vm7, %v13797_v61, %v13815_v1 }
 0x4be   : > { %7438 = vrot.lane.b32.xlu1 %v7400_v35, %s10320_s29  ;;  %v8511_v29 = vsel %vm3465_vm9, %v8207_v31, %v13625_v23  ;;  %v8170_v47 = vpop.permute.xlu0 %8169  ;;  %v8503_v31 = vsel %vm3465_vm9, %v8205_v55, %v13901_v44  ;;  %v8439_v43 = vsel %vm1391_vm7, %v8108_v62, %v13728_v54  ;;  %v8203_v54 = vsel %vm1391_vm7, %v13865_v8, %v13875_v50  ;;  %s9492_s29 = sshll.u32 %s14624_s25, 3 }
 0x4bf   : > { %8670 = vmatprep.subr.bf16.mxu1 %v8511_v29  ;;  %s278_s9 = scalar_lea.vmem %s14129_s7, %s9492_s29 }
 0x4c0   : > { %8671 = vmatpush2.bf16.xpose.msra.mxu1 %v8447_v33  ;;  %v13928_v52 = vpop.permute.xlu1 %8268 }
 0x4c2   : > { %8258 = vrot.lane.b32.xlu1 %v6759_v13, %s10322_s10  ;;  %v13932_v53 = vpop.permute.xlu0 %8072  ;;  %v14613_v13 = vld [vmem:[#allocation74_spill] sm:$0xff] }
 0x4c3   : > { %v9669_v17 = vpop.f32.mrf.mxu1  ;;  %v8107_v1 = vsel %vm3400_vm8, %v14613_v13, %v13833_v14  ;;  %v8495_v14 = vsel %vm3465_vm9, %v8203_v54, %v13928_v52  ;;  %v14617_v13 = vld [vmem:[#allocation112_spill] sm:$0xff] }
 0x4c4   : > { %v13936_v38 = vpop.permute.xlu1 %8280 }
 0x4c5   : > { %v8507_v30 = vsel %vm3465_vm9, %v8206_v59, %v13936_v38  ;;  %v1774_v32 = vpop.f32.mrf.mxu1 }
 0x4c6   : > { %8672 = vmatprep.subr.bf16.mxu1 %v8507_v30  ;;  %v7297_v16 = vpop.permute.xlu0 %7296  ;;  %v8435_v32 = vsel %vm1391_vm7, %v8107_v1, %v13797_v61 }
 0x4c7   : > { %v9670_v4 = vpop.f32.mrf.mxu1  ;;  %v7905_v26 = vsel %vm3400_vm8, %v14614_v19, %v7297_v16  ;;  %v14618_v19 = vld [vmem:[#allocation18_spill] sm:$0xff] }
 0x4c8   : > { %8673 = vmatpush2.bf16.xpose.msra.mxu1 %v8443_v42  ;;  %v7427_v24 = vpop.permute.xlu1 %7426 }
 0x4c9   : > { %v7939_v35 = vsel %vm1391_vm7, %v7907_v3, %v7427_v24  ;;  %8674 = vmatprep.subr.bf16.mxu1 %v8503_v31  ;;  %v1777_v27 = vpop.f32.mrf.mxu1  ;;  %v14615_v3 = vld [vmem:[#allocation53_spill] sm:$0xff] }
 0x4ca   : > { %v7973_v5 = vsel %vm3465_vm9, %v7939_v35, %v7779_v37  ;;  %v7777_v25 = vpop.permute.xlu0 %7776  ;;  %v8499_v37 = vsel %vm3465_vm9, %v8204_v2, %v13837_v45  ;;  %v8106_v61 = vsel %vm3400_vm8, %v14615_v3, %v13892_v48  ;;  %v10287_v3 = vld [vmem:[#allocation2 + $0xec] ss:$0 sps:$4 sm:$0x33]  }
 0x4cb   : > { %8705 = vmatprep.subr.bf16.mxu0 %v7973_v5  ;;  %v8431_v35 = vsel %vm1391_vm7, %v8106_v61, %v13865_v8  ;;  %v7900_v61 = vrot.slane %v10287_v3, 2 }
 0x4cc   : > { %v8168_v7 = vpop.permute.xlu1 %8167 }
 0x4cd   : > { %v8202_v16 = vsel %vm1391_vm7, %v8168_v7, %v8170_v47 }
 0x4ce   : > { %v8166_v15 = vpop.permute.xlu0 %8165 }
 0x4d0   : > { %8675 = vmatpush2.bf16.xpose.msra.mxu1 %v8439_v43  ;;  %v8235_v57 = vpop.permute.xlu1 %8234  ;;  %v14616_v43 = vld [vmem:[#allocation66_spill] sm:$0xff] }
 0x4d1   : > { %v8291_v29 = vsel %vm3465_vm9, %v14595_v0, %v8235_v57  ;;  %8676 = vmatprep.subr.bf16.mxu1 %v8499_v37  ;;  %v8105_v8 = vsel %vm3400_vm8, %v14616_v43, %v13932_v53 }
 0x4d2   : > { %8706 = vmatpush1.bf16.xpose.msra.mxu0 %v8291_v29  ;;  %v8069_v41 = vpop.permute.xlu0 %8068  ;;  %v8427_v37 = vsel %vm1391_vm7, %v8105_v8, %v8168_v7  ;;  %v10289_v8 = vld [vmem:[#allocation2 + $0xdc] sm:$0xf] }
 0x4d3   : > { %v9673_v33 = vpop.f32.mrf.mxu1 }
 0x4d4   : > { %v13968_v17 = vpop.permute.xlu1 %8264 }
 0x4d5   : > { %v1790_v59 = vpop.f32.mrf.mxu1  ;;  %v8491_v5 = vsel %vm3465_vm9, %v8202_v16, %v13968_v17 }
 0x4d6   : > { %v7295_v30 = vpop.permute.xlu0 %7294 }
 0x4d7   : > { %v9674_v0 = vpop.f32.mrf.mxu1 }
 0x4d8   : > { %8677 = vmatpush2.bf16.xpose.msra.mxu1 %v8435_v32  ;;  %v7425_v55 = vpop.permute.xlu1 %7424  ;;  %v6973_v0 = vld [vmem:[#allocation2 + $0xe4] sm:$0xc] }
 0x4d9   : > { %v7937_v42 = vsel %vm1391_vm7, %v7905_v26, %v7425_v55  ;;  %8678 = vmatprep.subr.bf16.mxu1 %v8495_v14  ;;  %v1793_v4 = vpop.f32.mrf.mxu1  ;;  %v10286_v26 = vld [vmem:[#allocation2 + $0xe8] sm:$0xf] }
 0x4da   : > { %v7970_v11 = vsel %vm3465_vm9, %v7937_v42, %v7777_v25  ;;  %v7775_v50 = vpop.permute.xlu0 %7774  ;;  %v9488_v55 = vcombine.low %v6973_v0, %v10286_v26  ;;  %v10291_v0 = vld [vmem:[#allocation2 + $0xe0] ss:$0 sps:$4 sm:$0x33]  }
 0x4db   : > { %8707 = vmatprep.subr.bf16.mxu0 %v7970_v11  ;;  %v6965_v11 = vld [vmem:[#allocation2 + $0x84] sm:$0xc] }
 0x4dc   : > { %v8164_v24 = vpop.permute.xlu1 %8163 }
 0x4dd   : > { %v8201_v29 = vsel %vm1391_vm7, %v8164_v24, %v8166_v15  ;;  %v8104_v15 = vsel %vm3400_vm8, %v14618_v19, %v8069_v41  ;;  %v7897_v19 = vrot.slane %v10291_v0, 2  ;;  %v10298_v0 = vld [vmem:[#allocation2 + $0xc4] sm:$0xf] }
 0x4de   : > { %v8162_v31 = vpop.permute.xlu0 %8161 }
 0x4df   : > { %v9677_v58 = vpop.f32.mrf.mxu1 }
 0x4e0   : > { %8679 = vmatpush2.bf16.xpose.msra.mxu1 %v8431_v35  ;;  %v8231_v27 = vpop.permute.xlu1 %8230  ;;  %v6972_v35 = vld [vmem:[#allocation2 + $0xd8] sm:$0xc] }
 0x4e1   : > { %v8290_v25 = vsel %vm3465_vm9, %v13363_v20, %v8231_v27  ;;  %8680 = vmatprep.subr.bf16.mxu1 %v8491_v5  ;;  %v1806_v62 = vpop.f32.mrf.mxu1  ;;  %v7903_v20 = vsel %vm3400_vm8, %v14617_v13, %v7295_v30  ;;  %v8423_v30 = vsel %vm1391_vm7, %v8104_v15, %v8164_v24  ;;  %v10288_v5 = vld [vmem:[#allocation2 + $0x88] sm:$0xf] }
 0x4e2   : > { %8708 = vmatpush1.bf16.xpose.msra.mxu0 %v8290_v25  ;;  %v8065_v48 = vpop.permute.xlu0 %8064  ;;  %v9480_v58 = vcombine.low %v6965_v11, %v10288_v5  ;;  %v14619_v25 = vld [vmem:[#allocation41_spill] sm:$0xff]  ;;  %v14621_v11 = vld [vmem:[#allocation87_spill] sm:$0xff] }
 0x4e3   : > { %v9678_v47 = vpop.f32.mrf.mxu1  ;;  %v8103_v62 = vsel %vm3400_vm8, %v14619_v25, %v8065_v48 }
 0x4e4   : > { %v13991_v2 = vpop.permute.xlu1 %8260  ;;  %v7875_v13 = vrot.slane %v9480_v58, 2  ;;  %v10294_v58 = vld [vmem:[#allocation2 + $0xd0] sm:$0xf] }
 0x4e5   : > { %v1809_v57 = vpop.f32.mrf.mxu1  ;;  %v8487_v59 = vsel %vm3465_vm9, %v8201_v29, %v13991_v2 }
 0x4e6   : > { %v7325_v33 = vpop.permute.xlu0 %7324  ;;  %v9487_v57 = vcombine.low %v6972_v35, %v10289_v8 }
 0x4e8   : > { %8681 = vmatpush2.bf16.xpose.msra.mxu1 %v8427_v37  ;;  %v7423_v1 = vpop.permute.xlu1 %7422 }
 0x4e9   : > { %v7935_v54 = vsel %vm1391_vm7, %v7903_v20, %v7423_v1  ;;  %8682 = vmatprep.subr.bf16.mxu1 %v8487_v59  ;;  %v10290_v20 = vld [vmem:[#allocation2 + $0x8c] ss:$0 sps:$4 sm:$0x33]   ;;  %v8540_v59 = vcombine.high %v13907_v18, %v13907_v18 }
 0x4ea   : > { %v7967_v32 = vsel %vm3465_vm9, %v7935_v54, %v7775_v50  ;;  %v7805_v53 = vpop.permute.xlu0 %7804  ;;  %v7899_v50 = vrot.slane %v9488_v55, 2  ;;  %v7876_v1 = vrot.slane %v10290_v20, 2  ;;  %v10292_v55 = vld [vmem:[#allocation2 + $0x7c] sm:$0xf] }
 0x4eb   : > { %8709 = vmatprep.subr.bf16.mxu0 %v7967_v32  ;;  %v7896_v32 = vrot.slane %v9487_v57, 2  ;;  %v10296_v57 = vld [vmem:[#allocation2 + $0xd4] ss:$0 sps:$4 sm:$0x33]  }
 0x4ec   : > { %v8160_v7 = vpop.permute.xlu1 %8159  ;;  %v7901_v43 = vsel %vm3351_vm12, %v7899_v50, %v7900_v61  ;;  %v7877_v26 = vsel %vm3351_vm12, %v7875_v13, %v7876_v1  ;;  %v6970_v13 = vld [vmem:[#allocation2 + $0xc0] sm:$0xc] }
 0x4ed   : > { %v8200_v27 = vsel %vm1391_vm7, %v8160_v7, %v8162_v31  ;;  %v8419_v31 = vsel %vm1391_vm7, %v8103_v62, %v8160_v7  ;;  %v7898_v50 = vsel %vm3351_vm12, %v7896_v32, %v7897_v19  ;;  %v8587_v61 = vsel %vm3400_vm8, %v7877_v26, 0  ;;  %v10295_v62 = vld [vmem:[#allocation2 + $0x70] sm:$0xf] }
 0x4ee   : > { %v7323_v14 = vpop.permute.xlu0 %7322  ;;  %v9485_v19 = vcombine.low %v6970_v13, %v10298_v0 }
 0x4f0   : > { %8683 = vmatpush2.bf16.xpose.msra.mxu1 %v8423_v30  ;;  %v8227_v42 = vpop.permute.xlu1 %8226 }
 0x4f1   : > { %v8289_v4 = vsel %vm3465_vm9, %v14604_v21, %v8227_v42  ;;  %v14620_v21 = vld [vmem:[#allocation37_spill] sm:$0xff]  ;;  %v14027_v42 = vrot.slane %v8540_v59, %v13138_v10  ;;  %v10293_v10 = vld [vmem:[#allocation2 + $0x80] ss:$0 sps:$4 sm:$0x33]  }
 0x4f2   : > { %8710 = vmatpush1.bf16.xpose.msra.mxu0 %v8289_v4  ;;  %v7803_v16 = vpop.permute.xlu0 %7802  ;;  %v7933_v47 = vsel %vm3400_vm8, %v14620_v21, %v7325_v33  ;;  %v6964_v33 = vld [vmem:[#allocation2 + $0x78] sm:$0xc]  ;;  %v6971_v4 = vld [vmem:[#allocation2 + $0xcc] sm:$0xc]  ;;  %v7873_v5 = vrot.slane %v10293_v10, 2 }
 0x4f3   : > { %v9479_v30 = vcombine.low %v6964_v33, %v10292_v55 }
 0x4f4   : > { %v14010_v41 = vpop.permute.xlu1 %8256 }
 0x4f5   : > { %v8483_v24 = vsel %vm3465_vm9, %v8200_v27, %v14010_v41  ;;  %v7872_v27 = vrot.slane %v9479_v30, 2 }
 0x4f6   : > { %8684 = vmatprep.subr.bf16.mxu1 %v8483_v24  ;;  %v7321_v37 = vpop.permute.xlu0 %7320  ;;  %v9486_v24 = vcombine.low %v6971_v4, %v10294_v58 }
 0x4f8   : > { %8685 = vmatpush2.bf16.xpose.msra.mxu1 %v8419_v31  ;;  %v7453_v29 = vpop.permute.xlu1 %7452  ;;  %v7893_v8 = vrot.slane %v9486_v24, 2  ;;  %v7894_v31 = vrot.slane %v10296_v57, 2  ;;  %v10302_v57 = vld [vmem:[#allocation2 + $0x5c] ss:$0 sps:$4 sm:$0x33]  }
 0x4f9   : > { %v7965_v48 = vsel %vm1391_vm7, %v7933_v47, %v7453_v29  ;;  %9679 = vmatprep.subr.msk.bf16.mxu1 %vm3400_vm8, %v7901_v43  ;;  %v7874_v43 = vsel %vm3351_vm12, %v7872_v27, %v7873_v5 }
 0x4fa   : > { %v8012_v54 = vsel %vm3465_vm9, %v7965_v48, %v7805_v53  ;;  %v7801_v7 = vpop.permute.xlu0 %7800  ;;  %v7931_v53 = vsel %vm3400_vm8, %v14621_v11, %v7323_v14  ;;  %v8584_v1 = vsel %vm3400_vm8, %v7874_v43, 0  ;;  %v7895_v33 = vsel %vm3351_vm12, %v7893_v8, %v7894_v31  ;;  %v6968_v43 = vld [vmem:[#allocation2 + $0xa8] sm:$0xc] }
 0x4fb   : > { %8711 = vmatprep.subr.bf16.mxu0 %v8012_v54  ;;  %v10297_v54 = vld [vmem:[#allocation2 + $0x74] ss:$0 sps:$4 sm:$0x33]   ;;  %v7864_v31 = vrot.slane %v10302_v57, 2 }
 0x4fc   : > { %v8287_v15 = vpop.permute.xlu1 %8286  ;;  %v7870_v32 = vrot.slane %v10297_v54, 2 }
 0x4fd   : > { %v8304_v18 = vsel %vm3465_vm9, %v13625_v23, %v8287_v15  ;;  %v6963_v23 = vld [vmem:[#allocation2 + $0x6c] sm:$0xc] }
 0x4fe   : > { %8712 = vmatpush2.bf16.xpose.msra.mxu0 %v8304_v18  ;;  %v7319_v3 = vpop.permute.xlu0 %7318  ;;  %v9478_v21 = vcombine.low %v6963_v23, %v10295_v62  ;;  %v10299_v18 = vld [vmem:[#allocation2 + $0x64] sm:$0xf] }
 0x4ff   : > { %8687 = vmatmul.mubr.bf16.vlgmr.msra.gmra.mxu1 %v13620_v63 }
 0x500   : > { %9582 = vmatpush3.bf16.xpose.msra.mxu1 %v8587_v61  ;;  %v7451_v35 = vpop.permute.xlu1 %7450  ;;  %9597 = vmatprep.mubr.msk.bf16.mxu1 %vm3400_vm8, %v14027_v42  ;;  %v7869_v59 = vrot.slane %v9478_v21, 2  ;;  %v10301_v21 = vld [vmem:[#allocation2 + $0x58] sm:$0xf] }
 0x501   : > { %v7963_v14 = vsel %vm1391_vm7, %v7931_v53, %v7451_v35  ;;  %9680 = vmatprep.subr.msk.bf16.mxu1 %vm3400_vm8, %v7898_v50  ;;  %v6969_v50 = vld [vmem:[#allocation2 + $0xb4] sm:$0xc]  ;;  %v10300_v35 = vld [vmem:[#allocation2 + $0x68] ss:$0 sps:$4 sm:$0x33]  }
 0x502   : > { %v8009_v25 = vsel %vm3465_vm9, %v7963_v14, %v7803_v16  ;;  %v7799_v63 = vpop.permute.xlu0 %7798  ;;  %v7929_v16 = vsel %vm3400_vm8, %v13531_v36, %v7321_v37  ;;  %v7871_v30 = vsel %vm3351_vm12, %v7869_v59, %v7870_v32  ;;  %v7890_v36 = vrot.slane %v9485_v19, 2  ;;  %v10303_v32 = vld [vmem:[#allocation2 + $0x4c] sm:$0xf] }
 0x503   : > { %8713 = vmatprep.subr.bf16.mxu0 %v8009_v25  ;;  %v7891_v37 = vrot.slane %v13631_v6, 2  ;;  %v8581_v61 = vsel %vm3400_vm8, %v7871_v30, 0  ;;  %v7867_v27 = vrot.slane %v10300_v35, 2  ;;  %v9484_v58 = vcombine.low %v6969_v50, %v13637_v46  ;;  %v6966_v35 = vld [vmem:[#allocation2 + $0x90] sm:$0xc] }
 0x504   : > { %v8283_v47 = vpop.permute.xlu1 %8282 }
 0x505   : > { %v8303_v29 = vsel %vm3465_vm9, %v13936_v38, %v8283_v47  ;;  %v6962_v38 = vld [vmem:[#allocation2 + $0x60] sm:$0xc]  ;;  %v7892_v5 = vsel %vm3351_vm12, %v7890_v36, %v7891_v37  ;;  %v10304_v36 = vld [vmem:[#allocation2 + $0x50] ss:$0 sps:$4 sm:$0x33]  }
 0x506   : > { %8714 = vmatpush2.bf16.xpose.msra.mxu0 %v8303_v29  ;;  %v7317_v20 = vpop.permute.xlu0 %7316  ;;  %v9477_v4 = vcombine.low %v6962_v38, %v10299_v18  ;;  %v7861_v37 = vrot.slane %v10304_v36, 2  ;;  %v6959_v18 = vld [vmem:[#allocation2 + $0x3c] sm:$0xc] }
 0x508   : > { %9584 = vmatpush3.bf16.xpose.msra.mxu1 %v8584_v1  ;;  %v7449_v48 = vpop.permute.xlu1 %7448  ;;  %v7866_v6 = vrot.slane %v9477_v4, 2 }
 0x509   : > { %v7961_v15 = vsel %vm1391_vm7, %v7929_v16, %v7449_v48  ;;  %9681 = vmatprep.subr.msk.bf16.mxu1 %vm3400_vm8, %v7895_v33 }
 0x50a   : > { %v8006_v26 = vsel %vm3465_vm9, %v7961_v15, %v7801_v7  ;;  %v7797_v11 = vpop.permute.xlu0 %7796  ;;  %v7927_v7 = vsel %vm3400_vm8, %v13571_v34, %v7319_v3  ;;  %v7868_v62 = vsel %vm3351_vm12, %v7866_v6, %v7867_v27  ;;  %v7887_v34 = vrot.slane %v9484_v58, 2  ;;  %v10306_v6 = vld [vmem:[#allocation2 + $0x44] ss:$0 sps:$4 sm:$0x33]  }
 0x50b   : > { %8715 = vmatprep.subr.bf16.mxu0 %v8006_v26  ;;  %v7888_v3 = vrot.slane %v13685_v9, 2  ;;  %v8578_v8 = vsel %vm3400_vm8, %v7868_v62, 0  ;;  %v9483_v9 = vcombine.low %v6968_v43, %v13666_v49  ;;  %v7858_v58 = vrot.slane %v10306_v6, 2 }
 0x50c   : > { %v8279_v55 = vpop.permute.xlu1 %8278 }
 0x50d   : > { %v8302_v53 = vsel %vm3465_vm9, %v13901_v44, %v8279_v55  ;;  %v6961_v44 = vld [vmem:[#allocation2 + $0x54] sm:$0xc]  ;;  %v7889_v13 = vsel %vm3351_vm12, %v7887_v34, %v7888_v3  ;;  %v7879_v34 = vrot.slane %v13813_v40, 2 }
 0x50e   : > { %8716 = vmatpush2.bf16.xpose.msra.mxu0 %v8302_v53  ;;  %v7315_v14 = vpop.permute.xlu0 %7314  ;;  %v9476_v47 = vcombine.low %v6961_v44, %v10301_v21  ;;  %v10305_v53 = vld [vmem:[#allocation2 + $0x40] sm:$0xf]  ;;  %v10307_v3 = vld [vmem:[#allocation2 + $0x34] sm:$0xf] }
 0x50f   : > { %v7923_v38 = vsel %vm3400_vm8, %v13693_v12, %v7315_v14  ;;  %v9474_v12 = vcombine.low %v6959_v18, %v10305_v53 }
 0x510   : > { %9586 = vmatpush3.bf16.xpose.msra.mxu1 %v8581_v61  ;;  %v7447_v10 = vpop.permute.xlu1 %7446  ;;  %v7863_v1 = vrot.slane %v9476_v47, 2 }
 0x511   : > { %v7959_v24 = vsel %vm1391_vm7, %v7927_v7, %v7447_v10  ;;  %9682 = vmatprep.subr.msk.bf16.mxu1 %vm3400_vm8, %v7892_v5  ;;  %v7857_v5 = vrot.slane %v9474_v12, 2 }
 0x512   : > { %v8003_v23 = vsel %vm3465_vm9, %v7959_v24, %v7799_v63  ;;  %v7925_v63 = vsel %vm3400_vm8, %v13656_v39, %v7317_v20  ;;  %v7795_v59 = vpop.permute.xlu0 %7794  ;;  %v7865_v54 = vsel %vm3351_vm12, %v7863_v1, %v7864_v31  ;;  %v7884_v39 = vrot.slane %v9483_v9, 2  ;;  %v10308_v31 = vld [vmem:[#allocation2 + $0x38] ss:$0 sps:$4 sm:$0x33]  }
 0x513   : > { %8717 = vmatprep.subr.bf16.mxu0 %v8003_v23  ;;  %v7885_v20 = vrot.slane %v13724_v60, 2  ;;  %v8575_v15 = vsel %vm3400_vm8, %v7865_v54, 0  ;;  %v9481_v24 = vcombine.low %v6966_v35, %v13780_v56 }
 0x514   : > { %v8275_v25 = vpop.permute.xlu1 %8274 }
 0x515   : > { %v8301_v46 = vsel %vm3465_vm9, %v13837_v45, %v8275_v25  ;;  %v6960_v45 = vld [vmem:[#allocation2 + $0x48] sm:$0xc]  ;;  %v7886_v55 = vsel %vm3351_vm12, %v7884_v39, %v7885_v20  ;;  %v7878_v62 = vrot.slane %v9481_v24, 2 }
 0x516   : > { %8718 = vmatpush2.bf16.xpose.msra.mxu0 %v8301_v46  ;;  %v9475_v0 = vcombine.low %v6960_v45, %v10303_v32  ;;  %v7313_v19 = vpop.permute.xlu0 %7312 }
 0x517   : > { %v7921_v7 = vsel %vm3400_vm8, %v13754_v51, %v7313_v19  ;;  %v7859_v51 = vsel %vm3351_vm12, %v7857_v5, %v7858_v58 }
 0x518   : > { %9588 = vmatpush3.bf16.xpose.msra.mxu1 %v8578_v8  ;;  %v7445_v29 = vpop.permute.xlu1 %7444  ;;  %v7860_v30 = vrot.slane %v9475_v0, 2  ;;  %v8569_v47 = vsel %vm3400_vm8, %v7859_v51, 0  ;;  %v7880_v8 = vsel %vm3351_vm12, %v7878_v62, %v7879_v34 }
 0x519   : > { %v7957_v16 = vsel %vm1391_vm7, %v7925_v63, %v7445_v29  ;;  %9683 = vmatprep.subr.msk.bf16.mxu1 %vm3400_vm8, %v7889_v13  ;;  %v7855_v63 = vrot.slane %v10308_v31, 2 }
 0x51a   : > { %v8000_v48 = vsel %vm3465_vm9, %v7957_v16, %v7797_v11  ;;  %v7862_v11 = vsel %vm3351_vm12, %v7860_v30, %v7861_v37  ;;  %v7793_v50 = vpop.permute.xlu0 %7792 }
 0x51b   : > { %8719 = vmatprep.subr.bf16.mxu0 %v8000_v48  ;;  %v8572_v27 = vsel %vm3400_vm8, %v7862_v11, 0 }
 0x51c   : > { %v8271_v33 = vpop.permute.xlu1 %8270 }
 0x51d   : > { %v8300_v49 = vsel %vm3465_vm9, %v13928_v52, %v8271_v33 }
 0x51e   : > { %8720 = vmatpush2.bf16.xpose.msra.mxu0 %v8300_v49  ;;  %v7311_v14 = vpop.permute.xlu0 %7310 }
 0x520   : > { %9590 = vmatpush3.bf16.xpose.msra.mxu1 %v8575_v15  ;;  %v7443_v26 = vpop.permute.xlu1 %7442 }
 0x521   : > { %v7955_v60 = vsel %vm1391_vm7, %v7923_v38, %v7443_v26  ;;  %9684 = vmatprep.subr.msk.bf16.mxu1 %vm3400_vm8, %v7886_v55 }
 0x522   : > { %v7997_v52 = vsel %vm3465_vm9, %v7955_v60, %v7795_v59  ;;  %v7791_v29 = vpop.permute.xlu0 %7790 }
 0x523   : > { %8721 = vmatprep.subr.bf16.mxu0 %v7997_v52 }
 0x524   : > { %v8267_v4 = vpop.permute.xlu1 %8266 }
 0x525   : > { %v8299_v61 = vsel %vm3465_vm9, %v13968_v17, %v8267_v4  ;;  %v6958_v17 = vld [vmem:[#allocation2 + $0x30] sm:$0xc] }
 0x526   : > { %8722 = vmatpush2.bf16.xpose.msra.mxu0 %v8299_v61  ;;  %v9473_v21 = vcombine.low %v6958_v17, %v10307_v3 }
 0x528   : > { %9592 = vmatpush3.bf16.xpose.msra.mxu1 %v8572_v27  ;;  %v7441_v10 = vpop.permute.xlu1 %7440  ;;  %v7854_v57 = vrot.slane %v9473_v21, 2 }
 0x529   : > { %v7953_v44 = vsel %vm1391_vm7, %v7921_v7, %v7441_v10  ;;  %9685 = vmatprep.subr.msk.bf16.mxu1 %vm3400_vm8, %v13708_v28  ;;  %v14622_v28 = vld [vmem:[#allocation65_spill] sm:$0xff] }
 0x52a   : > { %v7994_v23 = vsel %vm3465_vm9, %v7953_v44, %v7793_v50  ;;  %v7919_v46 = vsel %vm3400_vm8, %v14622_v28, %v7311_v14  ;;  %v7856_v1 = vsel %vm3351_vm12, %v7854_v57, %v7855_v63 }
 0x52b   : > { %8723 = vmatprep.subr.bf16.mxu0 %v7994_v23  ;;  %v8566_v59 = vsel %vm3400_vm8, %v7856_v1, 0 }
 0x52c   : > { %v8263_v25 = vpop.permute.xlu1 %8262 }
 0x52d   : > { %v8298_v56 = vsel %vm3465_vm9, %v13991_v2, %v8263_v25 }
 0x52e   : > { %8724 = vmatpush2.bf16.xpose.msra.mxu0 %v8298_v56 }
 0x52f   : > { %v8519_v0 = vpop.permute.xlu0 %8518 }
 0x530   : > { %9594 = vmatpush3.bf16.xpose.msra.mxu1 %v8569_v47  ;;  %v7439_v43 = vpop.permute.xlu1 %7438 }
 0x531   : > { %v7951_v40 = vsel %vm1391_vm7, %v7919_v46, %v7439_v43  ;;  %9686 = vmatprep.subr.msk.bf16.mxu1 %vm3400_vm8, %v7880_v8 }
 0x532   : > { %v7991_v2 = vsel %vm3465_vm9, %v7951_v40, %v7791_v29 }
 0x533   : > { %8725 = vmatprep.subr.bf16.mxu0 %v7991_v2 }
 0x534   : > { %v8259_v13 = vpop.permute.xlu1 %8258 }
 0x535   : > { %v8297_v9 = vsel %vm3465_vm9, %v14010_v41, %v8259_v13 }
 0x536   : > { %8726 = vmatpush2.bf16.xpose.msra.mxu0 %v8297_v9 }
 0x538   : > { %9596 = vmatpush3.bf16.xpose.msra.mxu1 %v8566_v59 }
 0x53d   : > { %8728 = vmatmul.mubr.bf16.vlgmr.msra.gmra.mxu0 %v13913_v22 }
 0x53f   : > { %9598 = vmatmul.mubr.msk.bf16.vlgmr.msra.gmra.mxu1 %vm3400_vm8, %v14027_v42  ;;  %v8647_v16 = vpop.f32.mrf.mxu1 }
 0x540   : > { %v8648_v49 = vadd.f32 %v8647_v16, %v8519_v0 }
 0x541   : > { %v8649_v45 = vpop.f32.mrf.mxu1 }
 0x542   : > { %v8650_v41 = vadd.f32 %v8649_v45, %v8519_v0 }
 0x543   : > { %v8651_v48 = vpop.f32.mrf.mxu1 }
 0x545   : > { %v8652_v33 = vpop.f32.mrf.mxu1 }
 0x5bf   : > { %v8688_v54 = vpop.f32.mrf.mxu1 }
 0x5c0   : > { %v8689_v19 = vadd.f32 %v8688_v54, %v8648_v49 }
 0x5c1   : > { %v8690_v39 = vpop.f32.mrf.mxu1 }
 0x5c2   : > { %v8691_v38 = vadd.f32 %v8690_v39, %v8650_v41 }
 0x5c3   : > { %v8692_v20 = vpop.f32.mrf.mxu1 }
 0x5c5   : > { %v8693_v32 = vpop.f32.mrf.mxu1 }
 0x5fd   : > { %v8729_v15 = vpop.f32.mrf.mxu0 }
 0x5fe   : > { %v8730_v26 = vadd.f32 %v8729_v15, %v8689_v19 }
 0x5ff   : > { %v8731_v22 = vpop.f32.mrf.mxu0  ;;  %v8770_v55 = vpop.f32.mrf.mxu1 }
 0x600   : > { %v8732_v30 = vadd.f32 %v8731_v22, %v8691_v38  ;;  %v8771_v42 = vadd.f32 %v8770_v55, %v8730_v26 }
 0x601   : > { %v8772_v36 = vpop.f32.mrf.mxu1  ;;  %v8733_v37 = vpop.f32.mrf.mxu0 }
 0x602   : > { %v8777_v60 = vmax.f32 %v8771_v42, 0.0  ;;  %v8773_v18 = vadd.f32 %v8772_v36, %v8732_v30 }
 0x603   : > { %v8734_v52 = vpop.f32.mrf.mxu0  ;;  %v8774_v4 = vpop.f32.mrf.mxu1 }
 0x604   : > { %v8779_v11 = vmax.f32 %v8777_v60, 1e-12  ;;  %v8778_v53 = vmax.f32 %v8773_v18, 0.0 }
 0x605   : > { %v8775_v12 = vpop.f32.mrf.mxu1 }
 0x606   : > { %v8780_v50 = vmax.f32 %v8778_v53, 1e-12  ;;  %v8781_v61 = vmin.f32 %v8779_v11, 1.0 }
 0x608   : > { %v8782_v35 = vmin.f32 %v8780_v50, 1.0 }
 0x60a   : > { %v8785_v27 = vcombine.low %v8781_v61, %v8782_v35 }
 0x60c   : > { %8787 = vst [vmem:[%s278_s9] sm:$0x77] %v8785_v27 }
 0x60d PF: > { %s17_s24 = sadd.s32 1, %s10315_s24  }
 0x60e   : > { %p14_p4 = scmp.ge.s32.totalorder %s17_s24, 4  }
 0x610   :  { %16 = sbr.rel (!%p14_p4) target bundleno = 1 (0x1), region = 82 }

</bundles_post_ra>
